<compile_context>
chip_gen: v7x
topology: tpu7x:2x2x1
jax: 0.10.0
libtpu: 0.0.40
codegen_flags: <defaults>
</compile_context>

<pallas_src>
import numpy as np
import jax
import jax.numpy as jnp
from jax.experimental import pallas as pl
from jax.experimental.pallas import tpu as pltpu


def _round_up(x, m):
    return ((x + m - 1) // m) * m


# ----------------------------------------------------------------------------
# Pallas kernel: full RNNGraphConvModule forward (GRU cell, cat_all=True)
# ----------------------------------------------------------------------------
def rnn_gconv_kernel(hxT_ref, gt_ref, at_ref, invdeg_ref, efT_ref,
                     fw1T_ref, fb1T_ref, fw2T_ref, fb2T_ref,
                     rexp_ref, sfold_ref,
                     wih_ref, whh_ref, bih_ref, bhh_ref,
                     out_ref, wflat_ref):
    nc = hxT_ref.shape[0]
    f32 = jnp.float32

    # ---- filter-generating network (runs once; weights shared over repeats) --
    # feature-major:  wflatT[c*nc + d, e] = W_e[c, d]
    h1 = jnp.maximum(
        jnp.dot(fw1T_ref[...], efT_ref[...], preferred_element_type=f32)
        + fb1T_ref[...], 0.0)                                          # [fh, Epad]
    wflat_ref[...] = (
        jnp.dot(fw2T_ref[...], h1, preferred_element_type=f32) + fb2T_ref[...])

    def graph_conv(hT):
        # gather source-node features: exact 0/1 matmul on the MXU
        hsrcT = jnp.dot(hT, gt_ref[...], preferred_element_type=f32)     # [nc, Epad]
        # channel-expand (R), per-edge elementwise product, channel-fold (S)
        repT = jnp.dot(rexp_ref[...], hsrcT,
                       preferred_element_type=f32)                       # [nc*nc, Epad]
        msgT = jnp.dot(sfold_ref[...], repT * wflat_ref[...],
                       preferred_element_type=f32)                       # [nc, Epad]
        # exact 0/1 scatter-sum; mean as f32 VPU multiply (0 for deg-0 nodes)
        sumT = jnp.dot(msgT, at_ref[...], preferred_element_type=f32)    # [nc, Npad]
        return sumT * invdeg_ref[...]

    def gru_cell(xT, hT):
        gi = jnp.dot(wih_ref[...], xT, preferred_element_type=f32) + bih_ref[...]
        gh = jnp.dot(whh_ref[...], hT, preferred_element_type=f32) + bhh_ref[...]
        # gate splits are 16-row sublane slices (8-aligned): no lane relayouts
        r = jax.nn.sigmoid(gi[0:nc] + gh[0:nc])
        z = jax.nn.sigmoid(gi[nc:2 * nc] + gh[nc:2 * nc])
        n = jnp.tanh(gi[2 * nc:3 * nc] + r * gh[2 * nc:3 * nc])
        return (1.0 - z) * n + z * hT

    def emit(k, hT):
        # immediate writeback: lane-dense, sublane-aligned full-width store
        out_ref[k * nc:(k + 1) * nc, :] = hT

    # ---- unrolled recurrence with skip connections (as in the PyTorch code) --
    hx = hxT_ref[...]
    emit(0, hx)
    hx1 = gru_cell(graph_conv(hx), hx);        emit(1, hx1)
    hx2 = gru_cell(graph_conv(hx1), hx1);      emit(2, hx2)
    hx3 = gru_cell(graph_conv(hx2), hx2)
    skip1 = hx1 + hx3;                         emit(3, skip1)
    hx4 = gru_cell(graph_conv(skip1), skip1);  emit(4, hx4)
    hx5 = gru_cell(graph_conv(hx4), hx4)
    skip2 = hx3 + hx5;                         emit(5, skip2)
    hx6 = gru_cell(graph_conv(skip2), skip2);  emit(6, hx6)
    hx7 = gru_cell(graph_conv(hx6), hx6)
    skip3 = hx5 + hx7;                         emit(7, skip3)
    hx8 = gru_cell(graph_conv(skip3), skip3);  emit(8, hx8)
    hx9 = gru_cell(graph_conv(hx8), hx8)
    skip4 = hx7 + hx9;                         emit(9, skip4)
    hx10 = gru_cell(graph_conv(skip4), skip4); emit(10, hx10)


# ----------------------------------------------------------------------------
# Wrapper: host-side layout plumbing (pad / transpose / build 0/1 operators)
# ----------------------------------------------------------------------------
def rnn_graph_conv_forward(hx, idxn, edge_dst, degs, edgefeats, params,
                           cat_all=True):
    """Forward of RNNGraphConvModule (GRU cell, 10 unrolled repeats).

    hx        : [N, nc]  f32 node hidden states
    idxn      : [E]      int  source-node index per edge
    edge_dst  : [E]      int  destination-node index per edge
    degs      : [N]      int  in-degree per node
    edgefeats : [E, fe]  f32 edge features (input of the filter-generating net)
    """
    if not cat_all:
        return hx

    N, nc = hx.shape
    E, fe = edgefeats.shape
    fh = params["fw1"].shape[1]
    nc2 = nc * nc

    Npad = _round_up(max(N, 128), 128)   # node axis -> 128-lane dense
    Epad = _round_up(max(E, 128), 128)   # edge axis -> tile aligned
    fepad = _round_up(fe, 8)

    idxn = np.asarray(idxn, np.int64)
    edge_dst = np.asarray(edge_dst, np.int64)
    degs = np.asarray(degs, np.int64)

    # ---- transposed / padded operands -------------------------------------
    hxT = np.zeros((nc, Npad), np.float32)
    hxT[:, :N] = np.asarray(hx).T

    Gt = np.zeros((Npad, Epad), np.float32)            # Gt[src(e), e] = 1 (exact)
    Gt[idxn, np.arange(E)] = 1.0
    At = np.zeros((Epad, Npad), np.float32)            # At[e, dst(e)] = 1 (exact)
    At[np.arange(E), edge_dst] = 1.0

    inv = np.zeros((Npad,), np.float32)
    inv[:N] = np.where(degs > 0, 1.0 / np.maximum(degs, 1), 0.0).astype(np.float32)
    inv_deg = np.ascontiguousarray(
        np.broadcast_to(inv[None, :], (nc, Npad)), dtype=np.float32)

    efT = np.zeros((fepad, Epad), np.float32)
    efT[:fe, :E] = np.asarray(edgefeats).T

    fw1T = np.zeros((fh, fepad), np.float32)
    fw1T[:, :fe] = np.asarray(params["fw1"]).T
    fb1T = np.ascontiguousarray(np.broadcast_to(
        np.asarray(params["fb1"], np.float32).reshape(fh, 1), (fh, Epad)))
    fw2T = np.ascontiguousarray(np.asarray(params["fw2"], np.float32).T)   # [nc2, fh]
    fb2T = np.ascontiguousarray(np.broadcast_to(
        np.asarray(params["fb2"], np.float32).reshape(nc2, 1), (nc2, Epad)))

    # exact 0/1 channel expand / fold operators for the per-edge nc x nc matmul
    R = np.zeros((nc2, nc), np.float32)
    R[np.arange(nc2), np.arange(nc2) // nc] = 1.0      # repT[c*nc+d, e] = hsrcT[c, e]
    S = np.zeros((nc, nc2), np.float32)
    S[np.arange(nc2) % nc, np.arange(nc2)] = 1.0       # msgT[d] = sum_c prodT[c*nc+d]

    wih = np.asarray(params["wih"], np.float32)        # [3nc, nc] (PyTorch layout)
    whh = np.asarray(params["whh"], np.float32)
    bih = np.ascontiguousarray(np.broadcast_to(
        np.asarray(params["bih"], np.float32).reshape(3 * nc, 1), (3 * nc, Npad)))
    bhh = np.ascontiguousarray(np.broadcast_to(
        np.asarray(params["bhh"], np.float32).reshape(3 * nc, 1), (3 * nc, Npad)))

    args = tuple(jnp.asarray(a) for a in
                 (hxT, Gt, At, inv_deg, efT, fw1T, fb1T, fw2T, fb2T, R, S,
                  wih, whh, bih, bhh))

    outT = pl.pallas_call(
        rnn_gconv_kernel,
        out_shape=jax.ShapeDtypeStruct((11 * nc, Npad), jnp.float32),
        in_specs=[pl.BlockSpec(memory_space=pltpu.MemorySpace.VMEM)] * len(args),
        out_specs=pl.BlockSpec(memory_space=pltpu.MemorySpace.VMEM),
        scratch_shapes=[pltpu.VMEM((nc2, Epad), jnp.float32)],
    )(*args)

    # [11*nc, Npad] -> [N, 11*nc] == torch.cat(hxs, dim=1)
    return outT[:, :N].T


# ----------------------------------------------------------------------------
# Pure-JAX reference (index gather / segment-mean), for a sanity check.
# ----------------------------------------------------------------------------
def reference_forward(hx, idxn, edge_dst, degs, edgefeats, params):
    N, nc = hx.shape
    h1 = jnp.maximum(edgefeats @ params["fw1"] + params["fb1"], 0.0)
    wflat = h1 @ params["fw2"] + params["fb2"]
    W = wflat.reshape(-1, nc, nc)
    degs_f = degs.astype(jnp.float32)

    def gc(h):
        hsrc = h[idxn]                                     # [E, nc]
        msg = jnp.einsum("ec,ecd->ed", hsrc, W)            # per-edge matmul
        summed = jnp.zeros((N, nc), jnp.float32).at[edge_dst].add(msg)
        out = summed / jnp.maximum(degs_f, 1.0)[:, None]
        return jnp.where((degs_f > 0)[:, None], out, 0.0)

    def gru(x, h):
        gi = x @ params["wih"].T + params["bih"]
        gh = h @ params["whh"].T + params["bhh"]
        i_r, i_z, i_n = gi[:, 0:nc], gi[:, nc:2 * nc], gi[:, 2 * nc:3 * nc]
        h_r, h_z, h_n = gh[:, 0:nc], gh[:, nc:2 * nc], gh[:, 2 * nc:3 * nc]
        r = jax.nn.sigmoid(i_r + h_r)
        z = jax.nn.sigmoid(i_z + h_z)
        n = jnp.tanh(i_n + r * h_n)
        return (1.0 - z) * n + z * h

    hx1 = gru(gc(hx), hx)
    hx2 = gru(gc(hx1), hx1)
    hx3 = gru(gc(hx2), hx2)
    s1 = hx1 + hx3
    hx4 = gru(gc(s1), s1)
    hx5 = gru(gc(hx4), hx4)
    s2 = hx3 + hx5
    hx6 = gru(gc(s2), s2)
    hx7 = gru(gc(hx6), hx6)
    s3 = hx5 + hx7
    hx8 = gru(gc(s3), s3)
    hx9 = gru(gc(hx8), hx8)
    s4 = hx7 + hx9
    hx10 = gru(gc(s4), s4)
    return jnp.concatenate(
        [hx, hx1, hx2, s1, hx4, s2, hx6, s3, hx8, s4, hx10], axis=1)


# ----------------------------------------------------------------------------
if __name__ == "__main__":
    N, nc = 64, 16          # nodes, channels (GRU hidden size == nc)
    fe, fh = 6, 32          # edge-feature dim, filter-net hidden dim

    # deterministic topology: node i has (i % 5) incoming edges  ->  E = 126
    degs_np = np.array([i % 5 for i in range(N)], dtype=np.int32)
    E = int(degs_np.sum())
    edge_dst_np = np.repeat(np.arange(N, dtype=np.int32), degs_np)

    key = jax.random.PRNGKey(0)
    ks = jax.random.split(key, 9)

    idxn_np = np.asarray(
        jax.random.randint(ks[0], (E,), 0, N, dtype=jnp.int32))   # edge sources
    hx = jax.random.normal(ks[1], (N, nc), jnp.float32)
    edgefeats = jax.random.normal(ks[2], (E, fe), jnp.float32)

    params = {
        # filter-generating net: Linear(fe->fh), ReLU, Linear(fh->nc*nc)
        "fw1": 0.3 * jax.random.normal(ks[3], (fe, fh), jnp.float32),
        "fb1": 0.1 * jax.random.normal(ks[4], (fh,), jnp.float32),
        "fw2": 0.05 * jax.random.normal(ks[5], (fh, nc * nc), jnp.float32),
        "fb2": jnp.zeros((nc * nc,), jnp.float32),
        # GRU cell, PyTorch layout (weight_ih/weight_hh: [3*nc, nc])
        "wih": (1.0 / np.sqrt(nc)) * jax.random.normal(ks[6], (3 * nc, nc), jnp.float32),
        "whh": (1.0 / np.sqrt(nc)) * jax.random.normal(ks[7], (3 * nc, nc), jnp.float32),
        "bih": 0.1 * jax.random.normal(ks[8], (3 * nc,), jnp.float32),
        "bhh": jnp.zeros((3 * nc,), jnp.float32),
    }

    out = rnn_graph_conv_forward(hx, idxn_np, edge_dst_np, degs_np,
                                 edgefeats, params, cat_all=True)
    out = jax.block_until_ready(out)

    ref = reference_forward(hx, jnp.asarray(idxn_np), jnp.asarray(edge_dst_np),
                            jnp.asarray(degs_np), edgefeats, params)
    ref = jax.block_until_ready(ref)

    assert out.shape == (N, 11 * nc)
    assert bool(jnp.all(jnp.isfinite(out)))
    # structural matrices (gather/scatter/fold) are exact 0/1 and the 1/deg
    # mean is an f32 VPU multiply, so kernel vs. reference agree tightly.
    err = float(jnp.max(jnp.abs(out - ref)))
    assert err < 5e-3, f"max abs error {err}"

    print("KERNEL_OK")
</pallas_src>

<mosaic_0001>
module attributes {stable_mosaic.version = 11 : i64} {
  func.func @rnn_gconv_kernel(%arg0: memref<16x128xf32, #tpu.memory_space<vmem>>, %arg1: memref<128x128xf32, #tpu.memory_space<vmem>>, %arg2: memref<128x128xf32, #tpu.memory_space<vmem>>, %arg3: memref<16x128xf32, #tpu.memory_space<vmem>>, %arg4: memref<8x128xf32, #tpu.memory_space<vmem>>, %arg5: memref<32x8xf32, #tpu.memory_space<vmem>>, %arg6: memref<32x128xf32, #tpu.memory_space<vmem>>, %arg7: memref<256x32xf32, #tpu.memory_space<vmem>>, %arg8: memref<256x128xf32, #tpu.memory_space<vmem>>, %arg9: memref<256x16xf32, #tpu.memory_space<vmem>>, %arg10: memref<16x256xf32, #tpu.memory_space<vmem>>, %arg11: memref<48x16xf32, #tpu.memory_space<vmem>>, %arg12: memref<48x16xf32, #tpu.memory_space<vmem>>, %arg13: memref<48x128xf32, #tpu.memory_space<vmem>>, %arg14: memref<48x128xf32, #tpu.memory_space<vmem>>, %arg15: memref<176x128xf32, #tpu.memory_space<vmem>>, %arg16: memref<256x128xf32, #tpu.memory_space<vmem>>) attributes {dimension_semantics = [], scalar_prefetch = 0 : i64, scratch_operands = 1 : i64, tpu.core_type = #tpu.core_type<tc>} {
    %c0 = arith.constant 0 : index
    %c0_0 = arith.constant 0 : index
    %0 = vector.load %arg5[%c0, %c0_0] : memref<32x8xf32, #tpu.memory_space<vmem>>, vector<32x8xf32>
    %c0_1 = arith.constant 0 : index
    %c0_2 = arith.constant 0 : index
    %1 = vector.load %arg4[%c0_1, %c0_2] : memref<8x128xf32, #tpu.memory_space<vmem>>, vector<8x128xf32>
    %cst = arith.constant dense<0.000000e+00> : vector<32x128xf32>
    %2 = tpu.matmul %0, %1, %cst {dimension_numbers = #tpu.dot_dimension_numbers<[1], [0], [0], [1], [0, 0, 1, 1], [], []>} : vector<32x8xf32>, vector<8x128xf32>, vector<32x128xf32> -> vector<32x128xf32>
    %c0_3 = arith.constant 0 : index
    %c0_4 = arith.constant 0 : index
    %3 = vector.load %arg6[%c0_3, %c0_4] : memref<32x128xf32, #tpu.memory_space<vmem>>, vector<32x128xf32>
    %4 = arith.addf %2, %3 : vector<32x128xf32>
    %cst_5 = arith.constant 0.000000e+00 : f32
    %5 = vector.broadcast %cst_5 : f32 to vector<32x128xf32>
    %6 = arith.maximumf %4, %5 : vector<32x128xf32>
    %c0_6 = arith.constant 0 : index
    %c0_7 = arith.constant 0 : index
    %7 = vector.load %arg7[%c0_6, %c0_7] : memref<256x32xf32, #tpu.memory_space<vmem>>, vector<256x32xf32>
    %cst_8 = arith.constant dense<0.000000e+00> : vector<256x128xf32>
    %8 = tpu.matmul %7, %6, %cst_8 {dimension_numbers = #tpu.dot_dimension_numbers<[1], [0], [0], [1], [0, 0, 1, 1], [], []>} : vector<256x32xf32>, vector<32x128xf32>, vector<256x128xf32> -> vector<256x128xf32>
    %c0_9 = arith.constant 0 : index
    %c0_10 = arith.constant 0 : index
    %9 = vector.load %arg8[%c0_9, %c0_10] : memref<256x128xf32, #tpu.memory_space<vmem>>, vector<256x128xf32>
    %10 = arith.addf %8, %9 : vector<256x128xf32>
    %c0_11 = arith.constant 0 : index
    %c0_12 = arith.constant 0 : index
    %11 = vector.load %arg16[%c0_11, %c0_12] : memref<256x128xf32, #tpu.memory_space<vmem>>, vector<256x128xf32>
    tpu.vector_store %arg16[%c0_11, %c0_12], %10 {strides = array<i32>} : memref<256x128xf32, #tpu.memory_space<vmem>>, vector<256x128xf32>,
    %c0_13 = arith.constant 0 : index
    %c0_14 = arith.constant 0 : index
    %12 = vector.load %arg0[%c0_13, %c0_14] : memref<16x128xf32, #tpu.memory_space<vmem>>, vector<16x128xf32>
    %c0_15 = arith.constant 0 : index
    %c0_16 = arith.constant 0 : index
    %13 = vector.load %arg15[%c0_15, %c0_16] : memref<176x128xf32, #tpu.memory_space<vmem>>, vector<16x128xf32>
    tpu.vector_store %arg15[%c0_15, %c0_16], %12 {strides = array<i32>} : memref<176x128xf32, #tpu.memory_space<vmem>>, vector<16x128xf32>,
    %c0_17 = arith.constant 0 : index
    %c0_18 = arith.constant 0 : index
    %14 = vector.load %arg1[%c0_17, %c0_18] : memref<128x128xf32, #tpu.memory_space<vmem>>, vector<128x128xf32>
    %cst_19 = arith.constant dense<0.000000e+00> : vector<16x128xf32>
    %15 = tpu.matmul %12, %14, %cst_19 {dimension_numbers = #tpu.dot_dimension_numbers<[1], [0], [0], [1], [0, 0, 1, 1], [], []>} : vector<16x128xf32>, vector<128x128xf32>, vector<16x128xf32> -> vector<16x128xf32>
    %c0_20 = arith.constant 0 : index
    %c0_21 = arith.constant 0 : index
    %16 = vector.load %arg9[%c0_20, %c0_21] : memref<256x16xf32, #tpu.memory_space<vmem>>, vector<256x16xf32>
    %cst_22 = arith.constant dense<0.000000e+00> : vector<256x128xf32>
    %17 = tpu.matmul %16, %15, %cst_22 {dimension_numbers = #tpu.dot_dimension_numbers<[1], [0], [0], [1], [0, 0, 1, 1], [], []>} : vector<256x16xf32>, vector<16x128xf32>, vector<256x128xf32> -> vector<256x128xf32>
    %c0_23 = arith.constant 0 : index
    %c0_24 = arith.constant 0 : index
    %18 = vector.load %arg10[%c0_23, %c0_24] : memref<16x256xf32, #tpu.memory_space<vmem>>, vector<16x256xf32>
    %c0_25 = arith.constant 0 : index
    %c0_26 = arith.constant 0 : index
    %19 = vector.load %arg16[%c0_25, %c0_26] : memref<256x128xf32, #tpu.memory_space<vmem>>, vector<256x128xf32>
    %20 = arith.mulf %17, %19 : vector<256x128xf32>
    %cst_27 = arith.constant dense<0.000000e+00> : vector<16x128xf32>
    %21 = tpu.matmul %18, %20, %cst_27 {dimension_numbers = #tpu.dot_dimension_numbers<[1], [0], [0], [1], [0, 0, 1, 1], [], []>} : vector<16x256xf32>, vector<256x128xf32>, vector<16x128xf32> -> vector<16x128xf32>
    %c0_28 = arith.constant 0 : index
    %c0_29 = arith.constant 0 : index
    %22 = vector.load %arg2[%c0_28, %c0_29] : memref<128x128xf32, #tpu.memory_space<vmem>>, vector<128x128xf32>
    %cst_30 = arith.constant dense<0.000000e+00> : vector<16x128xf32>
    %23 = tpu.matmul %21, %22, %cst_30 {dimension_numbers = #tpu.dot_dimension_numbers<[1], [0], [0], [1], [0, 0, 1, 1], [], []>} : vector<16x128xf32>, vector<128x128xf32>, vector<16x128xf32> -> vector<16x128xf32>
    %c0_31 = arith.constant 0 : index
    %c0_32 = arith.constant 0 : index
    %24 = vector.load %arg3[%c0_31, %c0_32] : memref<16x128xf32, #tpu.memory_space<vmem>>, vector<16x128xf32>
    %25 = arith.mulf %23, %24 : vector<16x128xf32>
    %c0_33 = arith.constant 0 : index
    %c0_34 = arith.constant 0 : index
    %26 = vector.load %arg11[%c0_33, %c0_34] : memref<48x16xf32, #tpu.memory_space<vmem>>, vector<48x16xf32>
    %cst_35 = arith.constant dense<0.000000e+00> : vector<48x128xf32>
    %27 = tpu.matmul %26, %25, %cst_35 {dimension_numbers = #tpu.dot_dimension_numbers<[1], [0], [0], [1], [0, 0, 1, 1], [], []>} : vector<48x16xf32>, vector<16x128xf32>, vector<48x128xf32> -> vector<48x128xf32>
    %c0_36 = arith.constant 0 : index
    %c0_37 = arith.constant 0 : index
    %28 = vector.load %arg13[%c0_36, %c0_37] : memref<48x128xf32, #tpu.memory_space<vmem>>, vector<48x128xf32>
    %29 = arith.addf %27, %28 : vector<48x128xf32>
    %c0_38 = arith.constant 0 : index
    %c0_39 = arith.constant 0 : index
    %30 = vector.load %arg12[%c0_38, %c0_39] : memref<48x16xf32, #tpu.memory_space<vmem>>, vector<48x16xf32>
    %cst_40 = arith.constant dense<0.000000e+00> : vector<48x128xf32>
    %31 = tpu.matmul %30, %12, %cst_40 {dimension_numbers = #tpu.dot_dimension_numbers<[1], [0], [0], [1], [0, 0, 1, 1], [], []>} : vector<48x16xf32>, vector<16x128xf32>, vector<48x128xf32> -> vector<48x128xf32>
    %c0_41 = arith.constant 0 : index
    %c0_42 = arith.constant 0 : index
    %32 = vector.load %arg14[%c0_41, %c0_42] : memref<48x128xf32, #tpu.memory_space<vmem>>, vector<48x128xf32>
    %33 = arith.addf %31, %32 : vector<48x128xf32>
    %34 = vector.extract_strided_slice %29 {offsets = [0, 0], sizes = [16, 128], strides = [1, 1]} : vector<48x128xf32> to vector<16x128xf32>
    %35 = vector.extract_strided_slice %33 {offsets = [0, 0], sizes = [16, 128], strides = [1, 1]} : vector<48x128xf32> to vector<16x128xf32>
    %36 = arith.addf %34, %35 : vector<16x128xf32>
    %37 = arith.negf %36 : vector<16x128xf32>
    %38 = math.exp %37 : vector<16x128xf32>
    %cst_43 = arith.constant 1.000000e+00 : f32
    %39 = vector.broadcast %cst_43 : f32 to vector<16x128xf32>
    %40 = arith.addf %39, %38 : vector<16x128xf32>
    %41 = arith.divf %39, %40 : vector<16x128xf32>
    %42 = vector.extract_strided_slice %29 {offsets = [16, 0], sizes = [16, 128], strides = [1, 1]} : vector<48x128xf32> to vector<16x128xf32>
    %43 = vector.extract_strided_slice %33 {offsets = [16, 0], sizes = [16, 128], strides = [1, 1]} : vector<48x128xf32> to vector<16x128xf32>
    %44 = arith.addf %42, %43 : vector<16x128xf32>
    %45 = arith.negf %44 : vector<16x128xf32>
    %46 = math.exp %45 : vector<16x128xf32>
    %cst_44 = arith.constant 1.000000e+00 : f32
    %47 = vector.broadcast %cst_44 : f32 to vector<16x128xf32>
    %48 = arith.addf %47, %46 : vector<16x128xf32>
    %49 = arith.divf %47, %48 : vector<16x128xf32>
    %50 = vector.extract_strided_slice %29 {offsets = [32, 0], sizes = [16, 128], strides = [1, 1]} : vector<48x128xf32> to vector<16x128xf32>
    %51 = vector.extract_strided_slice %33 {offsets = [32, 0], sizes = [16, 128], strides = [1, 1]} : vector<48x128xf32> to vector<16x128xf32>
    %52 = arith.mulf %41, %51 : vector<16x128xf32>
    %53 = arith.addf %50, %52 : vector<16x128xf32>
    %54 = math.tanh %53 : vector<16x128xf32>
    %cst_45 = arith.constant 1.000000e+00 : f32
    %55 = vector.broadcast %cst_45 : f32 to vector<16x128xf32>
    %56 = arith.subf %55, %49 : vector<16x128xf32>
    %57 = arith.mulf %56, %54 : vector<16x128xf32>
    %58 = arith.mulf %49, %12 : vector<16x128xf32>
    %59 = arith.addf %57, %58 : vector<16x128xf32>
    %c16 = arith.constant 16 : index
    %c0_46 = arith.constant 0 : index
    %60 = vector.load %arg15[%c16, %c0_46] : memref<176x128xf32, #tpu.memory_space<vmem>>, vector<16x128xf32>
    tpu.vector_store %arg15[%c16, %c0_46], %59 {strides = array<i32>} : memref<176x128xf32, #tpu.memory_space<vmem>>, vector<16x128xf32>,
    %c0_47 = arith.constant 0 : index
    %c0_48 = arith.constant 0 : index
    %61 = vector.load %arg1[%c0_47, %c0_48] : memref<128x128xf32, #tpu.memory_space<vmem>>, vector<128x128xf32>
    %cst_49 = arith.constant dense<0.000000e+00> : vector<16x128xf32>
    %62 = tpu.matmul %59, %61, %cst_49 {dimension_numbers = #tpu.dot_dimension_numbers<[1], [0], [0], [1], [0, 0, 1, 1], [], []>} : vector<16x128xf32>, vector<128x128xf32>, vector<16x128xf32> -> vector<16x128xf32>
    %c0_50 = arith.constant 0 : index
    %c0_51 = arith.constant 0 : index
    %63 = vector.load %arg9[%c0_50, %c0_51] : memref<256x16xf32, #tpu.memory_space<vmem>>, vector<256x16xf32>
    %cst_52 = arith.constant dense<0.000000e+00> : vector<256x128xf32>
    %64 = tpu.matmul %63, %62, %cst_52 {dimension_numbers = #tpu.dot_dimension_numbers<[1], [0], [0], [1], [0, 0, 1, 1], [], []>} : vector<256x16xf32>, vector<16x128xf32>, vector<256x128xf32> -> vector<256x128xf32>
    %c0_53 = arith.constant 0 : index
    %c0_54 = arith.constant 0 : index
    %65 = vector.load %arg10[%c0_53, %c0_54] : memref<16x256xf32, #tpu.memory_space<vmem>>, vector<16x256xf32>
    %c0_55 = arith.constant 0 : index
    %c0_56 = arith.constant 0 : index
    %66 = vector.load %arg16[%c0_55, %c0_56] : memref<256x128xf32, #tpu.memory_space<vmem>>, vector<256x128xf32>
    %67 = arith.mulf %64, %66 : vector<256x128xf32>
    %cst_57 = arith.constant dense<0.000000e+00> : vector<16x128xf32>
    %68 = tpu.matmul %65, %67, %cst_57 {dimension_numbers = #tpu.dot_dimension_numbers<[1], [0], [0], [1], [0, 0, 1, 1], [], []>} : vector<16x256xf32>, vector<256x128xf32>, vector<16x128xf32> -> vector<16x128xf32>
    %c0_58 = arith.constant 0 : index
    %c0_59 = arith.constant 0 : index
    %69 = vector.load %arg2[%c0_58, %c0_59] : memref<128x128xf32, #tpu.memory_space<vmem>>, vector<128x128xf32>
    %cst_60 = arith.constant dense<0.000000e+00> : vector<16x128xf32>
    %70 = tpu.matmul %68, %69, %cst_60 {dimension_numbers = #tpu.dot_dimension_numbers<[1], [0], [0], [1], [0, 0, 1, 1], [], []>} : vector<16x128xf32>, vector<128x128xf32>, vector<16x128xf32> -> vector<16x128xf32>
    %c0_61 = arith.constant 0 : index
    %c0_62 = arith.constant 0 : index
    %71 = vector.load %arg3[%c0_61, %c0_62] : memref<16x128xf32, #tpu.memory_space<vmem>>, vector<16x128xf32>
    %72 = arith.mulf %70, %71 : vector<16x128xf32>
    %c0_63 = arith.constant 0 : index
    %c0_64 = arith.constant 0 : index
    %73 = vector.load %arg11[%c0_63, %c0_64] : memref<48x16xf32, #tpu.memory_space<vmem>>, vector<48x16xf32>
    %cst_65 = arith.constant dense<0.000000e+00> : vector<48x128xf32>
    %74 = tpu.matmul %73, %72, %cst_65 {dimension_numbers = #tpu.dot_dimension_numbers<[1], [0], [0], [1], [0, 0, 1, 1], [], []>} : vector<48x16xf32>, vector<16x128xf32>, vector<48x128xf32> -> vector<48x128xf32>
    %c0_66 = arith.constant 0 : index
    %c0_67 = arith.constant 0 : index
    %75 = vector.load %arg13[%c0_66, %c0_67] : memref<48x128xf32, #tpu.memory_space<vmem>>, vector<48x128xf32>
    %76 = arith.addf %74, %75 : vector<48x128xf32>
    %c0_68 = arith.constant 0 : index
    %c0_69 = arith.constant 0 : index
    %77 = vector.load %arg12[%c0_68, %c0_69] : memref<48x16xf32, #tpu.memory_space<vmem>>, vector<48x16xf32>
    %cst_70 = arith.constant dense<0.000000e+00> : vector<48x128xf32>
    %78 = tpu.matmul %77, %59, %cst_70 {dimension_numbers = #tpu.dot_dimension_numbers<[1], [0], [0], [1], [0, 0, 1, 1], [], []>} : vector<48x16xf32>, vector<16x128xf32>, vector<48x128xf32> -> vector<48x128xf32>
    %c0_71 = arith.constant 0 : index
    %c0_72 = arith.constant 0 : index
    %79 = vector.load %arg14[%c0_71, %c0_72] : memref<48x128xf32, #tpu.memory_space<vmem>>, vector<48x128xf32>
    %80 = arith.addf %78, %79 : vector<48x128xf32>
    %81 = vector.extract_strided_slice %76 {offsets = [0, 0], sizes = [16, 128], strides = [1, 1]} : vector<48x128xf32> to vector<16x128xf32>
    %82 = vector.extract_strided_slice %80 {offsets = [0, 0], sizes = [16, 128], strides = [1, 1]} : vector<48x128xf32> to vector<16x128xf32>
    %83 = arith.addf %81, %82 : vector<16x128xf32>
    %84 = arith.negf %83 : vector<16x128xf32>
    %85 = math.exp %84 : vector<16x128xf32>
    %cst_73 = arith.constant 1.000000e+00 : f32
    %86 = vector.broadcast %cst_73 : f32 to vector<16x128xf32>
    %87 = arith.addf %86, %85 : vector<16x128xf32>
    %88 = arith.divf %86, %87 : vector<16x128xf32>
    %89 = vector.extract_strided_slice %76 {offsets = [16, 0], sizes = [16, 128], strides = [1, 1]} : vector<48x128xf32> to vector<16x128xf32>
    %90 = vector.extract_strided_slice %80 {offsets = [16, 0], sizes = [16, 128], strides = [1, 1]} : vector<48x128xf32> to vector<16x128xf32>
    %91 = arith.addf %89, %90 : vector<16x128xf32>
    %92 = arith.negf %91 : vector<16x128xf32>
    %93 = math.exp %92 : vector<16x128xf32>
    %cst_74 = arith.constant 1.000000e+00 : f32
    %94 = vector.broadcast %cst_74 : f32 to vector<16x128xf32>
    %95 = arith.addf %94, %93 : vector<16x128xf32>
    %96 = arith.divf %94, %95 : vector<16x128xf32>
    %97 = vector.extract_strided_slice %76 {offsets = [32, 0], sizes = [16, 128], strides = [1, 1]} : vector<48x128xf32> to vector<16x128xf32>
    %98 = vector.extract_strided_slice %80 {offsets = [32, 0], sizes = [16, 128], strides = [1, 1]} : vector<48x128xf32> to vector<16x128xf32>
    %99 = arith.mulf %88, %98 : vector<16x128xf32>
    %100 = arith.addf %97, %99 : vector<16x128xf32>
    %101 = math.tanh %100 : vector<16x128xf32>
    %cst_75 = arith.constant 1.000000e+00 : f32
    %102 = vector.broadcast %cst_75 : f32 to vector<16x128xf32>
    %103 = arith.subf %102, %96 : vector<16x128xf32>
    %104 = arith.mulf %103, %101 : vector<16x128xf32>
    %105 = arith.mulf %96, %59 : vector<16x128xf32>
    %106 = arith.addf %104, %105 : vector<16x128xf32>
    %c32 = arith.constant 32 : index
    %c0_76 = arith.constant 0 : index
    %107 = vector.load %arg15[%c32, %c0_76] : memref<176x128xf32, #tpu.memory_space<vmem>>, vector<16x128xf32>
    tpu.vector_store %arg15[%c32, %c0_76], %106 {strides = array<i32>} : memref<176x128xf32, #tpu.memory_space<vmem>>, vector<16x128xf32>,
    %c0_77 = arith.constant 0 : index
    %c0_78 = arith.constant 0 : index
    %108 = vector.load %arg1[%c0_77, %c0_78] : memref<128x128xf32, #tpu.memory_space<vmem>>, vector<128x128xf32>
    %cst_79 = arith.constant dense<0.000000e+00> : vector<16x128xf32>
    %109 = tpu.matmul %106, %108, %cst_79 {dimension_numbers = #tpu.dot_dimension_numbers<[1], [0], [0], [1], [0, 0, 1, 1], [], []>} : vector<16x128xf32>, vector<128x128xf32>, vector<16x128xf32> -> vector<16x128xf32>
    %c0_80 = arith.constant 0 : index
    %c0_81 = arith.constant 0 : index
    %110 = vector.load %arg9[%c0_80, %c0_81] : memref<256x16xf32, #tpu.memory_space<vmem>>, vector<256x16xf32>
    %cst_82 = arith.constant dense<0.000000e+00> : vector<256x128xf32>
    %111 = tpu.matmul %110, %109, %cst_82 {dimension_numbers = #tpu.dot_dimension_numbers<[1], [0], [0], [1], [0, 0, 1, 1], [], []>} : vector<256x16xf32>, vector<16x128xf32>, vector<256x128xf32> -> vector<256x128xf32>
    %c0_83 = arith.constant 0 : index
    %c0_84 = arith.constant 0 : index
    %112 = vector.load %arg10[%c0_83, %c0_84] : memref<16x256xf32, #tpu.memory_space<vmem>>, vector<16x256xf32>
    %c0_85 = arith.constant 0 : index
    %c0_86 = arith.constant 0 : index
    %113 = vector.load %arg16[%c0_85, %c0_86] : memref<256x128xf32, #tpu.memory_space<vmem>>, vector<256x128xf32>
    %114 = arith.mulf %111, %113 : vector<256x128xf32>
    %cst_87 = arith.constant dense<0.000000e+00> : vector<16x128xf32>
    %115 = tpu.matmul %112, %114, %cst_87 {dimension_numbers = #tpu.dot_dimension_numbers<[1], [0], [0], [1], [0, 0, 1, 1], [], []>} : vector<16x256xf32>, vector<256x128xf32>, vector<16x128xf32> -> vector<16x128xf32>
    %c0_88 = arith.constant 0 : index
    %c0_89 = arith.constant 0 : index
    %116 = vector.load %arg2[%c0_88, %c0_89] : memref<128x128xf32, #tpu.memory_space<vmem>>, vector<128x128xf32>
    %cst_90 = arith.constant dense<0.000000e+00> : vector<16x128xf32>
    %117 = tpu.matmul %115, %116, %cst_90 {dimension_numbers = #tpu.dot_dimension_numbers<[1], [0], [0], [1], [0, 0, 1, 1], [], []>} : vector<16x128xf32>, vector<128x128xf32>, vector<16x128xf32> -> vector<16x128xf32>
    %c0_91 = arith.constant 0 : index
    %c0_92 = arith.constant 0 : index
    %118 = vector.load %arg3[%c0_91, %c0_92] : memref<16x128xf32, #tpu.memory_space<vmem>>, vector<16x128xf32>
    %119 = arith.mulf %117, %118 : vector<16x128xf32>
    %c0_93 = arith.constant 0 : index
    %c0_94 = arith.constant 0 : index
    %120 = vector.load %arg11[%c0_93, %c0_94] : memref<48x16xf32, #tpu.memory_space<vmem>>, vector<48x16xf32>
    %cst_95 = arith.constant dense<0.000000e+00> : vector<48x128xf32>
    %121 = tpu.matmul %120, %119, %cst_95 {dimension_numbers = #tpu.dot_dimension_numbers<[1], [0], [0], [1], [0, 0, 1, 1], [], []>} : vector<48x16xf32>, vector<16x128xf32>, vector<48x128xf32> -> vector<48x128xf32>
    %c0_96 = arith.constant 0 : index
    %c0_97 = arith.constant 0 : index
    %122 = vector.load %arg13[%c0_96, %c0_97] : memref<48x128xf32, #tpu.memory_space<vmem>>, vector<48x128xf32>
    %123 = arith.addf %121, %122 : vector<48x128xf32>
    %c0_98 = arith.constant 0 : index
    %c0_99 = arith.constant 0 : index
    %124 = vector.load %arg12[%c0_98, %c0_99] : memref<48x16xf32, #tpu.memory_space<vmem>>, vector<48x16xf32>
    %cst_100 = arith.constant dense<0.000000e+00> : vector<48x128xf32>
    %125 = tpu.matmul %124, %106, %cst_100 {dimension_numbers = #tpu.dot_dimension_numbers<[1], [0], [0], [1], [0, 0, 1, 1], [], []>} : vector<48x16xf32>, vector<16x128xf32>, vector<48x128xf32> -> vector<48x128xf32>
    %c0_101 = arith.constant 0 : index
    %c0_102 = arith.constant 0 : index
    %126 = vector.load %arg14[%c0_101, %c0_102] : memref<48x128xf32, #tpu.memory_space<vmem>>, vector<48x128xf32>
    %127 = arith.addf %125, %126 : vector<48x128xf32>
    %128 = vector.extract_strided_slice %123 {offsets = [0, 0], sizes = [16, 128], strides = [1, 1]} : vector<48x128xf32> to vector<16x128xf32>
    %129 = vector.extract_strided_slice %127 {offsets = [0, 0], sizes = [16, 128], strides = [1, 1]} : vector<48x128xf32> to vector<16x128xf32>
    %130 = arith.addf %128, %129 : vector<16x128xf32>
    %131 = arith.negf %130 : vector<16x128xf32>
    %132 = math.exp %131 : vector<16x128xf32>
    %cst_103 = arith.constant 1.000000e+00 : f32
    %133 = vector.broadcast %cst_103 : f32 to vector<16x128xf32>
    %134 = arith.addf %133, %132 : vector<16x128xf32>
    %135 = arith.divf %133, %134 : vector<16x128xf32>
    %136 = vector.extract_strided_slice %123 {offsets = [16, 0], sizes = [16, 128], strides = [1, 1]} : vector<48x128xf32> to vector<16x128xf32>
    %137 = vector.extract_strided_slice %127 {offsets = [16, 0], sizes = [16, 128], strides = [1, 1]} : vector<48x128xf32> to vector<16x128xf32>
    %138 = arith.addf %136, %137 : vector<16x128xf32>
    %139 = arith.negf %138 : vector<16x128xf32>
    %140 = math.exp %139 : vector<16x128xf32>
    %cst_104 = arith.constant 1.000000e+00 : f32
    %141 = vector.broadcast %cst_104 : f32 to vector<16x128xf32>
    %142 = arith.addf %141, %140 : vector<16x128xf32>
    %143 = arith.divf %141, %142 : vector<16x128xf32>
    %144 = vector.extract_strided_slice %123 {offsets = [32, 0], sizes = [16, 128], strides = [1, 1]} : vector<48x128xf32> to vector<16x128xf32>
    %145 = vector.extract_strided_slice %127 {offsets = [32, 0], sizes = [16, 128], strides = [1, 1]} : vector<48x128xf32> to vector<16x128xf32>
    %146 = arith.mulf %135, %145 : vector<16x128xf32>
    %147 = arith.addf %144, %146 : vector<16x128xf32>
    %148 = math.tanh %147 : vector<16x128xf32>
    %cst_105 = arith.constant 1.000000e+00 : f32
    %149 = vector.broadcast %cst_105 : f32 to vector<16x128xf32>
    %150 = arith.subf %149, %143 : vector<16x128xf32>
    %151 = arith.mulf %150, %148 : vector<16x128xf32>
    %152 = arith.mulf %143, %106 : vector<16x128xf32>
    %153 = arith.addf %151, %152 : vector<16x128xf32>
    %154 = arith.addf %59, %153 : vector<16x128xf32>
    %c48 = arith.constant 48 : index
    %c0_106 = arith.constant 0 : index
    %155 = vector.load %arg15[%c48, %c0_106] : memref<176x128xf32, #tpu.memory_space<vmem>>, vector<16x128xf32>
    tpu.vector_store %arg15[%c48, %c0_106], %154 {strides = array<i32>} : memref<176x128xf32, #tpu.memory_space<vmem>>, vector<16x128xf32>,
    %c0_107 = arith.constant 0 : index
    %c0_108 = arith.constant 0 : index
    %156 = vector.load %arg1[%c0_107, %c0_108] : memref<128x128xf32, #tpu.memory_space<vmem>>, vector<128x128xf32>
    %cst_109 = arith.constant dense<0.000000e+00> : vector<16x128xf32>
    %157 = tpu.matmul %154, %156, %cst_109 {dimension_numbers = #tpu.dot_dimension_numbers<[1], [0], [0], [1], [0, 0, 1, 1], [], []>} : vector<16x128xf32>, vector<128x128xf32>, vector<16x128xf32> -> vector<16x128xf32>
    %c0_110 = arith.constant 0 : index
    %c0_111 = arith.constant 0 : index
    %158 = vector.load %arg9[%c0_110, %c0_111] : memref<256x16xf32, #tpu.memory_space<vmem>>, vector<256x16xf32>
    %cst_112 = arith.constant dense<0.000000e+00> : vector<256x128xf32>
    %159 = tpu.matmul %158, %157, %cst_112 {dimension_numbers = #tpu.dot_dimension_numbers<[1], [0], [0], [1], [0, 0, 1, 1], [], []>} : vector<256x16xf32>, vector<16x128xf32>, vector<256x128xf32> -> vector<256x128xf32>
    %c0_113 = arith.constant 0 : index
    %c0_114 = arith.constant 0 : index
    %160 = vector.load %arg10[%c0_113, %c0_114] : memref<16x256xf32, #tpu.memory_space<vmem>>, vector<16x256xf32>
    %c0_115 = arith.constant 0 : index
    %c0_116 = arith.constant 0 : index
    %161 = vector.load %arg16[%c0_115, %c0_116] : memref<256x128xf32, #tpu.memory_space<vmem>>, vector<256x128xf32>
    %162 = arith.mulf %159, %161 : vector<256x128xf32>
    %cst_117 = arith.constant dense<0.000000e+00> : vector<16x128xf32>
    %163 = tpu.matmul %160, %162, %cst_117 {dimension_numbers = #tpu.dot_dimension_numbers<[1], [0], [0], [1], [0, 0, 1, 1], [], []>} : vector<16x256xf32>, vector<256x128xf32>, vector<16x128xf32> -> vector<16x128xf32>
    %c0_118 = arith.constant 0 : index
    %c0_119 = arith.constant 0 : index
    %164 = vector.load %arg2[%c0_118, %c0_119] : memref<128x128xf32, #tpu.memory_space<vmem>>, vector<128x128xf32>
    %cst_120 = arith.constant dense<0.000000e+00> : vector<16x128xf32>
    %165 = tpu.matmul %163, %164, %cst_120 {dimension_numbers = #tpu.dot_dimension_numbers<[1], [0], [0], [1], [0, 0, 1, 1], [], []>} : vector<16x128xf32>, vector<128x128xf32>, vector<16x128xf32> -> vector<16x128xf32>
    %c0_121 = arith.constant 0 : index
    %c0_122 = arith.constant 0 : index
    %166 = vector.load %arg3[%c0_121, %c0_122] : memref<16x128xf32, #tpu.memory_space<vmem>>, vector<16x128xf32>
    %167 = arith.mulf %165, %166 : vector<16x128xf32>
    %c0_123 = arith.constant 0 : index
    %c0_124 = arith.constant 0 : index
    %168 = vector.load %arg11[%c0_123, %c0_124] : memref<48x16xf32, #tpu.memory_space<vmem>>, vector<48x16xf32>
    %cst_125 = arith.constant dense<0.000000e+00> : vector<48x128xf32>
    %169 = tpu.matmul %168, %167, %cst_125 {dimension_numbers = #tpu.dot_dimension_numbers<[1], [0], [0], [1], [0, 0, 1, 1], [], []>} : vector<48x16xf32>, vector<16x128xf32>, vector<48x128xf32> -> vector<48x128xf32>
    %c0_126 = arith.constant 0 : index
    %c0_127 = arith.constant 0 : index
    %170 = vector.load %arg13[%c0_126, %c0_127] : memref<48x128xf32, #tpu.memory_space<vmem>>, vector<48x128xf32>
    %171 = arith.addf %169, %170 : vector<48x128xf32>
    %c0_128 = arith.constant 0 : index
    %c0_129 = arith.constant 0 : index
    %172 = vector.load %arg12[%c0_128, %c0_129] : memref<48x16xf32, #tpu.memory_space<vmem>>, vector<48x16xf32>
    %cst_130 = arith.constant dense<0.000000e+00> : vector<48x128xf32>
    %173 = tpu.matmul %172, %154, %cst_130 {dimension_numbers = #tpu.dot_dimension_numbers<[1], [0], [0], [1], [0, 0, 1, 1], [], []>} : vector<48x16xf32>, vector<16x128xf32>, vector<48x128xf32> -> vector<48x128xf32>
    %c0_131 = arith.constant 0 : index
    %c0_132 = arith.constant 0 : index
    %174 = vector.load %arg14[%c0_131, %c0_132] : memref<48x128xf32, #tpu.memory_space<vmem>>, vector<48x128xf32>
    %175 = arith.addf %173, %174 : vector<48x128xf32>
    %176 = vector.extract_strided_slice %171 {offsets = [0, 0], sizes = [16, 128], strides = [1, 1]} : vector<48x128xf32> to vector<16x128xf32>
    %177 = vector.extract_strided_slice %175 {offsets = [0, 0], sizes = [16, 128], strides = [1, 1]} : vector<48x128xf32> to vector<16x128xf32>
    %178 = arith.addf %176, %177 : vector<16x128xf32>
    %179 = arith.negf %178 : vector<16x128xf32>
    %180 = math.exp %179 : vector<16x128xf32>
    %cst_133 = arith.constant 1.000000e+00 : f32
    %181 = vector.broadcast %cst_133 : f32 to vector<16x128xf32>
    %182 = arith.addf %181, %180 : vector<16x128xf32>
    %183 = arith.divf %181, %182 : vector<16x128xf32>
    %184 = vector.extract_strided_slice %171 {offsets = [16, 0], sizes = [16, 128], strides = [1, 1]} : vector<48x128xf32> to vector<16x128xf32>
    %185 = vector.extract_strided_slice %175 {offsets = [16, 0], sizes = [16, 128], strides = [1, 1]} : vector<48x128xf32> to vector<16x128xf32>
    %186 = arith.addf %184, %185 : vector<16x128xf32>
    %187 = arith.negf %186 : vector<16x128xf32>
    %188 = math.exp %187 : vector<16x128xf32>
    %cst_134 = arith.constant 1.000000e+00 : f32
    %189 = vector.broadcast %cst_134 : f32 to vector<16x128xf32>
    %190 = arith.addf %189, %188 : vector<16x128xf32>
    %191 = arith.divf %189, %190 : vector<16x128xf32>
    %192 = vector.extract_strided_slice %171 {offsets = [32, 0], sizes = [16, 128], strides = [1, 1]} : vector<48x128xf32> to vector<16x128xf32>
    %193 = vector.extract_strided_slice %175 {offsets = [32, 0], sizes = [16, 128], strides = [1, 1]} : vector<48x128xf32> to vector<16x128xf32>
    %194 = arith.mulf %183, %193 : vector<16x128xf32>
    %195 = arith.addf %192, %194 : vector<16x128xf32>
    %196 = math.tanh %195 : vector<16x128xf32>
    %cst_135 = arith.constant 1.000000e+00 : f32
    %197 = vector.broadcast %cst_135 : f32 to vector<16x128xf32>
    %198 = arith.subf %197, %191 : vector<16x128xf32>
    %199 = arith.mulf %198, %196 : vector<16x128xf32>
    %200 = arith.mulf %191, %154 : vector<16x128xf32>
    %201 = arith.addf %199, %200 : vector<16x128xf32>
    %c64 = arith.constant 64 : index
    %c0_136 = arith.constant 0 : index
    %202 = vector.load %arg15[%c64, %c0_136] : memref<176x128xf32, #tpu.memory_space<vmem>>, vector<16x128xf32>
    tpu.vector_store %arg15[%c64, %c0_136], %201 {strides = array<i32>} : memref<176x128xf32, #tpu.memory_space<vmem>>, vector<16x128xf32>,
    %c0_137 = arith.constant 0 : index
    %c0_138 = arith.constant 0 : index
    %203 = vector.load %arg1[%c0_137, %c0_138] : memref<128x128xf32, #tpu.memory_space<vmem>>, vector<128x128xf32>
    %cst_139 = arith.constant dense<0.000000e+00> : vector<16x128xf32>
    %204 = tpu.matmul %201, %203, %cst_139 {dimension_numbers = #tpu.dot_dimension_numbers<[1], [0], [0], [1], [0, 0, 1, 1], [], []>} : vector<16x128xf32>, vector<128x128xf32>, vector<16x128xf32> -> vector<16x128xf32>
    %c0_140 = arith.constant 0 : index
    %c0_141 = arith.constant 0 : index
    %205 = vector.load %arg9[%c0_140, %c0_141] : memref<256x16xf32, #tpu.memory_space<vmem>>, vector<256x16xf32>
    %cst_142 = arith.constant dense<0.000000e+00> : vector<256x128xf32>
    %206 = tpu.matmul %205, %204, %cst_142 {dimension_numbers = #tpu.dot_dimension_numbers<[1], [0], [0], [1], [0, 0, 1, 1], [], []>} : vector<256x16xf32>, vector<16x128xf32>, vector<256x128xf32> -> vector<256x128xf32>
    %c0_143 = arith.constant 0 : index
    %c0_144 = arith.constant 0 : index
    %207 = vector.load %arg10[%c0_143, %c0_144] : memref<16x256xf32, #tpu.memory_space<vmem>>, vector<16x256xf32>
    %c0_145 = arith.constant 0 : index
    %c0_146 = arith.constant 0 : index
    %208 = vector.load %arg16[%c0_145, %c0_146] : memref<256x128xf32, #tpu.memory_space<vmem>>, vector<256x128xf32>
    %209 = arith.mulf %206, %208 : vector<256x128xf32>
    %cst_147 = arith.constant dense<0.000000e+00> : vector<16x128xf32>
    %210 = tpu.matmul %207, %209, %cst_147 {dimension_numbers = #tpu.dot_dimension_numbers<[1], [0], [0], [1], [0, 0, 1, 1], [], []>} : vector<16x256xf32>, vector<256x128xf32>, vector<16x128xf32> -> vector<16x128xf32>
    %c0_148 = arith.constant 0 : index
    %c0_149 = arith.constant 0 : index
    %211 = vector.load %arg2[%c0_148, %c0_149] : memref<128x128xf32, #tpu.memory_space<vmem>>, vector<128x128xf32>
    %cst_150 = arith.constant dense<0.000000e+00> : vector<16x128xf32>
    %212 = tpu.matmul %210, %211, %cst_150 {dimension_numbers = #tpu.dot_dimension_numbers<[1], [0], [0], [1], [0, 0, 1, 1], [], []>} : vector<16x128xf32>, vector<128x128xf32>, vector<16x128xf32> -> vector<16x128xf32>
    %c0_151 = arith.constant 0 : index
    %c0_152 = arith.constant 0 : index
    %213 = vector.load %arg3[%c0_151, %c0_152] : memref<16x128xf32, #tpu.memory_space<vmem>>, vector<16x128xf32>
    %214 = arith.mulf %212, %213 : vector<16x128xf32>
    %c0_153 = arith.constant 0 : index
    %c0_154 = arith.constant 0 : index
    %215 = vector.load %arg11[%c0_153, %c0_154] : memref<48x16xf32, #tpu.memory_space<vmem>>, vector<48x16xf32>
    %cst_155 = arith.constant dense<0.000000e+00> : vector<48x128xf32>
    %216 = tpu.matmul %215, %214, %cst_155 {dimension_numbers = #tpu.dot_dimension_numbers<[1], [0], [0], [1], [0, 0, 1, 1], [], []>} : vector<48x16xf32>, vector<16x128xf32>, vector<48x128xf32> -> vector<48x128xf32>
    %c0_156 = arith.constant 0 : index
    %c0_157 = arith.constant 0 : index
    %217 = vector.load %arg13[%c0_156, %c0_157] : memref<48x128xf32, #tpu.memory_space<vmem>>, vector<48x128xf32>
    %218 = arith.addf %216, %217 : vector<48x128xf32>
    %c0_158 = arith.constant 0 : index
    %c0_159 = arith.constant 0 : index
    %219 = vector.load %arg12[%c0_158, %c0_159] : memref<48x16xf32, #tpu.memory_space<vmem>>, vector<48x16xf32>
    %cst_160 = arith.constant dense<0.000000e+00> : vector<48x128xf32>
    %220 = tpu.matmul %219, %201, %cst_160 {dimension_numbers = #tpu.dot_dimension_numbers<[1], [0], [0], [1], [0, 0, 1, 1], [], []>} : vector<48x16xf32>, vector<16x128xf32>, vector<48x128xf32> -> vector<48x128xf32>
    %c0_161 = arith.constant 0 : index
    %c0_162 = arith.constant 0 : index
    %221 = vector.load %arg14[%c0_161, %c0_162] : memref<48x128xf32, #tpu.memory_space<vmem>>, vector<48x128xf32>
    %222 = arith.addf %220, %221 : vector<48x128xf32>
    %223 = vector.extract_strided_slice %218 {offsets = [0, 0], sizes = [16, 128], strides = [1, 1]} : vector<48x128xf32> to vector<16x128xf32>
    %224 = vector.extract_strided_slice %222 {offsets = [0, 0], sizes = [16, 128], strides = [1, 1]} : vector<48x128xf32> to vector<16x128xf32>
    %225 = arith.addf %223, %224 : vector<16x128xf32>
    %226 = arith.negf %225 : vector<16x128xf32>
    %227 = math.exp %226 : vector<16x128xf32>
    %cst_163 = arith.constant 1.000000e+00 : f32
    %228 = vector.broadcast %cst_163 : f32 to vector<16x128xf32>
    %229 = arith.addf %228, %227 : vector<16x128xf32>
    %230 = arith.divf %228, %229 : vector<16x128xf32>
    %231 = vector.extract_strided_slice %218 {offsets = [16, 0], sizes = [16, 128], strides = [1, 1]} : vector<48x128xf32> to vector<16x128xf32>
    %232 = vector.extract_strided_slice %222 {offsets = [16, 0], sizes = [16, 128], strides = [1, 1]} : vector<48x128xf32> to vector<16x128xf32>
    %233 = arith.addf %231, %232 : vector<16x128xf32>
    %234 = arith.negf %233 : vector<16x128xf32>
    %235 = math.exp %234 : vector<16x128xf32>
    %cst_164 = arith.constant 1.000000e+00 : f32
    %236 = vector.broadcast %cst_164 : f32 to vector<16x128xf32>
    %237 = arith.addf %236, %235 : vector<16x128xf32>
    %238 = arith.divf %236, %237 : vector<16x128xf32>
    %239 = vector.extract_strided_slice %218 {offsets = [32, 0], sizes = [16, 128], strides = [1, 1]} : vector<48x128xf32> to vector<16x128xf32>
    %240 = vector.extract_strided_slice %222 {offsets = [32, 0], sizes = [16, 128], strides = [1, 1]} : vector<48x128xf32> to vector<16x128xf32>
    %241 = arith.mulf %230, %240 : vector<16x128xf32>
    %242 = arith.addf %239, %241 : vector<16x128xf32>
    %243 = math.tanh %242 : vector<16x128xf32>
    %cst_165 = arith.constant 1.000000e+00 : f32
    %244 = vector.broadcast %cst_165 : f32 to vector<16x128xf32>
    %245 = arith.subf %244, %238 : vector<16x128xf32>
    %246 = arith.mulf %245, %243 : vector<16x128xf32>
    %247 = arith.mulf %238, %201 : vector<16x128xf32>
    %248 = arith.addf %246, %247 : vector<16x128xf32>
    %249 = arith.addf %153, %248 : vector<16x128xf32>
    %c80 = arith.constant 80 : index
    %c0_166 = arith.constant 0 : index
    %250 = vector.load %arg15[%c80, %c0_166] : memref<176x128xf32, #tpu.memory_space<vmem>>, vector<16x128xf32>
    tpu.vector_store %arg15[%c80, %c0_166], %249 {strides = array<i32>} : memref<176x128xf32, #tpu.memory_space<vmem>>, vector<16x128xf32>,
    %c0_167 = arith.constant 0 : index
    %c0_168 = arith.constant 0 : index
    %251 = vector.load %arg1[%c0_167, %c0_168] : memref<128x128xf32, #tpu.memory_space<vmem>>, vector<128x128xf32>
    %cst_169 = arith.constant dense<0.000000e+00> : vector<16x128xf32>
    %252 = tpu.matmul %249, %251, %cst_169 {dimension_numbers = #tpu.dot_dimension_numbers<[1], [0], [0], [1], [0, 0, 1, 1], [], []>} : vector<16x128xf32>, vector<128x128xf32>, vector<16x128xf32> -> vector<16x128xf32>
    %c0_170 = arith.constant 0 : index
    %c0_171 = arith.constant 0 : index
    %253 = vector.load %arg9[%c0_170, %c0_171] : memref<256x16xf32, #tpu.memory_space<vmem>>, vector<256x16xf32>
    %cst_172 = arith.constant dense<0.000000e+00> : vector<256x128xf32>
    %254 = tpu.matmul %253, %252, %cst_172 {dimension_numbers = #tpu.dot_dimension_numbers<[1], [0], [0], [1], [0, 0, 1, 1], [], []>} : vector<256x16xf32>, vector<16x128xf32>, vector<256x128xf32> -> vector<256x128xf32>
    %c0_173 = arith.constant 0 : index
    %c0_174 = arith.constant 0 : index
    %255 = vector.load %arg10[%c0_173, %c0_174] : memref<16x256xf32, #tpu.memory_space<vmem>>, vector<16x256xf32>
    %c0_175 = arith.constant 0 : index
    %c0_176 = arith.constant 0 : index
    %256 = vector.load %arg16[%c0_175, %c0_176] : memref<256x128xf32, #tpu.memory_space<vmem>>, vector<256x128xf32>
    %257 = arith.mulf %254, %256 : vector<256x128xf32>
    %cst_177 = arith.constant dense<0.000000e+00> : vector<16x128xf32>
    %258 = tpu.matmul %255, %257, %cst_177 {dimension_numbers = #tpu.dot_dimension_numbers<[1], [0], [0], [1], [0, 0, 1, 1], [], []>} : vector<16x256xf32>, vector<256x128xf32>, vector<16x128xf32> -> vector<16x128xf32>
    %c0_178 = arith.constant 0 : index
    %c0_179 = arith.constant 0 : index
    %259 = vector.load %arg2[%c0_178, %c0_179] : memref<128x128xf32, #tpu.memory_space<vmem>>, vector<128x128xf32>
    %cst_180 = arith.constant dense<0.000000e+00> : vector<16x128xf32>
    %260 = tpu.matmul %258, %259, %cst_180 {dimension_numbers = #tpu.dot_dimension_numbers<[1], [0], [0], [1], [0, 0, 1, 1], [], []>} : vector<16x128xf32>, vector<128x128xf32>, vector<16x128xf32> -> vector<16x128xf32>
    %c0_181 = arith.constant 0 : index
    %c0_182 = arith.constant 0 : index
    %261 = vector.load %arg3[%c0_181, %c0_182] : memref<16x128xf32, #tpu.memory_space<vmem>>, vector<16x128xf32>
    %262 = arith.mulf %260, %261 : vector<16x128xf32>
    %c0_183 = arith.constant 0 : index
    %c0_184 = arith.constant 0 : index
    %263 = vector.load %arg11[%c0_183, %c0_184] : memref<48x16xf32, #tpu.memory_space<vmem>>, vector<48x16xf32>
    %cst_185 = arith.constant dense<0.000000e+00> : vector<48x128xf32>
    %264 = tpu.matmul %263, %262, %cst_185 {dimension_numbers = #tpu.dot_dimension_numbers<[1], [0], [0], [1], [0, 0, 1, 1], [], []>} : vector<48x16xf32>, vector<16x128xf32>, vector<48x128xf32> -> vector<48x128xf32>
    %c0_186 = arith.constant 0 : index
    %c0_187 = arith.constant 0 : index
    %265 = vector.load %arg13[%c0_186, %c0_187] : memref<48x128xf32, #tpu.memory_space<vmem>>, vector<48x128xf32>
    %266 = arith.addf %264, %265 : vector<48x128xf32>
    %c0_188 = arith.constant 0 : index
    %c0_189 = arith.constant 0 : index
    %267 = vector.load %arg12[%c0_188, %c0_189] : memref<48x16xf32, #tpu.memory_space<vmem>>, vector<48x16xf32>
    %cst_190 = arith.constant dense<0.000000e+00> : vector<48x128xf32>
    %268 = tpu.matmul %267, %249, %cst_190 {dimension_numbers = #tpu.dot_dimension_numbers<[1], [0], [0], [1], [0, 0, 1, 1], [], []>} : vector<48x16xf32>, vector<16x128xf32>, vector<48x128xf32> -> vector<48x128xf32>
    %c0_191 = arith.constant 0 : index
    %c0_192 = arith.constant 0 : index
    %269 = vector.load %arg14[%c0_191, %c0_192] : memref<48x128xf32, #tpu.memory_space<vmem>>, vector<48x128xf32>
    %270 = arith.addf %268, %269 : vector<48x128xf32>
    %271 = vector.extract_strided_slice %266 {offsets = [0, 0], sizes = [16, 128], strides = [1, 1]} : vector<48x128xf32> to vector<16x128xf32>
    %272 = vector.extract_strided_slice %270 {offsets = [0, 0], sizes = [16, 128], strides = [1, 1]} : vector<48x128xf32> to vector<16x128xf32>
    %273 = arith.addf %271, %272 : vector<16x128xf32>
    %274 = arith.negf %273 : vector<16x128xf32>
    %275 = math.exp %274 : vector<16x128xf32>
    %cst_193 = arith.constant 1.000000e+00 : f32
    %276 = vector.broadcast %cst_193 : f32 to vector<16x128xf32>
    %277 = arith.addf %276, %275 : vector<16x128xf32>
    %278 = arith.divf %276, %277 : vector<16x128xf32>
    %279 = vector.extract_strided_slice %266 {offsets = [16, 0], sizes = [16, 128], strides = [1, 1]} : vector<48x128xf32> to vector<16x128xf32>
    %280 = vector.extract_strided_slice %270 {offsets = [16, 0], sizes = [16, 128], strides = [1, 1]} : vector<48x128xf32> to vector<16x128xf32>
    %281 = arith.addf %279, %280 : vector<16x128xf32>
    %282 = arith.negf %281 : vector<16x128xf32>
    %283 = math.exp %282 : vector<16x128xf32>
    %cst_194 = arith.constant 1.000000e+00 : f32
    %284 = vector.broadcast %cst_194 : f32 to vector<16x128xf32>
    %285 = arith.addf %284, %283 : vector<16x128xf32>
    %286 = arith.divf %284, %285 : vector<16x128xf32>
    %287 = vector.extract_strided_slice %266 {offsets = [32, 0], sizes = [16, 128], strides = [1, 1]} : vector<48x128xf32> to vector<16x128xf32>
    %288 = vector.extract_strided_slice %270 {offsets = [32, 0], sizes = [16, 128], strides = [1, 1]} : vector<48x128xf32> to vector<16x128xf32>
    %289 = arith.mulf %278, %288 : vector<16x128xf32>
    %290 = arith.addf %287, %289 : vector<16x128xf32>
    %291 = math.tanh %290 : vector<16x128xf32>
    %cst_195 = arith.constant 1.000000e+00 : f32
    %292 = vector.broadcast %cst_195 : f32 to vector<16x128xf32>
    %293 = arith.subf %292, %286 : vector<16x128xf32>
    %294 = arith.mulf %293, %291 : vector<16x128xf32>
    %295 = arith.mulf %286, %249 : vector<16x128xf32>
    %296 = arith.addf %294, %295 : vector<16x128xf32>
    %c96 = arith.constant 96 : index
    %c0_196 = arith.constant 0 : index
    %297 = vector.load %arg15[%c96, %c0_196] : memref<176x128xf32, #tpu.memory_space<vmem>>, vector<16x128xf32>
    tpu.vector_store %arg15[%c96, %c0_196], %296 {strides = array<i32>} : memref<176x128xf32, #tpu.memory_space<vmem>>, vector<16x128xf32>,
    %c0_197 = arith.constant 0 : index
    %c0_198 = arith.constant 0 : index
    %298 = vector.load %arg1[%c0_197, %c0_198] : memref<128x128xf32, #tpu.memory_space<vmem>>, vector<128x128xf32>
    %cst_199 = arith.constant dense<0.000000e+00> : vector<16x128xf32>
    %299 = tpu.matmul %296, %298, %cst_199 {dimension_numbers = #tpu.dot_dimension_numbers<[1], [0], [0], [1], [0, 0, 1, 1], [], []>} : vector<16x128xf32>, vector<128x128xf32>, vector<16x128xf32> -> vector<16x128xf32>
    %c0_200 = arith.constant 0 : index
    %c0_201 = arith.constant 0 : index
    %300 = vector.load %arg9[%c0_200, %c0_201] : memref<256x16xf32, #tpu.memory_space<vmem>>, vector<256x16xf32>
    %cst_202 = arith.constant dense<0.000000e+00> : vector<256x128xf32>
    %301 = tpu.matmul %300, %299, %cst_202 {dimension_numbers = #tpu.dot_dimension_numbers<[1], [0], [0], [1], [0, 0, 1, 1], [], []>} : vector<256x16xf32>, vector<16x128xf32>, vector<256x128xf32> -> vector<256x128xf32>
    %c0_203 = arith.constant 0 : index
    %c0_204 = arith.constant 0 : index
    %302 = vector.load %arg10[%c0_203, %c0_204] : memref<16x256xf32, #tpu.memory_space<vmem>>, vector<16x256xf32>
    %c0_205 = arith.constant 0 : index
    %c0_206 = arith.constant 0 : index
    %303 = vector.load %arg16[%c0_205, %c0_206] : memref<256x128xf32, #tpu.memory_space<vmem>>, vector<256x128xf32>
    %304 = arith.mulf %301, %303 : vector<256x128xf32>
    %cst_207 = arith.constant dense<0.000000e+00> : vector<16x128xf32>
    %305 = tpu.matmul %302, %304, %cst_207 {dimension_numbers = #tpu.dot_dimension_numbers<[1], [0], [0], [1], [0, 0, 1, 1], [], []>} : vector<16x256xf32>, vector<256x128xf32>, vector<16x128xf32> -> vector<16x128xf32>
    %c0_208 = arith.constant 0 : index
    %c0_209 = arith.constant 0 : index
    %306 = vector.load %arg2[%c0_208, %c0_209] : memref<128x128xf32, #tpu.memory_space<vmem>>, vector<128x128xf32>
    %cst_210 = arith.constant dense<0.000000e+00> : vector<16x128xf32>
    %307 = tpu.matmul %305, %306, %cst_210 {dimension_numbers = #tpu.dot_dimension_numbers<[1], [0], [0], [1], [0, 0, 1, 1], [], []>} : vector<16x128xf32>, vector<128x128xf32>, vector<16x128xf32> -> vector<16x128xf32>
    %c0_211 = arith.constant 0 : index
    %c0_212 = arith.constant 0 : index
    %308 = vector.load %arg3[%c0_211, %c0_212] : memref<16x128xf32, #tpu.memory_space<vmem>>, vector<16x128xf32>
    %309 = arith.mulf %307, %308 : vector<16x128xf32>
    %c0_213 = arith.constant 0 : index
    %c0_214 = arith.constant 0 : index
    %310 = vector.load %arg11[%c0_213, %c0_214] : memref<48x16xf32, #tpu.memory_space<vmem>>, vector<48x16xf32>
    %cst_215 = arith.constant dense<0.000000e+00> : vector<48x128xf32>
    %311 = tpu.matmul %310, %309, %cst_215 {dimension_numbers = #tpu.dot_dimension_numbers<[1], [0], [0], [1], [0, 0, 1, 1], [], []>} : vector<48x16xf32>, vector<16x128xf32>, vector<48x128xf32> -> vector<48x128xf32>
    %c0_216 = arith.constant 0 : index
    %c0_217 = arith.constant 0 : index
    %312 = vector.load %arg13[%c0_216, %c0_217] : memref<48x128xf32, #tpu.memory_space<vmem>>, vector<48x128xf32>
    %313 = arith.addf %311, %312 : vector<48x128xf32>
    %c0_218 = arith.constant 0 : index
    %c0_219 = arith.constant 0 : index
    %314 = vector.load %arg12[%c0_218, %c0_219] : memref<48x16xf32, #tpu.memory_space<vmem>>, vector<48x16xf32>
    %cst_220 = arith.constant dense<0.000000e+00> : vector<48x128xf32>
    %315 = tpu.matmul %314, %296, %cst_220 {dimension_numbers = #tpu.dot_dimension_numbers<[1], [0], [0], [1], [0, 0, 1, 1], [], []>} : vector<48x16xf32>, vector<16x128xf32>, vector<48x128xf32> -> vector<48x128xf32>
    %c0_221 = arith.constant 0 : index
    %c0_222 = arith.constant 0 : index
    %316 = vector.load %arg14[%c0_221, %c0_222] : memref<48x128xf32, #tpu.memory_space<vmem>>, vector<48x128xf32>
    %317 = arith.addf %315, %316 : vector<48x128xf32>
    %318 = vector.extract_strided_slice %313 {offsets = [0, 0], sizes = [16, 128], strides = [1, 1]} : vector<48x128xf32> to vector<16x128xf32>
    %319 = vector.extract_strided_slice %317 {offsets = [0, 0], sizes = [16, 128], strides = [1, 1]} : vector<48x128xf32> to vector<16x128xf32>
    %320 = arith.addf %318, %319 : vector<16x128xf32>
    %321 = arith.negf %320 : vector<16x128xf32>
    %322 = math.exp %321 : vector<16x128xf32>
    %cst_223 = arith.constant 1.000000e+00 : f32
    %323 = vector.broadcast %cst_223 : f32 to vector<16x128xf32>
    %324 = arith.addf %323, %322 : vector<16x128xf32>
    %325 = arith.divf %323, %324 : vector<16x128xf32>
    %326 = vector.extract_strided_slice %313 {offsets = [16, 0], sizes = [16, 128], strides = [1, 1]} : vector<48x128xf32> to vector<16x128xf32>
    %327 = vector.extract_strided_slice %317 {offsets = [16, 0], sizes = [16, 128], strides = [1, 1]} : vector<48x128xf32> to vector<16x128xf32>
    %328 = arith.addf %326, %327 : vector<16x128xf32>
    %329 = arith.negf %328 : vector<16x128xf32>
    %330 = math.exp %329 : vector<16x128xf32>
    %cst_224 = arith.constant 1.000000e+00 : f32
    %331 = vector.broadcast %cst_224 : f32 to vector<16x128xf32>
    %332 = arith.addf %331, %330 : vector<16x128xf32>
    %333 = arith.divf %331, %332 : vector<16x128xf32>
    %334 = vector.extract_strided_slice %313 {offsets = [32, 0], sizes = [16, 128], strides = [1, 1]} : vector<48x128xf32> to vector<16x128xf32>
    %335 = vector.extract_strided_slice %317 {offsets = [32, 0], sizes = [16, 128], strides = [1, 1]} : vector<48x128xf32> to vector<16x128xf32>
    %336 = arith.mulf %325, %335 : vector<16x128xf32>
    %337 = arith.addf %334, %336 : vector<16x128xf32>
    %338 = math.tanh %337 : vector<16x128xf32>
    %cst_225 = arith.constant 1.000000e+00 : f32
    %339 = vector.broadcast %cst_225 : f32 to vector<16x128xf32>
    %340 = arith.subf %339, %333 : vector<16x128xf32>
    %341 = arith.mulf %340, %338 : vector<16x128xf32>
    %342 = arith.mulf %333, %296 : vector<16x128xf32>
    %343 = arith.addf %341, %342 : vector<16x128xf32>
    %344 = arith.addf %248, %343 : vector<16x128xf32>
    %c112 = arith.constant 112 : index
    %c0_226 = arith.constant 0 : index
    %345 = vector.load %arg15[%c112, %c0_226] : memref<176x128xf32, #tpu.memory_space<vmem>>, vector<16x128xf32>
    tpu.vector_store %arg15[%c112, %c0_226], %344 {strides = array<i32>} : memref<176x128xf32, #tpu.memory_space<vmem>>, vector<16x128xf32>,
    %c0_227 = arith.constant 0 : index
    %c0_228 = arith.constant 0 : index
    %346 = vector.load %arg1[%c0_227, %c0_228] : memref<128x128xf32, #tpu.memory_space<vmem>>, vector<128x128xf32>
    %cst_229 = arith.constant dense<0.000000e+00> : vector<16x128xf32>
    %347 = tpu.matmul %344, %346, %cst_229 {dimension_numbers = #tpu.dot_dimension_numbers<[1], [0], [0], [1], [0, 0, 1, 1], [], []>} : vector<16x128xf32>, vector<128x128xf32>, vector<16x128xf32> -> vector<16x128xf32>
    %c0_230 = arith.constant 0 : index
    %c0_231 = arith.constant 0 : index
    %348 = vector.load %arg9[%c0_230, %c0_231] : memref<256x16xf32, #tpu.memory_space<vmem>>, vector<256x16xf32>
    %cst_232 = arith.constant dense<0.000000e+00> : vector<256x128xf32>
    %349 = tpu.matmul %348, %347, %cst_232 {dimension_numbers = #tpu.dot_dimension_numbers<[1], [0], [0], [1], [0, 0, 1, 1], [], []>} : vector<256x16xf32>, vector<16x128xf32>, vector<256x128xf32> -> vector<256x128xf32>
    %c0_233 = arith.constant 0 : index
    %c0_234 = arith.constant 0 : index
    %350 = vector.load %arg10[%c0_233, %c0_234] : memref<16x256xf32, #tpu.memory_space<vmem>>, vector<16x256xf32>
    %c0_235 = arith.constant 0 : index
    %c0_236 = arith.constant 0 : index
    %351 = vector.load %arg16[%c0_235, %c0_236] : memref<256x128xf32, #tpu.memory_space<vmem>>, vector<256x128xf32>
    %352 = arith.mulf %349, %351 : vector<256x128xf32>
    %cst_237 = arith.constant dense<0.000000e+00> : vector<16x128xf32>
    %353 = tpu.matmul %350, %352, %cst_237 {dimension_numbers = #tpu.dot_dimension_numbers<[1], [0], [0], [1], [0, 0, 1, 1], [], []>} : vector<16x256xf32>, vector<256x128xf32>, vector<16x128xf32> -> vector<16x128xf32>
    %c0_238 = arith.constant 0 : index
    %c0_239 = arith.constant 0 : index
    %354 = vector.load %arg2[%c0_238, %c0_239] : memref<128x128xf32, #tpu.memory_space<vmem>>, vector<128x128xf32>
    %cst_240 = arith.constant dense<0.000000e+00> : vector<16x128xf32>
    %355 = tpu.matmul %353, %354, %cst_240 {dimension_numbers = #tpu.dot_dimension_numbers<[1], [0], [0], [1], [0, 0, 1, 1], [], []>} : vector<16x128xf32>, vector<128x128xf32>, vector<16x128xf32> -> vector<16x128xf32>
    %c0_241 = arith.constant 0 : index
    %c0_242 = arith.constant 0 : index
    %356 = vector.load %arg3[%c0_241, %c0_242] : memref<16x128xf32, #tpu.memory_space<vmem>>, vector<16x128xf32>
    %357 = arith.mulf %355, %356 : vector<16x128xf32>
    %c0_243 = arith.constant 0 : index
    %c0_244 = arith.constant 0 : index
    %358 = vector.load %arg11[%c0_243, %c0_244] : memref<48x16xf32, #tpu.memory_space<vmem>>, vector<48x16xf32>
    %cst_245 = arith.constant dense<0.000000e+00> : vector<48x128xf32>
    %359 = tpu.matmul %358, %357, %cst_245 {dimension_numbers = #tpu.dot_dimension_numbers<[1], [0], [0], [1], [0, 0, 1, 1], [], []>} : vector<48x16xf32>, vector<16x128xf32>, vector<48x128xf32> -> vector<48x128xf32>
    %c0_246 = arith.constant 0 : index
    %c0_247 = arith.constant 0 : index
    %360 = vector.load %arg13[%c0_246, %c0_247] : memref<48x128xf32, #tpu.memory_space<vmem>>, vector<48x128xf32>
    %361 = arith.addf %359, %360 : vector<48x128xf32>
    %c0_248 = arith.constant 0 : index
    %c0_249 = arith.constant 0 : index
    %362 = vector.load %arg12[%c0_248, %c0_249] : memref<48x16xf32, #tpu.memory_space<vmem>>, vector<48x16xf32>
    %cst_250 = arith.constant dense<0.000000e+00> : vector<48x128xf32>
    %363 = tpu.matmul %362, %344, %cst_250 {dimension_numbers = #tpu.dot_dimension_numbers<[1], [0], [0], [1], [0, 0, 1, 1], [], []>} : vector<48x16xf32>, vector<16x128xf32>, vector<48x128xf32> -> vector<48x128xf32>
    %c0_251 = arith.constant 0 : index
    %c0_252 = arith.constant 0 : index
    %364 = vector.load %arg14[%c0_251, %c0_252] : memref<48x128xf32, #tpu.memory_space<vmem>>, vector<48x128xf32>
    %365 = arith.addf %363, %364 : vector<48x128xf32>
    %366 = vector.extract_strided_slice %361 {offsets = [0, 0], sizes = [16, 128], strides = [1, 1]} : vector<48x128xf32> to vector<16x128xf32>
    %367 = vector.extract_strided_slice %365 {offsets = [0, 0], sizes = [16, 128], strides = [1, 1]} : vector<48x128xf32> to vector<16x128xf32>
    %368 = arith.addf %366, %367 : vector<16x128xf32>
    %369 = arith.negf %368 : vector<16x128xf32>
    %370 = math.exp %369 : vector<16x128xf32>
    %cst_253 = arith.constant 1.000000e+00 : f32
    %371 = vector.broadcast %cst_253 : f32 to vector<16x128xf32>
    %372 = arith.addf %371, %370 : vector<16x128xf32>
    %373 = arith.divf %371, %372 : vector<16x128xf32>
    %374 = vector.extract_strided_slice %361 {offsets = [16, 0], sizes = [16, 128], strides = [1, 1]} : vector<48x128xf32> to vector<16x128xf32>
    %375 = vector.extract_strided_slice %365 {offsets = [16, 0], sizes = [16, 128], strides = [1, 1]} : vector<48x128xf32> to vector<16x128xf32>
    %376 = arith.addf %374, %375 : vector<16x128xf32>
    %377 = arith.negf %376 : vector<16x128xf32>
    %378 = math.exp %377 : vector<16x128xf32>
    %cst_254 = arith.constant 1.000000e+00 : f32
    %379 = vector.broadcast %cst_254 : f32 to vector<16x128xf32>
    %380 = arith.addf %379, %378 : vector<16x128xf32>
    %381 = arith.divf %379, %380 : vector<16x128xf32>
    %382 = vector.extract_strided_slice %361 {offsets = [32, 0], sizes = [16, 128], strides = [1, 1]} : vector<48x128xf32> to vector<16x128xf32>
    %383 = vector.extract_strided_slice %365 {offsets = [32, 0], sizes = [16, 128], strides = [1, 1]} : vector<48x128xf32> to vector<16x128xf32>
    %384 = arith.mulf %373, %383 : vector<16x128xf32>
    %385 = arith.addf %382, %384 : vector<16x128xf32>
    %386 = math.tanh %385 : vector<16x128xf32>
    %cst_255 = arith.constant 1.000000e+00 : f32
    %387 = vector.broadcast %cst_255 : f32 to vector<16x128xf32>
    %388 = arith.subf %387, %381 : vector<16x128xf32>
    %389 = arith.mulf %388, %386 : vector<16x128xf32>
    %390 = arith.mulf %381, %344 : vector<16x128xf32>
    %391 = arith.addf %389, %390 : vector<16x128xf32>
    %c128 = arith.constant 128 : index
    %c0_256 = arith.constant 0 : index
    %392 = vector.load %arg15[%c128, %c0_256] : memref<176x128xf32, #tpu.memory_space<vmem>>, vector<16x128xf32>
    tpu.vector_store %arg15[%c128, %c0_256], %391 {strides = array<i32>} : memref<176x128xf32, #tpu.memory_space<vmem>>, vector<16x128xf32>,
    %c0_257 = arith.constant 0 : index
    %c0_258 = arith.constant 0 : index
    %393 = vector.load %arg1[%c0_257, %c0_258] : memref<128x128xf32, #tpu.memory_space<vmem>>, vector<128x128xf32>
    %cst_259 = arith.constant dense<0.000000e+00> : vector<16x128xf32>
    %394 = tpu.matmul %391, %393, %cst_259 {dimension_numbers = #tpu.dot_dimension_numbers<[1], [0], [0], [1], [0, 0, 1, 1], [], []>} : vector<16x128xf32>, vector<128x128xf32>, vector<16x128xf32> -> vector<16x128xf32>
    %c0_260 = arith.constant 0 : index
    %c0_261 = arith.constant 0 : index
    %395 = vector.load %arg9[%c0_260, %c0_261] : memref<256x16xf32, #tpu.memory_space<vmem>>, vector<256x16xf32>
    %cst_262 = arith.constant dense<0.000000e+00> : vector<256x128xf32>
    %396 = tpu.matmul %395, %394, %cst_262 {dimension_numbers = #tpu.dot_dimension_numbers<[1], [0], [0], [1], [0, 0, 1, 1], [], []>} : vector<256x16xf32>, vector<16x128xf32>, vector<256x128xf32> -> vector<256x128xf32>
    %c0_263 = arith.constant 0 : index
    %c0_264 = arith.constant 0 : index
    %397 = vector.load %arg10[%c0_263, %c0_264] : memref<16x256xf32, #tpu.memory_space<vmem>>, vector<16x256xf32>
    %c0_265 = arith.constant 0 : index
    %c0_266 = arith.constant 0 : index
    %398 = vector.load %arg16[%c0_265, %c0_266] : memref<256x128xf32, #tpu.memory_space<vmem>>, vector<256x128xf32>
    %399 = arith.mulf %396, %398 : vector<256x128xf32>
    %cst_267 = arith.constant dense<0.000000e+00> : vector<16x128xf32>
    %400 = tpu.matmul %397, %399, %cst_267 {dimension_numbers = #tpu.dot_dimension_numbers<[1], [0], [0], [1], [0, 0, 1, 1], [], []>} : vector<16x256xf32>, vector<256x128xf32>, vector<16x128xf32> -> vector<16x128xf32>
    %c0_268 = arith.constant 0 : index
    %c0_269 = arith.constant 0 : index
    %401 = vector.load %arg2[%c0_268, %c0_269] : memref<128x128xf32, #tpu.memory_space<vmem>>, vector<128x128xf32>
    %cst_270 = arith.constant dense<0.000000e+00> : vector<16x128xf32>
    %402 = tpu.matmul %400, %401, %cst_270 {dimension_numbers = #tpu.dot_dimension_numbers<[1], [0], [0], [1], [0, 0, 1, 1], [], []>} : vector<16x128xf32>, vector<128x128xf32>, vector<16x128xf32> -> vector<16x128xf32>
    %c0_271 = arith.constant 0 : index
    %c0_272 = arith.constant 0 : index
    %403 = vector.load %arg3[%c0_271, %c0_272] : memref<16x128xf32, #tpu.memory_space<vmem>>, vector<16x128xf32>
    %404 = arith.mulf %402, %403 : vector<16x128xf32>
    %c0_273 = arith.constant 0 : index
    %c0_274 = arith.constant 0 : index
    %405 = vector.load %arg11[%c0_273, %c0_274] : memref<48x16xf32, #tpu.memory_space<vmem>>, vector<48x16xf32>
    %cst_275 = arith.constant dense<0.000000e+00> : vector<48x128xf32>
    %406 = tpu.matmul %405, %404, %cst_275 {dimension_numbers = #tpu.dot_dimension_numbers<[1], [0], [0], [1], [0, 0, 1, 1], [], []>} : vector<48x16xf32>, vector<16x128xf32>, vector<48x128xf32> -> vector<48x128xf32>
    %c0_276 = arith.constant 0 : index
    %c0_277 = arith.constant 0 : index
    %407 = vector.load %arg13[%c0_276, %c0_277] : memref<48x128xf32, #tpu.memory_space<vmem>>, vector<48x128xf32>
    %408 = arith.addf %406, %407 : vector<48x128xf32>
    %c0_278 = arith.constant 0 : index
    %c0_279 = arith.constant 0 : index
    %409 = vector.load %arg12[%c0_278, %c0_279] : memref<48x16xf32, #tpu.memory_space<vmem>>, vector<48x16xf32>
    %cst_280 = arith.constant dense<0.000000e+00> : vector<48x128xf32>
    %410 = tpu.matmul %409, %391, %cst_280 {dimension_numbers = #tpu.dot_dimension_numbers<[1], [0], [0], [1], [0, 0, 1, 1], [], []>} : vector<48x16xf32>, vector<16x128xf32>, vector<48x128xf32> -> vector<48x128xf32>
    %c0_281 = arith.constant 0 : index
    %c0_282 = arith.constant 0 : index
    %411 = vector.load %arg14[%c0_281, %c0_282] : memref<48x128xf32, #tpu.memory_space<vmem>>, vector<48x128xf32>
    %412 = arith.addf %410, %411 : vector<48x128xf32>
    %413 = vector.extract_strided_slice %408 {offsets = [0, 0], sizes = [16, 128], strides = [1, 1]} : vector<48x128xf32> to vector<16x128xf32>
    %414 = vector.extract_strided_slice %412 {offsets = [0, 0], sizes = [16, 128], strides = [1, 1]} : vector<48x128xf32> to vector<16x128xf32>
    %415 = arith.addf %413, %414 : vector<16x128xf32>
    %416 = arith.negf %415 : vector<16x128xf32>
    %417 = math.exp %416 : vector<16x128xf32>
    %cst_283 = arith.constant 1.000000e+00 : f32
    %418 = vector.broadcast %cst_283 : f32 to vector<16x128xf32>
    %419 = arith.addf %418, %417 : vector<16x128xf32>
    %420 = arith.divf %418, %419 : vector<16x128xf32>
    %421 = vector.extract_strided_slice %408 {offsets = [16, 0], sizes = [16, 128], strides = [1, 1]} : vector<48x128xf32> to vector<16x128xf32>
    %422 = vector.extract_strided_slice %412 {offsets = [16, 0], sizes = [16, 128], strides = [1, 1]} : vector<48x128xf32> to vector<16x128xf32>
    %423 = arith.addf %421, %422 : vector<16x128xf32>
    %424 = arith.negf %423 : vector<16x128xf32>
    %425 = math.exp %424 : vector<16x128xf32>
    %cst_284 = arith.constant 1.000000e+00 : f32
    %426 = vector.broadcast %cst_284 : f32 to vector<16x128xf32>
    %427 = arith.addf %426, %425 : vector<16x128xf32>
    %428 = arith.divf %426, %427 : vector<16x128xf32>
    %429 = vector.extract_strided_slice %408 {offsets = [32, 0], sizes = [16, 128], strides = [1, 1]} : vector<48x128xf32> to vector<16x128xf32>
    %430 = vector.extract_strided_slice %412 {offsets = [32, 0], sizes = [16, 128], strides = [1, 1]} : vector<48x128xf32> to vector<16x128xf32>
    %431 = arith.mulf %420, %430 : vector<16x128xf32>
    %432 = arith.addf %429, %431 : vector<16x128xf32>
    %433 = math.tanh %432 : vector<16x128xf32>
    %cst_285 = arith.constant 1.000000e+00 : f32
    %434 = vector.broadcast %cst_285 : f32 to vector<16x128xf32>
    %435 = arith.subf %434, %428 : vector<16x128xf32>
    %436 = arith.mulf %435, %433 : vector<16x128xf32>
    %437 = arith.mulf %428, %391 : vector<16x128xf32>
    %438 = arith.addf %436, %437 : vector<16x128xf32>
    %439 = arith.addf %343, %438 : vector<16x128xf32>
    %c144 = arith.constant 144 : index
    %c0_286 = arith.constant 0 : index
    %440 = vector.load %arg15[%c144, %c0_286] : memref<176x128xf32, #tpu.memory_space<vmem>>, vector<16x128xf32>
    tpu.vector_store %arg15[%c144, %c0_286], %439 {strides = array<i32>} : memref<176x128xf32, #tpu.memory_space<vmem>>, vector<16x128xf32>,
    %c0_287 = arith.constant 0 : index
    %c0_288 = arith.constant 0 : index
    %441 = vector.load %arg1[%c0_287, %c0_288] : memref<128x128xf32, #tpu.memory_space<vmem>>, vector<128x128xf32>
    %cst_289 = arith.constant dense<0.000000e+00> : vector<16x128xf32>
    %442 = tpu.matmul %439, %441, %cst_289 {dimension_numbers = #tpu.dot_dimension_numbers<[1], [0], [0], [1], [0, 0, 1, 1], [], []>} : vector<16x128xf32>, vector<128x128xf32>, vector<16x128xf32> -> vector<16x128xf32>
    %c0_290 = arith.constant 0 : index
    %c0_291 = arith.constant 0 : index
    %443 = vector.load %arg9[%c0_290, %c0_291] : memref<256x16xf32, #tpu.memory_space<vmem>>, vector<256x16xf32>
    %cst_292 = arith.constant dense<0.000000e+00> : vector<256x128xf32>
    %444 = tpu.matmul %443, %442, %cst_292 {dimension_numbers = #tpu.dot_dimension_numbers<[1], [0], [0], [1], [0, 0, 1, 1], [], []>} : vector<256x16xf32>, vector<16x128xf32>, vector<256x128xf32> -> vector<256x128xf32>
    %c0_293 = arith.constant 0 : index
    %c0_294 = arith.constant 0 : index
    %445 = vector.load %arg10[%c0_293, %c0_294] : memref<16x256xf32, #tpu.memory_space<vmem>>, vector<16x256xf32>
    %c0_295 = arith.constant 0 : index
    %c0_296 = arith.constant 0 : index
    %446 = vector.load %arg16[%c0_295, %c0_296] : memref<256x128xf32, #tpu.memory_space<vmem>>, vector<256x128xf32>
    %447 = arith.mulf %444, %446 : vector<256x128xf32>
    %cst_297 = arith.constant dense<0.000000e+00> : vector<16x128xf32>
    %448 = tpu.matmul %445, %447, %cst_297 {dimension_numbers = #tpu.dot_dimension_numbers<[1], [0], [0], [1], [0, 0, 1, 1], [], []>} : vector<16x256xf32>, vector<256x128xf32>, vector<16x128xf32> -> vector<16x128xf32>
    %c0_298 = arith.constant 0 : index
    %c0_299 = arith.constant 0 : index
    %449 = vector.load %arg2[%c0_298, %c0_299] : memref<128x128xf32, #tpu.memory_space<vmem>>, vector<128x128xf32>
    %cst_300 = arith.constant dense<0.000000e+00> : vector<16x128xf32>
    %450 = tpu.matmul %448, %449, %cst_300 {dimension_numbers = #tpu.dot_dimension_numbers<[1], [0], [0], [1], [0, 0, 1, 1], [], []>} : vector<16x128xf32>, vector<128x128xf32>, vector<16x128xf32> -> vector<16x128xf32>
    %c0_301 = arith.constant 0 : index
    %c0_302 = arith.constant 0 : index
    %451 = vector.load %arg3[%c0_301, %c0_302] : memref<16x128xf32, #tpu.memory_space<vmem>>, vector<16x128xf32>
    %452 = arith.mulf %450, %451 : vector<16x128xf32>
    %c0_303 = arith.constant 0 : index
    %c0_304 = arith.constant 0 : index
    %453 = vector.load %arg11[%c0_303, %c0_304] : memref<48x16xf32, #tpu.memory_space<vmem>>, vector<48x16xf32>
    %cst_305 = arith.constant dense<0.000000e+00> : vector<48x128xf32>
    %454 = tpu.matmul %453, %452, %cst_305 {dimension_numbers = #tpu.dot_dimension_numbers<[1], [0], [0], [1], [0, 0, 1, 1], [], []>} : vector<48x16xf32>, vector<16x128xf32>, vector<48x128xf32> -> vector<48x128xf32>
    %c0_306 = arith.constant 0 : index
    %c0_307 = arith.constant 0 : index
    %455 = vector.load %arg13[%c0_306, %c0_307] : memref<48x128xf32, #tpu.memory_space<vmem>>, vector<48x128xf32>
    %456 = arith.addf %454, %455 : vector<48x128xf32>
    %c0_308 = arith.constant 0 : index
    %c0_309 = arith.constant 0 : index
    %457 = vector.load %arg12[%c0_308, %c0_309] : memref<48x16xf32, #tpu.memory_space<vmem>>, vector<48x16xf32>
    %cst_310 = arith.constant dense<0.000000e+00> : vector<48x128xf32>
    %458 = tpu.matmul %457, %439, %cst_310 {dimension_numbers = #tpu.dot_dimension_numbers<[1], [0], [0], [1], [0, 0, 1, 1], [], []>} : vector<48x16xf32>, vector<16x128xf32>, vector<48x128xf32> -> vector<48x128xf32>
    %c0_311 = arith.constant 0 : index
    %c0_312 = arith.constant 0 : index
    %459 = vector.load %arg14[%c0_311, %c0_312] : memref<48x128xf32, #tpu.memory_space<vmem>>, vector<48x128xf32>
    %460 = arith.addf %458, %459 : vector<48x128xf32>
    %461 = vector.extract_strided_slice %456 {offsets = [0, 0], sizes = [16, 128], strides = [1, 1]} : vector<48x128xf32> to vector<16x128xf32>
    %462 = vector.extract_strided_slice %460 {offsets = [0, 0], sizes = [16, 128], strides = [1, 1]} : vector<48x128xf32> to vector<16x128xf32>
    %463 = arith.addf %461, %462 : vector<16x128xf32>
    %464 = arith.negf %463 : vector<16x128xf32>
    %465 = math.exp %464 : vector<16x128xf32>
    %cst_313 = arith.constant 1.000000e+00 : f32
    %466 = vector.broadcast %cst_313 : f32 to vector<16x128xf32>
    %467 = arith.addf %466, %465 : vector<16x128xf32>
    %468 = arith.divf %466, %467 : vector<16x128xf32>
    %469 = vector.extract_strided_slice %456 {offsets = [16, 0], sizes = [16, 128], strides = [1, 1]} : vector<48x128xf32> to vector<16x128xf32>
    %470 = vector.extract_strided_slice %460 {offsets = [16, 0], sizes = [16, 128], strides = [1, 1]} : vector<48x128xf32> to vector<16x128xf32>
    %471 = arith.addf %469, %470 : vector<16x128xf32>
    %472 = arith.negf %471 : vector<16x128xf32>
    %473 = math.exp %472 : vector<16x128xf32>
    %cst_314 = arith.constant 1.000000e+00 : f32
    %474 = vector.broadcast %cst_314 : f32 to vector<16x128xf32>
    %475 = arith.addf %474, %473 : vector<16x128xf32>
    %476 = arith.divf %474, %475 : vector<16x128xf32>
    %477 = vector.extract_strided_slice %456 {offsets = [32, 0], sizes = [16, 128], strides = [1, 1]} : vector<48x128xf32> to vector<16x128xf32>
    %478 = vector.extract_strided_slice %460 {offsets = [32, 0], sizes = [16, 128], strides = [1, 1]} : vector<48x128xf32> to vector<16x128xf32>
    %479 = arith.mulf %468, %478 : vector<16x128xf32>
    %480 = arith.addf %477, %479 : vector<16x128xf32>
    %481 = math.tanh %480 : vector<16x128xf32>
    %cst_315 = arith.constant 1.000000e+00 : f32
    %482 = vector.broadcast %cst_315 : f32 to vector<16x128xf32>
    %483 = arith.subf %482, %476 : vector<16x128xf32>
    %484 = arith.mulf %483, %481 : vector<16x128xf32>
    %485 = arith.mulf %476, %439 : vector<16x128xf32>
    %486 = arith.addf %484, %485 : vector<16x128xf32>
    %c160 = arith.constant 160 : index
    %c0_316 = arith.constant 0 : index
    %487 = vector.load %arg15[%c160, %c0_316] : memref<176x128xf32, #tpu.memory_space<vmem>>, vector<16x128xf32>
    tpu.vector_store %arg15[%c160, %c0_316], %486 {strides = array<i32>} : memref<176x128xf32, #tpu.memory_space<vmem>>, vector<16x128xf32>,
    return
  }
}

</mosaic_0001>

<bundles_post_ra>
// kernel: tpu_custom_call.1
= control target key start
LH: loop header
LB: loop body
LE: loop exit
PB: predicated region body
PF: predicated region fallthrough
CT: control target
= control target key end

     0   :  { %20 = vsyncpa [#allocation4], 0  ;;  %s19738_s0 = inlined_call_operand.hbm [shape: f32[16,128], index: 0, kind: input, shape index: {}]   ;;  %s19739_s1 = inlined_call_operand.vmem [shape: f32[128,128], index: 1, kind: input, shape index: {}]   ;;  %s19740_s2 = inlined_call_operand.vmem [shape: f32[128,128], index: 2, kind: input, shape index: {}]   ;;  %s19741_s3 = inlined_call_operand.vmem [shape: f32[16,128], index: 3, kind: input, shape index: {}]   ;;  %s19742_s4 = inlined_call_operand.hbm [shape: f32[8,128], index: 4, kind: input, shape index: {}]   ;;  %s19743_s5 = inlined_call_operand.vmem [shape: f32[32,8], index: 5, kind: input, shape index: {}]   ;;  %s19744_s6 = inlined_call_operand.vmem [shape: f32[32,128], index: 6, kind: input, shape index: {}]   ;;  %s19745_s7 = inlined_call_operand.vmem [shape: f32[256,32], index: 7, kind: input, shape index: {}]   ;;  %s19746_s8 = inlined_call_operand.vmem [shape: f32[256,128], index: 8, kind: input, shape index: {}]   ;;  %s19747_s9 = inlined_call_operand.vmem [shape: f32[256,16], index: 9, kind: input, shape index: {}]   ;;  %s19748_s10 = inlined_call_operand.vmem [shape: f32[16,256], index: 10, kind: input, shape index: {}]   ;;  %s19749_s11 = inlined_call_operand.vmem [shape: f32[48,16], index: 11, kind: input, shape index: {}]   ;;  %s19750_s12 = inlined_call_operand.vmem [shape: f32[48,16], index: 12, kind: input, shape index: {}]   ;;  %s19751_s13 = inlined_call_operand.vmem [shape: f32[48,128], index: 13, kind: input, shape index: {}]   ;;  %s19752_s14 = inlined_call_operand.vmem [shape: f32[48,128], index: 14, kind: input, shape index: {}]   ;;  %s19753_s15 = inlined_call_operand.hbm [shape: f32[176,128], index: 15, kind: output, shape index: {}]  }
   0x1   :  { %21 = vsyncpa [#allocation7], 0 }
   0x2   :  { %22 = vsyncpa [#allocation5], 0  ;;  %s15227_s18 = smov [#allocation3]   ;;  %s15155_s22 = scalar_lea.hbm %s19738_s0, 256 }
   0x3   :  { %s28_s19 = sshll.u32 %s15227_s18, 4  ;;  %p15156_p0 = scmp.ne.s32.totalorder %s19738_s0, %s15155_s22  ;;  %s29_s19 = int_to_ptr.vmem [resolvable:$true] %s28_s19 }
   0x4   :  { %p15159_p1 = scmp.lt.u32.totalorder %s15155_s22, %s19738_s0 }
   0x6   :  { %p15161_p2 = pnand %p15159_p1, %p15156_p0 }
   0x8   :  { %15164 = shalt.err (!%p15161_p2)
}
   0x9   :  { %s15165_s27 = scalar_lea.vmem %s29_s19, 256  ;;  %p15170_p4 = scmp.lt.s32.totalorder %s29_s19, %s29_s19 }
   0xa   :  { %p15166_p3 = scmp.ne.s32.totalorder %s29_s19, %s15165_s27  ;;  %p15171_p5 = scmp.lt.s32.totalorder %s15165_s27, %s15165_s27 }
   0xc   :  { %p15172_p6 = por %p15171_p5, %p15170_p4 }
   0xe   :  { %p15173_p7 = pnand %p15172_p6, %p15166_p3 }
  0x10   :  { %15176 = shalt.err (!%p15173_p7)
}
  0x11   :  { %s15228_s28 = smov 128   ;;  %s15229_s29 = smov 8  }
  0x12   :  { %34 = dma.hbm_to_vmem [thread:$0]  %s19738_s0, 256, %s29_s19, [#allocation4], %s15228_s28, %s15228_s28, %s15229_s29  }
  0x13   :  { %s15230_s17 = smov [#allocation6]   ;;  %s15177_s22 = scalar_lea.hbm %s19742_s4, 128 }
  0x14   :  { %s47_s18 = sshll.u32 %s15230_s17, 4  ;;  %p15178_p8 = scmp.ne.s32.totalorder %s19742_s4, %s15177_s22  ;;  %s48_s18 = int_to_ptr.vmem [resolvable:$true] %s47_s18 }
  0x15   :  { %p15181_p9 = scmp.lt.u32.totalorder %s15177_s22, %s19742_s4 }
  0x17   :  { %p15183_p10 = pnand %p15181_p9, %p15178_p8 }
  0x19   :  { %15186 = shalt.err (!%p15183_p10)
}
  0x1a   :  { %s15187_s27 = scalar_lea.vmem %s48_s18, 128  ;;  %p15192_p12 = scmp.lt.s32.totalorder %s48_s18, %s48_s18 }
  0x1b   :  { %p15188_p11 = scmp.ne.s32.totalorder %s48_s18, %s15187_s27  ;;  %p15193_p13 = scmp.lt.s32.totalorder %s15187_s27, %s15187_s27 }
  0x1d   :  { %p15194_p0 = por %p15193_p13, %p15192_p12 }
  0x1f   :  { %p15195_p1 = pnand %p15194_p0, %p15188_p11 }
  0x21   :  { %15198 = shalt.err (!%p15195_p1)
}
  0x22   :  { %50 = dma.hbm_to_vmem [thread:$0]  %s19742_s4, 128, %s48_s18, [#allocation7]  }
  0x23   :  { %15221 = dma.done.wait [#allocation4], 256  }
  0x24   :  { %15222 = vsyncadd [#allocation4], 4294967040 }
  0x25   :  { %15223 = dma.done.wait [#allocation7], 128  }
  0x26   :  { %15224 = vsyncadd [#allocation7], 4294967168  ;;  %vm86_vm0 = vcmask 64512   ;;  %v81_v0 = vld [vmem:[#allocation6] sm:$0xff]  ;;  %v77_v1 = vld [vmem:[%s19743_s5] sm:$0xff]  ;;  %vm252_vm1 = vcmask 261120  }
  0x27   :  { %v78_v2 = vld [vmem:[%s19743_s5 + $0x8] sm:$0xff]  ;;  %12194 = vmatprep.subr.mxu0 %v81_v0  ;;  %12196 = vmatprep.mubr.msk.f32.mxu0 %vm86_vm0, %v77_v1  ;;  %v610_v3 = vld [vmem:[%s19739_s1] sm:$0xff]  ;;  %v612_v5 = vld [vmem:[%s19739_s1 + $0x10] sm:$0xff]  ;;  %vm733_vm2 = vcmask 130048  }
  0x28   :  { %v611_v4 = vld [vmem:[%s19739_s1 + $0x8] sm:$0xff]  ;;  %12195 = vmatpush3.msra.mxu0 %v81_v0  ;;  %v613_v7 = vld [vmem:[%s19739_s1 + $0x18] sm:$0xff]  ;;  %v614_v9 = vld [vmem:[%s19739_s1 + $0x20] sm:$0xff] }
  0x29   :  { %v13746_v6 = vpack.c.bf16 %v611_v4, %v610_v3  ;;  %12197 = vmatmul.mubr.msk.f32.vlgmr.msra.gmra.mrb[0].mxu0 %vm86_vm0, %v78_v2  ;;  %v13750_v8 = vpack.c.bf16 %v613_v7, %v612_v5  ;;  %v615_v10 = vld [vmem:[%s19739_s1 + $0x28] sm:$0xff]  ;;  %v79_v11 = vld [vmem:[%s19743_s5 + $0x10] sm:$0xff]  ;;  %v80_v12 = vld [vmem:[%s19743_s5 + $0x18] sm:$0xff] }
  0x2a   :  { %v13754_v13 = vpack.c.bf16 %v615_v10, %v614_v9  ;;  %v616_v14 = vld [vmem:[%s19739_s1 + $0x30] sm:$0xff]  ;;  %12199 = vmatprep.mubr.msk.f32.mxu0 %vm86_vm0, %v79_v11  ;;  %v617_v15 = vld [vmem:[%s19739_s1 + $0x38] sm:$0xff]  ;;  %v15379_v16 = vld [vmem:[#allocation3] sm:$0xff] }
  0x2b   :  { %13747 = vmatprep.subr.bf16.mxu0 %v13746_v6  ;;  %v15381_v17 = vld [vmem:[#allocation3 + $0x8] sm:$0xff]  ;;  %608 = vst [vmem:[#allocation8] sm:$0xff] %v15379_v16  ;;  %v13758_v18 = vpack.c.bf16 %v617_v15, %v616_v14  ;;  %v618_v19 = vld [vmem:[%s19739_s1 + $0x40] sm:$0xff]  ;;  %v620_v22 = vld [vmem:[%s19739_s1 + $0x50] sm:$0xff] }
  0x2c   :  { %13749 = vmatpush3.bf16.msra.mxu0 %v13746_v6  ;;  %609 = vst [vmem:[#allocation8 + $0x8] sm:$0xff] %v15381_v17  ;;  %v619_v20 = vld [vmem:[%s19739_s1 + $0x48] sm:$0xff]  ;;  %v621_v23 = vld [vmem:[%s19739_s1 + $0x58] sm:$0xff]  ;;  %v622_v25 = vld [vmem:[%s19739_s1 + $0x60] sm:$0xff] }
  0x2d   :  { %13751 = vmatprep.subr.bf16.mxu0 %v13750_v8  ;;  %12200 = vmatmul.mubr.msk.f32.gmra.mrb[2].mxu0 %vm86_vm0, %v80_v12  ;;  %v13762_v21 = vpack.c.bf16 %v619_v20, %v618_v19  ;;  %v13766_v24 = vpack.c.bf16 %v621_v23, %v620_v22  ;;  %v623_v26 = vld [vmem:[%s19739_s1 + $0x68] sm:$0xff]  ;;  %v624_v28 = vld [vmem:[%s19739_s1 + $0x70] sm:$0xff]  ;;  %v625_v29 = vld [vmem:[%s19739_s1 + $0x78] sm:$0xff] }
  0x2e   :  { %12290 = vmatprep.mubr.f32.mxu0 %v15379_v16  ;;  %v13770_v27 = vpack.c.bf16 %v623_v26, %v622_v25  ;;  %v13774_v30 = vpack.c.bf16 %v625_v29, %v624_v28  ;;  %v188_v31 = vld [vmem:[%s19745_s7] sm:$0xff]  ;;  %v83_v33 = vld [vmem:[%s19744_s6 + $0x8] sm:$0xff]  ;;  %v85_v39 = vld [vmem:[%s19744_s6 + $0x18] sm:$0xff] }
  0x2f   :  { %12210 = vmatprep.mubr.msk.f32.mxu1 %vm252_vm1, %v188_v31  ;;  %v701_v32 = vld [vmem:[%s19747_s9] sm:$0xff]  ;;  %v84_v41 = vld [vmem:[%s19744_s6 + $0x10] sm:$0xff]  ;;  %v189_v51 = vld [vmem:[%s19745_s7 + $0x8] sm:$0xff] }
  0x30   :  { %13753 = vmatpush3.bf16.msra.mxu0 %v13750_v8  ;;  %v82_v34 = vld [vmem:[%s19744_s6] sm:$0xff]  ;;  %v190_v52 = vld [vmem:[%s19745_s7 + $0x10] sm:$0xff]  ;;  %v191_v53 = vld [vmem:[%s19745_s7 + $0x18] sm:$0xff] }
  0x31   :  { %13755 = vmatprep.subr.bf16.mxu0 %v13754_v13  ;;  %v192_v54 = vld [vmem:[%s19745_s7 + $0x20] sm:$0xff]  ;;  %v193_v55 = vld [vmem:[%s19745_s7 + $0x28] sm:$0xff]  ;;  %v194_v56 = vld [vmem:[%s19745_s7 + $0x30] sm:$0xff] }
  0x32   :  { %v195_v57 = vld [vmem:[%s19745_s7 + $0x38] sm:$0xff]  ;;  %v196_v58 = vld [vmem:[%s19745_s7 + $0x40] sm:$0xff]  ;;  %v197_v59 = vld [vmem:[%s19745_s7 + $0x48] sm:$0xff] }
  0x33   :  { %v198_v60 = vld [vmem:[%s19745_s7 + $0x50] sm:$0xff]  ;;  %v199_v62 = vld [vmem:[%s19745_s7 + $0x58] sm:$0xff]  ;;  %v200_v0 = vld [vmem:[%s19745_s7 + $0x60] sm:$0xff] }
  0x34   :  { %13757 = vmatpush3.bf16.msra.mxu0 %v13754_v13  ;;  %v201_v2 = vld [vmem:[%s19745_s7 + $0x68] sm:$0xff]  ;;  %v202_v4 = vld [vmem:[%s19745_s7 + $0x70] sm:$0xff]  ;;  %v203_v6 = vld [vmem:[%s19745_s7 + $0x78] sm:$0xff] }
  0x35   :  { %13759 = vmatprep.subr.bf16.mxu0 %v13758_v18  ;;  %v702_v3 = vld [vmem:[%s19747_s9 + $0x8] sm:$0xff]  ;;  %v703_v5 = vld [vmem:[%s19747_s9 + $0x10] sm:$0xff]  ;;  %v704_v7 = vld [vmem:[%s19747_s9 + $0x18] sm:$0xff] }
  0x36   :  { %v204_v8 = vld [vmem:[%s19745_s7 + $0x80] sm:$0xff]  ;;  %v205_v10 = vld [vmem:[%s19745_s7 + $0x88] sm:$0xff]  ;;  %v206_v12 = vld [vmem:[%s19745_s7 + $0x90] sm:$0xff] }
  0x37   :  { %v15507_v9 = vld [vmem:[%s19747_s9 + $0x20] sm:$0xff]  ;;  %v15520_v11 = vld [vmem:[%s19747_s9 + $0x28] sm:$0xff]  ;;  %v15528_v13 = vld [vmem:[%s19747_s9 + $0x30] sm:$0xff] }
  0x38   :  { %13761 = vmatpush3.bf16.msra.mxu0 %v13758_v18  ;;  %v207_v14 = vld [vmem:[%s19745_s7 + $0x98] sm:$0xff]  ;;  %v208_v18 = vld [vmem:[%s19745_s7 + $0xa0] sm:$0xff]  ;;  %v209_v20 = vld [vmem:[%s19745_s7 + $0xa8] sm:$0xff] }
  0x39   :  { %13763 = vmatprep.subr.bf16.mxu0 %v13762_v21  ;;  %v15542_v15 = vld [vmem:[%s19747_s9 + $0x38] sm:$0xff]  ;;  %v15550_v19 = vld [vmem:[%s19747_s9 + $0x40] sm:$0xff]  ;;  %v210_v22 = vld [vmem:[%s19745_s7 + $0xb0] sm:$0xff] }
  0x3a   :  { %v15572_v23 = vld [vmem:[%s19747_s9 + $0x50] sm:$0xff]  ;;  %v15586_v25 = vld [vmem:[%s19747_s9 + $0x58] sm:$0xff]  ;;  %v212_v26 = vld [vmem:[%s19745_s7 + $0xc0] sm:$0xff] }
  0x3b   :  { %v213_v28 = vld [vmem:[%s19745_s7 + $0xc8] sm:$0xff]  ;;  %v15616_v31 = vld [vmem:[%s19747_s9 + $0x70] sm:$0xff] }
  0x3c   :  { %13765 = vmatpush3.bf16.msra.mxu0 %v13762_v21  ;;  %v15564_v21 = vld [vmem:[%s19747_s9 + $0x48] sm:$0xff]  ;;  %20118 = vst [vmem:[#allocation12_spill] sm:$0xff] %v15616_v31 }
  0x3d   :  { %13767 = vmatprep.subr.bf16.mxu0 %v13766_v24  ;;  %v15608_v29 = vld [vmem:[%s19747_s9 + $0x68] sm:$0xff] }
  0x40   :  { %13769 = vmatpush3.bf16.msra.mxu0 %v13766_v24  ;;  %v211_v24 = vld [vmem:[%s19745_s7 + $0xb8] sm:$0xff] }
  0x41   :  { %13771 = vmatprep.subr.bf16.mxu0 %v13770_v27 }
  0x44   :  { %13773 = vmatpush3.bf16.msra.mxu0 %v13770_v27  ;;  %v15594_v27 = vld [vmem:[%s19747_s9 + $0x60] sm:$0xff] }
  0x45   :  { %13775 = vmatprep.subr.bf16.mxu0 %v13774_v30 }
  0x48   :  { %13777 = vmatpush3.bf16.msra.mxu0 %v13774_v30  ;;  %v214_v30 = vld [vmem:[%s19745_s7 + $0xd0] sm:$0xff] }
  0x4b   :  { %12291 = vmatmul.mubr.f32.vlgmr.msra.gmra.mrb[4].mxu0 %v15381_v17 }
  0x4c   :  { %12297 = vmatprep.mubr.msk.f32.mxu0 %vm733_vm2, %v701_v32  ;;  %v215_v32 = vld [vmem:[%s19745_s7 + $0xd8] sm:$0xff] }
  0xfc   :  { %v12198_v35 = vpop.f32.mrb[0].mxu0 }
  0xfd   :  { %v171_v36 = vadd.f32 %v12198_v35, %v83_v33  ;;  %v165_v37 = vpop.f32.mrb[1].mxu0  ;;  %v15630_v33 = vld [vmem:[%s19747_s9 + $0x78] sm:$0xff]  ;;  %v15638_v35 = vld [vmem:[%s19747_s9 + $0x80] sm:$0xff] }
  0xfe   :  { %v166_v38 = vadd.f32 %v165_v37, %v82_v34  ;;  %20119 = vst [vmem:[#allocation13_spill] sm:$0xff] %v15630_v33  ;;  %v216_v34 = vld [vmem:[%s19745_s7 + $0xe0] sm:$0xff]  ;;  %20120 = vst [vmem:[#allocation14_spill] sm:$0xff] %v15638_v35  ;;  %v15652_v37 = vld [vmem:[%s19747_s9 + $0x88] sm:$0xff] }
  0xff   :  { %v185_v40 = vmax.f32 %v171_v36, 0.0  ;;  %v217_v36 = vld [vmem:[%s19745_s7 + $0xe8] sm:$0xff]  ;;  %20121 = vst [vmem:[#allocation15_spill] sm:$0xff] %v15652_v37 }
 0x100   :  { %v184_v42 = vmax.f32 %v166_v38, 0.0  ;;  %v12201_v43 = vpop.f32.mrb[2].mxu0  ;;  %v218_v38 = vld [vmem:[%s19745_s7 + $0xf0] sm:$0xff] }
 0x101   :  { %v181_v44 = vadd.f32 %v12201_v43, %v85_v39  ;;  %v175_v45 = vpop.f32.mrb[3].mxu0  ;;  %v15660_v39 = vld [vmem:[%s19747_s9 + $0x90] sm:$0xff]  ;;  %v15689_v43 = vld [vmem:[%s19747_s9 + $0xa8] sm:$0xff] }
 0x102   :  { %v13738_v46 = vpack.c.bf16 %v185_v40, %v184_v42  ;;  %v176_v47 = vadd.f32 %v175_v45, %v84_v41  ;;  %20122 = vst [vmem:[#allocation16_spill] sm:$0xff] %v15660_v39  ;;  %v219_v40 = vld [vmem:[%s19745_s7 + $0xf8] sm:$0xff]  ;;  %v15679_v42 = vld [vmem:[%s19747_s9 + $0xa0] sm:$0xff]  ;;  %20125 = vst [vmem:[#allocation19_spill] sm:$0xff] %v15689_v43 }
 0x103   :  { %v187_v48 = vmax.f32 %v181_v44, 0.0  ;;  %v15674_v41 = vld [vmem:[%s19747_s9 + $0x98] sm:$0xff]  ;;  %20124 = vst [vmem:[#allocation18_spill] sm:$0xff] %v15679_v42  ;;  %v15694_v44 = vld [vmem:[%s19747_s9 + $0xb0] sm:$0xff] }
 0x104   :  { %13739 = vmatprep.subr.bf16.mxu1 %v13738_v46  ;;  %v186_v49 = vmax.f32 %v176_v47, 0.0  ;;  %20123 = vst [vmem:[#allocation17_spill] sm:$0xff] %v15674_v41  ;;  %20126 = vst [vmem:[#allocation20_spill] sm:$0xff] %v15694_v44  ;;  %v15703_v45 = vld [vmem:[%s19747_s9 + $0xb8] sm:$0xff]  ;;  %v15717_v47 = vld [vmem:[%s19747_s9 + $0xc8] sm:$0xff] }
 0x105   :  { %13741 = vmatpush3.bf16.msra.mxu1 %v13738_v46  ;;  %20127 = vst [vmem:[#allocation21_spill] sm:$0xff] %v15703_v45  ;;  %v15708_v46 = vld [vmem:[%s19747_s9 + $0xc0] sm:$0xff]  ;;  %20129 = vst [vmem:[#allocation23_spill] sm:$0xff] %v15717_v47 }
 0x106   :  { %v13742_v50 = vpack.c.bf16 %v187_v48, %v186_v49  ;;  %20128 = vst [vmem:[#allocation22_spill] sm:$0xff] %v15708_v46  ;;  %v15722_v48 = vld [vmem:[%s19747_s9 + $0xd0] sm:$0xff]  ;;  %v15731_v49 = vld [vmem:[%s19747_s9 + $0xd8] sm:$0xff] }
 0x107   :  { %20130 = vst [vmem:[#allocation24_spill] sm:$0xff] %v15722_v48  ;;  %20131 = vst [vmem:[#allocation25_spill] sm:$0xff] %v15731_v49 }
 0x108   :  { %13743 = vmatprep.subr.bf16.mxu1 %v13742_v50 }
 0x109   :  { %13745 = vmatpush3.bf16.msra.mxu1 %v13742_v50  ;;  %v15736_v50 = vld [vmem:[%s19747_s9 + $0xe0] sm:$0xff] }
 0x10a   :  { %20132 = vst [vmem:[#allocation26_spill] sm:$0xff] %v15736_v50 }
 0x10c   :  { %12211 = vmatmul.mubr.msk.f32.vlgmr.msra.gmra.mrb[0].mxu1 %vm252_vm1, %v189_v51  ;;  %v15745_v51 = vld [vmem:[%s19747_s9 + $0xe8] sm:$0xff] }
 0x10d   :  { %12213 = vmatprep.mubr.msk.f32.mxu1 %vm252_vm1, %v190_v52  ;;  %20133 = vst [vmem:[#allocation27_spill] sm:$0xff] %v15745_v51  ;;  %v15750_v52 = vld [vmem:[%s19747_s9 + $0xf0] sm:$0xff] }
 0x10e   :  { %20134 = vst [vmem:[#allocation28_spill] sm:$0xff] %v15750_v52 }
 0x110   :  { %12214 = vmatmul.mubr.msk.f32.gmra.mrb[2].mxu1 %vm252_vm1, %v191_v53  ;;  %v15759_v53 = vld [vmem:[%s19747_s9 + $0xf8] sm:$0xff] }
 0x111   :  { %12216 = vmatprep.mubr.msk.f32.mxu1 %vm252_vm1, %v192_v54  ;;  %20135 = vst [vmem:[#allocation29_spill] sm:$0xff] %v15759_v53  ;;  %v15766_v54 = vld [vmem:[%s19748_s10 + $0x8] sm:$0xff] }
 0x114   :  { %12217 = vmatmul.mubr.msk.f32.gmra.mrb[4].mxu1 %vm252_vm1, %v193_v55  ;;  %v1198_v55 = vld [vmem:[%s19740_s2] sm:$0xff] }
 0x115   :  { %12219 = vmatprep.mubr.msk.f32.mxu1 %vm252_vm1, %v194_v56  ;;  %v1199_v56 = vld [vmem:[%s19740_s2 + $0x8] sm:$0xff] }
 0x118   :  { %12220 = vmatmul.mubr.msk.f32.gmra.mrb[6].mxu1 %vm252_vm1, %v195_v57  ;;  %v1200_v57 = vld [vmem:[%s19740_s2 + $0x10] sm:$0xff] }
 0x119   :  { %12222 = vmatprep.mubr.msk.f32.mxu1 %vm252_vm1, %v196_v58  ;;  %v15778_v58 = vpack.c.bf16 %v1199_v56, %v1198_v55 }
 0x11c   :  { %12223 = vmatmul.mubr.msk.f32.gmra.mrb[8].mxu1 %vm252_vm1, %v197_v59  ;;  %v1201_v59 = vld [vmem:[%s19740_s2 + $0x18] sm:$0xff] }
 0x11d   :  { %12225 = vmatprep.mubr.msk.f32.mxu1 %vm252_vm1, %v198_v60  ;;  %v15783_v60 = vpack.c.bf16 %v1201_v59, %v1200_v57 }
 0x11e   :  { %v12292_v61 = vpop.f32.mrb[4].mxu0 }
 0x11f   :  { %v692_v63 = vpop.f32.mrb[5].mxu0 }
 0x120   :  { %v13778_v1 = vpack.c.bf16 %v12292_v61, %v692_v63  ;;  %12226 = vmatmul.mubr.msk.f32.gmra.mrb[10].mxu1 %vm252_vm1, %v199_v62  ;;  %v1202_v61 = vld [vmem:[%s19740_s2 + $0x20] sm:$0xff]  ;;  %v1203_v62 = vld [vmem:[%s19740_s2 + $0x28] sm:$0xff] }
 0x121   :  { %12228 = vmatprep.mubr.msk.f32.mxu1 %vm252_vm1, %v200_v0  ;;  %v15794_v63 = vpack.c.bf16 %v1203_v62, %v1202_v61  ;;  %v1204_v0 = vld [vmem:[%s19740_s2 + $0x30] sm:$0xff]  ;;  %v223_v61 = vld [vmem:[%s19746_s8 + $0x18] sm:$0xff] }
 0x122   :  { %13779 = vmatprep.subr.bf16.mxu0 %v13778_v1  ;;  %v222_v62 = vld [vmem:[%s19746_s8 + $0x10] sm:$0xff] }
 0x123   :  { %13781 = vmatpush3.bf16.msra.mxu0 %v13778_v1  ;;  %v1205_v1 = vld [vmem:[%s19740_s2 + $0x38] sm:$0xff] }
 0x124   :  { %12229 = vmatmul.mubr.msk.f32.gmra.mrb[12].mxu1 %vm252_vm1, %v201_v2  ;;  %13815 = vmatprep.subr.bf16.mxu0 %v15778_v58  ;;  %v15804_v2 = vpack.c.bf16 %v1205_v1, %v1204_v0 }
 0x125   :  { %12231 = vmatprep.mubr.msk.f32.mxu1 %vm252_vm1, %v202_v4  ;;  %v1207_v4 = vld [vmem:[%s19740_s2 + $0x48] sm:$0xff] }
 0x126   :  { %12298 = vmatmul.mubr.msk.f32.vlgmr.msra.gmra.mrb[6].mxu0 %vm733_vm2, %v702_v3  ;;  %v1206_v3 = vld [vmem:[%s19740_s2 + $0x40] sm:$0xff] }
 0x127   :  { %12300 = vmatprep.mubr.msk.f32.mxu0 %vm733_vm2, %v703_v5  ;;  %13817 = vmatpush3.bf16.msra.mxu0 %v15778_v58  ;;  %v15814_v5 = vpack.c.bf16 %v1207_v4, %v1206_v3 }
 0x128   :  { %12232 = vmatmul.mubr.msk.f32.gmra.mrb[14].mxu1 %vm252_vm1, %v203_v6  ;;  %13819 = vmatprep.subr.bf16.mxu0 %v15783_v60  ;;  %v1208_v6 = vld [vmem:[%s19740_s2 + $0x50] sm:$0xff] }
 0x129   :  { %12234 = vmatprep.mubr.msk.f32.mxu1 %vm252_vm1, %v204_v8 }
 0x12a   :  { %12301 = vmatmul.mubr.msk.f32.gmra.mrb[8].mxu0 %vm733_vm2, %v704_v7  ;;  %v1209_v7 = vld [vmem:[%s19740_s2 + $0x58] sm:$0xff] }
 0x12b   :  { %12303 = vmatprep.mubr.msk.f32.mxu0 %vm733_vm2, %v15507_v9  ;;  %13821 = vmatpush3.bf16.msra.mxu0 %v15783_v60  ;;  %v15824_v8 = vpack.c.bf16 %v1209_v7, %v1208_v6 }
 0x12c   :  { %12235 = vmatmul.mubr.msk.f32.gmra.mrb[16].mxu1 %vm252_vm1, %v205_v10  ;;  %13823 = vmatprep.subr.bf16.mxu0 %v15794_v63  ;;  %v1210_v10 = vld [vmem:[%s19740_s2 + $0x60] sm:$0xff] }
 0x12d   :  { %12237 = vmatprep.mubr.msk.f32.mxu1 %vm252_vm1, %v206_v12  ;;  %v1211_v12 = vld [vmem:[%s19740_s2 + $0x68] sm:$0xff] }
 0x12e   :  { %12304 = vmatmul.mubr.msk.f32.gmra.mrb[10].mxu0 %vm733_vm2, %v15520_v11 }
 0x12f   :  { %12306 = vmatprep.mubr.msk.f32.mxu0 %vm733_vm2, %v15528_v13  ;;  %13825 = vmatpush3.bf16.msra.mxu0 %v15794_v63 }
 0x130   :  { %12238 = vmatmul.mubr.msk.f32.gmra.mrb[18].mxu1 %vm252_vm1, %v207_v14  ;;  %13827 = vmatprep.subr.bf16.mxu0 %v15804_v2  ;;  %v15834_v14 = vpack.c.bf16 %v1211_v12, %v1210_v10 }
 0x131   :  { %12240 = vmatprep.mubr.msk.f32.mxu1 %vm252_vm1, %v208_v18 }
 0x132   :  { %12307 = vmatmul.mubr.msk.f32.gmra.mrb[12].mxu0 %vm733_vm2, %v15542_v15 }
 0x133   :  { %12309 = vmatprep.mubr.msk.f32.mxu0 %vm733_vm2, %v15550_v19  ;;  %13829 = vmatpush3.bf16.msra.mxu0 %v15804_v2 }
 0x134   :  { %12241 = vmatmul.mubr.msk.f32.gmra.mrb[20].mxu1 %vm252_vm1, %v209_v20  ;;  %13831 = vmatprep.subr.bf16.mxu0 %v15814_v5 }
 0x135   :  { %12243 = vmatprep.mubr.msk.f32.mxu1 %vm252_vm1, %v210_v22 }
 0x136   :  { %12310 = vmatmul.mubr.msk.f32.gmra.mrb[14].mxu0 %vm733_vm2, %v15564_v21 }
 0x137   :  { %12312 = vmatprep.mubr.msk.f32.mxu0 %vm733_vm2, %v15572_v23  ;;  %13833 = vmatpush3.bf16.msra.mxu0 %v15814_v5 }
 0x138   :  { %12244 = vmatmul.mubr.msk.f32.gmra.mrb[22].mxu1 %vm252_vm1, %v211_v24  ;;  %13835 = vmatprep.subr.bf16.mxu0 %v15824_v8 }
 0x139   :  { %12246 = vmatprep.mubr.msk.f32.mxu1 %vm252_vm1, %v212_v26 }
 0x13a   :  { %12313 = vmatmul.mubr.msk.f32.gmra.mrb[16].mxu0 %vm733_vm2, %v15586_v25 }
 0x13b   :  { %12315 = vmatprep.mubr.msk.f32.mxu0 %vm733_vm2, %v15594_v27  ;;  %13837 = vmatpush3.bf16.msra.mxu0 %v15824_v8 }
 0x13c   :  { %12247 = vmatmul.mubr.msk.f32.gmra.mrb[24].mxu1 %vm252_vm1, %v213_v28  ;;  %13839 = vmatprep.subr.bf16.mxu0 %v15834_v14 }
 0x13d   :  { %12249 = vmatprep.mubr.msk.f32.mxu1 %vm252_vm1, %v214_v30 }
 0x13e   :  { %12316 = vmatmul.mubr.msk.f32.gmra.mrb[18].mxu0 %vm733_vm2, %v15608_v29 }
 0x13f   :  { %12318 = vmatprep.mubr.msk.f32.mxu0 %vm733_vm2, %v15616_v31  ;;  %13841 = vmatpush3.bf16.msra.mxu0 %v15834_v14 }
 0x140   :  { %12250 = vmatmul.mubr.msk.f32.gmra.mrb[26].mxu1 %vm252_vm1, %v215_v32 }
 0x141   :  { %12252 = vmatprep.mubr.msk.f32.mxu1 %vm252_vm1, %v216_v34 }
 0x142   :  { %12319 = vmatmul.mubr.msk.f32.gmra.mrb[20].mxu0 %vm733_vm2, %v15630_v33 }
 0x143   :  { %12321 = vmatprep.mubr.msk.f32.mxu0 %vm733_vm2, %v15638_v35 }
 0x144   :  { %12253 = vmatmul.mubr.msk.f32.gmra.mrb[28].mxu1 %vm252_vm1, %v217_v36 }
 0x145   :  { %12255 = vmatprep.mubr.msk.f32.mxu1 %vm252_vm1, %v218_v38  ;;  %v221_v38 = vld [vmem:[%s19746_s8 + $0x8] sm:$0xff] }
 0x146   :  { %12322 = vmatmul.mubr.msk.f32.gmra.mrb[22].mxu0 %vm733_vm2, %v15652_v37  ;;  %v240_v37 = vld [vmem:[%s19746_s8 + $0xa0] sm:$0xff] }
 0x147   :  { %12324 = vmatprep.mubr.msk.f32.mxu0 %vm733_vm2, %v15660_v39  ;;  %v241_v39 = vld [vmem:[%s19746_s8 + $0xa8] sm:$0xff] }
 0x148   :  { %12256 = vmatmul.mubr.msk.f32.gmra.mrb[30].mxu1 %vm252_vm1, %v219_v40  ;;  %v220_v40 = vld [vmem:[%s19746_s8] sm:$0xff] }
 0x149   :  { %1187 = vmatprep.mubr.f32.mxu1 %v15766_v54 }
 0x14a   :  { %12325 = vmatmul.mubr.msk.f32.gmra.mrb[24].mxu0 %vm733_vm2, %v15674_v41 }
 0x14b   :  { %12327 = vmatprep.mubr.msk.f32.mxu0 %vm733_vm2, %v15679_v42  ;;  %v239_v42 = vld [vmem:[%s19746_s8 + $0x98] sm:$0xff] }
 0x14e   :  { %12328 = vmatmul.mubr.msk.f32.gmra.mrb[26].mxu0 %vm733_vm2, %v15689_v43 }
 0x14f   :  { %12330 = vmatprep.mubr.msk.f32.mxu0 %vm733_vm2, %v15694_v44  ;;  %v237_v44 = vld [vmem:[%s19746_s8 + $0x88] sm:$0xff] }
 0x152   :  { %12331 = vmatmul.mubr.msk.f32.gmra.mrb[28].mxu0 %vm733_vm2, %v15703_v45 }
 0x153   :  { %12333 = vmatprep.mubr.msk.f32.mxu0 %vm733_vm2, %v15708_v46  ;;  %v235_v46 = vld [vmem:[%s19746_s8 + $0x78] sm:$0xff] }
 0x156   :  { %12334 = vmatmul.mubr.msk.f32.gmra.mrb[30].mxu0 %vm733_vm2, %v15717_v47 }
 0x157   :  { %12336 = vmatprep.mubr.msk.f32.mxu0 %vm733_vm2, %v15722_v48  ;;  %v233_v48 = vld [vmem:[%s19746_s8 + $0x68] sm:$0xff] }
 0x15a   :  { %12337 = vmatmul.mubr.msk.f32.gmra.mrb[32].mxu0 %vm733_vm2, %v15731_v49 }
 0x15b   :  { %12339 = vmatprep.mubr.msk.f32.mxu0 %vm733_vm2, %v15736_v50  ;;  %v231_v50 = vld [vmem:[%s19746_s8 + $0x58] sm:$0xff] }
 0x15e   :  { %12340 = vmatmul.mubr.msk.f32.gmra.mrb[34].mxu0 %vm733_vm2, %v15745_v51 }
 0x15f   :  { %12342 = vmatprep.mubr.msk.f32.mxu0 %vm733_vm2, %v15750_v52  ;;  %v229_v52 = vld [vmem:[%s19746_s8 + $0x48] sm:$0xff] }
 0x162   :  { %12343 = vmatmul.mubr.msk.f32.gmra.mrb[36].mxu0 %vm733_vm2, %v15759_v53 }
 0x1df   :  { %v12212_v18 = vpop.f32.mrb[0].mxu1 }
 0x1e0   :  { %v415_v20 = vpop.f32.mrb[1].mxu1  ;;  %v15845_v57 = vadd.f32 %v12212_v18, %v221_v38  ;;  %v225_v18 = vld [vmem:[%s19746_s8 + $0x28] sm:$0xff] }
 0x1e1   :  { %v15847_v59 = vadd.f32 %v415_v20, %v220_v40  ;;  %v224_v20 = vld [vmem:[%s19746_s8 + $0x20] sm:$0xff]  ;;  %v226_v40 = vld [vmem:[%s19746_s8 + $0x30] sm:$0xff] }
 0x1e2   :  { %20136 = vst [vmem:[#allocation30_spill] sm:$0xff] %v15845_v57 }
 0x1e3   :  { %v12215_v22 = vpop.f32.mrb[2].mxu1  ;;  %20137 = vst [vmem:[#allocation31_spill] sm:$0xff] %v15847_v59 }
 0x1e4   :  { %v425_v24 = vpop.f32.mrb[3].mxu1  ;;  %v15858_v6 = vadd.f32 %v12215_v22, %v223_v61 }
 0x1e5   :  { %v15863_v12 = vadd.f32 %v425_v24, %v222_v62 }
 0x1e6   :  { %20138 = vst [vmem:[#allocation32_spill] sm:$0xff] %v15858_v6 }
 0x1e7   :  { %v12218_v26 = vpop.f32.mrb[4].mxu1  ;;  %20139 = vst [vmem:[#allocation33_spill] sm:$0xff] %v15863_v12 }
 0x1e8   :  { %v435_v28 = vpop.f32.mrb[5].mxu1 }
 0x1eb   :  { %v12221_v30 = vpop.f32.mrb[6].mxu1 }
 0x1ec   :  { %v445_v32 = vpop.f32.mrb[7].mxu1 }
 0x1ef   :  { %v12224_v34 = vpop.f32.mrb[8].mxu1 }
 0x1f0   :  { %v455_v36 = vpop.f32.mrb[9].mxu1 }
 0x1f3   :  { %v12227_v55 = vpop.f32.mrb[10].mxu1 }
 0x1f4   :  { %v465_v56 = vpop.f32.mrb[11].mxu1 }
 0x1f7   :  { %v12230_v0 = vpop.f32.mrb[12].mxu1 }
 0x1f8   :  { %v475_v3 = vpop.f32.mrb[13].mxu1 }
 0x1f9   :  { %v12299_v1 = vpop.f32.mrb[6].mxu0 }
 0x1fa   :  { %v15856_v4 = vmul.f32 %v12299_v1, %v15845_v57  ;;  %v896_v7 = vpop.f32.mrb[7].mxu0  ;;  %v227_v57 = vld [vmem:[%s19746_s8 + $0x38] sm:$0xff] }
 0x1fb   :  { %v15861_v10 = vmul.f32 %v896_v7, %v15847_v59  ;;  %v12233_v38 = vpop.f32.mrb[14].mxu1  ;;  %v15876_v7 = vadd.f32 %v12218_v26, %v225_v18  ;;  %v15881_v59 = vadd.f32 %v435_v28, %v224_v20 }
 0x1fc   :  { %v485_v61 = vpop.f32.mrb[15].mxu1 }
 0x1fd   :  { %v12302_v22 = vpop.f32.mrb[8].mxu0  ;;  %20140 = vst [vmem:[#allocation34_spill] sm:$0xff] %v15876_v7  ;;  %20141 = vst [vmem:[#allocation35_spill] sm:$0xff] %v15881_v59 }
 0x1fe   :  { %v15874_v1 = vmul.f32 %v12302_v22, %v15858_v6  ;;  %v906_v24 = vpop.f32.mrb[9].mxu0  ;;  %v228_v22 = vld [vmem:[%s19746_s8 + $0x40] sm:$0xff] }
 0x1ff   :  { %v15879_v62 = vmul.f32 %v906_v24, %v15863_v12  ;;  %v12236_v53 = vpop.f32.mrb[16].mxu1  ;;  %v15894_v24 = vadd.f32 %v12221_v30, %v227_v57  ;;  %v15899_v12 = vadd.f32 %v445_v32, %v226_v40 }
 0x200   :  { %v495_v18 = vpop.f32.mrb[17].mxu1 }
 0x201   :  { %v12305_v26 = vpop.f32.mrb[10].mxu0  ;;  %20142 = vst [vmem:[#allocation36_spill] sm:$0xff] %v15894_v24  ;;  %20143 = vst [vmem:[#allocation37_spill] sm:$0xff] %v15899_v12 }
 0x202   :  { %v15892_v6 = vmul.f32 %v12305_v26, %v15876_v7  ;;  %v916_v28 = vpop.f32.mrb[11].mxu0  ;;  %v230_v26 = vld [vmem:[%s19746_s8 + $0x50] sm:$0xff] }
 0x203   :  { %v15897_v20 = vmul.f32 %v916_v28, %v15881_v59  ;;  %v12239_v51 = vpop.f32.mrb[18].mxu1  ;;  %v15912_v28 = vadd.f32 %v12224_v34, %v229_v52  ;;  %v15917_v59 = vadd.f32 %v455_v36, %v228_v22 }
 0x204   :  { %v505_v57 = vpop.f32.mrb[19].mxu1 }
 0x205   :  { %v12308_v30 = vpop.f32.mrb[12].mxu0  ;;  %20144 = vst [vmem:[#allocation38_spill] sm:$0xff] %v15912_v28  ;;  %20145 = vst [vmem:[#allocation39_spill] sm:$0xff] %v15917_v59 }
 0x206   :  { %v15910_v7 = vmul.f32 %v12308_v30, %v15894_v24  ;;  %v926_v32 = vpop.f32.mrb[13].mxu0  ;;  %v232_v30 = vld [vmem:[%s19746_s8 + $0x60] sm:$0xff] }
 0x207   :  { %v15915_v40 = vmul.f32 %v926_v32, %v15899_v12  ;;  %v12242_v49 = vpop.f32.mrb[20].mxu1  ;;  %v15930_v32 = vadd.f32 %v12227_v55, %v231_v50  ;;  %v15935_v12 = vadd.f32 %v465_v56, %v230_v26 }
 0x208   :  { %v515_v34 = vpop.f32.mrb[21].mxu1 }
 0x209   :  { %v12311_v52 = vpop.f32.mrb[14].mxu0  ;;  %20146 = vst [vmem:[#allocation40_spill] sm:$0xff] %v15930_v32  ;;  %20147 = vst [vmem:[#allocation41_spill] sm:$0xff] %v15935_v12 }
 0x20a   :  { %v15928_v24 = vmul.f32 %v12311_v52, %v15912_v28  ;;  %v936_v36 = vpop.f32.mrb[15].mxu0  ;;  %v234_v52 = vld [vmem:[%s19746_s8 + $0x70] sm:$0xff] }
 0x20b   :  { %v15933_v22 = vmul.f32 %v936_v36, %v15917_v59  ;;  %v12245_v47 = vpop.f32.mrb[22].mxu1  ;;  %v15948_v36 = vadd.f32 %v12230_v0, %v233_v48  ;;  %v15953_v59 = vadd.f32 %v475_v3, %v232_v30 }
 0x20c   :  { %v525_v55 = vpop.f32.mrb[23].mxu1 }
 0x20d   :  { %v12314_v50 = vpop.f32.mrb[16].mxu0  ;;  %20148 = vst [vmem:[#allocation42_spill] sm:$0xff] %v15948_v36  ;;  %20149 = vst [vmem:[#allocation43_spill] sm:$0xff] %v15953_v59 }
 0x20e   :  { %v15946_v28 = vmul.f32 %v12314_v50, %v15930_v32  ;;  %v946_v56 = vpop.f32.mrb[17].mxu0  ;;  %v236_v50 = vld [vmem:[%s19746_s8 + $0x80] sm:$0xff] }
 0x20f   :  { %v15951_v26 = vmul.f32 %v946_v56, %v15935_v12  ;;  %v12248_v45 = vpop.f32.mrb[24].mxu1  ;;  %v15966_v56 = vadd.f32 %v12233_v38, %v235_v46  ;;  %v15971_v12 = vadd.f32 %v485_v61, %v234_v52 }
 0x210   :  { %v535_v0 = vpop.f32.mrb[25].mxu1 }
 0x211   :  { %v12317_v48 = vpop.f32.mrb[18].mxu0  ;;  %20150 = vst [vmem:[#allocation44_spill] sm:$0xff] %v15966_v56  ;;  %20151 = vst [vmem:[#allocation45_spill] sm:$0xff] %v15971_v12 }
 0x212   :  { %v15964_v32 = vmul.f32 %v12317_v48, %v15948_v36  ;;  %v956_v3 = vpop.f32.mrb[19].mxu0  ;;  %v238_v48 = vld [vmem:[%s19746_s8 + $0x90] sm:$0xff] }
 0x213   :  { %v15969_v30 = vmul.f32 %v956_v3, %v15953_v59  ;;  %v12251_v43 = vpop.f32.mrb[26].mxu1  ;;  %v15984_v3 = vadd.f32 %v12236_v53, %v237_v44  ;;  %v15989_v59 = vadd.f32 %v495_v18, %v236_v50  ;;  %v16003_v50 = vadd.f32 %v505_v57, %v238_v48 }
 0x214   :  { %v545_v38 = vpop.f32.mrb[27].mxu1  ;;  %v16015_v48 = vadd.f32 %v515_v34, %v240_v37 }
 0x215   :  { %v12320_v46 = vpop.f32.mrb[20].mxu0  ;;  %20152 = vst [vmem:[#allocation46_spill] sm:$0xff] %v15989_v59 }
 0x216   :  { %v15982_v36 = vmul.f32 %v12320_v46, %v15966_v56  ;;  %v966_v61 = vpop.f32.mrb[21].mxu0 }
 0x217   :  { %v15987_v52 = vmul.f32 %v966_v61, %v15971_v12  ;;  %v12254_v41 = vpop.f32.mrb[28].mxu1  ;;  %v16000_v12 = vadd.f32 %v12239_v51, %v239_v42  ;;  %v16012_v51 = vadd.f32 %v12242_v49, %v241_v39 }
 0x218   :  { %v555_v53 = vpop.f32.mrb[29].mxu1 }
 0x219   :  { %v12323_v44 = vpop.f32.mrb[22].mxu0 }
 0x21a   :  { %v1108_v56 = vmul.f32 %v12323_v44, %v15984_v3  ;;  %v976_v61 = vpop.f32.mrb[23].mxu0 }
 0x21b   :  { %v1107_v18 = vmul.f32 %v976_v61, %v15989_v59  ;;  %v12257_v46 = vpop.f32.mrb[30].mxu1  ;;  %v243_v61 = vld [vmem:[%s19746_s8 + $0xb8] sm:$0xff]  ;;  %v20153_v59 = vpack.c.bf16 %v15856_v4, %v15861_v10  ;;  %v20154_v4 = vpack.c.bf16 %v15874_v1, %v15879_v62  ;;  %v244_v10 = vld [vmem:[%s19746_s8 + $0xc0] sm:$0xff]  ;;  %v20155_v62 = vpack.c.bf16 %v15892_v6, %v15897_v20  ;;  %v249_v6 = vld [vmem:[%s19746_s8 + $0xe8] sm:$0xff] }
 0x21c   :  { %v565_v31 = vpop.f32.mrb[31].mxu1  ;;  %v247_v1 = vld [vmem:[%s19746_s8 + $0xd8] sm:$0xff]  ;;  %v20156_v20 = vpack.c.bf16 %v15910_v7, %v15915_v40  ;;  %v20157_v40 = vpack.c.bf16 %v15928_v24, %v15933_v22  ;;  %v20159_v24 = vpack.c.bf16 %v15946_v28, %v15951_v26  ;;  %v16106_v28 = vld [vmem:[%s19748_s10] sm:$0xff] }
 0x21d   :  { %v13782_v35 = vpack.c.bf16 %v1108_v56, %v1107_v18  ;;  %v12326_v33 = vpop.f32.mrb[24].mxu0  ;;  %v251_v7 = vld [vmem:[%s19746_s8 + $0xf8] sm:$0xff] }
 0x21e   :  { %v1110_v44 = vmul.f32 %v12326_v33, %v16000_v12  ;;  %v986_v42 = vpop.f32.mrb[25].mxu0  ;;  %v242_v33 = vld [vmem:[%s19746_s8 + $0xb0] sm:$0xff]  ;;  %v16111_v26 = vld [vmem:[%s19748_s10 + $0x18] sm:$0xff] }
 0x21f   :  { %v1109_v57 = vmul.f32 %v986_v42, %v16003_v50  ;;  %13783 = vmatprep.subr.bf16.mxu1 %v13782_v35  ;;  %v16027_v35 = vadd.f32 %v12245_v47, %v243_v61  ;;  %v16030_v34 = vadd.f32 %v525_v55, %v242_v33  ;;  %v16045_v33 = vadd.f32 %v535_v0, %v244_v10 }
 0x220   :  { %13785 = vmatpush3.bf16.msra.mxu1 %v20153_v59  ;;  %v245_v59 = vld [vmem:[%s19746_s8 + $0xc8] sm:$0xff] }
 0x221   :  { %v13786_v56 = vpack.c.bf16 %v1110_v44, %v1109_v57  ;;  %v12329_v39 = vpop.f32.mrb[26].mxu0  ;;  %v16042_v61 = vadd.f32 %v12248_v45, %v245_v59 }
 0x222   :  { %v1112_v49 = vmul.f32 %v12329_v39, %v16012_v51  ;;  %v996_v18 = vpop.f32.mrb[27].mxu0 }
 0x223   :  { %v1111_v37 = vmul.f32 %v996_v18, %v16015_v48  ;;  %13787 = vmatprep.subr.bf16.mxu1 %v13786_v56  ;;  %v246_v56 = vld [vmem:[%s19746_s8 + $0xd0] sm:$0xff] }
 0x224   :  { %13789 = vmatpush3.bf16.msra.mxu1 %v20154_v4  ;;  %v16060_v59 = vadd.f32 %v545_v38, %v246_v56  ;;  %v248_v4 = vld [vmem:[%s19746_s8 + $0xe0] sm:$0xff] }
 0x225   :  { %v13790_v44 = vpack.c.bf16 %v1112_v49, %v1111_v37  ;;  %v12332_v47 = vpop.f32.mrb[28].mxu0  ;;  %v16057_v37 = vadd.f32 %v12251_v43, %v247_v1 }
 0x226   :  { %v1114_v42 = vmul.f32 %v12332_v47, %v16027_v35  ;;  %v1006_v57 = vpop.f32.mrb[29].mxu0 }
 0x227   :  { %v1113_v55 = vmul.f32 %v1006_v57, %v16030_v34  ;;  %13791 = vmatprep.subr.bf16.mxu1 %v13790_v44  ;;  %v16075_v57 = vadd.f32 %v555_v53, %v248_v4 }
 0x228   :  { %13793 = vmatpush3.bf16.msra.mxu1 %v20155_v62 }
 0x229   :  { %v13794_v39 = vpack.c.bf16 %v1114_v42, %v1113_v55  ;;  %v12335_v45 = vpop.f32.mrb[30].mxu0  ;;  %v16072_v42 = vadd.f32 %v12254_v41, %v249_v6  ;;  %v250_v55 = vld [vmem:[%s19746_s8 + $0xf0] sm:$0xff] }
 0x22a   :  { %v1116_v49 = vmul.f32 %v12335_v45, %v16042_v61  ;;  %v1016_v18 = vpop.f32.mrb[31].mxu0  ;;  %v16090_v45 = vadd.f32 %v565_v31, %v250_v55  ;;  %v20161_v31 = vpack.c.bf16 %v15982_v36, %v15987_v52  ;;  %v1212_v36 = vld [vmem:[%s19740_s2 + $0x70] sm:$0xff]  ;;  %v16146_v55 = vld [vmem:[%s19741_s3] sm:$0xff] }
 0x22b   :  { %v1115_v0 = vmul.f32 %v1016_v18, %v16045_v33  ;;  %13795 = vmatprep.subr.bf16.mxu1 %v13794_v39  ;;  %v16087_v39 = vadd.f32 %v12257_v46, %v251_v7  ;;  %v20160_v46 = vpack.c.bf16 %v15964_v32, %v15969_v30  ;;  %v16118_v32 = vld [vmem:[%s19748_s10 + $0x10] sm:$0xff]  ;;  %v1213_v30 = vld [vmem:[%s19740_s2 + $0x78] sm:$0xff]  ;;  %v16134_v7 = vld [vmem:[%s19749_s11] sm:$0xff]  ;;  %20164 = vst [vmem:[#allocation50_spill] sm:$0xff] %v16146_v55 }
 0x22c   :  { %13797 = vmatpush3.bf16.msra.mxu1 %v20156_v20  ;;  %20158 = vst [vmem:[#allocation47_spill] sm:$0xff] %v16090_v45  ;;  %v16127_v52 = vpack.c.bf16 %v1213_v30, %v1212_v36  ;;  %20162 = vst [vmem:[#allocation48_spill] sm:$0xff] %v16134_v7  ;;  %v16225_v36 = vld [vmem:[%s19750_s12 + $0x28] sm:$0xff]  ;;  %v1587_v30 = vld [vmem:[%s19739_s1] sm:$0xff] }
 0x22d   :  { %v13798_v10 = vpack.c.bf16 %v1116_v49, %v1115_v0  ;;  %v12338_v43 = vpop.f32.mrb[32].mxu0  ;;  %20171 = vst [vmem:[#allocation57_spill] sm:$0xff] %v16225_v36 }
 0x22e   :  { %v1118_v44 = vmul.f32 %v12338_v43, %v16057_v37  ;;  %v1026_v47 = vpop.f32.mrb[33].mxu0  ;;  %13843 = vmatprep.subr.bf16.mxu0 %v16127_v52 }
 0x22f   :  { %v1117_v38 = vmul.f32 %v1026_v47, %v16060_v59  ;;  %13799 = vmatprep.subr.bf16.mxu1 %v13798_v10  ;;  %13845 = vmatpush3.bf16.msra.mxu0 %v16127_v52 }
 0x230   :  { %13801 = vmatpush3.bf16.msra.mxu1 %v20157_v40  ;;  %v16141_v40 = vld [vmem:[%s19741_s3 + $0x8] sm:$0xff] }
 0x231   :  { %v13802_v1 = vpack.c.bf16 %v1118_v44, %v1117_v38  ;;  %v12341_v41 = vpop.f32.mrb[34].mxu0  ;;  %20163 = vst [vmem:[#allocation49_spill] sm:$0xff] %v16141_v40 }
 0x232   :  { %v1120_v62 = vmul.f32 %v12341_v41, %v16072_v42  ;;  %v1036_v56 = vpop.f32.mrb[35].mxu0 }
 0x233   :  { %v1119_v53 = vmul.f32 %v1036_v56, %v16075_v57  ;;  %13803 = vmatprep.subr.bf16.mxu1 %v13802_v1 }
 0x234   :  { %13805 = vmatpush3.bf16.msra.mxu1 %v20159_v24  ;;  %v13850_v24 = vpack.c.bf16 %v15381_v17, %v15379_v16  ;;  %v16169_v16 = vld [vmem:[%s19749_s11 + $0x18] sm:$0xff]  ;;  %v16174_v17 = vld [vmem:[%s19749_s11 + $0x20] sm:$0xff] }
 0x235   :  { %v13806_v22 = vpack.c.bf16 %v1120_v62, %v1119_v53  ;;  %v12344_v49 = vpop.f32.mrb[36].mxu0  ;;  %20167 = vst [vmem:[#allocation53_spill] sm:$0xff] %v16169_v16  ;;  %20168 = vst [vmem:[#allocation54_spill] sm:$0xff] %v16174_v17 }
 0x236   :  { %v1122_v18 = vmul.f32 %v12344_v49, %v16087_v39  ;;  %v1046_v0 = vpop.f32.mrb[37].mxu0  ;;  %v16160_v49 = vld [vmem:[%s19749_s11 + $0x10] sm:$0xff] }
 0x237   :  { %v1121_v6 = vmul.f32 %v1046_v0, %v16090_v45  ;;  %13807 = vmatprep.subr.bf16.mxu1 %v13806_v22  ;;  %v16155_v22 = vld [vmem:[%s19749_s11 + $0x8] sm:$0xff]  ;;  %20166 = vst [vmem:[#allocation52_spill] sm:$0xff] %v16160_v49  ;;  %v16188_v0 = vld [vmem:[%s19750_s12] sm:$0xff] }
 0x238   :  { %13809 = vmatpush3.bf16.msra.mxu1 %v20160_v46  ;;  %20165 = vst [vmem:[#allocation51_spill] sm:$0xff] %v16155_v22  ;;  %v16202_v46 = vld [vmem:[%s19750_s12 + $0x10] sm:$0xff] }
 0x239   :  { %v13810_v20 = vpack.c.bf16 %v1122_v18, %v1121_v6  ;;  %v16183_v18 = vld [vmem:[%s19749_s11 + $0x28] sm:$0xff] }
 0x23a   :  { %20169 = vst [vmem:[#allocation55_spill] sm:$0xff] %v16183_v18  ;;  %v16197_v6 = vld [vmem:[%s19750_s12 + $0x8] sm:$0xff] }
 0x23b   :  { %13811 = vmatprep.subr.bf16.mxu1 %v13810_v20  ;;  %v16211_v20 = vld [vmem:[%s19750_s12 + $0x18] sm:$0xff] }
 0x23c   :  { %13813 = vmatpush3.bf16.msra.mxu1 %v20161_v31  ;;  %v16216_v31 = vld [vmem:[%s19750_s12 + $0x20] sm:$0xff] }
 0x23d   :  { %20170 = vst [vmem:[#allocation56_spill] sm:$0xff] %v16216_v31 }
 0x23f   :  { %1188 = vmatmul.mubr.f32.vlgmr.msra.gmra.mrb[32].mxu1 %v16106_v28 }
 0x240   :  { %1192 = vmatprep.mubr.f32.mxu1 %v16111_v26 }
 0x243   :  { %1193 = vmatmul.mubr.f32.gmra.mrb[34].mxu1 %v16118_v32 }
 0x244   :  { %12384 = vmatprep.mubr.msk.f32.mxu1 %vm733_vm2, %v16134_v7 }
 0x312   :  { %v11038_v4 = vpop.f32.mrb[32].mxu1 }
 0x313   :  { %v11039_v10 = vpop.f32.mrb[33].mxu1 }
 0x314   :  { %v11040_v43 = vadd.f32 %v11039_v10, %v11038_v4  ;;  %v1588_v4 = vld [vmem:[%s19739_s1 + $0x8] sm:$0xff] }
 0x315   :  { %v16235_v10 = vpack.c.bf16 %v1588_v4, %v1587_v30  ;;  %v1596_v30 = vld [vmem:[%s19739_s1 + $0x48] sm:$0xff] }
 0x316   :  { %v11041_v44 = vpop.f32.mrb[34].mxu1  ;;  %12377 = vmatprep.mubr.f32.mxu0 %v11040_v43  ;;  %v1589_v43 = vld [vmem:[%s19739_s1 + $0x10] sm:$0xff] }
 0x317   :  { %v11042_v47 = vpop.f32.mrb[35].mxu1  ;;  %20172 = vst [vmem:[#allocation58_spill] sm:$0xff] %v16235_v10 }
 0x318   :  { %v11043_v38 = vadd.f32 %v11042_v47, %v11041_v44  ;;  %v1590_v44 = vld [vmem:[%s19739_s1 + $0x18] sm:$0xff] }
 0x319   :  { %v16245_v47 = vpack.c.bf16 %v1590_v44, %v1589_v43  ;;  %v1597_v43 = vld [vmem:[%s19739_s1 + $0x50] sm:$0xff]  ;;  %v1598_v44 = vld [vmem:[%s19739_s1 + $0x58] sm:$0xff] }
 0x31a   :  { %12378 = vmatmul.mubr.f32.vlgmr.msra.gmra.mrb[38].mxu0 %v11043_v38  ;;  %v1591_v38 = vld [vmem:[%s19739_s1 + $0x20] sm:$0xff] }
 0x31b   :  { %20173 = vst [vmem:[#allocation59_spill] sm:$0xff] %v16245_v47 }
 0x3ed   :  { %v12379_v1 = vpop.f32.mrb[38].mxu0 }
 0x3ee   :  { %v1292_v41 = vmul.f32 %v12379_v1, %v16141_v40  ;;  %v1280_v62 = vpop.f32.mrb[39].mxu0  ;;  %v1592_v1 = vld [vmem:[%s19739_s1 + $0x28] sm:$0xff]  ;;  %v15151_v40 = vld [vmem:[#allocation8 + $0x8] sm:$0xff] }
 0x3ef   :  { %v1291_v56 = vmul.f32 %v16146_v55, %v1280_v62  ;;  %v1593_v62 = vld [vmem:[%s19739_s1 + $0x30] sm:$0xff] }
 0x3f1   :  { %v13846_v53 = vpack.c.bf16 %v1292_v41, %v1291_v56  ;;  %v16255_v41 = vpack.c.bf16 %v1592_v1, %v1591_v38  ;;  %v1594_v56 = vld [vmem:[%s19739_s1 + $0x38] sm:$0xff]  ;;  %v1599_v38 = vld [vmem:[%s19739_s1 + $0x60] sm:$0xff]  ;;  %v16288_v1 = vpack.c.bf16 %v1598_v44, %v1597_v43  ;;  %v16312_v44 = vld [vmem:[%s19751_s13 + $0x8] sm:$0xff] }
 0x3f2   :  { %20180 = vst [vmem:[#allocation66_spill] sm:$0xff] %v16312_v44 }
 0x3f3   :  { %13847 = vmatprep.subr.bf16.mxu1 %v13846_v53  ;;  %20174 = vst [vmem:[#allocation60_spill] sm:$0xff] %v16255_v41  ;;  %20177 = vst [vmem:[#allocation63_spill] sm:$0xff] %v16288_v1 }
 0x3f4   :  { %13849 = vmatpush3.bf16.msra.mxu1 %v13846_v53  ;;  %v16265_v53 = vpack.c.bf16 %v1594_v56, %v1593_v62  ;;  %v1600_v62 = vld [vmem:[%s19739_s1 + $0x68] sm:$0xff] }
 0x3f5   :  { %13851 = vmatprep.subr.bf16.mxu1 %v13850_v24  ;;  %v16293_v56 = vpack.c.bf16 %v1600_v62, %v1599_v38  ;;  %v16317_v38 = vld [vmem:[%s19752_s14 + $0x8] sm:$0xff] }
 0x3f6   :  { %20175 = vst [vmem:[#allocation61_spill] sm:$0xff] %v16265_v53  ;;  %20181 = vst [vmem:[#allocation67_spill] sm:$0xff] %v16317_v38 }
 0x3f7   :  { %12385 = vmatmul.mubr.msk.f32.vlgmr.msra.gmra.mrb[36].mxu1 %vm733_vm2, %v16155_v22  ;;  %20178 = vst [vmem:[#allocation64_spill] sm:$0xff] %v16293_v56  ;;  %v16353_v22 = vld [vmem:[%s19752_s14 + $0x10] sm:$0xff] }
 0x3f8   :  { %12387 = vmatprep.mubr.msk.f32.mxu1 %vm733_vm2, %v16160_v49  ;;  %13853 = vmatpush3.bf16.msra.mxu1 %v13850_v24  ;;  %v1595_v24 = vld [vmem:[%s19739_s1 + $0x40] sm:$0xff]  ;;  %20187 = vst [vmem:[#allocation73_spill] sm:$0xff] %v16353_v22 }
 0x3f9   :  { %13855 = vmatprep.subr.bf16.mxu1 %v16235_v10  ;;  %v16275_v4 = vpack.c.bf16 %v1596_v30, %v1595_v24  ;;  %v1601_v24 = vld [vmem:[%s19739_s1 + $0x70] sm:$0xff]  ;;  %v1602_v30 = vld [vmem:[%s19739_s1 + $0x78] sm:$0xff] }
 0x3fa   :  { %v16304_v43 = vpack.c.bf16 %v1602_v30, %v1601_v24  ;;  %v14826_v24 = vadd.f32 %v16317_v38, %v16312_v44  ;;  %v16324_v30 = vld [vmem:[%s19751_s13 + $0x18] sm:$0xff]  ;;  %v16339_v38 = vld [vmem:[%s19752_s14] sm:$0xff] }
 0x3fb   :  { %12388 = vmatmul.mubr.msk.f32.gmra.mrb[38].mxu1 %vm733_vm2, %v16169_v16  ;;  %20176 = vst [vmem:[#allocation62_spill] sm:$0xff] %v16275_v4  ;;  %20182 = vst [vmem:[#allocation68_spill] sm:$0xff] %v16324_v30  ;;  %v16347_v16 = vld [vmem:[%s19751_s13 + $0x10] sm:$0xff] }
 0x3fc   :  { %12390 = vmatprep.mubr.msk.f32.mxu1 %vm733_vm2, %v16174_v17  ;;  %20179 = vst [vmem:[#allocation65_spill] sm:$0xff] %v16304_v43  ;;  %20185 = vst [vmem:[#allocation71_spill] sm:$0xff] %v16339_v38 }
 0x3fd   :  { %20186 = vst [vmem:[#allocation72_spill] sm:$0xff] %v16347_v16 }
 0x3ff   :  { %12391 = vmatmul.mubr.msk.f32.gmra.mrb[40].mxu1 %vm733_vm2, %v16183_v18 }
 0x400   :  { %12397 = vmatprep.mubr.msk.f32.mxu1 %vm733_vm2, %v16188_v0 }
 0x403   :  { %12398 = vmatmul.mubr.msk.f32.vlgmr.msra.gmra.mrb[36].mxu1 %vm733_vm2, %v16197_v6 }
 0x404   :  { %12400 = vmatprep.mubr.msk.f32.mxu1 %vm733_vm2, %v16202_v46  ;;  %13857 = vmatpush3.bf16.msra.mxu1 %v16235_v10 }
 0x405   :  { %13859 = vmatprep.subr.bf16.mxu1 %v16245_v47 }
 0x407   :  { %12401 = vmatmul.mubr.msk.f32.gmra.mrb[38].mxu1 %vm733_vm2, %v16211_v20 }
 0x408   :  { %12403 = vmatprep.mubr.msk.f32.mxu1 %vm733_vm2, %v16216_v31  ;;  %13861 = vmatpush3.bf16.msra.mxu1 %v16245_v47 }
 0x409   :  { %13863 = vmatprep.subr.bf16.mxu1 %v16255_v41 }
 0x40b   :  { %12404 = vmatmul.mubr.msk.f32.gmra.mrb[42].mxu1 %vm733_vm2, %v16225_v36 }
 0x40c   :  { %13865 = vmatpush3.bf16.msra.mxu1 %v16255_v41 }
 0x40d   :  { %13867 = vmatprep.subr.bf16.mxu1 %v16265_v53 }
 0x410   :  { %13869 = vmatpush3.bf16.msra.mxu1 %v16265_v53 }
 0x411   :  { %13871 = vmatprep.subr.bf16.mxu1 %v16275_v4 }
 0x414   :  { %13873 = vmatpush3.bf16.msra.mxu1 %v16275_v4 }
 0x415   :  { %13875 = vmatprep.subr.bf16.mxu1 %v16288_v1 }
 0x418   :  { %13877 = vmatpush3.bf16.msra.mxu1 %v16288_v1 }
 0x419   :  { %13879 = vmatprep.subr.bf16.mxu1 %v16293_v56 }
 0x41c   :  { %13881 = vmatpush3.bf16.msra.mxu1 %v16293_v56  ;;  %v16334_v56 = vld [vmem:[%s19751_s13] sm:$0xff] }
 0x41d   :  { %13883 = vmatprep.subr.bf16.mxu1 %v16304_v43  ;;  %20184 = vst [vmem:[#allocation70_spill] sm:$0xff] %v16334_v56 }
 0x420   :  { %13885 = vmatpush3.bf16.msra.mxu1 %v16304_v43  ;;  %v16329_v43 = vld [vmem:[%s19752_s14 + $0x18] sm:$0xff] }
 0x421   :  { %20183 = vst [vmem:[#allocation69_spill] sm:$0xff] %v16329_v43  ;;  %v14830_v44 = vadd.f32 %v16329_v43, %v16324_v30 }
 0x4d2   :  { %v12392_v62 = vpop.f32.mrb[40].mxu1 }
 0x4d3   :  { %v1409_v1 = vpop.f32.mrb[41].mxu1 }
 0x4d6   :  { %v12399_v4 = vpop.f32.mrb[36].mxu1 }
 0x4d7   :  { %v14827_v53 = vadd.f32 %v14826_v24, %v12399_v4  ;;  %v1514_v18 = vpop.f32.mrb[37].mxu1 }
 0x4d8   :  { %v14828_v41 = vadd.f32 %v1514_v18, %v16334_v56 }
 0x4d9   :  { %v10478_v17 = vmul.f32 -1.442695, %v14827_v53 }
 0x4da   :  { %v14829_v47 = vadd.f32 %v14828_v41, %v16339_v38  ;;  %v12402_v4 = vpop.f32.mrb[38].mxu1 }
 0x4db   :  { %14951 = vpow2.f32 %v10478_v17  ;;  %v14831_v24 = vadd.f32 %v14830_v44, %v12402_v4  ;;  %v1524_v49 = vpop.f32.mrb[39].mxu1 }
 0x4dc   :  { %v10477_v43 = vmul.f32 -1.442695, %v14829_v47  ;;  %v14832_v18 = vadd.f32 %v1524_v49, %v16347_v16  ;;  %v16360_v49 = vld [vmem:[%s19752_s14 + $0x28] sm:$0xff] }
 0x4dd   :  { %v10480_v53 = vmul.f32 -1.442695, %v14831_v24  ;;  %20188 = vst [vmem:[#allocation74_spill] sm:$0xff] %v16360_v49 }
 0x4de   :  { %14953 = vpow2.f32 %v10477_v43  ;;  %v14833_v30 = vadd.f32 %v14832_v18, %v16353_v22  ;;  %v12405_v56 = vpop.f32.mrb[42].mxu1 }
 0x4df   :  { %v1534_v10 = vpop.f32.mrb[43].mxu1  ;;  %14955 = vpow2.f32 %v10480_v53  ;;  %v1540_v24 = vadd.f32 %v12405_v56, %v16360_v49  ;;  %v16378_v56 = vld [vmem:[%s19751_s13 + $0x20] sm:$0xff] }
 0x4e0   :  { %v10479_v55 = vmul.f32 -1.442695, %v14833_v30  ;;  %v16366_v30 = vld [vmem:[%s19752_s14 + $0x20] sm:$0xff]  ;;  %v1410_v49 = vadd.f32 %v1409_v1, %v16378_v56 }
 0x4e1   :  { %20189 = vst [vmem:[#allocation75_spill] sm:$0xff] %v16366_v30 }
 0x4e2   :  { %14957 = vpow2.f32 %v10479_v55  ;;  %v16371_v55 = vld [vmem:[%s19751_s13 + $0x28] sm:$0xff] }
 0x4e3   :  { %20190 = vst [vmem:[#allocation76_spill] sm:$0xff] %v16371_v55 }
 0x4e5   :  { %v14952_v41 = vpop.eup %14951 }
 0x4e6   :  { %v1552_v17 = vadd.f32 1.0, %v14952_v41  ;;  %v1535_v41 = vadd.f32 %v1534_v10, %v16366_v30 }
 0x4e8   :  { %v14954_v44 = vpop.eup %14953  ;;  %14959 = vrcp.f32 %v1552_v17  ;;  %v1415_v17 = vadd.f32 %v12392_v62, %v16371_v55 }
 0x4e9   :  { %v1551_v4 = vadd.f32 1.0, %v14954_v44  ;;  %v14956_v38 = vpop.eup %14955 }
 0x4ea   :  { %v1566_v43 = vadd.f32 1.0, %v14956_v38 }
 0x4eb   :  { %14961 = vrcp.f32 %v1551_v4 }
 0x4ec   :  { %v14958_v47 = vpop.eup %14957  ;;  %14963 = vrcp.f32 %v1566_v43 }
 0x4ed   :  { %v1565_v53 = vadd.f32 1.0, %v14958_v47 }
 0x4ef   :  { %14965 = vrcp.f32 %v1565_v53 }
 0x4f2   :  { %v14960_v18 = vpop.eup %14959 }
 0x4f3   :  { %v1572_v38 = vmul.f32 %v14960_v18, %v1540_v24  ;;  %v15152_v18 = vld [vmem:[#allocation8] sm:$0xff] }
 0x4f5   :  { %v14962_v44 = vpop.eup %14961  ;;  %v1574_v4 = vadd.f32 %v1572_v38, %v1415_v17 }
 0x4f6   :  { %v1571_v22 = vmul.f32 %v14962_v44, %v1535_v41  ;;  %v14964_v47 = vpop.eup %14963  ;;  %v20210_v41 = vld [vmem:[#allocation31_spill] sm:$0xff] }
 0x4f7   :  { %14967 = vtanh.f32 %v1574_v4  ;;  %v1578_v30 = vsub.f32 1.0, %v14964_v47  ;;  %v1582_v7 = vmul.f32 %v15151_v40, %v14964_v47  ;;  %v20211_v47 = vld [vmem:[#allocation32_spill] sm:$0xff] }
 0x4f8   :  { %v1573_v16 = vadd.f32 %v1571_v22, %v1410_v49 }
 0x4f9   :  { %v14966_v10 = vpop.eup %14965 }
 0x4fa   :  { %14969 = vtanh.f32 %v1573_v16  ;;  %v1577_v36 = vsub.f32 1.0, %v14966_v10  ;;  %v1581_v17 = vmul.f32 %v15152_v18, %v14966_v10 }
 0x501   :  { %v14968_v62 = vpop.eup %14967 }
 0x502   :  { %v1580_v55 = vmul.f32 %v14968_v62, %v1578_v30  ;;  %v20209_v30 = vld [vmem:[#allocation30_spill] sm:$0xff] }
 0x504   :  { %v14970_v31 = vpop.eup %14969  ;;  %v16381_v43 = vadd.f32 %v1582_v7, %v1580_v55  ;;  %v16393_v7 = vld [vmem:[%s19747_s9] sm:$0xff] }
 0x505   :  { %v1579_v24 = vmul.f32 %v14970_v31, %v1577_v36  ;;  %12445 = vmatprep.mubr.msk.f32.mxu0 %vm733_vm2, %v16393_v7  ;;  %v16400_v31 = vld [vmem:[%s19747_s9 + $0x8] sm:$0xff]  ;;  %v16415_v36 = vld [vmem:[%s19747_s9 + $0x18] sm:$0xff] }
 0x506   :  { %1586 = vst [vmem:[#allocation8 + $0x18] sm:$0xff] %v16381_v43 }
 0x507   :  { %v16384_v1 = vadd.f32 %v1581_v17, %v1579_v24  ;;  %v20212_v24 = vld [vmem:[#allocation33_spill] sm:$0xff] }
 0x509   :  { %1585 = vst [vmem:[#allocation8 + $0x10] sm:$0xff] %v16384_v1  ;;  %12438 = vmatprep.mubr.f32.mxu1 %v16384_v1 }
 0x50a   :  { %12439 = vmatmul.mubr.f32.vlgmr.msra.gmra.mrb[44].mxu1 %v16381_v43 }
 0x50b   :  { %2163 = vmatprep.mubr.f32.mxu1 %v15766_v54  ;;  %v16405_v54 = vld [vmem:[%s19747_s9 + $0x10] sm:$0xff] }
 0x5dd   :  { %v12440_v40 = vpop.f32.mrb[44].mxu1 }
 0x5de   :  { %v1669_v22 = vpop.f32.mrb[45].mxu1 }
 0x5df   :  { %v13886_v16 = vpack.c.bf16 %v12440_v40, %v1669_v22  ;;  %v20213_v22 = vld [vmem:[#allocation34_spill] sm:$0xff] }
 0x5e1   :  { %13887 = vmatprep.subr.bf16.mxu0 %v13886_v16 }
 0x5e2   :  { %13889 = vmatpush3.bf16.msra.mxu0 %v13886_v16 }
 0x5e3   :  { %13923 = vmatprep.subr.bf16.mxu0 %v15778_v58 }
 0x5e5   :  { %12446 = vmatmul.mubr.msk.f32.vlgmr.msra.gmra.mrb[40].mxu0 %vm733_vm2, %v16400_v31 }
 0x5e6   :  { %12448 = vmatprep.mubr.msk.f32.mxu0 %vm733_vm2, %v16405_v54  ;;  %13925 = vmatpush3.bf16.msra.mxu0 %v15778_v58  ;;  %v20201_v58 = vld [vmem:[#allocation22_spill] sm:$0xff] }
 0x5e7   :  { %13927 = vmatprep.subr.bf16.mxu0 %v15783_v60 }
 0x5e9   :  { %12449 = vmatmul.mubr.msk.f32.gmra.mrb[42].mxu0 %vm733_vm2, %v16415_v36 }
 0x5ea   :  { %12451 = vmatprep.mubr.msk.f32.mxu0 %vm733_vm2, %v15507_v9  ;;  %13929 = vmatpush3.bf16.msra.mxu0 %v15783_v60  ;;  %v20191_v9 = vld [vmem:[#allocation12_spill] sm:$0xff]  ;;  %v20202_v60 = vld [vmem:[#allocation23_spill] sm:$0xff] }
 0x5eb   :  { %13931 = vmatprep.subr.bf16.mxu0 %v15794_v63 }
 0x5ed   :  { %12452 = vmatmul.mubr.msk.f32.gmra.mrb[44].mxu0 %vm733_vm2, %v15520_v11  ;;  %v20192_v11 = vld [vmem:[#allocation13_spill] sm:$0xff] }
 0x5ee   :  { %12454 = vmatprep.mubr.msk.f32.mxu0 %vm733_vm2, %v15528_v13  ;;  %13933 = vmatpush3.bf16.msra.mxu0 %v15794_v63  ;;  %v20193_v13 = vld [vmem:[#allocation14_spill] sm:$0xff]  ;;  %v20203_v63 = vld [vmem:[#allocation24_spill] sm:$0xff] }
 0x5ef   :  { %13935 = vmatprep.subr.bf16.mxu0 %v15804_v2 }
 0x5f1   :  { %12455 = vmatmul.mubr.msk.f32.gmra.mrb[46].mxu0 %vm733_vm2, %v15542_v15  ;;  %v20194_v15 = vld [vmem:[#allocation15_spill] sm:$0xff] }
 0x5f2   :  { %12457 = vmatprep.mubr.msk.f32.mxu0 %vm733_vm2, %v15550_v19  ;;  %13937 = vmatpush3.bf16.msra.mxu0 %v15804_v2  ;;  %v20195_v19 = vld [vmem:[#allocation16_spill] sm:$0xff]  ;;  %v20204_v2 = vld [vmem:[#allocation25_spill] sm:$0xff] }
 0x5f3   :  { %13939 = vmatprep.subr.bf16.mxu0 %v15814_v5 }
 0x5f5   :  { %12458 = vmatmul.mubr.msk.f32.gmra.mrb[48].mxu0 %vm733_vm2, %v15564_v21  ;;  %v20196_v21 = vld [vmem:[#allocation17_spill] sm:$0xff] }
 0x5f6   :  { %12460 = vmatprep.mubr.msk.f32.mxu0 %vm733_vm2, %v15572_v23  ;;  %13941 = vmatpush3.bf16.msra.mxu0 %v15814_v5  ;;  %v20197_v23 = vld [vmem:[#allocation18_spill] sm:$0xff] }
 0x5f7   :  { %13943 = vmatprep.subr.bf16.mxu0 %v15824_v8  ;;  %v20205_v5 = vld [vmem:[#allocation26_spill] sm:$0xff] }
 0x5f9   :  { %12461 = vmatmul.mubr.msk.f32.gmra.mrb[50].mxu0 %vm733_vm2, %v15586_v25  ;;  %v20198_v25 = vld [vmem:[#allocation19_spill] sm:$0xff] }
 0x5fa   :  { %12463 = vmatprep.mubr.msk.f32.mxu0 %vm733_vm2, %v15594_v27  ;;  %13945 = vmatpush3.bf16.msra.mxu0 %v15824_v8  ;;  %v20199_v27 = vld [vmem:[#allocation20_spill] sm:$0xff]  ;;  %v20206_v8 = vld [vmem:[#allocation27_spill] sm:$0xff] }
 0x5fb   :  { %13947 = vmatprep.subr.bf16.mxu0 %v15834_v14 }
 0x5fd   :  { %12464 = vmatmul.mubr.msk.f32.gmra.mrb[52].mxu0 %vm733_vm2, %v15608_v29  ;;  %v20200_v29 = vld [vmem:[#allocation21_spill] sm:$0xff] }
 0x5fe   :  { %12466 = vmatprep.mubr.msk.f32.mxu0 %vm733_vm2, %v20191_v9  ;;  %13949 = vmatpush3.bf16.msra.mxu0 %v15834_v14  ;;  %v20207_v14 = vld [vmem:[#allocation28_spill] sm:$0xff] }
 0x5ff   :  { %13951 = vmatprep.subr.bf16.mxu0 %v16127_v52 }
 0x601   :  { %12467 = vmatmul.mubr.msk.f32.gmra.mrb[54].mxu0 %vm733_vm2, %v20192_v11  ;;  %v20214_v11 = vld [vmem:[#allocation35_spill] sm:$0xff] }
 0x602   :  { %12469 = vmatprep.mubr.msk.f32.mxu0 %vm733_vm2, %v20193_v13  ;;  %13953 = vmatpush3.bf16.msra.mxu0 %v16127_v52  ;;  %v20208_v52 = vld [vmem:[#allocation29_spill] sm:$0xff] }
 0x605   :  { %12470 = vmatmul.mubr.msk.f32.gmra.mrb[56].mxu0 %vm733_vm2, %v20194_v15 }
 0x606   :  { %12472 = vmatprep.mubr.msk.f32.mxu0 %vm733_vm2, %v20195_v19 }
 0x609   :  { %12473 = vmatmul.mubr.msk.f32.gmra.mrb[58].mxu0 %vm733_vm2, %v20196_v21  ;;  %v20215_v21 = vld [vmem:[#allocation36_spill] sm:$0xff] }
 0x60a   :  { %12475 = vmatprep.mubr.msk.f32.mxu0 %vm733_vm2, %v20197_v23 }
 0x60d   :  { %12476 = vmatmul.mubr.msk.f32.gmra.mrb[60].mxu0 %vm733_vm2, %v20198_v25 }
 0x60e   :  { %12478 = vmatprep.mubr.msk.f32.mxu0 %vm733_vm2, %v20199_v27  ;;  %v20216_v27 = vld [vmem:[#allocation37_spill] sm:$0xff] }
 0x611   :  { %12479 = vmatmul.mubr.msk.f32.gmra.mrb[62].mxu0 %vm733_vm2, %v20200_v29 }
 0x612   :  { %12481 = vmatprep.mubr.msk.f32.mxu0 %vm733_vm2, %v20201_v58 }
 0x615   :  { %12482 = vmatmul.mubr.msk.f32.gmra.mrb[64].mxu0 %vm733_vm2, %v20202_v60 }
 0x616   :  { %12484 = vmatprep.mubr.msk.f32.mxu0 %vm733_vm2, %v20203_v63  ;;  %v20217_v63 = vld [vmem:[#allocation38_spill] sm:$0xff] }
 0x619   :  { %12485 = vmatmul.mubr.msk.f32.gmra.mrb[66].mxu0 %vm733_vm2, %v20204_v2 }
 0x61a   :  { %12487 = vmatprep.mubr.msk.f32.mxu0 %vm733_vm2, %v20205_v5 }
 0x61d   :  { %12488 = vmatmul.mubr.msk.f32.gmra.mrb[68].mxu0 %vm733_vm2, %v20206_v8  ;;  %v20218_v8 = vld [vmem:[#allocation39_spill] sm:$0xff] }
 0x61e   :  { %12490 = vmatprep.mubr.msk.f32.mxu0 %vm733_vm2, %v20207_v14 }
 0x621   :  { %12491 = vmatmul.mubr.msk.f32.gmra.mrb[70].mxu0 %vm733_vm2, %v20208_v52 }
 0x6b8   :  { %v12447_v49 = vpop.f32.mrb[40].mxu0 }
 0x6b9   :  { %v2068_v55 = vmul.f32 %v12447_v49, %v20209_v30  ;;  %v1872_v53 = vpop.f32.mrb[41].mxu0 }
 0x6ba   :  { %v2067_v38 = vmul.f32 %v1872_v53, %v20210_v41 }
 0x6bc   :  { %v13892_v44 = vpack.c.bf16 %v2068_v55, %v2067_v38  ;;  %v12450_v4 = vpop.f32.mrb[42].mxu0  ;;  %v20219_v55 = vld [vmem:[#allocation40_spill] sm:$0xff] }
 0x6bd   :  { %v2070_v10 = vmul.f32 %v12450_v4, %v20211_v47  ;;  %v1882_v62 = vpop.f32.mrb[43].mxu0  ;;  %v20220_v4 = vld [vmem:[#allocation41_spill] sm:$0xff] }
 0x6be   :  { %v2069_v18 = vmul.f32 %v1882_v62, %v20212_v24 }
 0x6c0   :  { %v13896_v17 = vpack.c.bf16 %v2070_v10, %v2069_v18  ;;  %v12453_v40 = vpop.f32.mrb[44].mxu0 }
 0x6c1   :  { %v2072_v16 = vmul.f32 %v12453_v40, %v20213_v22  ;;  %v1892_v9 = vpop.f32.mrb[45].mxu0  ;;  %v20221_v40 = vld [vmem:[#allocation42_spill] sm:$0xff] }
 0x6c2   :  { %v2071_v13 = vmul.f32 %v1892_v9, %v20214_v11 }
 0x6c4   :  { %v13900_v15 = vpack.c.bf16 %v2072_v16, %v2071_v13  ;;  %v12456_v19 = vpop.f32.mrb[46].mxu0  ;;  %v20222_v13 = vld [vmem:[#allocation43_spill] sm:$0xff] }
 0x6c5   :  { %v2074_v23 = vmul.f32 %v12456_v19, %v20215_v21  ;;  %v1902_v25 = vpop.f32.mrb[47].mxu0 }
 0x6c6   :  { %v2073_v29 = vmul.f32 %v1902_v25, %v20216_v27 }
 0x6c8   :  { %v13904_v58 = vpack.c.bf16 %v2074_v23, %v2073_v29  ;;  %v12459_v60 = vpop.f32.mrb[48].mxu0  ;;  %v20223_v29 = vld [vmem:[#allocation44_spill] sm:$0xff] }
 0x6c9   :  { %v2076_v2 = vmul.f32 %v12459_v60, %v20217_v63  ;;  %v1912_v5 = vpop.f32.mrb[49].mxu0 }
 0x6ca   :  { %v2075_v14 = vmul.f32 %v1912_v5, %v20218_v8  ;;  %v20224_v5 = vld [vmem:[#allocation45_spill] sm:$0xff] }
 0x6cc   :  { %v13908_v52 = vpack.c.bf16 %v2076_v2, %v2075_v14  ;;  %v12462_v49 = vpop.f32.mrb[50].mxu0 }
 0x6cd   :  { %v2078_v53 = vmul.f32 %v12462_v49, %v20219_v55  ;;  %v1922_v38 = vpop.f32.mrb[51].mxu0 }
 0x6ce   :  { %v2077_v10 = vmul.f32 %v1922_v38, %v20220_v4  ;;  %v20225_v38 = vld [vmem:[#allocation46_spill] sm:$0xff] }
 0x6d0   :  { %v13912_v62 = vpack.c.bf16 %v2078_v53, %v2077_v10  ;;  %v12465_v18 = vpop.f32.mrb[52].mxu0 }
 0x6d1   :  { %v2080_v16 = vmul.f32 %v12465_v18, %v20221_v40  ;;  %v1932_v9 = vpop.f32.mrb[53].mxu0 }
 0x6d2   :  { %v2079_v19 = vmul.f32 %v1932_v9, %v20222_v13 }
 0x6d4   :  { %v13916_v23 = vpack.c.bf16 %v2080_v16, %v2079_v19  ;;  %v12468_v25 = vpop.f32.mrb[54].mxu0 }
 0x6d5   :  { %v2082_v60 = vmul.f32 %v12468_v25, %v20223_v29  ;;  %v1942_v63 = vpop.f32.mrb[55].mxu0 }
 0x6d6   :  { %v2081_v2 = vmul.f32 %v1942_v63, %v20224_v5 }
 0x6d8   :  { %v13920_v14 = vpack.c.bf16 %v2082_v60, %v2081_v2  ;;  %v12471_v8 = vpop.f32.mrb[56].mxu0 }
 0x6d9   :  { %v2084_v49 = vmul.f32 %v12471_v8, %v15984_v3  ;;  %v1952_v55 = vpop.f32.mrb[57].mxu0 }
 0x6da   :  { %v2083_v53 = vmul.f32 %v1952_v55, %v20225_v38 }
 0x6dc   :  { %v13890_v10 = vpack.c.bf16 %v2084_v49, %v2083_v53  ;;  %v12474_v4 = vpop.f32.mrb[58].mxu0 }
 0x6dd   :  { %v2086_v18 = vmul.f32 %v12474_v4, %v16000_v12  ;;  %v1962_v40 = vpop.f32.mrb[59].mxu0 }
 0x6de   :  { %v2085_v16 = vmul.f32 %v1962_v40, %v16003_v50  ;;  %13891 = vmatprep.subr.bf16.mxu1 %v13890_v10 }
 0x6df   :  { %13893 = vmatpush3.bf16.msra.mxu1 %v13892_v44 }
 0x6e0   :  { %v13894_v9 = vpack.c.bf16 %v2086_v18, %v2085_v16  ;;  %v12477_v19 = vpop.f32.mrb[60].mxu0 }
 0x6e1   :  { %v2088_v63 = vmul.f32 %v12477_v19, %v16012_v51  ;;  %v1972_v25 = vpop.f32.mrb[61].mxu0 }
 0x6e2   :  { %v2087_v60 = vmul.f32 %v1972_v25, %v16015_v48  ;;  %13895 = vmatprep.subr.bf16.mxu1 %v13894_v9 }
 0x6e3   :  { %13897 = vmatpush3.bf16.msra.mxu1 %v13896_v17 }
 0x6e4   :  { %v13898_v8 = vpack.c.bf16 %v2088_v63, %v2087_v60  ;;  %v12480_v55 = vpop.f32.mrb[62].mxu0 }
 0x6e5   :  { %v2090_v2 = vmul.f32 %v12480_v55, %v16027_v35  ;;  %v1982_v49 = vpop.f32.mrb[63].mxu0 }
 0x6e6   :  { %v2089_v4 = vmul.f32 %v1982_v49, %v16030_v34  ;;  %13899 = vmatprep.subr.bf16.mxu1 %v13898_v8 }
 0x6e7   :  { %13901 = vmatpush3.bf16.msra.mxu1 %v13900_v15 }
 0x6e8   :  { %v13902_v40 = vpack.c.bf16 %v2090_v2, %v2089_v4  ;;  %v12483_v44 = vpop.f32.mrb[64].mxu0 }
 0x6e9   :  { %v2092_v53 = vmul.f32 %v12483_v44, %v16042_v61  ;;  %v1992_v10 = vpop.f32.mrb[65].mxu0 }
 0x6ea   :  { %v2091_v18 = vmul.f32 %v1992_v10, %v16045_v33  ;;  %13903 = vmatprep.subr.bf16.mxu1 %v13902_v40 }
 0x6eb   :  { %13905 = vmatpush3.bf16.msra.mxu1 %v13904_v58 }
 0x6ec   :  { %v13906_v16 = vpack.c.bf16 %v2092_v53, %v2091_v18  ;;  %v12486_v17 = vpop.f32.mrb[66].mxu0  ;;  %v20229_v53 = vld [vmem:[#allocation49_spill] sm:$0xff] }
 0x6ed   :  { %v2094_v9 = vmul.f32 %v12486_v17, %v16057_v37  ;;  %v2002_v19 = vpop.f32.mrb[67].mxu0 }
 0x6ee   :  { %v2093_v63 = vmul.f32 %v2002_v19, %v16060_v59  ;;  %13907 = vmatprep.subr.bf16.mxu1 %v13906_v16  ;;  %v20230_v16 = vld [vmem:[#allocation50_spill] sm:$0xff]  ;;  %v20232_v19 = vld [vmem:[#allocation51_spill] sm:$0xff] }
 0x6ef   :  { %13909 = vmatpush3.bf16.msra.mxu1 %v13908_v52  ;;  %v13958_v52 = vpack.c.bf16 %v16381_v43, %v16384_v1 }
 0x6f0   :  { %v13910_v25 = vpack.c.bf16 %v2094_v9, %v2093_v63  ;;  %v12489_v15 = vpop.f32.mrb[68].mxu0  ;;  %v20233_v63 = vld [vmem:[#allocation52_spill] sm:$0xff] }
 0x6f1   :  { %v2096_v60 = vmul.f32 %v12489_v15, %v16072_v42  ;;  %v2012_v8 = vpop.f32.mrb[69].mxu0  ;;  %v20235_v15 = vld [vmem:[#allocation53_spill] sm:$0xff] }
 0x6f2   :  { %v2095_v55 = vmul.f32 %v2012_v8, %v16075_v57  ;;  %13911 = vmatprep.subr.bf16.mxu1 %v13910_v25  ;;  %v20234_v25 = vld [vmem:[#allocation59_spill] sm:$0xff]  ;;  %v20237_v8 = vld [vmem:[#allocation60_spill] sm:$0xff] }
 0x6f3   :  { %13913 = vmatpush3.bf16.msra.mxu1 %v13912_v62  ;;  %v20226_v62 = vld [vmem:[#allocation56_spill] sm:$0xff] }
 0x6f4   :  { %v13914_v2 = vpack.c.bf16 %v2096_v60, %v2095_v55  ;;  %v12492_v58 = vpop.f32.mrb[70].mxu0  ;;  %v20236_v60 = vld [vmem:[#allocation54_spill] sm:$0xff]  ;;  %v20238_v55 = vld [vmem:[#allocation55_spill] sm:$0xff] }
 0x6f5   :  { %v2098_v49 = vmul.f32 %v12492_v58, %v16087_v39  ;;  %v2022_v4 = vpop.f32.mrb[71].mxu0  ;;  %v20240_v58 = vld [vmem:[#allocation62_spill] sm:$0xff] }
 0x6f6   :  { %v2097_v40 = vmul.f32 %v2022_v4, %v16090_v45  ;;  %13915 = vmatprep.subr.bf16.mxu1 %v13914_v2  ;;  %v20239_v2 = vld [vmem:[#allocation61_spill] sm:$0xff]  ;;  %v20242_v4 = vld [vmem:[#allocation64_spill] sm:$0xff] }
 0x6f7   :  { %13917 = vmatpush3.bf16.msra.mxu1 %v13916_v23 }
 0x6f8   :  { %v13918_v44 = vpack.c.bf16 %v2098_v49, %v2097_v40  ;;  %v20241_v49 = vld [vmem:[#allocation63_spill] sm:$0xff]  ;;  %v20243_v40 = vld [vmem:[#allocation65_spill] sm:$0xff] }
 0x6fa   :  { %13919 = vmatprep.subr.bf16.mxu1 %v13918_v44 }
 0x6fb   :  { %13921 = vmatpush3.bf16.msra.mxu1 %v13920_v14 }
 0x6fc   :  { %13959 = vmatprep.subr.bf16.mxu1 %v13958_v52 }
 0x6fe   :  { %2164 = vmatmul.mubr.f32.vlgmr.msra.gmra.mrb[46].mxu1 %v16106_v28  ;;  %v20227_v28 = vld [vmem:[#allocation57_spill] sm:$0xff] }
 0x6ff   :  { %13961 = vmatpush3.bf16.msra.mxu1 %v13958_v52  ;;  %2168 = vmatprep.mubr.f32.mxu1 %v16111_v26 }
 0x702   :  { %2169 = vmatmul.mubr.f32.gmra.mrb[48].mxu1 %v16118_v32 }
 0x703   :  { %12545 = vmatprep.mubr.msk.f32.mxu1 %vm733_vm2, %v16188_v0 }
 0x706   :  { %12546 = vmatmul.mubr.msk.f32.vlgmr.msra.gmra.mrb[50].mxu1 %vm733_vm2, %v16197_v6 }
 0x707   :  { %12548 = vmatprep.mubr.msk.f32.mxu1 %vm733_vm2, %v16202_v46  ;;  %v20228_v46 = vld [vmem:[#allocation48_spill] sm:$0xff] }
 0x70a   :  { %12549 = vmatmul.mubr.msk.f32.gmra.mrb[52].mxu1 %vm733_vm2, %v16211_v20 }
 0x70b   :  { %12551 = vmatprep.mubr.msk.f32.mxu1 %vm733_vm2, %v20226_v62 }
 0x70e   :  { %12552 = vmatmul.mubr.msk.f32.gmra.mrb[54].mxu1 %vm733_vm2, %v20227_v28 }
 0x70f   :  { %12593 = vmatprep.mubr.msk.f32.mxu1 %vm733_vm2, %v16393_v7  ;;  %v20231_v7 = vld [vmem:[#allocation58_spill] sm:$0xff] }
 0x7d1   :  { %v11162_v26 = vpop.f32.mrb[46].mxu1 }
 0x7d2   :  { %v11163_v32 = vpop.f32.mrb[47].mxu1 }
 0x7d3   :  { %v11164_v0 = vadd.f32 %v11163_v32, %v11162_v26 }
 0x7d5   :  { %v11165_v23 = vpop.f32.mrb[48].mxu1  ;;  %12525 = vmatprep.mubr.f32.mxu0 %v11164_v0 }
 0x7d6   :  { %v11166_v6 = vpop.f32.mrb[49].mxu1 }
 0x7d7   :  { %v11167_v14 = vadd.f32 %v11166_v6, %v11165_v23  ;;  %v20244_v23 = vld [vmem:[#allocation66_spill] sm:$0xff] }
 0x7d9   :  { %12526 = vmatmul.mubr.f32.vlgmr.msra.gmra.mrb[72].mxu0 %v11167_v14  ;;  %v12547_v44 = vpop.f32.mrb[50].mxu1 }
 0x7da   :  { %12532 = vmatprep.mubr.msk.f32.mxu0 %vm733_vm2, %v20228_v46  ;;  %v2490_v52 = vpop.f32.mrb[51].mxu1  ;;  %v20245_v46 = vld [vmem:[#allocation70_spill] sm:$0xff] }
 0x7dd   :  { %v12550_v62 = vpop.f32.mrb[52].mxu1 }
 0x7de   :  { %v2500_v28 = vpop.f32.mrb[53].mxu1 }
 0x7e1   :  { %v12553_v26 = vpop.f32.mrb[54].mxu1 }
 0x7e2   :  { %v2510_v32 = vpop.f32.mrb[55].mxu1 }
 0x8ac   :  { %v12527_v20 = vpop.f32.mrb[72].mxu0 }
 0x8ad   :  { %v2268_v10 = vmul.f32 %v12527_v20, %v20229_v53  ;;  %v2256_v18 = vpop.f32.mrb[73].mxu0  ;;  %v20246_v53 = vld [vmem:[#allocation67_spill] sm:$0xff] }
 0x8ae   :  { %v2267_v17 = vmul.f32 %v2256_v18, %v20230_v16 }
 0x8b0   :  { %v13954_v9 = vpack.c.bf16 %v2268_v10, %v2267_v17 }
 0x8b2   :  { %13955 = vmatprep.subr.bf16.mxu0 %v13954_v9 }
 0x8b3   :  { %13957 = vmatpush3.bf16.msra.mxu0 %v13954_v9  ;;  %v20247_v9 = vld [vmem:[#allocation68_spill] sm:$0xff] }
 0x8b4   :  { %13963 = vmatprep.subr.bf16.mxu0 %v20231_v7 }
 0x8b6   :  { %12533 = vmatmul.mubr.msk.f32.vlgmr.msra.gmra.mrb[74].mxu0 %vm733_vm2, %v20232_v19 }
 0x8b7   :  { %12535 = vmatprep.mubr.msk.f32.mxu0 %vm733_vm2, %v20233_v63  ;;  %13965 = vmatpush3.bf16.msra.mxu0 %v20231_v7  ;;  %v20248_v63 = vld [vmem:[#allocation71_spill] sm:$0xff] }
 0x8b8   :  { %13967 = vmatprep.subr.bf16.mxu0 %v20234_v25 }
 0x8ba   :  { %12536 = vmatmul.mubr.msk.f32.gmra.mrb[76].mxu0 %vm733_vm2, %v20235_v15  ;;  %v20249_v15 = vld [vmem:[#allocation72_spill] sm:$0xff] }
 0x8bb   :  { %12538 = vmatprep.mubr.msk.f32.mxu0 %vm733_vm2, %v20236_v60  ;;  %13969 = vmatpush3.bf16.msra.mxu0 %v20234_v25 }
 0x8bc   :  { %13971 = vmatprep.subr.bf16.mxu0 %v20237_v8 }
 0x8be   :  { %12539 = vmatmul.mubr.msk.f32.gmra.mrb[78].mxu0 %vm733_vm2, %v20238_v55  ;;  %v20250_v55 = vld [vmem:[#allocation69_spill] sm:$0xff] }
 0x8bf   :  { %13973 = vmatpush3.bf16.msra.mxu0 %v20237_v8 }
 0x8c0   :  { %13975 = vmatprep.subr.bf16.mxu0 %v20239_v2 }
 0x8c3   :  { %13977 = vmatpush3.bf16.msra.mxu0 %v20239_v2 }
 0x8c4   :  { %13979 = vmatprep.subr.bf16.mxu0 %v20240_v58 }
 0x8c7   :  { %13981 = vmatpush3.bf16.msra.mxu0 %v20240_v58 }
 0x8c8   :  { %13983 = vmatprep.subr.bf16.mxu0 %v20241_v49 }
 0x8cb   :  { %13985 = vmatpush3.bf16.msra.mxu0 %v20241_v49 }
 0x8cc   :  { %13987 = vmatprep.subr.bf16.mxu0 %v20242_v4 }
 0x8cf   :  { %13989 = vmatpush3.bf16.msra.mxu0 %v20242_v4 }
 0x8d0   :  { %13991 = vmatprep.subr.bf16.mxu0 %v20243_v40 }
 0x8d3   :  { %13993 = vmatpush3.bf16.msra.mxu0 %v20243_v40 }
 0x989   :  { %v12534_v0 = vpop.f32.mrb[74].mxu0 }
 0x98a   :  { %v2371_v6 = vadd.f32 %v12534_v0, %v20244_v23  ;;  %v2365_v14 = vpop.f32.mrb[75].mxu0 }
 0x98b   :  { %v2366_v20 = vadd.f32 %v2365_v14, %v20245_v46 }
 0x98c   :  { %v14835_v10 = vadd.f32 %v2371_v6, %v20246_v53 }
 0x98d   :  { %v14838_v18 = vadd.f32 %v2490_v52, %v2366_v20  ;;  %v12537_v16 = vpop.f32.mrb[76].mxu0  ;;  %v20251_v52 = vld [vmem:[#allocation73_spill] sm:$0xff] }
 0x98e   :  { %v14836_v17 = vadd.f32 %v14835_v10, %v12547_v44  ;;  %v2381_v7 = vadd.f32 %v12537_v16, %v20247_v9  ;;  %v2375_v19 = vpop.f32.mrb[77].mxu0 }
 0x98f   :  { %v14839_v25 = vadd.f32 %v14838_v18, %v20248_v63  ;;  %v2376_v60 = vadd.f32 %v2375_v19, %v20249_v15  ;;  %v20254_v19 = vld [vmem:[#allocation76_spill] sm:$0xff] }
 0x990   :  { %v10526_v8 = vmul.f32 -1.442695, %v14836_v17  ;;  %v14841_v2 = vadd.f32 %v2381_v7, %v20250_v55 }
 0x991   :  { %v10525_v58 = vmul.f32 -1.442695, %v14839_v25  ;;  %v14844_v49 = vadd.f32 %v2500_v28, %v2376_v60  ;;  %v12540_v4 = vpop.f32.mrb[78].mxu0  ;;  %v20252_v28 = vld [vmem:[#allocation74_spill] sm:$0xff] }
 0x992   :  { %14971 = vpow2.f32 %v10526_v8  ;;  %v14842_v40 = vadd.f32 %v14841_v2, %v12550_v62  ;;  %v2385_v0 = vpop.f32.mrb[79].mxu0  ;;  %v2516_v16 = vadd.f32 %v12553_v26, %v20252_v28  ;;  %v20253_v62 = vld [vmem:[#allocation75_spill] sm:$0xff]  ;;  %v2391_v63 = vadd.f32 %v12540_v4, %v20254_v19  ;;  %v16651_v28 = vld [vmem:[%s19747_s9 + $0x58] sm:$0xff]  ;;  %v16693_v19 = vld [vmem:[%s19747_s9 + $0x88] sm:$0xff] }
 0x993   :  { %14973 = vpow2.f32 %v10525_v58  ;;  %v14845_v23 = vadd.f32 %v14844_v49, %v20251_v52  ;;  %v2511_v9 = vadd.f32 %v2510_v32, %v20253_v62  ;;  %v2386_v15 = vadd.f32 %v2385_v0, %v16378_v56  ;;  %v16670_v62 = vld [vmem:[%s19747_s9 + $0x70] sm:$0xff]  ;;  %20259 = vst [vmem:[#allocation16_spill] sm:$0xff] %v16693_v19 }
 0x994   :  { %v10528_v6 = vmul.f32 -1.442695, %v14842_v40  ;;  %20256 = vst [vmem:[#allocation13_spill] sm:$0xff] %v16670_v62 }
 0x995   :  { %v10527_v44 = vmul.f32 -1.442695, %v14845_v23 }
 0x997   :  { %14975 = vpow2.f32 %v10527_v44 }
 0x998   :  { %14977 = vpow2.f32 %v10528_v6 }
 0x99c   :  { %v14972_v14 = vpop.eup %14971 }
 0x99d   :  { %v14974_v46 = vpop.eup %14973  ;;  %v2528_v20 = vadd.f32 1.0, %v14972_v14 }
 0x99e   :  { %v2527_v53 = vadd.f32 1.0, %v14974_v46 }
 0x99f   :  { %14979 = vrcp.f32 %v2528_v20 }
 0x9a0   :  { %14981 = vrcp.f32 %v2527_v53 }
 0x9a1   :  { %v14976_v10 = vpop.eup %14975 }
 0x9a2   :  { %v14978_v18 = vpop.eup %14977  ;;  %v2541_v17 = vadd.f32 1.0, %v14976_v10  ;;  %v16637_v10 = vld [vmem:[%s19747_s9 + $0x48] sm:$0xff] }
 0x9a3   :  { %v2542_v7 = vadd.f32 1.0, %v14978_v18  ;;  %v16642_v18 = vld [vmem:[%s19747_s9 + $0x50] sm:$0xff] }
 0x9a4   :  { %14983 = vrcp.f32 %v2541_v17  ;;  %v16665_v17 = vld [vmem:[%s19747_s9 + $0x68] sm:$0xff] }
 0x9a5   :  { %14985 = vrcp.f32 %v2542_v7  ;;  %20255 = vst [vmem:[#allocation12_spill] sm:$0xff] %v16665_v17  ;;  %v16684_v7 = vld [vmem:[%s19747_s9 + $0x80] sm:$0xff] }
 0x9a6   :  { %20258 = vst [vmem:[#allocation15_spill] sm:$0xff] %v16684_v7 }
 0x9a9   :  { %v14980_v25 = vpop.eup %14979 }
 0x9aa   :  { %v14982_v60 = vpop.eup %14981  ;;  %v2548_v8 = vmul.f32 %v14980_v25, %v2516_v16  ;;  %v16656_v16 = vld [vmem:[%s19747_s9 + $0x60] sm:$0xff]  ;;  %v16707_v25 = vld [vmem:[%s19747_s9 + $0x98] sm:$0xff] }
 0x9ab   :  { %v2547_v55 = vmul.f32 %v14982_v60, %v2511_v9  ;;  %v16679_v9 = vld [vmem:[%s19747_s9 + $0x78] sm:$0xff]  ;;  %20261 = vst [vmem:[#allocation18_spill] sm:$0xff] %v16707_v25  ;;  %v16721_v60 = vld [vmem:[%s19747_s9 + $0xa8] sm:$0xff] }
 0x9ac   :  { %v2550_v2 = vadd.f32 %v2548_v8, %v2391_v63  ;;  %20257 = vst [vmem:[#allocation14_spill] sm:$0xff] %v16679_v9  ;;  %v16698_v63 = vld [vmem:[%s19747_s9 + $0x90] sm:$0xff]  ;;  %20263 = vst [vmem:[#allocation20_spill] sm:$0xff] %v16721_v60 }
 0x9ad   :  { %v2549_v58 = vadd.f32 %v2547_v55, %v2386_v15  ;;  %20260 = vst [vmem:[#allocation17_spill] sm:$0xff] %v16698_v63  ;;  %v16712_v15 = vld [vmem:[%s19747_s9 + $0xa0] sm:$0xff]  ;;  %v16726_v8 = vld [vmem:[%s19747_s9 + $0xb0] sm:$0xff]  ;;  %v16735_v55 = vld [vmem:[%s19747_s9 + $0xb8] sm:$0xff] }
 0x9ae   :  { %14987 = vtanh.f32 %v2550_v2  ;;  %v14984_v49 = vpop.eup %14983  ;;  %20262 = vst [vmem:[#allocation19_spill] sm:$0xff] %v16712_v15  ;;  %20264 = vst [vmem:[#allocation21_spill] sm:$0xff] %v16726_v8  ;;  %v16740_v2 = vld [vmem:[%s19747_s9 + $0xc0] sm:$0xff] }
 0x9af   :  { %14989 = vtanh.f32 %v2549_v58  ;;  %v14986_v26 = vpop.eup %14985  ;;  %v2553_v40 = vsub.f32 1.0, %v14984_v49  ;;  %v2557_v56 = vmul.f32 %v14984_v49, %v16384_v1  ;;  %v16609_v1 = vld [vmem:[%s19747_s9 + $0x28] sm:$0xff]  ;;  %20265 = vst [vmem:[#allocation22_spill] sm:$0xff] %v16735_v55  ;;  %20266 = vst [vmem:[#allocation23_spill] sm:$0xff] %v16740_v2  ;;  %v16754_v49 = vld [vmem:[%s19747_s9 + $0xd0] sm:$0xff] }
 0x9b0   :  { %v2554_v52 = vsub.f32 1.0, %v14986_v26  ;;  %v2558_v4 = vmul.f32 %v14986_v26, %v16381_v43  ;;  %v16600_v43 = vld [vmem:[%s19747_s9 + $0x20] sm:$0xff]  ;;  %v16749_v58 = vld [vmem:[%s19747_s9 + $0xc8] sm:$0xff]  ;;  %20268 = vst [vmem:[#allocation25_spill] sm:$0xff] %v16754_v49  ;;  %v16763_v26 = vld [vmem:[%s19747_s9 + $0xd8] sm:$0xff] }
 0x9b1   :  { %20267 = vst [vmem:[#allocation24_spill] sm:$0xff] %v16749_v58  ;;  %20269 = vst [vmem:[#allocation26_spill] sm:$0xff] %v16763_v26 }
 0x9b8   :  { %v14988_v32 = vpop.eup %14987 }
 0x9b9   :  { %v14990_v23 = vpop.eup %14989  ;;  %v2556_v44 = vmul.f32 %v14988_v32, %v2554_v52  ;;  %v16777_v52 = vld [vmem:[%s19747_s9 + $0xe8] sm:$0xff]  ;;  %v16782_v32 = vld [vmem:[%s19747_s9 + $0xf0] sm:$0xff] }
 0x9ba   :  { %v2555_v6 = vmul.f32 %v14990_v23, %v2553_v40  ;;  %v16768_v40 = vld [vmem:[%s19747_s9 + $0xe0] sm:$0xff]  ;;  %20271 = vst [vmem:[#allocation28_spill] sm:$0xff] %v16777_v52  ;;  %20272 = vst [vmem:[#allocation29_spill] sm:$0xff] %v16782_v32  ;;  %v16791_v23 = vld [vmem:[%s19747_s9 + $0xf8] sm:$0xff] }
 0x9bb   :  { %v16585_v0 = vadd.f32 %v2558_v4, %v2556_v44  ;;  %20270 = vst [vmem:[#allocation27_spill] sm:$0xff] %v16768_v40  ;;  %20273 = vst [vmem:[#allocation37_spill] sm:$0xff] %v16791_v23  ;;  %v16798_v44 = vld [vmem:[%s19748_s10 + $0x8] sm:$0xff]  ;;  %v3150_v4 = vld [vmem:[%s19740_s2] sm:$0xff] }
 0x9bc   :  { %v16587_v14 = vadd.f32 %v2557_v56, %v2555_v6  ;;  %v3151_v6 = vld [vmem:[%s19740_s2 + $0x8] sm:$0xff]  ;;  %v3152_v56 = vld [vmem:[%s19740_s2 + $0x10] sm:$0xff] }
 0x9bd   :  { %2562 = vst [vmem:[#allocation8 + $0x28] sm:$0xff] %v16585_v0 }
 0x9be   :  { %2561 = vst [vmem:[#allocation8 + $0x20] sm:$0xff] %v16587_v14  ;;  %12586 = vmatprep.mubr.f32.mxu0 %v16587_v14 }
 0x9bf   :  { %12587 = vmatmul.mubr.f32.vlgmr.msra.gmra.mrb[80].mxu0 %v16585_v0 }
 0x9c0   :  { %3139 = vmatprep.mubr.f32.mxu0 %v16798_v44 }
 0xa92   :  { %v12588_v46 = vpop.f32.mrb[80].mxu0 }
 0xa93   :  { %v2645_v20 = vpop.f32.mrb[81].mxu0 }
 0xa94   :  { %v13994_v53 = vpack.c.bf16 %v12588_v46, %v2645_v20  ;;  %v16810_v46 = vpack.c.bf16 %v3151_v6, %v3150_v4  ;;  %v3153_v20 = vld [vmem:[%s19740_s2 + $0x18] sm:$0xff]  ;;  %v3156_v6 = vld [vmem:[%s19740_s2 + $0x30] sm:$0xff] }
 0xa96   :  { %13995 = vmatprep.subr.bf16.mxu1 %v13994_v53 }
 0xa97   :  { %13997 = vmatpush3.bf16.msra.mxu1 %v13994_v53  ;;  %v16815_v53 = vpack.c.bf16 %v3153_v20, %v3152_v56  ;;  %v3157_v56 = vld [vmem:[%s19740_s2 + $0x38] sm:$0xff] }
 0xa98   :  { %14031 = vmatprep.subr.bf16.mxu1 %v16810_v46  ;;  %v16836_v20 = vpack.c.bf16 %v3157_v56, %v3156_v6  ;;  %v3161_v6 = vld [vmem:[%s19740_s2 + $0x58] sm:$0xff] }
 0xa9a   :  { %12594 = vmatmul.mubr.msk.f32.vlgmr.msra.gmra.mrb[56].mxu1 %vm733_vm2, %v16400_v31  ;;  %v16614_v31 = vld [vmem:[%s19747_s9 + $0x30] sm:$0xff] }
 0xa9b   :  { %12596 = vmatprep.mubr.msk.f32.mxu1 %vm733_vm2, %v16405_v54  ;;  %v16623_v54 = vld [vmem:[%s19747_s9 + $0x38] sm:$0xff]  ;;  %14033 = vmatpush3.bf16.msra.mxu1 %v16810_v46 }
 0xa9c   :  { %14035 = vmatprep.subr.bf16.mxu1 %v16815_v53 }
 0xa9e   :  { %12597 = vmatmul.mubr.msk.f32.gmra.mrb[58].mxu1 %vm733_vm2, %v16415_v36  ;;  %v16628_v36 = vld [vmem:[%s19747_s9 + $0x40] sm:$0xff] }
 0xa9f   :  { %12599 = vmatprep.mubr.msk.f32.mxu1 %vm733_vm2, %v16600_v43  ;;  %14037 = vmatpush3.bf16.msra.mxu1 %v16815_v53 }
 0xaa2   :  { %12600 = vmatmul.mubr.msk.f32.gmra.mrb[60].mxu1 %vm733_vm2, %v16609_v1 }
 0xaa3   :  { %12602 = vmatprep.mubr.msk.f32.mxu1 %vm733_vm2, %v16614_v31 }
 0xaa6   :  { %12603 = vmatmul.mubr.msk.f32.gmra.mrb[62].mxu1 %vm733_vm2, %v16623_v54 }
 0xaa7   :  { %12605 = vmatprep.mubr.msk.f32.mxu1 %vm733_vm2, %v16628_v36 }
 0xaaa   :  { %12606 = vmatmul.mubr.msk.f32.gmra.mrb[64].mxu1 %vm733_vm2, %v16637_v10 }
 0xaab   :  { %12608 = vmatprep.mubr.msk.f32.mxu1 %vm733_vm2, %v16642_v18 }
 0xaae   :  { %12609 = vmatmul.mubr.msk.f32.gmra.mrb[66].mxu1 %vm733_vm2, %v16651_v28 }
 0xaaf   :  { %12611 = vmatprep.mubr.msk.f32.mxu1 %vm733_vm2, %v16656_v16 }
 0xab2   :  { %12612 = vmatmul.mubr.msk.f32.gmra.mrb[68].mxu1 %vm733_vm2, %v16665_v17 }
 0xab3   :  { %12614 = vmatprep.mubr.msk.f32.mxu1 %vm733_vm2, %v16670_v62 }
 0xab6   :  { %12615 = vmatmul.mubr.msk.f32.gmra.mrb[70].mxu1 %vm733_vm2, %v16679_v9 }
 0xab7   :  { %12617 = vmatprep.mubr.msk.f32.mxu1 %vm733_vm2, %v16684_v7 }
 0xaba   :  { %12618 = vmatmul.mubr.msk.f32.gmra.mrb[72].mxu1 %vm733_vm2, %v16693_v19 }
 0xabb   :  { %12620 = vmatprep.mubr.msk.f32.mxu1 %vm733_vm2, %v16698_v63 }
 0xabe   :  { %12621 = vmatmul.mubr.msk.f32.gmra.mrb[74].mxu1 %vm733_vm2, %v16707_v25 }
 0xabf   :  { %12623 = vmatprep.mubr.msk.f32.mxu1 %vm733_vm2, %v16712_v15 }
 0xac2   :  { %12624 = vmatmul.mubr.msk.f32.gmra.mrb[76].mxu1 %vm733_vm2, %v16721_v60 }
 0xac3   :  { %12626 = vmatprep.mubr.msk.f32.mxu1 %vm733_vm2, %v16726_v8 }
 0xac6   :  { %12627 = vmatmul.mubr.msk.f32.gmra.mrb[78].mxu1 %vm733_vm2, %v16735_v55 }
 0xac7   :  { %12629 = vmatprep.mubr.msk.f32.mxu1 %vm733_vm2, %v16740_v2 }
 0xaca   :  { %12630 = vmatmul.mubr.msk.f32.gmra.mrb[80].mxu1 %vm733_vm2, %v16749_v58 }
 0xacb   :  { %12632 = vmatprep.mubr.msk.f32.mxu1 %vm733_vm2, %v16754_v49 }
 0xace   :  { %12633 = vmatmul.mubr.msk.f32.gmra.mrb[82].mxu1 %vm733_vm2, %v16763_v26  ;;  %v3162_v26 = vld [vmem:[%s19740_s2 + $0x60] sm:$0xff] }
 0xacf   :  { %12635 = vmatprep.mubr.msk.f32.mxu1 %vm733_vm2, %v16768_v40  ;;  %v3160_v40 = vld [vmem:[%s19740_s2 + $0x50] sm:$0xff] }
 0xad0   :  { %v16856_v56 = vpack.c.bf16 %v3161_v6, %v3160_v40 }
 0xad2   :  { %12636 = vmatmul.mubr.msk.f32.gmra.mrb[84].mxu1 %vm733_vm2, %v16777_v52  ;;  %v3158_v52 = vld [vmem:[%s19740_s2 + $0x40] sm:$0xff] }
 0xad3   :  { %12638 = vmatprep.mubr.msk.f32.mxu1 %vm733_vm2, %v16782_v32  ;;  %v3155_v32 = vld [vmem:[%s19740_s2 + $0x28] sm:$0xff] }
 0xad6   :  { %12639 = vmatmul.mubr.msk.f32.gmra.mrb[86].mxu1 %vm733_vm2, %v16791_v23  ;;  %v3154_v23 = vld [vmem:[%s19740_s2 + $0x20] sm:$0xff] }
 0xad7   :  { %v16826_v4 = vpack.c.bf16 %v3155_v32, %v3154_v23  ;;  %v3159_v32 = vld [vmem:[%s19740_s2 + $0x48] sm:$0xff] }
 0xad8   :  { %v16846_v23 = vpack.c.bf16 %v3159_v32, %v3158_v52  ;;  %v3163_v52 = vld [vmem:[%s19740_s2 + $0x68] sm:$0xff] }
 0xad9   :  { %14039 = vmatprep.subr.bf16.mxu1 %v16826_v4  ;;  %v16866_v32 = vpack.c.bf16 %v3163_v52, %v3162_v26 }
 0xada   :  { %14041 = vmatpush3.bf16.msra.mxu1 %v16826_v4 }
 0xadb   :  { %14043 = vmatprep.subr.bf16.mxu1 %v16836_v20 }
 0xade   :  { %14045 = vmatpush3.bf16.msra.mxu1 %v16836_v20 }
 0xadf   :  { %14047 = vmatprep.subr.bf16.mxu1 %v16846_v23 }
 0xae2   :  { %14049 = vmatpush3.bf16.msra.mxu1 %v16846_v23 }
 0xae3   :  { %14051 = vmatprep.subr.bf16.mxu1 %v16856_v56 }
 0xae6   :  { %14053 = vmatpush3.bf16.msra.mxu1 %v16856_v56 }
 0xae7   :  { %14055 = vmatprep.subr.bf16.mxu1 %v16866_v32 }
 0xaea   :  { %14057 = vmatpush3.bf16.msra.mxu1 %v16866_v32 }
 0xb6d   :  { %v12595_v40 = vpop.f32.mrb[56].mxu1 }
 0xb6e   :  { %v3044_v6 = vmul.f32 %v12595_v40, %v20209_v30  ;;  %v2848_v49 = vpop.f32.mrb[57].mxu1 }
 0xb6f   :  { %v3043_v58 = vmul.f32 %v2848_v49, %v20210_v41 }
 0xb71   :  { %v14000_v2 = vpack.c.bf16 %v3044_v6, %v3043_v58  ;;  %v12598_v55 = vpop.f32.mrb[58].mxu1 }
 0xb72   :  { %v3046_v8 = vmul.f32 %v12598_v55, %v20211_v47  ;;  %v2858_v60 = vpop.f32.mrb[59].mxu1  ;;  %v20274_v55 = vld [vmem:[#allocation38_spill] sm:$0xff] }
 0xb73   :  { %v3045_v26 = vmul.f32 %v2858_v60, %v20212_v24  ;;  %v20275_v60 = vld [vmem:[#allocation39_spill] sm:$0xff] }
 0xb75   :  { %v14004_v52 = vpack.c.bf16 %v3046_v8, %v3045_v26  ;;  %v12601_v15 = vpop.f32.mrb[60].mxu1 }
 0xb76   :  { %v3048_v25 = vmul.f32 %v12601_v15, %v20213_v22  ;;  %v2868_v63 = vpop.f32.mrb[61].mxu1  ;;  %v20276_v15 = vld [vmem:[#allocation40_spill] sm:$0xff] }
 0xb77   :  { %v3047_v19 = vmul.f32 %v2868_v63, %v20214_v11  ;;  %v20277_v63 = vld [vmem:[#allocation41_spill] sm:$0xff] }
 0xb79   :  { %v14008_v7 = vpack.c.bf16 %v3048_v25, %v3047_v19  ;;  %v12604_v9 = vpop.f32.mrb[62].mxu1 }
 0xb7a   :  { %v3050_v40 = vmul.f32 %v12604_v9, %v20215_v21  ;;  %v2878_v30 = vpop.f32.mrb[63].mxu1  ;;  %v20278_v9 = vld [vmem:[#allocation42_spill] sm:$0xff] }
 0xb7b   :  { %v3049_v58 = vmul.f32 %v2878_v30, %v20216_v27 }
 0xb7d   :  { %v14012_v49 = vpack.c.bf16 %v3050_v40, %v3049_v58  ;;  %v12607_v6 = vpop.f32.mrb[64].mxu1 }
 0xb7e   :  { %v3052_v47 = vmul.f32 %v12607_v6, %v20274_v55  ;;  %v2888_v41 = vpop.f32.mrb[65].mxu1 }
 0xb7f   :  { %v3051_v8 = vmul.f32 %v2888_v41, %v20275_v60 }
 0xb81   :  { %v14016_v26 = vpack.c.bf16 %v3052_v47, %v3051_v8  ;;  %v12610_v24 = vpop.f32.mrb[66].mxu1 }
 0xb82   :  { %v3054_v22 = vmul.f32 %v12610_v24, %v20276_v15  ;;  %v2898_v62 = vpop.f32.mrb[67].mxu1 }
 0xb83   :  { %v3053_v19 = vmul.f32 %v2898_v62, %v20277_v63 }
 0xb85   :  { %v14020_v25 = vpack.c.bf16 %v3054_v22, %v3053_v19  ;;  %v12613_v11 = vpop.f32.mrb[68].mxu1 }
 0xb86   :  { %v3056_v21 = vmul.f32 %v12613_v11, %v20278_v9  ;;  %v2908_v17 = vpop.f32.mrb[69].mxu1 }
 0xb87   :  { %v3055_v30 = vmul.f32 %v2908_v17, %v20222_v13 }
 0xb89   :  { %v14024_v40 = vpack.c.bf16 %v3056_v21, %v3055_v30  ;;  %v12616_v58 = vpop.f32.mrb[70].mxu1 }
 0xb8a   :  { %v3058_v6 = vmul.f32 %v12616_v58, %v20223_v29  ;;  %v2918_v55 = vpop.f32.mrb[71].mxu1 }
 0xb8b   :  { %v3057_v41 = vmul.f32 %v2918_v55, %v20224_v5 }
 0xb8d   :  { %v14028_v47 = vpack.c.bf16 %v3058_v6, %v3057_v41  ;;  %v12619_v8 = vpop.f32.mrb[72].mxu1 }
 0xb8e   :  { %v3060_v24 = vmul.f32 %v12619_v8, %v15984_v3  ;;  %v2928_v15 = vpop.f32.mrb[73].mxu1 }
 0xb8f   :  { %v3059_v22 = vmul.f32 %v2928_v15, %v20225_v38 }
 0xb91   :  { %v13998_v62 = vpack.c.bf16 %v3060_v24, %v3059_v22  ;;  %v12622_v19 = vpop.f32.mrb[74].mxu1 }
 0xb92   :  { %v3062_v11 = vmul.f32 %v12622_v19, %v16000_v12  ;;  %v2938_v9 = vpop.f32.mrb[75].mxu1 }
 0xb93   :  { %v3061_v21 = vmul.f32 %v2938_v9, %v16003_v50  ;;  %13999 = vmatprep.subr.bf16.mxu0 %v13998_v62 }
 0xb94   :  { %14001 = vmatpush3.bf16.msra.mxu0 %v14000_v2 }
 0xb95   :  { %v14002_v17 = vpack.c.bf16 %v3062_v11, %v3061_v21  ;;  %v12625_v30 = vpop.f32.mrb[76].mxu1 }
 0xb96   :  { %v3064_v55 = vmul.f32 %v12625_v30, %v16012_v51  ;;  %v2948_v58 = vpop.f32.mrb[77].mxu1 }
 0xb97   :  { %v3063_v6 = vmul.f32 %v2948_v58, %v16015_v48  ;;  %14003 = vmatprep.subr.bf16.mxu0 %v14002_v17 }
 0xb98   :  { %14005 = vmatpush3.bf16.msra.mxu0 %v14004_v52 }
 0xb99   :  { %v14006_v41 = vpack.c.bf16 %v3064_v55, %v3063_v6  ;;  %v12628_v15 = vpop.f32.mrb[78].mxu1 }
 0xb9a   :  { %v3066_v8 = vmul.f32 %v12628_v15, %v16027_v35  ;;  %v2958_v24 = vpop.f32.mrb[79].mxu1 }
 0xb9b   :  { %v3065_v22 = vmul.f32 %v2958_v24, %v16030_v34  ;;  %14007 = vmatprep.subr.bf16.mxu0 %v14006_v41 }
 0xb9c   :  { %14009 = vmatpush3.bf16.msra.mxu0 %v14008_v7 }
 0xb9d   :  { %v14010_v9 = vpack.c.bf16 %v3066_v8, %v3065_v22  ;;  %v12631_v2 = vpop.f32.mrb[80].mxu1 }
 0xb9e   :  { %v3068_v62 = vmul.f32 %v12631_v2, %v16042_v61  ;;  %v2968_v19 = vpop.f32.mrb[81].mxu1 }
 0xb9f   :  { %v3067_v11 = vmul.f32 %v2968_v19, %v16045_v33  ;;  %14011 = vmatprep.subr.bf16.mxu0 %v14010_v9 }
 0xba0   :  { %14013 = vmatpush3.bf16.msra.mxu0 %v14012_v49 }
 0xba1   :  { %v14014_v21 = vpack.c.bf16 %v3068_v62, %v3067_v11  ;;  %v12634_v52 = vpop.f32.mrb[82].mxu1  ;;  %v3165_v62 = vld [vmem:[%s19740_s2 + $0x78] sm:$0xff] }
 0xba2   :  { %v3070_v17 = vmul.f32 %v12634_v52, %v16057_v37  ;;  %v2978_v30 = vpop.f32.mrb[83].mxu1 }
 0xba3   :  { %v3069_v55 = vmul.f32 %v2978_v30, %v16060_v59  ;;  %14015 = vmatprep.subr.bf16.mxu0 %v14014_v21 }
 0xba4   :  { %14017 = vmatpush3.bf16.msra.mxu0 %v14016_v26  ;;  %v16906_v26 = vld [vmem:[%s19748_s10] sm:$0xff] }
 0xba5   :  { %v14018_v58 = vpack.c.bf16 %v3070_v17, %v3069_v55  ;;  %v12637_v7 = vpop.f32.mrb[84].mxu1  ;;  %20279 = vst [vmem:[#allocation43_spill] sm:$0xff] %v16906_v26 }
 0xba6   :  { %v3072_v6 = vmul.f32 %v12637_v7, %v16072_v42  ;;  %v2988_v41 = vpop.f32.mrb[85].mxu1  ;;  %v16941_v7 = vld [vmem:[%s19741_s3 + $0x8] sm:$0xff] }
 0xba7   :  { %v3071_v15 = vmul.f32 %v2988_v41, %v16075_v57  ;;  %14019 = vmatprep.subr.bf16.mxu0 %v14018_v58  ;;  %v16934_v58 = vld [vmem:[%s19749_s11] sm:$0xff]  ;;  %20283 = vst [vmem:[#allocation56_spill] sm:$0xff] %v16941_v7 }
 0xba8   :  { %14021 = vmatpush3.bf16.msra.mxu0 %v14020_v25  ;;  %v16911_v25 = vld [vmem:[%s19748_s10 + $0x18] sm:$0xff]  ;;  %20282 = vst [vmem:[#allocation46_spill] sm:$0xff] %v16934_v58 }
 0xba9   :  { %v14022_v8 = vpack.c.bf16 %v3072_v6, %v3071_v15  ;;  %v12640_v49 = vpop.f32.mrb[86].mxu1  ;;  %20280 = vst [vmem:[#allocation44_spill] sm:$0xff] %v16911_v25  ;;  %v16946_v6 = vld [vmem:[%s19741_s3] sm:$0xff] }
 0xbaa   :  { %v3074_v24 = vmul.f32 %v12640_v49, %v16087_v39  ;;  %v2998_v22 = vpop.f32.mrb[87].mxu1  ;;  %20284 = vst [vmem:[#allocation57_spill] sm:$0xff] %v16946_v6 }
 0xbab   :  { %v3073_v9 = vmul.f32 %v2998_v22, %v16090_v45  ;;  %14023 = vmatprep.subr.bf16.mxu0 %v14022_v8  ;;  %v14066_v22 = vpack.c.bf16 %v16585_v0, %v16587_v14 }
 0xbac   :  { %14025 = vmatpush3.bf16.msra.mxu0 %v14024_v40  ;;  %v16918_v40 = vld [vmem:[%s19748_s10 + $0x10] sm:$0xff] }
 0xbad   :  { %v14026_v2 = vpack.c.bf16 %v3074_v24, %v3073_v9  ;;  %20281 = vst [vmem:[#allocation45_spill] sm:$0xff] %v16918_v40  ;;  %v16955_v9 = vld [vmem:[%s19749_s11 + $0x8] sm:$0xff] }
 0xbae   :  { %20285 = vst [vmem:[#allocation48_spill] sm:$0xff] %v16955_v9 }
 0xbaf   :  { %14027 = vmatprep.subr.bf16.mxu0 %v14026_v2  ;;  %v16960_v2 = vld [vmem:[%s19749_s11 + $0x10] sm:$0xff] }
 0xbb0   :  { %14029 = vmatpush3.bf16.msra.mxu0 %v14028_v47  ;;  %v3164_v47 = vld [vmem:[%s19740_s2 + $0x70] sm:$0xff]  ;;  %20286 = vst [vmem:[#allocation49_spill] sm:$0xff] %v16960_v2 }
 0xbb1   :  { %v16927_v19 = vpack.c.bf16 %v3165_v62, %v3164_v47  ;;  %v16969_v47 = vld [vmem:[%s19749_s11 + $0x18] sm:$0xff]  ;;  %v16974_v62 = vld [vmem:[%s19749_s11 + $0x20] sm:$0xff] }
 0xbb2   :  { %20287 = vst [vmem:[#allocation50_spill] sm:$0xff] %v16969_v47  ;;  %20288 = vst [vmem:[#allocation58_spill] sm:$0xff] %v16974_v62 }
 0xbb3   :  { %3140 = vmatmul.mubr.f32.vlgmr.msra.gmra.mrb[82].mxu0 %v16906_v26  ;;  %14059 = vmatprep.subr.bf16.mxu1 %v16927_v19 }
 0xbb4   :  { %3144 = vmatprep.mubr.f32.mxu0 %v16911_v25  ;;  %14061 = vmatpush3.bf16.msra.mxu1 %v16927_v19 }
 0xbb7   :  { %3145 = vmatmul.mubr.f32.gmra.mrb[84].mxu0 %v16918_v40 }
 0xbb8   :  { %12680 = vmatprep.mubr.msk.f32.mxu0 %vm733_vm2, %v16934_v58 }
 0xc86   :  { %v11286_v11 = vpop.f32.mrb[82].mxu0 }
 0xc87   :  { %v11287_v21 = vpop.f32.mrb[83].mxu0 }
 0xc88   :  { %v11288_v52 = vadd.f32 %v11287_v21, %v11286_v11  ;;  %v16983_v11 = vld [vmem:[%s19749_s11 + $0x28] sm:$0xff]  ;;  %v16988_v21 = vld [vmem:[%s19750_s12] sm:$0xff] }
 0xc89   :  { %20289 = vst [vmem:[#allocation51_spill] sm:$0xff] %v16983_v11  ;;  %20290 = vst [vmem:[#allocation52_spill] sm:$0xff] %v16988_v21 }
 0xc8a   :  { %v11289_v17 = vpop.f32.mrb[84].mxu0  ;;  %12673 = vmatprep.mubr.f32.mxu1 %v11288_v52  ;;  %v16997_v52 = vld [vmem:[%s19750_s12 + $0x8] sm:$0xff] }
 0xc8b   :  { %v11290_v30 = vpop.f32.mrb[85].mxu0  ;;  %20291 = vst [vmem:[#allocation59_spill] sm:$0xff] %v16997_v52 }
 0xc8c   :  { %v11291_v55 = vadd.f32 %v11290_v30, %v11289_v17  ;;  %v17002_v17 = vld [vmem:[%s19750_s12 + $0x10] sm:$0xff]  ;;  %v17011_v30 = vld [vmem:[%s19750_s12 + $0x18] sm:$0xff] }
 0xc8d   :  { %20292 = vst [vmem:[#allocation53_spill] sm:$0xff] %v17002_v17  ;;  %20293 = vst [vmem:[#allocation54_spill] sm:$0xff] %v17011_v30 }
 0xc8e   :  { %12674 = vmatmul.mubr.f32.vlgmr.msra.gmra.mrb[88].mxu1 %v11291_v55  ;;  %v17016_v55 = vld [vmem:[%s19750_s12 + $0x20] sm:$0xff] }
 0xc8f   :  { %20294 = vst [vmem:[#allocation60_spill] sm:$0xff] %v17016_v55 }
 0xd61   :  { %v12675_v41 = vpop.f32.mrb[88].mxu1 }
 0xd62   :  { %v3244_v15 = vmul.f32 %v12675_v41, %v16941_v7  ;;  %v3232_v8 = vpop.f32.mrb[89].mxu1  ;;  %v17025_v41 = vld [vmem:[%s19750_s12 + $0x28] sm:$0xff] }
 0xd63   :  { %v3243_v49 = vmul.f32 %v16946_v6, %v3232_v8  ;;  %20295 = vst [vmem:[#allocation55_spill] sm:$0xff] %v17025_v41  ;;  %v3542_v8 = vld [vmem:[%s19739_s1 + $0x8] sm:$0xff] }
 0xd65   :  { %v14062_v24 = vpack.c.bf16 %v3244_v15, %v3243_v49  ;;  %v3541_v15 = vld [vmem:[%s19739_s1] sm:$0xff] }
 0xd66   :  { %v17035_v49 = vpack.c.bf16 %v3542_v8, %v3541_v15  ;;  %v3545_v15 = vld [vmem:[%s19739_s1 + $0x20] sm:$0xff]  ;;  %v3546_v8 = vld [vmem:[%s19739_s1 + $0x28] sm:$0xff] }
 0xd67   :  { %14063 = vmatprep.subr.bf16.mxu0 %v14062_v24 }
 0xd68   :  { %14065 = vmatpush3.bf16.msra.mxu0 %v14062_v24  ;;  %14071 = vmatprep.subr.bf16.mxu1 %v17035_v49  ;;  %v3543_v24 = vld [vmem:[%s19739_s1 + $0x10] sm:$0xff] }
 0xd69   :  { %14067 = vmatprep.subr.bf16.mxu0 %v14066_v22  ;;  %14073 = vmatpush3.bf16.msra.mxu1 %v17035_v49 }
 0xd6b   :  { %12681 = vmatmul.mubr.msk.f32.vlgmr.msra.gmra.mrb[86].mxu0 %vm733_vm2, %v16955_v9  ;;  %v17126_v9 = vld [vmem:[%s19751_s13] sm:$0xff] }
 0xd6c   :  { %14069 = vmatpush3.bf16.msra.mxu0 %v14066_v22  ;;  %12683 = vmatprep.mubr.msk.f32.mxu0 %vm733_vm2, %v16960_v2  ;;  %v3544_v22 = vld [vmem:[%s19739_s1 + $0x18] sm:$0xff]  ;;  %20304 = vst [vmem:[#allocation68_spill] sm:$0xff] %v17126_v9 }
 0xd6f   :  { %12684 = vmatmul.mubr.msk.f32.gmra.mrb[88].mxu0 %vm733_vm2, %v16969_v47 }
 0xd70   :  { %12686 = vmatprep.mubr.msk.f32.mxu0 %vm733_vm2, %v16974_v62 }
 0xd73   :  { %12687 = vmatmul.mubr.msk.f32.gmra.mrb[90].mxu0 %vm733_vm2, %v16983_v11  ;;  %v3554_v11 = vld [vmem:[%s19739_s1 + $0x68] sm:$0xff] }
 0xd74   :  { %12693 = vmatprep.mubr.msk.f32.mxu0 %vm733_vm2, %v16988_v21  ;;  %v3553_v21 = vld [vmem:[%s19739_s1 + $0x60] sm:$0xff] }
 0xd77   :  { %12694 = vmatmul.mubr.msk.f32.vlgmr.msra.gmra.mrb[86].mxu0 %vm733_vm2, %v16997_v52  ;;  %v3551_v52 = vld [vmem:[%s19739_s1 + $0x50] sm:$0xff] }
 0xd78   :  { %12696 = vmatprep.mubr.msk.f32.mxu0 %vm733_vm2, %v17002_v17 }
 0xd7b   :  { %12697 = vmatmul.mubr.msk.f32.gmra.mrb[88].mxu0 %vm733_vm2, %v17011_v30 }
 0xd7c   :  { %12699 = vmatprep.mubr.msk.f32.mxu0 %vm733_vm2, %v17016_v55  ;;  %v17055_v55 = vpack.c.bf16 %v3546_v8, %v3545_v15  ;;  %v3549_v15 = vld [vmem:[%s19739_s1 + $0x40] sm:$0xff]  ;;  %v3550_v8 = vld [vmem:[%s19739_s1 + $0x48] sm:$0xff] }
 0xd7d   :  { %v17075_v17 = vpack.c.bf16 %v3550_v8, %v3549_v15  ;;  %v17094_v15 = vpack.c.bf16 %v3554_v11, %v3553_v21  ;;  %v3556_v8 = vld [vmem:[%s19739_s1 + $0x78] sm:$0xff]  ;;  %v3252_v11 = vld [vmem:[%s19751_s13 + $0x8] sm:$0xff] }
 0xd7e   :  { %20297 = vst [vmem:[#allocation62_spill] sm:$0xff] %v17055_v55  ;;  %v3377_v21 = vld [vmem:[%s19752_s14 + $0x8] sm:$0xff] }
 0xd7f   :  { %12700 = vmatmul.mubr.msk.f32.gmra.mrb[92].mxu0 %vm733_vm2, %v17025_v41  ;;  %v17045_v41 = vpack.c.bf16 %v3544_v22, %v3543_v24  ;;  %v3547_v24 = vld [vmem:[%s19739_s1 + $0x30] sm:$0xff]  ;;  %v3548_v22 = vld [vmem:[%s19739_s1 + $0x38] sm:$0xff]  ;;  %20299 = vst [vmem:[#allocation64_spill] sm:$0xff] %v17075_v17  ;;  %20301 = vst [vmem:[#allocation66_spill] sm:$0xff] %v17094_v15  ;;  %v17115_v2 = vadd.f32 %v3377_v21, %v3252_v11 }
 0xd80   :  { %v17065_v30 = vpack.c.bf16 %v3548_v22, %v3547_v24  ;;  %v3552_v24 = vld [vmem:[%s19739_s1 + $0x58] sm:$0xff]  ;;  %v17132_v11 = vld [vmem:[%s19752_s14] sm:$0xff] }
 0xd81   :  { %20296 = vst [vmem:[#allocation61_spill] sm:$0xff] %v17045_v41  ;;  %14075 = vmatprep.subr.bf16.mxu1 %v17045_v41  ;;  %v17083_v22 = vpack.c.bf16 %v3552_v24, %v3551_v52  ;;  %v3555_v52 = vld [vmem:[%s19739_s1 + $0x70] sm:$0xff]  ;;  %20303 = vst [vmem:[#allocation67_spill] sm:$0xff] %v17115_v2 }
 0xd82   :  { %14077 = vmatpush3.bf16.msra.mxu1 %v17045_v41  ;;  %20298 = vst [vmem:[#allocation63_spill] sm:$0xff] %v17065_v30  ;;  %v17104_v24 = vpack.c.bf16 %v3556_v8, %v3555_v52  ;;  %v3254_v52 = vld [vmem:[%s19751_s13 + $0x18] sm:$0xff]  ;;  %20305 = vst [vmem:[#allocation71_spill] sm:$0xff] %v17132_v11 }
 0xd83   :  { %14079 = vmatprep.subr.bf16.mxu1 %v17055_v55  ;;  %20300 = vst [vmem:[#allocation65_spill] sm:$0xff] %v17083_v22  ;;  %v3379_v8 = vld [vmem:[%s19752_s14 + $0x18] sm:$0xff] }
 0xd84   :  { %20302 = vst [vmem:[#allocation70_spill] sm:$0xff] %v17104_v24  ;;  %v17134_v21 = vadd.f32 %v3379_v8, %v3254_v52  ;;  %v17147_v52 = vld [vmem:[%s19752_s14 + $0x10] sm:$0xff] }
 0xd85   :  { %20308 = vst [vmem:[#allocation73_spill] sm:$0xff] %v17147_v52 }
 0xd86   :  { %14081 = vmatpush3.bf16.msra.mxu1 %v17055_v55  ;;  %20306 = vst [vmem:[#allocation72_spill] sm:$0xff] %v17134_v21 }
 0xd87   :  { %14083 = vmatprep.subr.bf16.mxu1 %v17065_v30 }
 0xd8a   :  { %14085 = vmatpush3.bf16.msra.mxu1 %v17065_v30 }
 0xd8b   :  { %14087 = vmatprep.subr.bf16.mxu1 %v17075_v17 }
 0xd8e   :  { %14089 = vmatpush3.bf16.msra.mxu1 %v17075_v17  ;;  %v17140_v17 = vld [vmem:[%s19751_s13 + $0x10] sm:$0xff] }
 0xd8f   :  { %14091 = vmatprep.subr.bf16.mxu1 %v17083_v22  ;;  %20307 = vst [vmem:[#allocation69_spill] sm:$0xff] %v17140_v17 }
 0xd92   :  { %14093 = vmatpush3.bf16.msra.mxu1 %v17083_v22 }
 0xd93   :  { %14095 = vmatprep.subr.bf16.mxu1 %v17094_v15 }
 0xd96   :  { %14097 = vmatpush3.bf16.msra.mxu1 %v17094_v15 }
 0xd97   :  { %14099 = vmatprep.subr.bf16.mxu1 %v17104_v24 }
 0xd9a   :  { %14101 = vmatpush3.bf16.msra.mxu1 %v17104_v24 }
 0xe46   :  { %v12688_v62 = vpop.f32.mrb[90].mxu0 }
 0xe47   :  { %v3361_v47 = vpop.f32.mrb[91].mxu0 }
 0xe4a   :  { %v12695_v6 = vpop.f32.mrb[86].mxu0 }
 0xe4b   :  { %v14847_v7 = vadd.f32 %v17115_v2, %v12695_v6  ;;  %v3466_v24 = vpop.f32.mrb[87].mxu0 }
 0xe4c   :  { %v14848_v15 = vadd.f32 %v3466_v24, %v17126_v9 }
 0xe4d   :  { %v10574_v22 = vmul.f32 -1.442695, %v14847_v7 }
 0xe4e   :  { %v14849_v30 = vadd.f32 %v14848_v15, %v17132_v11  ;;  %v12698_v55 = vpop.f32.mrb[88].mxu0 }
 0xe4f   :  { %14991 = vpow2.f32 %v10574_v22  ;;  %v14851_v6 = vadd.f32 %v17134_v21, %v12698_v55  ;;  %v3476_v2 = vpop.f32.mrb[89].mxu0 }
 0xe50   :  { %v10573_v8 = vmul.f32 -1.442695, %v14849_v30  ;;  %v14852_v7 = vadd.f32 %v3476_v2, %v17140_v17  ;;  %v17154_v2 = vld [vmem:[%s19752_s14 + $0x28] sm:$0xff] }
 0xe51   :  { %v10576_v24 = vmul.f32 -1.442695, %v14851_v6  ;;  %20309 = vst [vmem:[#allocation74_spill] sm:$0xff] %v17154_v2 }
 0xe52   :  { %14993 = vpow2.f32 %v10573_v8  ;;  %v14853_v9 = vadd.f32 %v14852_v7, %v17147_v52  ;;  %v12701_v41 = vpop.f32.mrb[92].mxu0 }
 0xe53   :  { %v3486_v58 = vpop.f32.mrb[93].mxu0  ;;  %14995 = vpow2.f32 %v10576_v24  ;;  %v3492_v8 = vadd.f32 %v12701_v41, %v17154_v2 }
 0xe54   :  { %v10575_v15 = vmul.f32 -1.442695, %v14853_v9  ;;  %v17160_v9 = vld [vmem:[%s19752_s14 + $0x20] sm:$0xff] }
 0xe55   :  { %20310 = vst [vmem:[#allocation75_spill] sm:$0xff] %v17160_v9  ;;  %v3487_v24 = vadd.f32 %v3486_v58, %v17160_v9 }
 0xe56   :  { %14997 = vpow2.f32 %v10575_v15 }
 0xe59   :  { %v14992_v22 = vpop.eup %14991 }
 0xe5a   :  { %v3504_v55 = vadd.f32 1.0, %v14992_v22 }
 0xe5c   :  { %v14994_v21 = vpop.eup %14993  ;;  %14999 = vrcp.f32 %v3504_v55 }
 0xe5d   :  { %v3503_v11 = vadd.f32 1.0, %v14994_v21  ;;  %v14996_v40 = vpop.eup %14995  ;;  %v17165_v21 = vld [vmem:[%s19751_s13 + $0x28] sm:$0xff] }
 0xe5e   :  { %v3518_v6 = vadd.f32 1.0, %v14996_v40  ;;  %20311 = vst [vmem:[#allocation76_spill] sm:$0xff] %v17165_v21  ;;  %v3367_v15 = vadd.f32 %v12688_v62, %v17165_v21  ;;  %v17172_v40 = vld [vmem:[%s19751_s13 + $0x20] sm:$0xff] }
 0xe5f   :  { %15001 = vrcp.f32 %v3503_v11  ;;  %v3362_v2 = vadd.f32 %v3361_v47, %v17172_v40  ;;  %v15153_v47 = vld [vmem:[#allocation8 + $0x18] sm:$0xff] }
 0xe60   :  { %v14998_v30 = vpop.eup %14997  ;;  %15003 = vrcp.f32 %v3518_v6 }
 0xe61   :  { %v3517_v7 = vadd.f32 1.0, %v14998_v30 }
 0xe63   :  { %15005 = vrcp.f32 %v3517_v7 }
 0xe66   :  { %v15000_v11 = vpop.eup %14999 }
 0xe67   :  { %v3524_v41 = vmul.f32 %v15000_v11, %v3492_v8 }
 0xe69   :  { %v15002_v22 = vpop.eup %15001  ;;  %v3526_v55 = vadd.f32 %v3524_v41, %v3367_v15  ;;  %v20331_v41 = vld [vmem:[#allocation30_spill] sm:$0xff] }
 0xe6a   :  { %v3523_v52 = vmul.f32 %v15002_v22, %v3487_v24  ;;  %v15004_v30 = vpop.eup %15003  ;;  %v20330_v24 = vld [vmem:[#allocation37_spill] sm:$0xff] }
 0xe6b   :  { %15007 = vtanh.f32 %v3526_v55  ;;  %v3530_v9 = vsub.f32 1.0, %v15004_v30  ;;  %v3534_v25 = vmul.f32 %v15004_v30, %v16585_v0  ;;  %v20332_v30 = vld [vmem:[#allocation31_spill] sm:$0xff] }
 0xe6c   :  { %v3525_v17 = vadd.f32 %v3523_v52, %v3362_v2 }
 0xe6d   :  { %v15006_v58 = vpop.eup %15005 }
 0xe6e   :  { %15009 = vtanh.f32 %v3525_v17  ;;  %v3529_v26 = vsub.f32 1.0, %v15006_v58  ;;  %v3533_v11 = vmul.f32 %v15006_v58, %v16587_v14  ;;  %v15154_v17 = vld [vmem:[#allocation8 + $0x10] sm:$0xff] }
 0xe75   :  { %v15008_v62 = vpop.eup %15007 }
 0xe76   :  { %v3532_v21 = vmul.f32 %v15008_v62, %v3530_v9  ;;  %v17217_v9 = vld [vmem:[%s19747_s9 + $0x18] sm:$0xff] }
 0xe78   :  { %v15010_v45 = vpop.eup %15009  ;;  %v17176_v6 = vadd.f32 %v3534_v25, %v3532_v21  ;;  %v17202_v25 = vld [vmem:[%s19747_s9 + $0x8] sm:$0xff]  ;;  %v20329_v21 = vld [vmem:[#allocation29_spill] sm:$0xff] }
 0xe79   :  { %v3531_v8 = vmul.f32 %v15010_v45, %v3529_v26  ;;  %v17195_v45 = vld [vmem:[%s19747_s9] sm:$0xff] }
 0xe7a   :  { %v17180_v7 = vadd.f32 %v15153_v47, %v17176_v6  ;;  %12741 = vmatprep.mubr.msk.f32.mxu0 %vm733_vm2, %v17195_v45 }
 0xe7b   :  { %v17182_v52 = vadd.f32 %v3533_v11, %v3531_v8  ;;  %v20333_v11 = vld [vmem:[#allocation32_spill] sm:$0xff] }
 0xe7c   :  { %3540 = vst [vmem:[#allocation8 + $0x38] sm:$0xff] %v17180_v7 }
 0xe7d   :  { %v17186_v2 = vadd.f32 %v15154_v17, %v17182_v52 }
 0xe7f   :  { %3539 = vst [vmem:[#allocation8 + $0x30] sm:$0xff] %v17186_v2  ;;  %12734 = vmatprep.mubr.f32.mxu1 %v17186_v2 }
 0xe80   :  { %12735 = vmatmul.mubr.f32.vlgmr.msra.gmra.mrb[90].mxu1 %v17180_v7 }
 0xe81   :  { %4117 = vmatprep.mubr.f32.mxu1 %v16798_v44  ;;  %v17207_v44 = vld [vmem:[%s19747_s9 + $0x10] sm:$0xff] }
 0xf53   :  { %v12736_v0 = vpop.f32.mrb[90].mxu1 }
 0xf54   :  { %v3623_v14 = vpop.f32.mrb[91].mxu1 }
 0xf55   :  { %v14102_v26 = vpack.c.bf16 %v12736_v0, %v3623_v14  ;;  %v20334_v0 = vld [vmem:[#allocation33_spill] sm:$0xff] }
 0xf57   :  { %14103 = vmatprep.subr.bf16.mxu0 %v14102_v26 }
 0xf58   :  { %14105 = vmatpush3.bf16.msra.mxu0 %v14102_v26 }
 0xf59   :  { %14139 = vmatprep.subr.bf16.mxu0 %v16810_v46 }
 0xf5b   :  { %12742 = vmatmul.mubr.msk.f32.vlgmr.msra.gmra.mrb[94].mxu0 %vm733_vm2, %v17202_v25 }
 0xf5c   :  { %12744 = vmatprep.mubr.msk.f32.mxu0 %vm733_vm2, %v17207_v44  ;;  %14141 = vmatpush3.bf16.msra.mxu0 %v16810_v46  ;;  %v20321_v46 = vld [vmem:[#allocation21_spill] sm:$0xff] }
 0xf5d   :  { %14143 = vmatprep.subr.bf16.mxu0 %v16815_v53 }
 0xf5f   :  { %12745 = vmatmul.mubr.msk.f32.gmra.mrb[96].mxu0 %vm733_vm2, %v17217_v9 }
 0xf60   :  { %12747 = vmatprep.mubr.msk.f32.mxu0 %vm733_vm2, %v16600_v43  ;;  %14145 = vmatpush3.bf16.msra.mxu0 %v16815_v53  ;;  %v20312_v43 = vld [vmem:[#allocation12_spill] sm:$0xff]  ;;  %v20322_v53 = vld [vmem:[#allocation22_spill] sm:$0xff] }
 0xf61   :  { %14147 = vmatprep.subr.bf16.mxu0 %v16826_v4 }
 0xf63   :  { %12748 = vmatmul.mubr.msk.f32.gmra.mrb[98].mxu0 %vm733_vm2, %v16609_v1  ;;  %v20313_v1 = vld [vmem:[#allocation13_spill] sm:$0xff] }
 0xf64   :  { %12750 = vmatprep.mubr.msk.f32.mxu0 %vm733_vm2, %v16614_v31  ;;  %14149 = vmatpush3.bf16.msra.mxu0 %v16826_v4  ;;  %v20314_v31 = vld [vmem:[#allocation14_spill] sm:$0xff]  ;;  %v20323_v4 = vld [vmem:[#allocation23_spill] sm:$0xff] }
 0xf65   :  { %14151 = vmatprep.subr.bf16.mxu0 %v16836_v20 }
 0xf67   :  { %12751 = vmatmul.mubr.msk.f32.gmra.mrb[100].mxu0 %vm733_vm2, %v16623_v54  ;;  %v20315_v54 = vld [vmem:[#allocation15_spill] sm:$0xff] }
 0xf68   :  { %12753 = vmatprep.mubr.msk.f32.mxu0 %vm733_vm2, %v16628_v36  ;;  %14153 = vmatpush3.bf16.msra.mxu0 %v16836_v20  ;;  %v20316_v36 = vld [vmem:[#allocation16_spill] sm:$0xff] }
 0xf69   :  { %14155 = vmatprep.subr.bf16.mxu0 %v16846_v23  ;;  %v20324_v20 = vld [vmem:[#allocation24_spill] sm:$0xff] }
 0xf6b   :  { %12754 = vmatmul.mubr.msk.f32.gmra.mrb[102].mxu0 %vm733_vm2, %v16637_v10  ;;  %v20317_v10 = vld [vmem:[#allocation17_spill] sm:$0xff] }
 0xf6c   :  { %12756 = vmatprep.mubr.msk.f32.mxu0 %vm733_vm2, %v16642_v18  ;;  %14157 = vmatpush3.bf16.msra.mxu0 %v16846_v23  ;;  %v20318_v18 = vld [vmem:[#allocation18_spill] sm:$0xff]  ;;  %v20325_v23 = vld [vmem:[#allocation25_spill] sm:$0xff] }
 0xf6d   :  { %14159 = vmatprep.subr.bf16.mxu0 %v16856_v56 }
 0xf6f   :  { %12757 = vmatmul.mubr.msk.f32.gmra.mrb[104].mxu0 %vm733_vm2, %v16651_v28  ;;  %v20319_v28 = vld [vmem:[#allocation19_spill] sm:$0xff] }
 0xf70   :  { %12759 = vmatprep.mubr.msk.f32.mxu0 %vm733_vm2, %v16656_v16  ;;  %14161 = vmatpush3.bf16.msra.mxu0 %v16856_v56  ;;  %v20320_v16 = vld [vmem:[#allocation20_spill] sm:$0xff]  ;;  %v20326_v56 = vld [vmem:[#allocation26_spill] sm:$0xff] }
 0xf71   :  { %14163 = vmatprep.subr.bf16.mxu0 %v16866_v32 }
 0xf73   :  { %12760 = vmatmul.mubr.msk.f32.gmra.mrb[106].mxu0 %vm733_vm2, %v20312_v43 }
 0xf74   :  { %12762 = vmatprep.mubr.msk.f32.mxu0 %vm733_vm2, %v20313_v1  ;;  %14165 = vmatpush3.bf16.msra.mxu0 %v16866_v32  ;;  %v20327_v32 = vld [vmem:[#allocation27_spill] sm:$0xff]  ;;  %v20335_v1 = vld [vmem:[#allocation34_spill] sm:$0xff] }
 0xf75   :  { %14167 = vmatprep.subr.bf16.mxu0 %v16927_v19 }
 0xf77   :  { %12763 = vmatmul.mubr.msk.f32.gmra.mrb[108].mxu0 %vm733_vm2, %v20314_v31 }
 0xf78   :  { %12765 = vmatprep.mubr.msk.f32.mxu0 %vm733_vm2, %v20315_v54  ;;  %14169 = vmatpush3.bf16.msra.mxu0 %v16927_v19  ;;  %v20328_v19 = vld [vmem:[#allocation28_spill] sm:$0xff] }
 0xf79   :  { %14179 = vmatprep.subr.bf16.mxu0 %v17035_v49 }
 0xf7b   :  { %12766 = vmatmul.mubr.msk.f32.gmra.mrb[110].mxu0 %vm733_vm2, %v20316_v36  ;;  %v20336_v36 = vld [vmem:[#allocation35_spill] sm:$0xff] }
 0xf7c   :  { %12768 = vmatprep.mubr.msk.f32.mxu0 %vm733_vm2, %v20317_v10 }
 0xf7f   :  { %12769 = vmatmul.mubr.msk.f32.gmra.mrb[112].mxu0 %vm733_vm2, %v20318_v18 }
 0xf80   :  { %12771 = vmatprep.mubr.msk.f32.mxu0 %vm733_vm2, %v20319_v28 }
 0xf83   :  { %12772 = vmatmul.mubr.msk.f32.gmra.mrb[114].mxu0 %vm733_vm2, %v20320_v16  ;;  %v20337_v16 = vld [vmem:[#allocation36_spill] sm:$0xff] }
 0xf84   :  { %12774 = vmatprep.mubr.msk.f32.mxu0 %vm733_vm2, %v20321_v46 }
 0xf87   :  { %12775 = vmatmul.mubr.msk.f32.gmra.mrb[116].mxu0 %vm733_vm2, %v20322_v53 }
 0xf88   :  { %12777 = vmatprep.mubr.msk.f32.mxu0 %vm733_vm2, %v20323_v4 }
 0xf8b   :  { %12778 = vmatmul.mubr.msk.f32.gmra.mrb[118].mxu0 %vm733_vm2, %v20324_v20 }
 0xf8c   :  { %12780 = vmatprep.mubr.msk.f32.mxu0 %vm733_vm2, %v20325_v23 }
 0xf8f   :  { %12781 = vmatmul.mubr.msk.f32.gmra.mrb[120].mxu0 %vm733_vm2, %v20326_v56  ;;  %v20338_v56 = vld [vmem:[#allocation38_spill] sm:$0xff] }
 0xf90   :  { %12783 = vmatprep.mubr.msk.f32.mxu0 %vm733_vm2, %v20327_v32 }
 0xf93   :  { %12784 = vmatmul.mubr.msk.f32.gmra.mrb[122].mxu0 %vm733_vm2, %v20328_v19 }
 0xf94   :  { %12786 = vmatprep.mubr.msk.f32.mxu0 %vm733_vm2, %v20329_v21 }
 0xf97   :  { %12787 = vmatmul.mubr.msk.f32.gmra.mrb[124].mxu0 %vm733_vm2, %v20330_v24 }
0x102e   :  { %v12743_v15 = vpop.f32.mrb[94].mxu0 }
0x102f   :  { %v4022_v22 = vmul.f32 %v12743_v15, %v20331_v41  ;;  %v3826_v55 = vpop.f32.mrb[95].mxu0 }
0x1030   :  { %v4021_v58 = vmul.f32 %v3826_v55, %v20332_v30 }
0x1032   :  { %v14108_v62 = vpack.c.bf16 %v4022_v22, %v4021_v58  ;;  %v12746_v8 = vpop.f32.mrb[96].mxu0  ;;  %v20339_v22 = vld [vmem:[#allocation40_spill] sm:$0xff] }
0x1033   :  { %v4024_v47 = vmul.f32 %v12746_v8, %v20333_v11  ;;  %v3836_v17 = vpop.f32.mrb[97].mxu0 }
0x1034   :  { %v4023_v14 = vmul.f32 %v3836_v17, %v20334_v0 }
0x1036   :  { %v14112_v26 = vpack.c.bf16 %v4024_v47, %v4023_v14  ;;  %v12749_v43 = vpop.f32.mrb[98].mxu0  ;;  %v20340_v14 = vld [vmem:[#allocation42_spill] sm:$0xff] }
0x1037   :  { %v4026_v31 = vmul.f32 %v12749_v43, %v20335_v1  ;;  %v3846_v54 = vpop.f32.mrb[99].mxu0 }
0x1038   :  { %v4025_v10 = vmul.f32 %v3846_v54, %v20336_v36 }
0x103a   :  { %v14116_v18 = vpack.c.bf16 %v4026_v31, %v4025_v10  ;;  %v12752_v28 = vpop.f32.mrb[100].mxu0 }
0x103b   :  { %v4028_v46 = vmul.f32 %v12752_v28, %v20337_v16  ;;  %v3856_v53 = vpop.f32.mrb[101].mxu0 }
0x103c   :  { %v4027_v4 = vmul.f32 %v3856_v53, %v20216_v27 }
0x103e   :  { %v14120_v20 = vpack.c.bf16 %v4028_v46, %v4027_v4  ;;  %v12755_v23 = vpop.f32.mrb[102].mxu0 }
0x103f   :  { %v4030_v32 = vmul.f32 %v12755_v23, %v20338_v56  ;;  %v3866_v19 = vpop.f32.mrb[103].mxu0 }
0x1040   :  { %v4029_v21 = vmul.f32 %v3866_v19, %v20275_v60 }
0x1042   :  { %v14124_v24 = vpack.c.bf16 %v4030_v32, %v4029_v21  ;;  %v12758_v15 = vpop.f32.mrb[104].mxu0 }
0x1043   :  { %v4032_v55 = vmul.f32 %v12758_v15, %v20339_v22  ;;  %v3876_v58 = vpop.f32.mrb[105].mxu0 }
0x1044   :  { %v4031_v8 = vmul.f32 %v3876_v58, %v20277_v63 }
0x1046   :  { %v14128_v47 = vpack.c.bf16 %v4032_v55, %v4031_v8  ;;  %v12761_v17 = vpop.f32.mrb[106].mxu0 }
0x1047   :  { %v4034_v43 = vmul.f32 %v12761_v17, %v20340_v14  ;;  %v3886_v31 = vpop.f32.mrb[107].mxu0 }
0x1048   :  { %v4033_v54 = vmul.f32 %v3886_v31, %v20222_v13 }
0x104a   :  { %v14132_v10 = vpack.c.bf16 %v4034_v43, %v4033_v54  ;;  %v12764_v28 = vpop.f32.mrb[108].mxu0 }
0x104b   :  { %v4036_v46 = vmul.f32 %v12764_v28, %v20223_v29  ;;  %v3896_v53 = vpop.f32.mrb[109].mxu0 }
0x104c   :  { %v4035_v4 = vmul.f32 %v3896_v53, %v20224_v5 }
0x104e   :  { %v14136_v23 = vpack.c.bf16 %v4036_v46, %v4035_v4  ;;  %v12767_v32 = vpop.f32.mrb[110].mxu0 }
0x104f   :  { %v4038_v19 = vmul.f32 %v12767_v32, %v15984_v3  ;;  %v3906_v21 = vpop.f32.mrb[111].mxu0 }
0x1050   :  { %v4037_v15 = vmul.f32 %v3906_v21, %v20225_v38 }
0x1052   :  { %v14106_v55 = vpack.c.bf16 %v4038_v19, %v4037_v15  ;;  %v12770_v58 = vpop.f32.mrb[112].mxu0 }
0x1053   :  { %v4040_v8 = vmul.f32 %v12770_v58, %v16000_v12  ;;  %v3916_v17 = vpop.f32.mrb[113].mxu0 }
0x1054   :  { %v4039_v43 = vmul.f32 %v3916_v17, %v16003_v50  ;;  %14107 = vmatprep.subr.bf16.mxu1 %v14106_v55 }
0x1055   :  { %14109 = vmatpush3.bf16.msra.mxu1 %v14108_v62 }
0x1056   :  { %v14110_v31 = vpack.c.bf16 %v4040_v8, %v4039_v43  ;;  %v12773_v54 = vpop.f32.mrb[114].mxu0 }
0x1057   :  { %v4042_v28 = vmul.f32 %v12773_v54, %v16012_v51  ;;  %v3926_v46 = vpop.f32.mrb[115].mxu0 }
0x1058   :  { %v4041_v53 = vmul.f32 %v3926_v46, %v16015_v48  ;;  %14111 = vmatprep.subr.bf16.mxu1 %v14110_v31 }
0x1059   :  { %14113 = vmatpush3.bf16.msra.mxu1 %v14112_v26 }
0x105a   :  { %v14114_v4 = vpack.c.bf16 %v4042_v28, %v4041_v53  ;;  %v12776_v32 = vpop.f32.mrb[116].mxu0 }
0x105b   :  { %v4044_v19 = vmul.f32 %v12776_v32, %v16027_v35  ;;  %v3936_v21 = vpop.f32.mrb[117].mxu0 }
0x105c   :  { %v4043_v15 = vmul.f32 %v3936_v21, %v16030_v34  ;;  %14115 = vmatprep.subr.bf16.mxu1 %v14114_v4 }
0x105d   :  { %14117 = vmatpush3.bf16.msra.mxu1 %v14116_v18 }
0x105e   :  { %v14118_v55 = vpack.c.bf16 %v4044_v19, %v4043_v15  ;;  %v12779_v62 = vpop.f32.mrb[118].mxu0 }
0x105f   :  { %v4046_v58 = vmul.f32 %v12779_v62, %v16042_v61  ;;  %v3946_v8 = vpop.f32.mrb[119].mxu0 }
0x1060   :  { %v4045_v17 = vmul.f32 %v3946_v8, %v16045_v33  ;;  %14119 = vmatprep.subr.bf16.mxu1 %v14118_v55  ;;  %v20341_v55 = vld [vmem:[#allocation47_spill] sm:$0xff]  ;;  %v20343_v8 = vld [vmem:[#allocation44_spill] sm:$0xff] }
0x1061   :  { %14121 = vmatpush3.bf16.msra.mxu1 %v14120_v20 }
0x1062   :  { %v14122_v43 = vpack.c.bf16 %v4046_v58, %v4045_v17  ;;  %v12782_v26 = vpop.f32.mrb[120].mxu0  ;;  %v20344_v17 = vld [vmem:[#allocation45_spill] sm:$0xff] }
0x1063   :  { %v4048_v31 = vmul.f32 %v12782_v26, %v16057_v37  ;;  %v3956_v54 = vpop.f32.mrb[121].mxu0 }
0x1064   :  { %v4047_v28 = vmul.f32 %v3956_v54, %v16060_v59  ;;  %14123 = vmatprep.subr.bf16.mxu1 %v14122_v43  ;;  %v20345_v43 = vld [vmem:[#allocation46_spill] sm:$0xff] }
0x1065   :  { %14125 = vmatpush3.bf16.msra.mxu1 %v14124_v24  ;;  %v20342_v24 = vld [vmem:[#allocation43_spill] sm:$0xff] }
0x1066   :  { %v14126_v46 = vpack.c.bf16 %v4048_v31, %v4047_v28  ;;  %v12785_v18 = vpop.f32.mrb[122].mxu0 }
0x1067   :  { %v4050_v53 = vmul.f32 %v12785_v18, %v16072_v42  ;;  %v3966_v4 = vpop.f32.mrb[123].mxu0  ;;  %v20348_v18 = vld [vmem:[#allocation63_spill] sm:$0xff] }
0x1068   :  { %v4049_v32 = vmul.f32 %v3966_v4, %v16075_v57  ;;  %14127 = vmatprep.subr.bf16.mxu1 %v14126_v46  ;;  %v20350_v4 = vld [vmem:[#allocation65_spill] sm:$0xff] }
0x1069   :  { %14129 = vmatpush3.bf16.msra.mxu1 %v14128_v47 }
0x106a   :  { %v14130_v19 = vpack.c.bf16 %v4050_v53, %v4049_v32  ;;  %v12788_v20 = vpop.f32.mrb[124].mxu0  ;;  %v20349_v53 = vld [vmem:[#allocation64_spill] sm:$0xff]  ;;  %v20352_v32 = vld [vmem:[#allocation70_spill] sm:$0xff] }
0x106b   :  { %v4052_v21 = vmul.f32 %v12788_v20, %v16087_v39  ;;  %v3976_v15 = vpop.f32.mrb[125].mxu0  ;;  %v20353_v20 = vld [vmem:[#allocation56_spill] sm:$0xff] }
0x106c   :  { %v4051_v62 = vmul.f32 %v3976_v15, %v20341_v55  ;;  %14131 = vmatprep.subr.bf16.mxu1 %v14130_v19 }
0x106d   :  { %14133 = vmatpush3.bf16.msra.mxu1 %v14132_v10  ;;  %v20346_v10 = vld [vmem:[#allocation61_spill] sm:$0xff] }
0x106e   :  { %v14134_v58 = vpack.c.bf16 %v4052_v21, %v4051_v62  ;;  %v20354_v62 = vld [vmem:[#allocation57_spill] sm:$0xff] }
0x1070   :  { %14135 = vmatprep.subr.bf16.mxu1 %v14134_v58 }
0x1071   :  { %14137 = vmatpush3.bf16.msra.mxu1 %v14136_v23  ;;  %v20347_v23 = vld [vmem:[#allocation62_spill] sm:$0xff] }
0x1074   :  { %4118 = vmatmul.mubr.f32.vlgmr.msra.gmra.mrb[92].mxu1 %v20342_v24 }
0x1075   :  { %4122 = vmatprep.mubr.f32.mxu1 %v20343_v8  ;;  %v14174_v8 = vpack.c.bf16 %v17180_v7, %v17186_v2 }
0x1078   :  { %4123 = vmatmul.mubr.f32.gmra.mrb[94].mxu1 %v20344_v17  ;;  %v20355_v17 = vld [vmem:[#allocation48_spill] sm:$0xff] }
0x1079   :  { %12828 = vmatprep.mubr.msk.f32.mxu1 %vm733_vm2, %v20345_v43  ;;  %v20356_v43 = vld [vmem:[#allocation49_spill] sm:$0xff] }
0x1147   :  { %v11410_v47 = vpop.f32.mrb[92].mxu1 }
0x1148   :  { %v11411_v26 = vpop.f32.mrb[93].mxu1 }
0x1149   :  { %v11412_v31 = vadd.f32 %v11411_v26, %v11410_v47  ;;  %v20357_v47 = vld [vmem:[#allocation50_spill] sm:$0xff] }
0x114a   :  { %v20358_v26 = vld [vmem:[#allocation58_spill] sm:$0xff] }
0x114b   :  { %v11413_v54 = vpop.f32.mrb[94].mxu1  ;;  %12821 = vmatprep.mubr.f32.mxu0 %v11412_v31  ;;  %v20359_v31 = vld [vmem:[#allocation51_spill] sm:$0xff] }
0x114c   :  { %v11414_v28 = vpop.f32.mrb[95].mxu1 }
0x114d   :  { %v11415_v46 = vadd.f32 %v11414_v28, %v11413_v54  ;;  %v20360_v54 = vld [vmem:[#allocation52_spill] sm:$0xff]  ;;  %v20361_v28 = vld [vmem:[#allocation59_spill] sm:$0xff] }
0x114f   :  { %12822 = vmatmul.mubr.f32.vlgmr.msra.gmra.mrb[126].mxu0 %v11415_v46  ;;  %v20362_v46 = vld [vmem:[#allocation53_spill] sm:$0xff] }
0x1150   :  { %14181 = vmatpush3.bf16.msra.mxu0 %v17035_v49  ;;  %v20351_v49 = vld [vmem:[#allocation66_spill] sm:$0xff] }
0x1151   :  { %14183 = vmatprep.subr.bf16.mxu0 %v20346_v10 }
0x1154   :  { %14185 = vmatpush3.bf16.msra.mxu0 %v20346_v10  ;;  %v20363_v10 = vld [vmem:[#allocation54_spill] sm:$0xff] }
0x1155   :  { %14187 = vmatprep.subr.bf16.mxu0 %v20347_v23 }
0x1158   :  { %14189 = vmatpush3.bf16.msra.mxu0 %v20347_v23  ;;  %v20364_v23 = vld [vmem:[#allocation60_spill] sm:$0xff] }
0x1159   :  { %14191 = vmatprep.subr.bf16.mxu0 %v20348_v18 }
0x115c   :  { %14193 = vmatpush3.bf16.msra.mxu0 %v20348_v18  ;;  %v20365_v18 = vld [vmem:[#allocation55_spill] sm:$0xff] }
0x115d   :  { %14195 = vmatprep.subr.bf16.mxu0 %v20349_v53 }
0x1160   :  { %14197 = vmatpush3.bf16.msra.mxu0 %v20349_v53 }
0x1161   :  { %14199 = vmatprep.subr.bf16.mxu0 %v20350_v4 }
0x1164   :  { %14201 = vmatpush3.bf16.msra.mxu0 %v20350_v4 }
0x1165   :  { %14203 = vmatprep.subr.bf16.mxu0 %v20351_v49 }
0x1168   :  { %14205 = vmatpush3.bf16.msra.mxu0 %v20351_v49 }
0x1169   :  { %14207 = vmatprep.subr.bf16.mxu0 %v20352_v32 }
0x116c   :  { %14209 = vmatpush3.bf16.msra.mxu0 %v20352_v32  ;;  %v20366_v32 = vld [vmem:[#allocation67_spill] sm:$0xff] }
0x1222   :  { %v12823_v19 = vpop.f32.mrb[126].mxu0 }
0x1223   :  { %v4222_v21 = vmul.f32 %v12823_v19, %v20353_v20  ;;  %v4210_v15 = vpop.f32.mrb[127].mxu0 }
0x1224   :  { %v4221_v58 = vmul.f32 %v4210_v15, %v20354_v62 }
0x1226   :  { %v14170_v24 = vpack.c.bf16 %v4222_v21, %v4221_v58  ;;  %v20367_v21 = vld [vmem:[#allocation68_spill] sm:$0xff]  ;;  %v20368_v58 = vld [vmem:[#allocation71_spill] sm:$0xff] }
0x1228   :  { %14171 = vmatprep.subr.bf16.mxu1 %v14170_v24 }
0x1229   :  { %14173 = vmatpush3.bf16.msra.mxu1 %v14170_v24 }
0x122a   :  { %14175 = vmatprep.subr.bf16.mxu1 %v14174_v8 }
0x122c   :  { %12829 = vmatmul.mubr.msk.f32.vlgmr.msra.gmra.mrb[96].mxu1 %vm733_vm2, %v20355_v17  ;;  %v20369_v17 = vld [vmem:[#allocation72_spill] sm:$0xff] }
0x122d   :  { %14177 = vmatpush3.bf16.msra.mxu1 %v14174_v8  ;;  %12831 = vmatprep.mubr.msk.f32.mxu1 %vm733_vm2, %v20356_v43 }
0x1230   :  { %12832 = vmatmul.mubr.msk.f32.gmra.mrb[98].mxu1 %vm733_vm2, %v20357_v47 }
0x1231   :  { %12834 = vmatprep.mubr.msk.f32.mxu1 %vm733_vm2, %v20358_v26 }
0x1234   :  { %12835 = vmatmul.mubr.msk.f32.gmra.mrb[100].mxu1 %vm733_vm2, %v20359_v31  ;;  %v20370_v31 = vld [vmem:[#allocation69_spill] sm:$0xff] }
0x1235   :  { %12841 = vmatprep.mubr.msk.f32.mxu1 %vm733_vm2, %v20360_v54 }
0x1238   :  { %12842 = vmatmul.mubr.msk.f32.vlgmr.msra.gmra.mrb[96].mxu1 %vm733_vm2, %v20361_v28  ;;  %v20371_v28 = vld [vmem:[#allocation73_spill] sm:$0xff] }
0x1239   :  { %12844 = vmatprep.mubr.msk.f32.mxu1 %vm733_vm2, %v20362_v46 }
0x123c   :  { %12845 = vmatmul.mubr.msk.f32.gmra.mrb[98].mxu1 %vm733_vm2, %v20363_v10 }
0x123d   :  { %12847 = vmatprep.mubr.msk.f32.mxu1 %vm733_vm2, %v20364_v23 }
0x1240   :  { %12848 = vmatmul.mubr.msk.f32.gmra.mrb[102].mxu1 %vm733_vm2, %v20365_v18 }
0x1241   :  { %12889 = vmatprep.mubr.msk.f32.mxu1 %vm733_vm2, %v17195_v45 }
0x1307   :  { %v12836_v53 = vpop.f32.mrb[100].mxu1 }
0x1308   :  { %v4339_v4 = vpop.f32.mrb[101].mxu1 }
0x130b   :  { %v12843_v49 = vpop.f32.mrb[96].mxu1 }
0x130c   :  { %v14855_v19 = vadd.f32 %v20366_v32, %v12843_v49  ;;  %v4444_v20 = vpop.f32.mrb[97].mxu1 }
0x130d   :  { %v14856_v15 = vadd.f32 %v4444_v20, %v20367_v21 }
0x130e   :  { %v10622_v62 = vmul.f32 -1.442695, %v14855_v19 }
0x130f   :  { %v14857_v24 = vadd.f32 %v14856_v15, %v20368_v58  ;;  %v12846_v8 = vpop.f32.mrb[98].mxu1  ;;  %v20372_v58 = vld [vmem:[#allocation74_spill] sm:$0xff] }
0x1310   :  { %15011 = vpow2.f32 %v10622_v62  ;;  %v14859_v43 = vadd.f32 %v20369_v17, %v12846_v8  ;;  %v4454_v47 = vpop.f32.mrb[99].mxu1 }
0x1311   :  { %v10621_v26 = vmul.f32 -1.442695, %v14857_v24  ;;  %v14860_v54 = vadd.f32 %v4454_v47, %v20370_v31 }
0x1312   :  { %v10624_v45 = vmul.f32 -1.442695, %v14859_v43  ;;  %v20373_v43 = vld [vmem:[#allocation75_spill] sm:$0xff] }
0x1313   :  { %15013 = vpow2.f32 %v10621_v26  ;;  %v14861_v46 = vadd.f32 %v14860_v54, %v20371_v28  ;;  %v12849_v10 = vpop.f32.mrb[102].mxu1  ;;  %v20374_v26 = vld [vmem:[#allocation76_spill] sm:$0xff] }
0x1314   :  { %v4464_v23 = vpop.f32.mrb[103].mxu1  ;;  %15015 = vpow2.f32 %v10624_v45  ;;  %v4470_v24 = vadd.f32 %v12849_v10, %v20372_v58  ;;  %v4345_v31 = vadd.f32 %v12836_v53, %v20374_v26  ;;  %v17451_v26 = vld [vmem:[%s19747_s9 + $0x58] sm:$0xff] }
0x1315   :  { %v10623_v18 = vmul.f32 -1.442695, %v14861_v46  ;;  %v4465_v47 = vadd.f32 %v4464_v23, %v20373_v43  ;;  %v4340_v46 = vadd.f32 %v4339_v4, %v17172_v40  ;;  %v17437_v43 = vld [vmem:[%s19747_s9 + $0x48] sm:$0xff]  ;;  %20376 = vst [vmem:[#allocation41_spill] sm:$0xff] %v17451_v26 }
0x1317   :  { %15017 = vpow2.f32 %v10623_v18 }
0x131a   :  { %v15012_v49 = vpop.eup %15011 }
0x131b   :  { %v4482_v32 = vadd.f32 1.0, %v15012_v49 }
0x131d   :  { %v15014_v19 = vpop.eup %15013  ;;  %15019 = vrcp.f32 %v4482_v32 }
0x131e   :  { %v4481_v20 = vadd.f32 1.0, %v15014_v19  ;;  %v15016_v21 = vpop.eup %15015 }
0x131f   :  { %v4496_v62 = vadd.f32 1.0, %v15016_v21 }
0x1320   :  { %15021 = vrcp.f32 %v4481_v20 }
0x1321   :  { %v15018_v15 = vpop.eup %15017  ;;  %15023 = vrcp.f32 %v4496_v62 }
0x1322   :  { %v4495_v17 = vadd.f32 1.0, %v15018_v15 }
0x1324   :  { %15025 = vrcp.f32 %v4495_v17  ;;  %v17409_v17 = vld [vmem:[%s19747_s9 + $0x28] sm:$0xff] }
0x1327   :  { %v15020_v8 = vpop.eup %15019 }
0x1328   :  { %v4502_v54 = vmul.f32 %v15020_v8, %v4470_v24 }
0x132a   :  { %v15022_v45 = vpop.eup %15021  ;;  %v4504_v28 = vadd.f32 %v4502_v54, %v4345_v31  ;;  %v17456_v31 = vld [vmem:[%s19747_s9 + $0x60] sm:$0xff]  ;;  %v17465_v54 = vld [vmem:[%s19747_s9 + $0x68] sm:$0xff] }
0x132b   :  { %v4501_v18 = vmul.f32 %v15022_v45, %v4465_v47  ;;  %v15024_v32 = vpop.eup %15023  ;;  %v17442_v47 = vld [vmem:[%s19747_s9 + $0x50] sm:$0xff]  ;;  %20377 = vst [vmem:[#allocation12_spill] sm:$0xff] %v17456_v31  ;;  %20378 = vst [vmem:[#allocation13_spill] sm:$0xff] %v17465_v54 }
0x132c   :  { %15027 = vtanh.f32 %v4504_v28  ;;  %v4508_v10 = vsub.f32 1.0, %v15024_v32  ;;  %v4512_v23 = vmul.f32 %v15024_v32, %v17180_v7  ;;  %20375 = vst [vmem:[#allocation39_spill] sm:$0xff] %v17442_v47  ;;  %v17470_v45 = vld [vmem:[%s19747_s9 + $0x70] sm:$0xff]  ;;  %v17479_v28 = vld [vmem:[%s19747_s9 + $0x78] sm:$0xff] }
0x132d   :  { %v4503_v49 = vadd.f32 %v4501_v18, %v4340_v46  ;;  %20379 = vst [vmem:[#allocation14_spill] sm:$0xff] %v17470_v45  ;;  %20380 = vst [vmem:[#allocation15_spill] sm:$0xff] %v17479_v28  ;;  %v17484_v46 = vld [vmem:[%s19747_s9 + $0x80] sm:$0xff]  ;;  %v17493_v18 = vld [vmem:[%s19747_s9 + $0x88] sm:$0xff] }
0x132e   :  { %v15026_v19 = vpop.eup %15025  ;;  %20381 = vst [vmem:[#allocation16_spill] sm:$0xff] %v17484_v46  ;;  %20382 = vst [vmem:[#allocation17_spill] sm:$0xff] %v17493_v18  ;;  %v17507_v32 = vld [vmem:[%s19747_s9 + $0x98] sm:$0xff] }
0x132f   :  { %15029 = vtanh.f32 %v4503_v49  ;;  %v4507_v15 = vsub.f32 1.0, %v15026_v19  ;;  %v4511_v24 = vmul.f32 %v15026_v19, %v17186_v2  ;;  %v17400_v2 = vld [vmem:[%s19747_s9 + $0x20] sm:$0xff]  ;;  %v17498_v49 = vld [vmem:[%s19747_s9 + $0x90] sm:$0xff]  ;;  %20384 = vst [vmem:[#allocation19_spill] sm:$0xff] %v17507_v32 }
0x1330   :  { %20383 = vst [vmem:[#allocation18_spill] sm:$0xff] %v17498_v49  ;;  %v17512_v19 = vld [vmem:[%s19747_s9 + $0xa0] sm:$0xff] }
0x1331   :  { %20385 = vst [vmem:[#allocation20_spill] sm:$0xff] %v17512_v19 }
0x1336   :  { %v15028_v20 = vpop.eup %15027 }
0x1337   :  { %v4510_v21 = vmul.f32 %v15028_v20, %v4508_v10  ;;  %v17521_v10 = vld [vmem:[%s19747_s9 + $0xa8] sm:$0xff]  ;;  %v17526_v20 = vld [vmem:[%s19747_s9 + $0xb0] sm:$0xff] }
0x1338   :  { %20386 = vst [vmem:[#allocation21_spill] sm:$0xff] %v17521_v10  ;;  %20387 = vst [vmem:[#allocation22_spill] sm:$0xff] %v17526_v20 }
0x1339   :  { %v15030_v53 = vpop.eup %15029  ;;  %v17384_v62 = vadd.f32 %v4512_v23, %v4510_v21  ;;  %v17535_v21 = vld [vmem:[%s19747_s9 + $0xb8] sm:$0xff]  ;;  %v17540_v23 = vld [vmem:[%s19747_s9 + $0xc0] sm:$0xff] }
0x133a   :  { %v4509_v58 = vmul.f32 %v15030_v53, %v4507_v15  ;;  %20388 = vst [vmem:[#allocation23_spill] sm:$0xff] %v17535_v21  ;;  %20389 = vst [vmem:[#allocation24_spill] sm:$0xff] %v17540_v23  ;;  %v17549_v15 = vld [vmem:[%s19747_s9 + $0xc8] sm:$0xff]  ;;  %v17554_v53 = vld [vmem:[%s19747_s9 + $0xd0] sm:$0xff] }
0x133b   :  { %4516 = vst [vmem:[#allocation8 + $0x48] sm:$0xff] %v17384_v62  ;;  %20390 = vst [vmem:[#allocation25_spill] sm:$0xff] %v17549_v15 }
0x133c   :  { %v17388_v40 = vadd.f32 %v4511_v24, %v4509_v58  ;;  %20391 = vst [vmem:[#allocation26_spill] sm:$0xff] %v17554_v53  ;;  %v17563_v58 = vld [vmem:[%s19747_s9 + $0xd8] sm:$0xff]  ;;  %v17568_v24 = vld [vmem:[%s19747_s9 + $0xe0] sm:$0xff] }
0x133d   :  { %20392 = vst [vmem:[#allocation27_spill] sm:$0xff] %v17563_v58  ;;  %20393 = vst [vmem:[#allocation28_spill] sm:$0xff] %v17568_v24 }
0x133e   :  { %4515 = vst [vmem:[#allocation8 + $0x40] sm:$0xff] %v17388_v40  ;;  %12882 = vmatprep.mubr.f32.mxu0 %v17388_v40 }
0x133f   :  { %12883 = vmatmul.mubr.f32.vlgmr.msra.gmra.mrb[128].mxu0 %v17384_v62 }
0x1412   :  { %v12884_v4 = vpop.f32.mrb[128].mxu0 }
0x1413   :  { %v4599_v8 = vpop.f32.mrb[129].mxu0 }
0x1414   :  { %v14210_v7 = vpack.c.bf16 %v12884_v4, %v4599_v8  ;;  %v17577_v4 = vld [vmem:[%s19747_s9 + $0xe8] sm:$0xff]  ;;  %v17582_v8 = vld [vmem:[%s19747_s9 + $0xf0] sm:$0xff] }
0x1415   :  { %20394 = vst [vmem:[#allocation29_spill] sm:$0xff] %v17577_v4  ;;  %20395 = vst [vmem:[#allocation37_spill] sm:$0xff] %v17582_v8 }
0x1416   :  { %14211 = vmatprep.subr.bf16.mxu1 %v14210_v7 }
0x1417   :  { %14213 = vmatpush3.bf16.msra.mxu1 %v14210_v7  ;;  %v17591_v7 = vld [vmem:[%s19747_s9 + $0xf8] sm:$0xff] }
0x1418   :  { %20396 = vst [vmem:[#allocation31_spill] sm:$0xff] %v17591_v7 }
0x141a   :  { %12890 = vmatmul.mubr.msk.f32.vlgmr.msra.gmra.mrb[104].mxu1 %vm733_vm2, %v17202_v25  ;;  %v17414_v25 = vld [vmem:[%s19747_s9 + $0x30] sm:$0xff] }
0x141b   :  { %12892 = vmatprep.mubr.msk.f32.mxu1 %vm733_vm2, %v17207_v44  ;;  %v17423_v44 = vld [vmem:[%s19747_s9 + $0x38] sm:$0xff] }
0x141e   :  { %12893 = vmatmul.mubr.msk.f32.gmra.mrb[106].mxu1 %vm733_vm2, %v17217_v9  ;;  %v17428_v9 = vld [vmem:[%s19747_s9 + $0x40] sm:$0xff] }
0x141f   :  { %12895 = vmatprep.mubr.msk.f32.mxu1 %vm733_vm2, %v17400_v2 }
0x1422   :  { %12896 = vmatmul.mubr.msk.f32.gmra.mrb[108].mxu1 %vm733_vm2, %v17409_v17 }
0x1423   :  { %12898 = vmatprep.mubr.msk.f32.mxu1 %vm733_vm2, %v17414_v25 }
0x1426   :  { %12899 = vmatmul.mubr.msk.f32.gmra.mrb[110].mxu1 %vm733_vm2, %v17423_v44 }
0x1427   :  { %12901 = vmatprep.mubr.msk.f32.mxu1 %vm733_vm2, %v17428_v9 }
0x142a   :  { %12902 = vmatmul.mubr.msk.f32.gmra.mrb[112].mxu1 %vm733_vm2, %v17437_v43 }
0x142b   :  { %12904 = vmatprep.mubr.msk.f32.mxu1 %vm733_vm2, %v17442_v47 }
0x142e   :  { %12905 = vmatmul.mubr.msk.f32.gmra.mrb[114].mxu1 %vm733_vm2, %v17451_v26 }
0x142f   :  { %12907 = vmatprep.mubr.msk.f32.mxu1 %vm733_vm2, %v17456_v31 }
0x1432   :  { %12908 = vmatmul.mubr.msk.f32.gmra.mrb[116].mxu1 %vm733_vm2, %v17465_v54 }
0x1433   :  { %12910 = vmatprep.mubr.msk.f32.mxu1 %vm733_vm2, %v17470_v45 }
0x1436   :  { %12911 = vmatmul.mubr.msk.f32.gmra.mrb[118].mxu1 %vm733_vm2, %v17479_v28 }
0x1437   :  { %12913 = vmatprep.mubr.msk.f32.mxu1 %vm733_vm2, %v17484_v46 }
0x143a   :  { %12914 = vmatmul.mubr.msk.f32.gmra.mrb[120].mxu1 %vm733_vm2, %v17493_v18 }
0x143b   :  { %12916 = vmatprep.mubr.msk.f32.mxu1 %vm733_vm2, %v17498_v49 }
0x143e   :  { %12917 = vmatmul.mubr.msk.f32.gmra.mrb[122].mxu1 %vm733_vm2, %v17507_v32 }
0x143f   :  { %12919 = vmatprep.mubr.msk.f32.mxu1 %vm733_vm2, %v17512_v19  ;;  %v5116_v19 = vld [vmem:[%s19740_s2 + $0x60] sm:$0xff] }
0x1442   :  { %12920 = vmatmul.mubr.msk.f32.gmra.mrb[124].mxu1 %vm733_vm2, %v17521_v10  ;;  %v5114_v10 = vld [vmem:[%s19740_s2 + $0x50] sm:$0xff] }
0x1443   :  { %12922 = vmatprep.mubr.msk.f32.mxu1 %vm733_vm2, %v17526_v20  ;;  %v5112_v20 = vld [vmem:[%s19740_s2 + $0x40] sm:$0xff] }
0x1446   :  { %12923 = vmatmul.mubr.msk.f32.gmra.mrb[126].mxu1 %vm733_vm2, %v17535_v21  ;;  %v5109_v21 = vld [vmem:[%s19740_s2 + $0x28] sm:$0xff] }
0x1447   :  { %12925 = vmatprep.mubr.msk.f32.mxu1 %vm733_vm2, %v17540_v23  ;;  %v5108_v23 = vld [vmem:[%s19740_s2 + $0x20] sm:$0xff] }
0x144a   :  { %12926 = vmatmul.mubr.msk.f32.gmra.mrb[128].mxu1 %vm733_vm2, %v17549_v15 }
0x144b   :  { %12928 = vmatprep.mubr.msk.f32.mxu1 %vm733_vm2, %v17554_v53  ;;  %v5107_v53 = vld [vmem:[%s19740_s2 + $0x18] sm:$0xff] }
0x144e   :  { %12929 = vmatmul.mubr.msk.f32.gmra.mrb[130].mxu1 %vm733_vm2, %v17563_v58  ;;  %v5106_v58 = vld [vmem:[%s19740_s2 + $0x10] sm:$0xff] }
0x144f   :  { %12931 = vmatprep.mubr.msk.f32.mxu1 %vm733_vm2, %v17568_v24  ;;  %v17598_v24 = vld [vmem:[%s19748_s10 + $0x8] sm:$0xff]  ;;  %v17615_v15 = vpack.c.bf16 %v5107_v53, %v5106_v58  ;;  %v5110_v53 = vld [vmem:[%s19740_s2 + $0x30] sm:$0xff]  ;;  %v5111_v58 = vld [vmem:[%s19740_s2 + $0x38] sm:$0xff] }
0x1450   :  { %5093 = vmatprep.mubr.f32.mxu0 %v17598_v24 }
0x1452   :  { %12932 = vmatmul.mubr.msk.f32.gmra.mrb[132].mxu1 %vm733_vm2, %v17577_v4  ;;  %v5104_v4 = vld [vmem:[%s19740_s2] sm:$0xff] }
0x1453   :  { %12934 = vmatprep.mubr.msk.f32.mxu1 %vm733_vm2, %v17582_v8  ;;  %v5105_v8 = vld [vmem:[%s19740_s2 + $0x8] sm:$0xff] }
0x1456   :  { %12935 = vmatmul.mubr.msk.f32.gmra.mrb[134].mxu1 %vm733_vm2, %v17591_v7  ;;  %v17610_v7 = vpack.c.bf16 %v5105_v8, %v5104_v4  ;;  %v17626_v4 = vpack.c.bf16 %v5109_v21, %v5108_v23  ;;  %v17636_v8 = vpack.c.bf16 %v5111_v58, %v5110_v53  ;;  %v5113_v21 = vld [vmem:[%s19740_s2 + $0x48] sm:$0xff]  ;;  %v5115_v53 = vld [vmem:[%s19740_s2 + $0x58] sm:$0xff] }
0x1457   :  { %v17646_v23 = vpack.c.bf16 %v5113_v21, %v5112_v20  ;;  %v17656_v58 = vpack.c.bf16 %v5115_v53, %v5114_v10  ;;  %v5117_v20 = vld [vmem:[%s19740_s2 + $0x68] sm:$0xff] }
0x1458   :  { %14247 = vmatprep.subr.bf16.mxu1 %v17610_v7  ;;  %v17666_v21 = vpack.c.bf16 %v5117_v20, %v5116_v19 }
0x1459   :  { %14249 = vmatpush3.bf16.msra.mxu1 %v17610_v7  ;;  %20397 = vst [vmem:[#allocation33_spill] sm:$0xff] %v17656_v58 }
0x145a   :  { %14251 = vmatprep.subr.bf16.mxu1 %v17615_v15  ;;  %20398 = vst [vmem:[#allocation35_spill] sm:$0xff] %v17666_v21 }
0x145d   :  { %14253 = vmatpush3.bf16.msra.mxu1 %v17615_v15 }
0x145e   :  { %14255 = vmatprep.subr.bf16.mxu1 %v17626_v4 }
0x1461   :  { %14257 = vmatpush3.bf16.msra.mxu1 %v17626_v4 }
0x1462   :  { %14259 = vmatprep.subr.bf16.mxu1 %v17636_v8 }
0x1465   :  { %14261 = vmatpush3.bf16.msra.mxu1 %v17636_v8 }
0x1466   :  { %14263 = vmatprep.subr.bf16.mxu1 %v17646_v23 }
0x1469   :  { %14265 = vmatpush3.bf16.msra.mxu1 %v17646_v23 }
0x146a   :  { %14267 = vmatprep.subr.bf16.mxu1 %v17656_v58 }
0x146d   :  { %14269 = vmatpush3.bf16.msra.mxu1 %v17656_v58 }
0x146e   :  { %14271 = vmatprep.subr.bf16.mxu1 %v17666_v21 }
0x1471   :  { %14273 = vmatpush3.bf16.msra.mxu1 %v17666_v21 }
0x14ed   :  { %v12891_v10 = vpop.f32.mrb[104].mxu1 }
0x14ee   :  { %v4998_v53 = vmul.f32 %v12891_v10, %v20331_v41  ;;  %v4802_v32 = vpop.f32.mrb[105].mxu1 }
0x14ef   :  { %v4997_v49 = vmul.f32 %v4802_v32, %v20332_v30 }
0x14f1   :  { %v14216_v18 = vpack.c.bf16 %v4998_v53, %v4997_v49  ;;  %v12894_v46 = vpop.f32.mrb[106].mxu1 }
0x14f2   :  { %v5000_v28 = vmul.f32 %v12894_v46, %v20333_v11  ;;  %v4812_v45 = vpop.f32.mrb[107].mxu1 }
0x14f3   :  { %v4999_v19 = vmul.f32 %v4812_v45, %v20334_v0 }
0x14f5   :  { %v14220_v20 = vpack.c.bf16 %v5000_v28, %v4999_v19  ;;  %v12897_v54 = vpop.f32.mrb[108].mxu1 }
0x14f6   :  { %v5002_v31 = vmul.f32 %v12897_v54, %v20335_v1  ;;  %v4822_v26 = vpop.f32.mrb[109].mxu1 }
0x14f7   :  { %v5001_v21 = vmul.f32 %v4822_v26, %v20336_v36 }
0x14f9   :  { %v14224_v58 = vpack.c.bf16 %v5002_v31, %v5001_v21  ;;  %v12900_v47 = vpop.f32.mrb[110].mxu1 }
0x14fa   :  { %v5004_v10 = vmul.f32 %v12900_v47, %v20337_v16  ;;  %v4832_v41 = vpop.f32.mrb[111].mxu1 }
0x14fb   :  { %v5003_v49 = vmul.f32 %v4832_v41, %v20216_v27 }
0x14fd   :  { %v14228_v32 = vpack.c.bf16 %v5004_v10, %v5003_v49  ;;  %v12903_v53 = vpop.f32.mrb[112].mxu1 }
0x14fe   :  { %v5006_v46 = vmul.f32 %v12903_v53, %v20338_v56  ;;  %v4842_v11 = vpop.f32.mrb[113].mxu1 }
0x14ff   :  { %v5005_v45 = vmul.f32 %v4842_v11, %v20275_v60 }
0x1501   :  { %v14232_v28 = vpack.c.bf16 %v5006_v46, %v5005_v45  ;;  %v12906_v19 = vpop.f32.mrb[114].mxu1 }
0x1502   :  { %v5008_v54 = vmul.f32 %v12906_v19, %v20339_v22  ;;  %v4852_v1 = vpop.f32.mrb[115].mxu1 }
0x1503   :  { %v5007_v26 = vmul.f32 %v4852_v1, %v20277_v63 }
0x1505   :  { %v14236_v31 = vpack.c.bf16 %v5008_v54, %v5007_v26  ;;  %v12909_v21 = vpop.f32.mrb[116].mxu1 }
0x1506   :  { %v5010_v47 = vmul.f32 %v12909_v21, %v20340_v14  ;;  %v4862_v16 = vpop.f32.mrb[117].mxu1 }
0x1507   :  { %v5009_v41 = vmul.f32 %v4862_v16, %v20222_v13 }
0x1509   :  { %v14240_v10 = vpack.c.bf16 %v5010_v47, %v5009_v41  ;;  %v12912_v49 = vpop.f32.mrb[118].mxu1 }
0x150a   :  { %v5012_v53 = vmul.f32 %v12912_v49, %v20223_v29  ;;  %v4872_v56 = vpop.f32.mrb[119].mxu1 }
0x150b   :  { %v5011_v11 = vmul.f32 %v4872_v56, %v20224_v5 }
0x150d   :  { %v14244_v46 = vpack.c.bf16 %v5012_v53, %v5011_v11  ;;  %v12915_v45 = vpop.f32.mrb[120].mxu1 }
0x150e   :  { %v5014_v19 = vmul.f32 %v12915_v45, %v15984_v3  ;;  %v4882_v22 = vpop.f32.mrb[121].mxu1 }
0x150f   :  { %v5013_v1 = vmul.f32 %v4882_v22, %v20225_v38 }
0x1511   :  { %v14214_v54 = vpack.c.bf16 %v5014_v19, %v5013_v1  ;;  %v12918_v26 = vpop.f32.mrb[122].mxu1 }
0x1512   :  { %v5016_v21 = vmul.f32 %v12918_v26, %v16000_v12  ;;  %v4892_v14 = vpop.f32.mrb[123].mxu1 }
0x1513   :  { %v5015_v16 = vmul.f32 %v4892_v14, %v16003_v50  ;;  %14215 = vmatprep.subr.bf16.mxu0 %v14214_v54 }
0x1514   :  { %14217 = vmatpush3.bf16.msra.mxu0 %v14216_v18 }
0x1515   :  { %v14218_v47 = vpack.c.bf16 %v5016_v21, %v5015_v16  ;;  %v12921_v41 = vpop.f32.mrb[124].mxu1 }
0x1516   :  { %v5018_v56 = vmul.f32 %v12921_v41, %v16012_v51  ;;  %v4902_v49 = vpop.f32.mrb[125].mxu1 }
0x1517   :  { %v5017_v53 = vmul.f32 %v4902_v49, %v16015_v48  ;;  %14219 = vmatprep.subr.bf16.mxu0 %v14218_v47 }
0x1518   :  { %14221 = vmatpush3.bf16.msra.mxu0 %v14220_v20 }
0x1519   :  { %v14222_v11 = vpack.c.bf16 %v5018_v56, %v5017_v53  ;;  %v12924_v22 = vpop.f32.mrb[126].mxu1 }
0x151a   :  { %v5020_v45 = vmul.f32 %v12924_v22, %v16027_v35  ;;  %v4912_v19 = vpop.f32.mrb[127].mxu1 }
0x151b   :  { %v5019_v1 = vmul.f32 %v4912_v19, %v16030_v34  ;;  %14223 = vmatprep.subr.bf16.mxu0 %v14222_v11 }
0x151c   :  { %14225 = vmatpush3.bf16.msra.mxu0 %v14224_v58 }
0x151d   :  { %v14226_v14 = vpack.c.bf16 %v5020_v45, %v5019_v1  ;;  %v12927_v18 = vpop.f32.mrb[128].mxu1 }
0x151e   :  { %v5022_v54 = vmul.f32 %v12927_v18, %v16042_v61  ;;  %v4922_v26 = vpop.f32.mrb[129].mxu1 }
0x151f   :  { %v5021_v21 = vmul.f32 %v4922_v26, %v16045_v33  ;;  %14227 = vmatprep.subr.bf16.mxu0 %v14226_v14 }
0x1520   :  { %14229 = vmatpush3.bf16.msra.mxu0 %v14228_v32 }
0x1521   :  { %v14230_v16 = vpack.c.bf16 %v5022_v54, %v5021_v21  ;;  %v12930_v20 = vpop.f32.mrb[130].mxu1  ;;  %v5119_v54 = vld [vmem:[%s19740_s2 + $0x78] sm:$0xff] }
0x1522   :  { %v5024_v47 = vmul.f32 %v12930_v20, %v16057_v37  ;;  %v4932_v41 = vpop.f32.mrb[131].mxu1 }
0x1523   :  { %v5023_v56 = vmul.f32 %v4932_v41, %v16060_v59  ;;  %14231 = vmatprep.subr.bf16.mxu0 %v14230_v16 }
0x1524   :  { %14233 = vmatpush3.bf16.msra.mxu0 %v14232_v28  ;;  %v17706_v28 = vld [vmem:[%s19748_s10] sm:$0xff] }
0x1525   :  { %v14234_v49 = vpack.c.bf16 %v5024_v47, %v5023_v56  ;;  %v12933_v58 = vpop.f32.mrb[132].mxu1  ;;  %20399 = vst [vmem:[#allocation43_spill] sm:$0xff] %v17706_v28 }
0x1526   :  { %v5026_v53 = vmul.f32 %v12933_v58, %v16072_v42  ;;  %v4942_v11 = vpop.f32.mrb[133].mxu1  ;;  %v17741_v58 = vld [vmem:[%s19741_s3 + $0x8] sm:$0xff] }
0x1527   :  { %v5025_v22 = vmul.f32 %v4942_v11, %v16075_v57  ;;  %14235 = vmatprep.subr.bf16.mxu0 %v14234_v49  ;;  %v17734_v49 = vld [vmem:[%s19749_s11] sm:$0xff]  ;;  %20403 = vst [vmem:[#allocation61_spill] sm:$0xff] %v17741_v58 }
0x1528   :  { %14237 = vmatpush3.bf16.msra.mxu0 %v14236_v31  ;;  %v17711_v31 = vld [vmem:[%s19748_s10 + $0x18] sm:$0xff]  ;;  %20402 = vst [vmem:[#allocation46_spill] sm:$0xff] %v17734_v49 }
0x1529   :  { %v14238_v45 = vpack.c.bf16 %v5026_v53, %v5025_v22  ;;  %v12936_v32 = vpop.f32.mrb[134].mxu1  ;;  %20400 = vst [vmem:[#allocation44_spill] sm:$0xff] %v17711_v31  ;;  %v17746_v53 = vld [vmem:[%s19741_s3] sm:$0xff] }
0x152a   :  { %v5028_v19 = vmul.f32 %v12936_v32, %v16087_v39  ;;  %v4952_v1 = vpop.f32.mrb[135].mxu1  ;;  %20404 = vst [vmem:[#allocation62_spill] sm:$0xff] %v17746_v53 }
0x152b   :  { %v5027_v14 = vmul.f32 %v4952_v1, %v20341_v55  ;;  %14239 = vmatprep.subr.bf16.mxu0 %v14238_v45  ;;  %v14282_v1 = vpack.c.bf16 %v17384_v62, %v17388_v40 }
0x152c   :  { %14241 = vmatpush3.bf16.msra.mxu0 %v14240_v10  ;;  %v17718_v10 = vld [vmem:[%s19748_s10 + $0x10] sm:$0xff] }
0x152d   :  { %v14242_v18 = vpack.c.bf16 %v5028_v19, %v5027_v14  ;;  %20401 = vst [vmem:[#allocation45_spill] sm:$0xff] %v17718_v10  ;;  %v17755_v14 = vld [vmem:[%s19749_s11 + $0x8] sm:$0xff] }
0x152e   :  { %20405 = vst [vmem:[#allocation63_spill] sm:$0xff] %v17755_v14 }
0x152f   :  { %14243 = vmatprep.subr.bf16.mxu0 %v14242_v18  ;;  %v17760_v18 = vld [vmem:[%s19749_s11 + $0x10] sm:$0xff] }
0x1530   :  { %14245 = vmatpush3.bf16.msra.mxu0 %v14244_v46  ;;  %v5118_v46 = vld [vmem:[%s19740_s2 + $0x70] sm:$0xff]  ;;  %20406 = vst [vmem:[#allocation64_spill] sm:$0xff] %v17760_v18 }
0x1531   :  { %v17727_v26 = vpack.c.bf16 %v5119_v54, %v5118_v46  ;;  %v17769_v46 = vld [vmem:[%s19749_s11 + $0x18] sm:$0xff]  ;;  %v17774_v54 = vld [vmem:[%s19749_s11 + $0x20] sm:$0xff] }
0x1532   :  { %20407 = vst [vmem:[#allocation65_spill] sm:$0xff] %v17769_v46  ;;  %20408 = vst [vmem:[#allocation66_spill] sm:$0xff] %v17774_v54 }
0x1533   :  { %5094 = vmatmul.mubr.f32.vlgmr.msra.gmra.mrb[130].mxu0 %v17706_v28  ;;  %14275 = vmatprep.subr.bf16.mxu1 %v17727_v26 }
0x1534   :  { %5098 = vmatprep.mubr.f32.mxu0 %v17711_v31  ;;  %14277 = vmatpush3.bf16.msra.mxu1 %v17727_v26 }
0x1537   :  { %5099 = vmatmul.mubr.f32.gmra.mrb[132].mxu0 %v17718_v10 }
0x1538   :  { %12976 = vmatprep.mubr.msk.f32.mxu0 %vm733_vm2, %v17734_v49 }
0x1606   :  { %v11534_v21 = vpop.f32.mrb[130].mxu0 }
0x1607   :  { %v11535_v16 = vpop.f32.mrb[131].mxu0 }
0x1608   :  { %v11536_v20 = vadd.f32 %v11535_v16, %v11534_v21  ;;  %v17783_v21 = vld [vmem:[%s19749_s11 + $0x28] sm:$0xff]  ;;  %v17788_v16 = vld [vmem:[%s19750_s12] sm:$0xff] }
0x1609   :  { %20409 = vst [vmem:[#allocation70_spill] sm:$0xff] %v17783_v21  ;;  %20410 = vst [vmem:[#allocation56_spill] sm:$0xff] %v17788_v16 }
0x160a   :  { %v11537_v47 = vpop.f32.mrb[132].mxu0  ;;  %12969 = vmatprep.mubr.f32.mxu1 %v11536_v20  ;;  %v17797_v20 = vld [vmem:[%s19750_s12 + $0x8] sm:$0xff] }
0x160b   :  { %v11538_v41 = vpop.f32.mrb[133].mxu0  ;;  %20411 = vst [vmem:[#allocation57_spill] sm:$0xff] %v17797_v20 }
0x160c   :  { %v11539_v56 = vadd.f32 %v11538_v41, %v11537_v47  ;;  %v17802_v47 = vld [vmem:[%s19750_s12 + $0x10] sm:$0xff]  ;;  %v17811_v41 = vld [vmem:[%s19750_s12 + $0x18] sm:$0xff] }
0x160d   :  { %20412 = vst [vmem:[#allocation48_spill] sm:$0xff] %v17802_v47  ;;  %20413 = vst [vmem:[#allocation49_spill] sm:$0xff] %v17811_v41 }
0x160e   :  { %12970 = vmatmul.mubr.f32.vlgmr.msra.gmra.mrb[136].mxu1 %v11539_v56  ;;  %v17816_v56 = vld [vmem:[%s19750_s12 + $0x20] sm:$0xff] }
0x160f   :  { %20414 = vst [vmem:[#allocation50_spill] sm:$0xff] %v17816_v56 }
0x16e1   :  { %v12971_v11 = vpop.f32.mrb[136].mxu1 }
0x16e2   :  { %v5198_v22 = vmul.f32 %v12971_v11, %v17741_v58  ;;  %v5186_v45 = vpop.f32.mrb[137].mxu1  ;;  %v17825_v11 = vld [vmem:[%s19750_s12 + $0x28] sm:$0xff] }
0x16e3   :  { %v5197_v32 = vmul.f32 %v17746_v53, %v5186_v45  ;;  %20415 = vst [vmem:[#allocation58_spill] sm:$0xff] %v17825_v11  ;;  %v5496_v45 = vld [vmem:[%s19739_s1 + $0x8] sm:$0xff] }
0x16e5   :  { %v14278_v19 = vpack.c.bf16 %v5198_v22, %v5197_v32  ;;  %v5495_v22 = vld [vmem:[%s19739_s1] sm:$0xff] }
0x16e6   :  { %v17835_v32 = vpack.c.bf16 %v5496_v45, %v5495_v22  ;;  %v5499_v22 = vld [vmem:[%s19739_s1 + $0x20] sm:$0xff]  ;;  %v5500_v45 = vld [vmem:[%s19739_s1 + $0x28] sm:$0xff] }
0x16e7   :  { %14279 = vmatprep.subr.bf16.mxu0 %v14278_v19 }
0x16e8   :  { %14281 = vmatpush3.bf16.msra.mxu0 %v14278_v19  ;;  %14287 = vmatprep.subr.bf16.mxu1 %v17835_v32  ;;  %v5497_v19 = vld [vmem:[%s19739_s1 + $0x10] sm:$0xff] }
0x16e9   :  { %14283 = vmatprep.subr.bf16.mxu0 %v14282_v1  ;;  %14289 = vmatpush3.bf16.msra.mxu1 %v17835_v32 }
0x16eb   :  { %12977 = vmatmul.mubr.msk.f32.vlgmr.msra.gmra.mrb[134].mxu0 %vm733_vm2, %v17755_v14  ;;  %v17926_v14 = vld [vmem:[%s19751_s13] sm:$0xff] }
0x16ec   :  { %14285 = vmatpush3.bf16.msra.mxu0 %v14282_v1  ;;  %12979 = vmatprep.mubr.msk.f32.mxu0 %vm733_vm2, %v17760_v18  ;;  %v5498_v1 = vld [vmem:[%s19739_s1 + $0x18] sm:$0xff]  ;;  %20424 = vst [vmem:[#allocation68_spill] sm:$0xff] %v17926_v14 }
0x16ef   :  { %12980 = vmatmul.mubr.msk.f32.gmra.mrb[136].mxu0 %vm733_vm2, %v17769_v46 }
0x16f0   :  { %12982 = vmatprep.mubr.msk.f32.mxu0 %vm733_vm2, %v17774_v54 }
0x16f3   :  { %12983 = vmatmul.mubr.msk.f32.gmra.mrb[138].mxu0 %vm733_vm2, %v17783_v21  ;;  %v5508_v21 = vld [vmem:[%s19739_s1 + $0x68] sm:$0xff] }
0x16f4   :  { %12989 = vmatprep.mubr.msk.f32.mxu0 %vm733_vm2, %v17788_v16  ;;  %v5507_v16 = vld [vmem:[%s19739_s1 + $0x60] sm:$0xff] }
0x16f7   :  { %12990 = vmatmul.mubr.msk.f32.vlgmr.msra.gmra.mrb[134].mxu0 %vm733_vm2, %v17797_v20  ;;  %v5505_v20 = vld [vmem:[%s19739_s1 + $0x50] sm:$0xff] }
0x16f8   :  { %12992 = vmatprep.mubr.msk.f32.mxu0 %vm733_vm2, %v17802_v47 }
0x16fb   :  { %12993 = vmatmul.mubr.msk.f32.gmra.mrb[136].mxu0 %vm733_vm2, %v17811_v41 }
0x16fc   :  { %12995 = vmatprep.mubr.msk.f32.mxu0 %vm733_vm2, %v17816_v56  ;;  %v17855_v56 = vpack.c.bf16 %v5500_v45, %v5499_v22  ;;  %v5503_v22 = vld [vmem:[%s19739_s1 + $0x40] sm:$0xff]  ;;  %v5504_v45 = vld [vmem:[%s19739_s1 + $0x48] sm:$0xff] }
0x16fd   :  { %v17875_v47 = vpack.c.bf16 %v5504_v45, %v5503_v22  ;;  %v17894_v22 = vpack.c.bf16 %v5508_v21, %v5507_v16  ;;  %v5510_v45 = vld [vmem:[%s19739_s1 + $0x78] sm:$0xff]  ;;  %v5206_v21 = vld [vmem:[%s19751_s13 + $0x8] sm:$0xff] }
0x16fe   :  { %20417 = vst [vmem:[#allocation52_spill] sm:$0xff] %v17855_v56  ;;  %v5331_v16 = vld [vmem:[%s19752_s14 + $0x8] sm:$0xff] }
0x16ff   :  { %12996 = vmatmul.mubr.msk.f32.gmra.mrb[140].mxu0 %vm733_vm2, %v17825_v11  ;;  %v17845_v11 = vpack.c.bf16 %v5498_v1, %v5497_v19  ;;  %v5501_v19 = vld [vmem:[%s19739_s1 + $0x30] sm:$0xff]  ;;  %v5502_v1 = vld [vmem:[%s19739_s1 + $0x38] sm:$0xff]  ;;  %20419 = vst [vmem:[#allocation53_spill] sm:$0xff] %v17875_v47  ;;  %20421 = vst [vmem:[#allocation60_spill] sm:$0xff] %v17894_v22  ;;  %v17915_v18 = vadd.f32 %v5331_v16, %v5206_v21 }
0x1700   :  { %v17865_v41 = vpack.c.bf16 %v5502_v1, %v5501_v19  ;;  %v5506_v19 = vld [vmem:[%s19739_s1 + $0x58] sm:$0xff]  ;;  %v17932_v21 = vld [vmem:[%s19752_s14] sm:$0xff] }
0x1701   :  { %20416 = vst [vmem:[#allocation51_spill] sm:$0xff] %v17845_v11  ;;  %14291 = vmatprep.subr.bf16.mxu1 %v17845_v11  ;;  %v17883_v1 = vpack.c.bf16 %v5506_v19, %v5505_v20  ;;  %v5509_v20 = vld [vmem:[%s19739_s1 + $0x70] sm:$0xff]  ;;  %20423 = vst [vmem:[#allocation67_spill] sm:$0xff] %v17915_v18 }
0x1702   :  { %14293 = vmatpush3.bf16.msra.mxu1 %v17845_v11  ;;  %20418 = vst [vmem:[#allocation59_spill] sm:$0xff] %v17865_v41  ;;  %v17904_v19 = vpack.c.bf16 %v5510_v45, %v5509_v20  ;;  %v5208_v20 = vld [vmem:[%s19751_s13 + $0x18] sm:$0xff]  ;;  %20425 = vst [vmem:[#allocation71_spill] sm:$0xff] %v17932_v21 }
0x1703   :  { %14295 = vmatprep.subr.bf16.mxu1 %v17855_v56  ;;  %20420 = vst [vmem:[#allocation54_spill] sm:$0xff] %v17883_v1  ;;  %v5333_v45 = vld [vmem:[%s19752_s14 + $0x18] sm:$0xff] }
0x1704   :  { %20422 = vst [vmem:[#allocation55_spill] sm:$0xff] %v17904_v19  ;;  %v17934_v16 = vadd.f32 %v5333_v45, %v5208_v20  ;;  %v17947_v20 = vld [vmem:[%s19752_s14 + $0x10] sm:$0xff] }
0x1705   :  { %20428 = vst [vmem:[#allocation73_spill] sm:$0xff] %v17947_v20 }
0x1706   :  { %14297 = vmatpush3.bf16.msra.mxu1 %v17855_v56  ;;  %20426 = vst [vmem:[#allocation72_spill] sm:$0xff] %v17934_v16 }
0x1707   :  { %14299 = vmatprep.subr.bf16.mxu1 %v17865_v41 }
0x170a   :  { %14301 = vmatpush3.bf16.msra.mxu1 %v17865_v41 }
0x170b   :  { %14303 = vmatprep.subr.bf16.mxu1 %v17875_v47 }
0x170e   :  { %14305 = vmatpush3.bf16.msra.mxu1 %v17875_v47  ;;  %v17940_v47 = vld [vmem:[%s19751_s13 + $0x10] sm:$0xff] }
0x170f   :  { %14307 = vmatprep.subr.bf16.mxu1 %v17883_v1  ;;  %20427 = vst [vmem:[#allocation69_spill] sm:$0xff] %v17940_v47 }
0x1712   :  { %14309 = vmatpush3.bf16.msra.mxu1 %v17883_v1 }
0x1713   :  { %14311 = vmatprep.subr.bf16.mxu1 %v17894_v22 }
0x1716   :  { %14313 = vmatpush3.bf16.msra.mxu1 %v17894_v22 }
0x1717   :  { %14315 = vmatprep.subr.bf16.mxu1 %v17904_v19 }
0x171a   :  { %14317 = vmatpush3.bf16.msra.mxu1 %v17904_v19 }
0x17c6   :  { %v12984_v54 = vpop.f32.mrb[138].mxu0 }
0x17c7   :  { %v5315_v46 = vpop.f32.mrb[139].mxu0 }
0x17ca   :  { %v12991_v53 = vpop.f32.mrb[134].mxu0 }
0x17cb   :  { %v14863_v58 = vadd.f32 %v17915_v18, %v12991_v53  ;;  %v5420_v19 = vpop.f32.mrb[135].mxu0 }
0x17cc   :  { %v14864_v22 = vadd.f32 %v5420_v19, %v17926_v14 }
0x17cd   :  { %v10670_v1 = vmul.f32 -1.442695, %v14863_v58 }
0x17ce   :  { %v14865_v41 = vadd.f32 %v14864_v22, %v17932_v21  ;;  %v12994_v56 = vpop.f32.mrb[136].mxu0 }
0x17cf   :  { %15031 = vpow2.f32 %v10670_v1  ;;  %v14867_v53 = vadd.f32 %v17934_v16, %v12994_v56  ;;  %v5430_v18 = vpop.f32.mrb[137].mxu0 }
0x17d0   :  { %v10669_v45 = vmul.f32 -1.442695, %v14865_v41  ;;  %v14868_v58 = vadd.f32 %v5430_v18, %v17940_v47  ;;  %v17954_v18 = vld [vmem:[%s19752_s14 + $0x28] sm:$0xff] }
0x17d1   :  { %v10672_v19 = vmul.f32 -1.442695, %v14867_v53  ;;  %20429 = vst [vmem:[#allocation74_spill] sm:$0xff] %v17954_v18 }
0x17d2   :  { %15033 = vpow2.f32 %v10669_v45  ;;  %v14869_v14 = vadd.f32 %v14868_v58, %v17947_v20  ;;  %v12997_v11 = vpop.f32.mrb[140].mxu0 }
0x17d3   :  { %v5440_v49 = vpop.f32.mrb[141].mxu0  ;;  %15035 = vpow2.f32 %v10672_v19  ;;  %v5446_v45 = vadd.f32 %v12997_v11, %v17954_v18 }
0x17d4   :  { %v10671_v22 = vmul.f32 -1.442695, %v14869_v14  ;;  %v17960_v14 = vld [vmem:[%s19752_s14 + $0x20] sm:$0xff] }
0x17d5   :  { %20430 = vst [vmem:[#allocation75_spill] sm:$0xff] %v17960_v14  ;;  %v5441_v19 = vadd.f32 %v5440_v49, %v17960_v14 }
0x17d6   :  { %15037 = vpow2.f32 %v10671_v22 }
0x17d9   :  { %v15032_v1 = vpop.eup %15031 }
0x17da   :  { %v5458_v56 = vadd.f32 1.0, %v15032_v1 }
0x17dc   :  { %v15034_v16 = vpop.eup %15033  ;;  %15039 = vrcp.f32 %v5458_v56 }
0x17dd   :  { %v5457_v21 = vadd.f32 1.0, %v15034_v16  ;;  %v15036_v10 = vpop.eup %15035  ;;  %v17965_v16 = vld [vmem:[%s19751_s13 + $0x28] sm:$0xff] }
0x17de   :  { %v5472_v53 = vadd.f32 1.0, %v15036_v10  ;;  %20431 = vst [vmem:[#allocation76_spill] sm:$0xff] %v17965_v16  ;;  %v5321_v22 = vadd.f32 %v12984_v54, %v17965_v16  ;;  %v17972_v10 = vld [vmem:[%s19751_s13 + $0x20] sm:$0xff] }
0x17df   :  { %15041 = vrcp.f32 %v5457_v21  ;;  %v5316_v18 = vadd.f32 %v5315_v46, %v17972_v10 }
0x17e0   :  { %v15038_v41 = vpop.eup %15037  ;;  %15043 = vrcp.f32 %v5472_v53 }
0x17e1   :  { %v5471_v58 = vadd.f32 1.0, %v15038_v41 }
0x17e3   :  { %15045 = vrcp.f32 %v5471_v58  ;;  %v20448_v58 = vld [vmem:[#allocation24_spill] sm:$0xff] }
0x17e6   :  { %v15040_v21 = vpop.eup %15039 }
0x17e7   :  { %v5478_v11 = vmul.f32 %v15040_v21, %v5446_v45 }
0x17e9   :  { %v15042_v1 = vpop.eup %15041  ;;  %v5480_v56 = vadd.f32 %v5478_v11, %v5321_v22  ;;  %v20450_v22 = vld [vmem:[#allocation26_spill] sm:$0xff]  ;;  %v20451_v11 = vld [vmem:[#allocation27_spill] sm:$0xff] }
0x17ea   :  { %v5477_v20 = vmul.f32 %v15042_v1, %v5441_v19  ;;  %v15044_v41 = vpop.eup %15043  ;;  %v20449_v19 = vld [vmem:[#allocation25_spill] sm:$0xff]  ;;  %v20452_v1 = vld [vmem:[#allocation28_spill] sm:$0xff] }
0x17eb   :  { %15047 = vtanh.f32 %v5480_v56  ;;  %v5484_v14 = vsub.f32 1.0, %v15044_v41  ;;  %v5488_v31 = vmul.f32 %v15044_v41, %v17384_v62  ;;  %v20453_v56 = vld [vmem:[#allocation29_spill] sm:$0xff] }
0x17ec   :  { %v5479_v47 = vadd.f32 %v5477_v20, %v5316_v18  ;;  %v20444_v18 = vld [vmem:[#allocation20_spill] sm:$0xff]  ;;  %v20454_v41 = vld [vmem:[#allocation37_spill] sm:$0xff] }
0x17ed   :  { %v15046_v49 = vpop.eup %15045 }
0x17ee   :  { %15049 = vtanh.f32 %v5479_v47  ;;  %v5483_v28 = vsub.f32 1.0, %v15046_v49  ;;  %v5487_v21 = vmul.f32 %v15046_v49, %v17388_v40  ;;  %v18004_v40 = vld [vmem:[%s19747_s9 + $0x8] sm:$0xff]  ;;  %v20455_v49 = vld [vmem:[#allocation31_spill] sm:$0xff] }
0x17f5   :  { %v15048_v54 = vpop.eup %15047 }
0x17f6   :  { %v5486_v16 = vmul.f32 %v15048_v54, %v5484_v14  ;;  %v20445_v14 = vld [vmem:[#allocation21_spill] sm:$0xff] }
0x17f8   :  { %v15050_v55 = vpop.eup %15049  ;;  %v17976_v53 = vadd.f32 %v5488_v31, %v5486_v16  ;;  %v20443_v31 = vld [vmem:[#allocation19_spill] sm:$0xff]  ;;  %v20446_v16 = vld [vmem:[#allocation22_spill] sm:$0xff] }
0x17f9   :  { %v5485_v45 = vmul.f32 %v15050_v55, %v5483_v28  ;;  %v18019_v28 = vld [vmem:[%s19747_s9 + $0x18] sm:$0xff] }
0x17fa   :  { %v17981_v46 = vadd.f32 %v17976_v53, %v17176_v6  ;;  %v17997_v6 = vld [vmem:[%s19747_s9] sm:$0xff] }
0x17fb   :  { %v17983_v20 = vadd.f32 %v5487_v21, %v5485_v45  ;;  %13037 = vmatprep.mubr.msk.f32.mxu0 %vm733_vm2, %v17997_v6  ;;  %v20456_v45 = vld [vmem:[#allocation30_spill] sm:$0xff] }
0x17fc   :  { %5494 = vst [vmem:[#allocation8 + $0x58] sm:$0xff] %v17981_v46 }
0x17fd   :  { %v17988_v47 = vadd.f32 %v17983_v20, %v17182_v52 }
0x17ff   :  { %5493 = vst [vmem:[#allocation8 + $0x50] sm:$0xff] %v17988_v47  ;;  %13030 = vmatprep.mubr.f32.mxu1 %v17988_v47 }
0x1800   :  { %13031 = vmatmul.mubr.f32.vlgmr.msra.gmra.mrb[138].mxu1 %v17981_v46 }
0x1801   :  { %6071 = vmatprep.mubr.f32.mxu1 %v17598_v24  ;;  %v18009_v24 = vld [vmem:[%s19747_s9 + $0x10] sm:$0xff] }
0x18d3   :  { %v13032_v55 = vpop.f32.mrb[138].mxu1 }
0x18d4   :  { %v5577_v62 = vpop.f32.mrb[139].mxu1 }
0x18d5   :  { %v14318_v52 = vpack.c.bf16 %v13032_v55, %v5577_v62 }
0x18d7   :  { %14319 = vmatprep.subr.bf16.mxu0 %v14318_v52 }
0x18d8   :  { %14321 = vmatpush3.bf16.msra.mxu0 %v14318_v52 }
0x18d9   :  { %14355 = vmatprep.subr.bf16.mxu0 %v17610_v7 }
0x18db   :  { %13038 = vmatmul.mubr.msk.f32.vlgmr.msra.gmra.mrb[142].mxu0 %vm733_vm2, %v18004_v40 }
0x18dc   :  { %13040 = vmatprep.mubr.msk.f32.mxu0 %vm733_vm2, %v18009_v24  ;;  %14357 = vmatpush3.bf16.msra.mxu0 %v17610_v7  ;;  %v20439_v7 = vld [vmem:[#allocation15_spill] sm:$0xff] }
0x18dd   :  { %14359 = vmatprep.subr.bf16.mxu0 %v17615_v15 }
0x18df   :  { %13041 = vmatmul.mubr.msk.f32.gmra.mrb[144].mxu0 %vm733_vm2, %v18019_v28 }
0x18e0   :  { %13043 = vmatprep.mubr.msk.f32.mxu0 %vm733_vm2, %v17400_v2  ;;  %14361 = vmatpush3.bf16.msra.mxu0 %v17615_v15  ;;  %v20432_v2 = vld [vmem:[#allocation39_spill] sm:$0xff]  ;;  %v20437_v15 = vld [vmem:[#allocation13_spill] sm:$0xff] }
0x18e1   :  { %14363 = vmatprep.subr.bf16.mxu0 %v17626_v4 }
0x18e3   :  { %13044 = vmatmul.mubr.msk.f32.gmra.mrb[146].mxu0 %vm733_vm2, %v17409_v17  ;;  %v20433_v17 = vld [vmem:[#allocation33_spill] sm:$0xff] }
0x18e4   :  { %13046 = vmatprep.mubr.msk.f32.mxu0 %vm733_vm2, %v17414_v25  ;;  %14365 = vmatpush3.bf16.msra.mxu0 %v17626_v4  ;;  %v20434_v25 = vld [vmem:[#allocation41_spill] sm:$0xff]  ;;  %v20440_v4 = vld [vmem:[#allocation16_spill] sm:$0xff] }
0x18e5   :  { %14367 = vmatprep.subr.bf16.mxu0 %v17636_v8 }
0x18e7   :  { %13047 = vmatmul.mubr.msk.f32.gmra.mrb[148].mxu0 %vm733_vm2, %v17423_v44  ;;  %v20435_v44 = vld [vmem:[#allocation12_spill] sm:$0xff] }
0x18e8   :  { %13049 = vmatprep.mubr.msk.f32.mxu0 %vm733_vm2, %v17428_v9  ;;  %14369 = vmatpush3.bf16.msra.mxu0 %v17636_v8  ;;  %v20436_v9 = vld [vmem:[#allocation35_spill] sm:$0xff]  ;;  %v20441_v8 = vld [vmem:[#allocation17_spill] sm:$0xff] }
0x18e9   :  { %14371 = vmatprep.subr.bf16.mxu0 %v17646_v23 }
0x18eb   :  { %13050 = vmatmul.mubr.msk.f32.gmra.mrb[150].mxu0 %vm733_vm2, %v17437_v43  ;;  %v20438_v43 = vld [vmem:[#allocation14_spill] sm:$0xff] }
0x18ec   :  { %13052 = vmatprep.mubr.msk.f32.mxu0 %vm733_vm2, %v20432_v2  ;;  %14373 = vmatpush3.bf16.msra.mxu0 %v17646_v23  ;;  %v20442_v23 = vld [vmem:[#allocation18_spill] sm:$0xff] }
0x18ed   :  { %14375 = vmatprep.subr.bf16.mxu0 %v20433_v17 }
0x18ef   :  { %13053 = vmatmul.mubr.msk.f32.gmra.mrb[152].mxu0 %vm733_vm2, %v20434_v25 }
0x18f0   :  { %13055 = vmatprep.mubr.msk.f32.mxu0 %vm733_vm2, %v20435_v44  ;;  %14377 = vmatpush3.bf16.msra.mxu0 %v20433_v17  ;;  %v20457_v17 = vld [vmem:[#allocation32_spill] sm:$0xff] }
0x18f1   :  { %14379 = vmatprep.subr.bf16.mxu0 %v20436_v9 }
0x18f3   :  { %13056 = vmatmul.mubr.msk.f32.gmra.mrb[154].mxu0 %vm733_vm2, %v20437_v15 }
0x18f4   :  { %13058 = vmatprep.mubr.msk.f32.mxu0 %vm733_vm2, %v20438_v43  ;;  %14381 = vmatpush3.bf16.msra.mxu0 %v20436_v9 }
0x18f5   :  { %14383 = vmatprep.subr.bf16.mxu0 %v17727_v26 }
0x18f7   :  { %13059 = vmatmul.mubr.msk.f32.gmra.mrb[156].mxu0 %vm733_vm2, %v20439_v7  ;;  %v20458_v7 = vld [vmem:[#allocation34_spill] sm:$0xff] }
0x18f8   :  { %13061 = vmatprep.mubr.msk.f32.mxu0 %vm733_vm2, %v20440_v4  ;;  %14385 = vmatpush3.bf16.msra.mxu0 %v17727_v26  ;;  %v20447_v26 = vld [vmem:[#allocation23_spill] sm:$0xff] }
0x18f9   :  { %14395 = vmatprep.subr.bf16.mxu0 %v17835_v32 }
0x18fb   :  { %13062 = vmatmul.mubr.msk.f32.gmra.mrb[158].mxu0 %vm733_vm2, %v20441_v8 }
0x18fc   :  { %13064 = vmatprep.mubr.msk.f32.mxu0 %vm733_vm2, %v20442_v23 }
0x18ff   :  { %13065 = vmatmul.mubr.msk.f32.gmra.mrb[160].mxu0 %vm733_vm2, %v20443_v31 }
0x1900   :  { %13067 = vmatprep.mubr.msk.f32.mxu0 %vm733_vm2, %v20444_v18 }
0x1903   :  { %13068 = vmatmul.mubr.msk.f32.gmra.mrb[162].mxu0 %vm733_vm2, %v20445_v14  ;;  %v20459_v14 = vld [vmem:[#allocation36_spill] sm:$0xff] }
0x1904   :  { %13070 = vmatprep.mubr.msk.f32.mxu0 %vm733_vm2, %v20446_v16 }
0x1907   :  { %13071 = vmatmul.mubr.msk.f32.gmra.mrb[164].mxu0 %vm733_vm2, %v20447_v26 }
0x1908   :  { %13073 = vmatprep.mubr.msk.f32.mxu0 %vm733_vm2, %v20448_v58 }
0x190b   :  { %13074 = vmatmul.mubr.msk.f32.gmra.mrb[166].mxu0 %vm733_vm2, %v20449_v19 }
0x190c   :  { %13076 = vmatprep.mubr.msk.f32.mxu0 %vm733_vm2, %v20450_v22 }
0x190f   :  { %13077 = vmatmul.mubr.msk.f32.gmra.mrb[168].mxu0 %vm733_vm2, %v20451_v11  ;;  %v20460_v11 = vld [vmem:[#allocation38_spill] sm:$0xff] }
0x1910   :  { %13079 = vmatprep.mubr.msk.f32.mxu0 %vm733_vm2, %v20452_v1 }
0x1913   :  { %13080 = vmatmul.mubr.msk.f32.gmra.mrb[170].mxu0 %vm733_vm2, %v20453_v56 }
0x1914   :  { %13082 = vmatprep.mubr.msk.f32.mxu0 %vm733_vm2, %v20454_v41 }
0x1917   :  { %13083 = vmatmul.mubr.msk.f32.gmra.mrb[172].mxu0 %vm733_vm2, %v20455_v49 }
0x19ae   :  { %v13039_v54 = vpop.f32.mrb[142].mxu0 }
0x19af   :  { %v5976_v21 = vmul.f32 %v13039_v54, %v20456_v45  ;;  %v5780_v55 = vpop.f32.mrb[143].mxu0 }
0x19b0   :  { %v5975_v62 = vmul.f32 %v5780_v55, %v20332_v30 }
0x19b2   :  { %v14324_v52 = vpack.c.bf16 %v5976_v21, %v5975_v62  ;;  %v13042_v2 = vpop.f32.mrb[144].mxu0  ;;  %v20461_v21 = vld [vmem:[#allocation40_spill] sm:$0xff] }
0x19b3   :  { %v5978_v25 = vmul.f32 %v13042_v2, %v20457_v17  ;;  %v5790_v44 = vpop.f32.mrb[145].mxu0 }
0x19b4   :  { %v5977_v9 = vmul.f32 %v5790_v44, %v20334_v0 }
0x19b6   :  { %v14328_v15 = vpack.c.bf16 %v5978_v25, %v5977_v9  ;;  %v13045_v43 = vpop.f32.mrb[146].mxu0  ;;  %v20462_v9 = vld [vmem:[#allocation42_spill] sm:$0xff] }
0x19b7   :  { %v5980_v4 = vmul.f32 %v13045_v43, %v20458_v7  ;;  %v5800_v8 = vpop.f32.mrb[147].mxu0 }
0x19b8   :  { %v5979_v23 = vmul.f32 %v5800_v8, %v20336_v36 }
0x19ba   :  { %v14332_v31 = vpack.c.bf16 %v5980_v4, %v5979_v23  ;;  %v13048_v18 = vpop.f32.mrb[148].mxu0 }
0x19bb   :  { %v5982_v16 = vmul.f32 %v13048_v18, %v20459_v14  ;;  %v5810_v26 = vpop.f32.mrb[149].mxu0 }
0x19bc   :  { %v5981_v58 = vmul.f32 %v5810_v26, %v20216_v27 }
0x19be   :  { %v14336_v19 = vpack.c.bf16 %v5982_v16, %v5981_v58  ;;  %v13051_v22 = vpop.f32.mrb[150].mxu0 }
0x19bf   :  { %v5984_v1 = vmul.f32 %v13051_v22, %v20460_v11  ;;  %v5820_v56 = vpop.f32.mrb[151].mxu0 }
0x19c0   :  { %v5983_v41 = vmul.f32 %v5820_v56, %v20275_v60 }
0x19c2   :  { %v14340_v49 = vpack.c.bf16 %v5984_v1, %v5983_v41  ;;  %v13054_v54 = vpop.f32.mrb[152].mxu0 }
0x19c3   :  { %v5986_v55 = vmul.f32 %v13054_v54, %v20461_v21  ;;  %v5830_v62 = vpop.f32.mrb[153].mxu0 }
0x19c4   :  { %v5985_v2 = vmul.f32 %v5830_v62, %v20277_v63 }
0x19c6   :  { %v14344_v25 = vpack.c.bf16 %v5986_v55, %v5985_v2  ;;  %v13057_v44 = vpop.f32.mrb[154].mxu0 }
0x19c7   :  { %v5988_v43 = vmul.f32 %v13057_v44, %v20462_v9  ;;  %v5840_v4 = vpop.f32.mrb[155].mxu0 }
0x19c8   :  { %v5987_v8 = vmul.f32 %v5840_v4, %v20222_v13 }
0x19ca   :  { %v14348_v23 = vpack.c.bf16 %v5988_v43, %v5987_v8  ;;  %v13060_v18 = vpop.f32.mrb[156].mxu0 }
0x19cb   :  { %v5990_v16 = vmul.f32 %v13060_v18, %v20223_v29  ;;  %v5850_v26 = vpop.f32.mrb[157].mxu0 }
0x19cc   :  { %v5989_v58 = vmul.f32 %v5850_v26, %v20224_v5 }
0x19ce   :  { %v14352_v22 = vpack.c.bf16 %v5990_v16, %v5989_v58  ;;  %v13063_v1 = vpop.f32.mrb[158].mxu0 }
0x19cf   :  { %v5992_v56 = vmul.f32 %v13063_v1, %v15984_v3  ;;  %v5860_v41 = vpop.f32.mrb[159].mxu0 }
0x19d0   :  { %v5991_v54 = vmul.f32 %v5860_v41, %v20225_v38 }
0x19d2   :  { %v14322_v55 = vpack.c.bf16 %v5992_v56, %v5991_v54  ;;  %v13066_v62 = vpop.f32.mrb[160].mxu0 }
0x19d3   :  { %v5994_v2 = vmul.f32 %v13066_v62, %v16000_v12  ;;  %v5870_v44 = vpop.f32.mrb[161].mxu0 }
0x19d4   :  { %v5993_v43 = vmul.f32 %v5870_v44, %v16003_v50  ;;  %14323 = vmatprep.subr.bf16.mxu1 %v14322_v55 }
0x19d5   :  { %14325 = vmatpush3.bf16.msra.mxu1 %v14324_v52 }
0x19d6   :  { %v14326_v4 = vpack.c.bf16 %v5994_v2, %v5993_v43  ;;  %v13069_v8 = vpop.f32.mrb[162].mxu0 }
0x19d7   :  { %v5996_v18 = vmul.f32 %v13069_v8, %v16012_v51  ;;  %v5880_v16 = vpop.f32.mrb[163].mxu0 }
0x19d8   :  { %v5995_v26 = vmul.f32 %v5880_v16, %v16015_v48  ;;  %14327 = vmatprep.subr.bf16.mxu1 %v14326_v4 }
0x19d9   :  { %14329 = vmatpush3.bf16.msra.mxu1 %v14328_v15 }
0x19da   :  { %v14330_v58 = vpack.c.bf16 %v5996_v18, %v5995_v26  ;;  %v13072_v1 = vpop.f32.mrb[164].mxu0 }
0x19db   :  { %v5998_v56 = vmul.f32 %v13072_v1, %v16027_v35  ;;  %v5890_v41 = vpop.f32.mrb[165].mxu0 }
0x19dc   :  { %v5997_v54 = vmul.f32 %v5890_v41, %v16030_v34  ;;  %14331 = vmatprep.subr.bf16.mxu1 %v14330_v58 }
0x19dd   :  { %14333 = vmatpush3.bf16.msra.mxu1 %v14332_v31 }
0x19de   :  { %v14334_v55 = vpack.c.bf16 %v5998_v56, %v5997_v54  ;;  %v13075_v52 = vpop.f32.mrb[166].mxu0 }
0x19df   :  { %v6000_v62 = vmul.f32 %v13075_v52, %v16042_v61  ;;  %v5900_v2 = vpop.f32.mrb[167].mxu0 }
0x19e0   :  { %v5999_v44 = vmul.f32 %v5900_v2, %v16045_v33  ;;  %14335 = vmatprep.subr.bf16.mxu1 %v14334_v55  ;;  %v20463_v55 = vld [vmem:[#allocation47_spill] sm:$0xff]  ;;  %v20465_v2 = vld [vmem:[#allocation44_spill] sm:$0xff] }
0x19e1   :  { %14337 = vmatpush3.bf16.msra.mxu1 %v14336_v19 }
0x19e2   :  { %v14338_v43 = vpack.c.bf16 %v6000_v62, %v5999_v44  ;;  %v13078_v15 = vpop.f32.mrb[168].mxu0  ;;  %v20466_v44 = vld [vmem:[#allocation45_spill] sm:$0xff] }
0x19e3   :  { %v6002_v4 = vmul.f32 %v13078_v15, %v16057_v37  ;;  %v5910_v8 = vpop.f32.mrb[169].mxu0 }
0x19e4   :  { %v6001_v18 = vmul.f32 %v5910_v8, %v16060_v59  ;;  %14339 = vmatprep.subr.bf16.mxu1 %v14338_v43  ;;  %v20467_v43 = vld [vmem:[#allocation46_spill] sm:$0xff] }
0x19e5   :  { %14341 = vmatpush3.bf16.msra.mxu1 %v14340_v49  ;;  %v20464_v49 = vld [vmem:[#allocation43_spill] sm:$0xff] }
0x19e6   :  { %v14342_v16 = vpack.c.bf16 %v6002_v4, %v6001_v18  ;;  %v13081_v31 = vpop.f32.mrb[170].mxu0 }
0x19e7   :  { %v6004_v26 = vmul.f32 %v13081_v31, %v16072_v42  ;;  %v5920_v58 = vpop.f32.mrb[171].mxu0  ;;  %v20470_v31 = vld [vmem:[#allocation59_spill] sm:$0xff] }
0x19e8   :  { %v6003_v1 = vmul.f32 %v5920_v58, %v16075_v57  ;;  %14343 = vmatprep.subr.bf16.mxu1 %v14342_v16  ;;  %v20472_v58 = vld [vmem:[#allocation54_spill] sm:$0xff] }
0x19e9   :  { %14345 = vmatpush3.bf16.msra.mxu1 %v14344_v25 }
0x19ea   :  { %v14346_v56 = vpack.c.bf16 %v6004_v26, %v6003_v1  ;;  %v13084_v19 = vpop.f32.mrb[172].mxu0  ;;  %v20471_v26 = vld [vmem:[#allocation53_spill] sm:$0xff]  ;;  %v20474_v1 = vld [vmem:[#allocation55_spill] sm:$0xff] }
0x19eb   :  { %v6006_v41 = vmul.f32 %v13084_v19, %v16087_v39  ;;  %v5930_v54 = vpop.f32.mrb[173].mxu0  ;;  %v20475_v19 = vld [vmem:[#allocation61_spill] sm:$0xff] }
0x19ec   :  { %v6005_v52 = vmul.f32 %v5930_v54, %v20463_v55  ;;  %14347 = vmatprep.subr.bf16.mxu1 %v14346_v56 }
0x19ed   :  { %14349 = vmatpush3.bf16.msra.mxu1 %v14348_v23  ;;  %v20468_v23 = vld [vmem:[#allocation51_spill] sm:$0xff] }
0x19ee   :  { %v14350_v62 = vpack.c.bf16 %v6006_v41, %v6005_v52  ;;  %v20476_v52 = vld [vmem:[#allocation62_spill] sm:$0xff] }
0x19f0   :  { %14351 = vmatprep.subr.bf16.mxu1 %v14350_v62 }
0x19f1   :  { %14353 = vmatpush3.bf16.msra.mxu1 %v14352_v22  ;;  %v20469_v22 = vld [vmem:[#allocation52_spill] sm:$0xff] }
0x19f4   :  { %6072 = vmatmul.mubr.f32.vlgmr.msra.gmra.mrb[140].mxu1 %v20464_v49 }
0x19f5   :  { %6076 = vmatprep.mubr.f32.mxu1 %v20465_v2  ;;  %v14390_v2 = vpack.c.bf16 %v17981_v46, %v17988_v47 }
0x19f8   :  { %6077 = vmatmul.mubr.f32.gmra.mrb[142].mxu1 %v20466_v44  ;;  %v20477_v44 = vld [vmem:[#allocation63_spill] sm:$0xff] }
0x19f9   :  { %13124 = vmatprep.mubr.msk.f32.mxu1 %vm733_vm2, %v20467_v43  ;;  %v20478_v43 = vld [vmem:[#allocation64_spill] sm:$0xff] }
0x1ac7   :  { %v11658_v25 = vpop.f32.mrb[140].mxu1 }
0x1ac8   :  { %v11659_v15 = vpop.f32.mrb[141].mxu1 }
0x1ac9   :  { %v11660_v4 = vadd.f32 %v11659_v15, %v11658_v25  ;;  %v20479_v25 = vld [vmem:[#allocation65_spill] sm:$0xff]  ;;  %v20480_v15 = vld [vmem:[#allocation66_spill] sm:$0xff] }
0x1acb   :  { %v11661_v8 = vpop.f32.mrb[142].mxu1  ;;  %13117 = vmatprep.mubr.f32.mxu0 %v11660_v4  ;;  %v20481_v4 = vld [vmem:[#allocation70_spill] sm:$0xff] }
0x1acc   :  { %v11662_v18 = vpop.f32.mrb[143].mxu1 }
0x1acd   :  { %v11663_v16 = vadd.f32 %v11662_v18, %v11661_v8  ;;  %v20482_v8 = vld [vmem:[#allocation56_spill] sm:$0xff]  ;;  %v20483_v18 = vld [vmem:[#allocation57_spill] sm:$0xff] }
0x1acf   :  { %13118 = vmatmul.mubr.f32.vlgmr.msra.gmra.mrb[174].mxu0 %v11663_v16  ;;  %v20484_v16 = vld [vmem:[#allocation48_spill] sm:$0xff] }
0x1ad0   :  { %14397 = vmatpush3.bf16.msra.mxu0 %v17835_v32  ;;  %v20473_v32 = vld [vmem:[#allocation60_spill] sm:$0xff] }
0x1ad1   :  { %14399 = vmatprep.subr.bf16.mxu0 %v20468_v23 }
0x1ad4   :  { %14401 = vmatpush3.bf16.msra.mxu0 %v20468_v23  ;;  %v20485_v23 = vld [vmem:[#allocation49_spill] sm:$0xff] }
0x1ad5   :  { %14403 = vmatprep.subr.bf16.mxu0 %v20469_v22 }
0x1ad8   :  { %14405 = vmatpush3.bf16.msra.mxu0 %v20469_v22  ;;  %v20486_v22 = vld [vmem:[#allocation50_spill] sm:$0xff] }
0x1ad9   :  { %14407 = vmatprep.subr.bf16.mxu0 %v20470_v31 }
0x1adc   :  { %14409 = vmatpush3.bf16.msra.mxu0 %v20470_v31  ;;  %v20487_v31 = vld [vmem:[#allocation58_spill] sm:$0xff] }
0x1add   :  { %14411 = vmatprep.subr.bf16.mxu0 %v20471_v26 }
0x1ae0   :  { %14413 = vmatpush3.bf16.msra.mxu0 %v20471_v26 }
0x1ae1   :  { %14415 = vmatprep.subr.bf16.mxu0 %v20472_v58 }
0x1ae4   :  { %14417 = vmatpush3.bf16.msra.mxu0 %v20472_v58 }
0x1ae5   :  { %14419 = vmatprep.subr.bf16.mxu0 %v20473_v32 }
0x1ae8   :  { %14421 = vmatpush3.bf16.msra.mxu0 %v20473_v32 }
0x1ae9   :  { %14423 = vmatprep.subr.bf16.mxu0 %v20474_v1 }
0x1aec   :  { %14425 = vmatpush3.bf16.msra.mxu0 %v20474_v1  ;;  %v20488_v1 = vld [vmem:[#allocation67_spill] sm:$0xff] }
0x1ba2   :  { %v13119_v56 = vpop.f32.mrb[174].mxu0 }
0x1ba3   :  { %v6176_v41 = vmul.f32 %v13119_v56, %v20475_v19  ;;  %v6164_v54 = vpop.f32.mrb[175].mxu0 }
0x1ba4   :  { %v6175_v62 = vmul.f32 %v6164_v54, %v20476_v52 }
0x1ba6   :  { %v14386_v49 = vpack.c.bf16 %v6176_v41, %v6175_v62  ;;  %v20489_v41 = vld [vmem:[#allocation68_spill] sm:$0xff]  ;;  %v20490_v62 = vld [vmem:[#allocation71_spill] sm:$0xff] }
0x1ba8   :  { %14387 = vmatprep.subr.bf16.mxu1 %v14386_v49 }
0x1ba9   :  { %14389 = vmatpush3.bf16.msra.mxu1 %v14386_v49 }
0x1baa   :  { %14391 = vmatprep.subr.bf16.mxu1 %v14390_v2 }
0x1bac   :  { %13125 = vmatmul.mubr.msk.f32.vlgmr.msra.gmra.mrb[144].mxu1 %vm733_vm2, %v20477_v44  ;;  %v20491_v44 = vld [vmem:[#allocation72_spill] sm:$0xff] }
0x1bad   :  { %14393 = vmatpush3.bf16.msra.mxu1 %v14390_v2  ;;  %13127 = vmatprep.mubr.msk.f32.mxu1 %vm733_vm2, %v20478_v43 }
0x1bb0   :  { %13128 = vmatmul.mubr.msk.f32.gmra.mrb[146].mxu1 %vm733_vm2, %v20479_v25 }
0x1bb1   :  { %13130 = vmatprep.mubr.msk.f32.mxu1 %vm733_vm2, %v20480_v15 }
0x1bb4   :  { %13131 = vmatmul.mubr.msk.f32.gmra.mrb[148].mxu1 %vm733_vm2, %v20481_v4  ;;  %v20492_v4 = vld [vmem:[#allocation69_spill] sm:$0xff] }
0x1bb5   :  { %13137 = vmatprep.mubr.msk.f32.mxu1 %vm733_vm2, %v20482_v8 }
0x1bb8   :  { %13138 = vmatmul.mubr.msk.f32.vlgmr.msra.gmra.mrb[144].mxu1 %vm733_vm2, %v20483_v18  ;;  %v20493_v18 = vld [vmem:[#allocation73_spill] sm:$0xff] }
0x1bb9   :  { %13140 = vmatprep.mubr.msk.f32.mxu1 %vm733_vm2, %v20484_v16 }
0x1bbc   :  { %13141 = vmatmul.mubr.msk.f32.gmra.mrb[146].mxu1 %vm733_vm2, %v20485_v23 }
0x1bbd   :  { %13143 = vmatprep.mubr.msk.f32.mxu1 %vm733_vm2, %v20486_v22 }
0x1bc0   :  { %13144 = vmatmul.mubr.msk.f32.gmra.mrb[150].mxu1 %vm733_vm2, %v20487_v31 }
0x1bc1   :  { %13185 = vmatprep.mubr.msk.f32.mxu1 %vm733_vm2, %v17997_v6 }
0x1c87   :  { %v13132_v26 = vpop.f32.mrb[148].mxu1 }
0x1c88   :  { %v6293_v58 = vpop.f32.mrb[149].mxu1 }
0x1c8b   :  { %v13139_v32 = vpop.f32.mrb[144].mxu1 }
0x1c8c   :  { %v14871_v56 = vadd.f32 %v20488_v1, %v13139_v32  ;;  %v6398_v19 = vpop.f32.mrb[145].mxu1 }
0x1c8d   :  { %v14872_v54 = vadd.f32 %v6398_v19, %v20489_v41 }
0x1c8e   :  { %v10718_v52 = vmul.f32 -1.442695, %v14871_v56 }
0x1c8f   :  { %v14873_v49 = vadd.f32 %v14872_v54, %v20490_v62  ;;  %v13142_v2 = vpop.f32.mrb[146].mxu1  ;;  %v20494_v62 = vld [vmem:[#allocation74_spill] sm:$0xff] }
0x1c90   :  { %15051 = vpow2.f32 %v10718_v52  ;;  %v14875_v43 = vadd.f32 %v20491_v44, %v13142_v2  ;;  %v6408_v25 = vpop.f32.mrb[147].mxu1 }
0x1c91   :  { %v10717_v15 = vmul.f32 -1.442695, %v14873_v49  ;;  %v14876_v8 = vadd.f32 %v6408_v25, %v20492_v4 }
0x1c92   :  { %v10720_v6 = vmul.f32 -1.442695, %v14875_v43  ;;  %v20495_v43 = vld [vmem:[#allocation75_spill] sm:$0xff] }
0x1c93   :  { %15053 = vpow2.f32 %v10717_v15  ;;  %v14877_v16 = vadd.f32 %v14876_v8, %v20493_v18  ;;  %v13145_v23 = vpop.f32.mrb[150].mxu1  ;;  %v20496_v15 = vld [vmem:[#allocation76_spill] sm:$0xff] }
0x1c94   :  { %v6418_v22 = vpop.f32.mrb[151].mxu1  ;;  %15055 = vpow2.f32 %v10720_v6  ;;  %v6424_v49 = vadd.f32 %v13145_v23, %v20494_v62  ;;  %v6299_v4 = vadd.f32 %v13132_v26, %v20496_v15  ;;  %v18253_v15 = vld [vmem:[%s19747_s9 + $0x58] sm:$0xff] }
0x1c95   :  { %v10719_v31 = vmul.f32 -1.442695, %v14877_v16  ;;  %v6419_v25 = vadd.f32 %v6418_v22, %v20495_v43  ;;  %v6294_v16 = vadd.f32 %v6293_v58, %v17972_v10  ;;  %v18239_v43 = vld [vmem:[%s19747_s9 + $0x48] sm:$0xff]  ;;  %20498 = vst [vmem:[#allocation33_spill] sm:$0xff] %v18253_v15 }
0x1c97   :  { %15057 = vpow2.f32 %v10719_v31 }
0x1c9a   :  { %v15052_v32 = vpop.eup %15051 }
0x1c9b   :  { %v6436_v1 = vadd.f32 1.0, %v15052_v32 }
0x1c9d   :  { %v15054_v56 = vpop.eup %15053  ;;  %15059 = vrcp.f32 %v6436_v1 }
0x1c9e   :  { %v6435_v19 = vadd.f32 1.0, %v15054_v56  ;;  %v15056_v41 = vpop.eup %15055 }
0x1c9f   :  { %v6450_v52 = vadd.f32 1.0, %v15056_v41 }
0x1ca0   :  { %15061 = vrcp.f32 %v6435_v19 }
0x1ca1   :  { %v15058_v54 = vpop.eup %15057  ;;  %15063 = vrcp.f32 %v6450_v52 }
0x1ca2   :  { %v6449_v44 = vadd.f32 1.0, %v15058_v54 }
0x1ca4   :  { %15065 = vrcp.f32 %v6449_v44  ;;  %v18211_v44 = vld [vmem:[%s19747_s9 + $0x28] sm:$0xff] }
0x1ca7   :  { %v15060_v2 = vpop.eup %15059 }
0x1ca8   :  { %v6456_v8 = vmul.f32 %v15060_v2, %v6424_v49 }
0x1caa   :  { %v15062_v6 = vpop.eup %15061  ;;  %v6458_v18 = vadd.f32 %v6456_v8, %v6299_v4  ;;  %v18258_v4 = vld [vmem:[%s19747_s9 + $0x60] sm:$0xff]  ;;  %v18267_v8 = vld [vmem:[%s19747_s9 + $0x68] sm:$0xff] }
0x1cab   :  { %v6455_v31 = vmul.f32 %v15062_v6, %v6419_v25  ;;  %v15064_v1 = vpop.eup %15063  ;;  %v18244_v25 = vld [vmem:[%s19747_s9 + $0x50] sm:$0xff]  ;;  %20499 = vst [vmem:[#allocation41_spill] sm:$0xff] %v18258_v4  ;;  %20500 = vst [vmem:[#allocation12_spill] sm:$0xff] %v18267_v8 }
0x1cac   :  { %15067 = vtanh.f32 %v6458_v18  ;;  %v6462_v23 = vsub.f32 1.0, %v15064_v1  ;;  %v6466_v22 = vmul.f32 %v15064_v1, %v17981_v46  ;;  %20497 = vst [vmem:[#allocation39_spill] sm:$0xff] %v18244_v25  ;;  %v18272_v6 = vld [vmem:[%s19747_s9 + $0x70] sm:$0xff]  ;;  %v18281_v18 = vld [vmem:[%s19747_s9 + $0x78] sm:$0xff] }
0x1cad   :  { %v6457_v32 = vadd.f32 %v6455_v31, %v6294_v16  ;;  %20501 = vst [vmem:[#allocation35_spill] sm:$0xff] %v18272_v6  ;;  %20502 = vst [vmem:[#allocation13_spill] sm:$0xff] %v18281_v18  ;;  %v18286_v16 = vld [vmem:[%s19747_s9 + $0x80] sm:$0xff]  ;;  %v18295_v31 = vld [vmem:[%s19747_s9 + $0x88] sm:$0xff] }
0x1cae   :  { %v15066_v56 = vpop.eup %15065  ;;  %20503 = vst [vmem:[#allocation14_spill] sm:$0xff] %v18286_v16  ;;  %20504 = vst [vmem:[#allocation15_spill] sm:$0xff] %v18295_v31  ;;  %v18309_v1 = vld [vmem:[%s19747_s9 + $0x98] sm:$0xff] }
0x1caf   :  { %15069 = vtanh.f32 %v6457_v32  ;;  %v6461_v54 = vsub.f32 1.0, %v15066_v56  ;;  %v6465_v49 = vmul.f32 %v15066_v56, %v17988_v47  ;;  %v18202_v47 = vld [vmem:[%s19747_s9 + $0x20] sm:$0xff]  ;;  %v18300_v32 = vld [vmem:[%s19747_s9 + $0x90] sm:$0xff]  ;;  %20506 = vst [vmem:[#allocation17_spill] sm:$0xff] %v18309_v1 }
0x1cb0   :  { %20505 = vst [vmem:[#allocation16_spill] sm:$0xff] %v18300_v32  ;;  %v18314_v56 = vld [vmem:[%s19747_s9 + $0xa0] sm:$0xff] }
0x1cb1   :  { %20507 = vst [vmem:[#allocation18_spill] sm:$0xff] %v18314_v56 }
0x1cb6   :  { %v15068_v19 = vpop.eup %15067 }
0x1cb7   :  { %v6464_v41 = vmul.f32 %v15068_v19, %v6462_v23  ;;  %v18323_v23 = vld [vmem:[%s19747_s9 + $0xa8] sm:$0xff]  ;;  %v18328_v19 = vld [vmem:[%s19747_s9 + $0xb0] sm:$0xff] }
0x1cb8   :  { %20508 = vst [vmem:[#allocation19_spill] sm:$0xff] %v18323_v23  ;;  %20509 = vst [vmem:[#allocation20_spill] sm:$0xff] %v18328_v19 }
0x1cb9   :  { %v15070_v26 = vpop.eup %15069  ;;  %v18186_v52 = vadd.f32 %v6466_v22, %v6464_v41  ;;  %v18337_v41 = vld [vmem:[%s19747_s9 + $0xb8] sm:$0xff]  ;;  %v18342_v22 = vld [vmem:[%s19747_s9 + $0xc0] sm:$0xff] }
0x1cba   :  { %v6463_v62 = vmul.f32 %v15070_v26, %v6461_v54  ;;  %20510 = vst [vmem:[#allocation21_spill] sm:$0xff] %v18337_v41  ;;  %20511 = vst [vmem:[#allocation22_spill] sm:$0xff] %v18342_v22  ;;  %v18351_v54 = vld [vmem:[%s19747_s9 + $0xc8] sm:$0xff]  ;;  %v18356_v26 = vld [vmem:[%s19747_s9 + $0xd0] sm:$0xff] }
0x1cbb   :  { %6470 = vst [vmem:[#allocation8 + $0x68] sm:$0xff] %v18186_v52  ;;  %20512 = vst [vmem:[#allocation23_spill] sm:$0xff] %v18351_v54 }
0x1cbc   :  { %v18190_v10 = vadd.f32 %v6465_v49, %v6463_v62  ;;  %20513 = vst [vmem:[#allocation24_spill] sm:$0xff] %v18356_v26  ;;  %v18365_v62 = vld [vmem:[%s19747_s9 + $0xd8] sm:$0xff]  ;;  %v18370_v49 = vld [vmem:[%s19747_s9 + $0xe0] sm:$0xff] }
0x1cbd   :  { %20514 = vst [vmem:[#allocation25_spill] sm:$0xff] %v18365_v62  ;;  %20515 = vst [vmem:[#allocation26_spill] sm:$0xff] %v18370_v49 }
0x1cbe   :  { %6469 = vst [vmem:[#allocation8 + $0x60] sm:$0xff] %v18190_v10  ;;  %13178 = vmatprep.mubr.f32.mxu0 %v18190_v10 }
0x1cbf   :  { %13179 = vmatmul.mubr.f32.vlgmr.msra.gmra.mrb[176].mxu0 %v18186_v52 }
0x1d92   :  { %v13180_v58 = vpop.f32.mrb[176].mxu0 }
0x1d93   :  { %v6553_v2 = vpop.f32.mrb[177].mxu0 }
0x1d94   :  { %v14426_v46 = vpack.c.bf16 %v13180_v58, %v6553_v2  ;;  %v18379_v58 = vld [vmem:[%s19747_s9 + $0xe8] sm:$0xff]  ;;  %v18384_v2 = vld [vmem:[%s19747_s9 + $0xf0] sm:$0xff] }
0x1d95   :  { %20516 = vst [vmem:[#allocation27_spill] sm:$0xff] %v18379_v58  ;;  %20517 = vst [vmem:[#allocation28_spill] sm:$0xff] %v18384_v2 }
0x1d96   :  { %14427 = vmatprep.subr.bf16.mxu1 %v14426_v46 }
0x1d97   :  { %14429 = vmatpush3.bf16.msra.mxu1 %v14426_v46  ;;  %v18393_v46 = vld [vmem:[%s19747_s9 + $0xf8] sm:$0xff] }
0x1d98   :  { %20518 = vst [vmem:[#allocation29_spill] sm:$0xff] %v18393_v46 }
0x1d9a   :  { %13186 = vmatmul.mubr.msk.f32.vlgmr.msra.gmra.mrb[152].mxu1 %vm733_vm2, %v18004_v40  ;;  %v18216_v40 = vld [vmem:[%s19747_s9 + $0x30] sm:$0xff] }
0x1d9b   :  { %13188 = vmatprep.mubr.msk.f32.mxu1 %vm733_vm2, %v18009_v24  ;;  %v18225_v24 = vld [vmem:[%s19747_s9 + $0x38] sm:$0xff] }
0x1d9e   :  { %13189 = vmatmul.mubr.msk.f32.gmra.mrb[154].mxu1 %vm733_vm2, %v18019_v28  ;;  %v18230_v28 = vld [vmem:[%s19747_s9 + $0x40] sm:$0xff] }
0x1d9f   :  { %13191 = vmatprep.mubr.msk.f32.mxu1 %vm733_vm2, %v18202_v47 }
0x1da2   :  { %13192 = vmatmul.mubr.msk.f32.gmra.mrb[156].mxu1 %vm733_vm2, %v18211_v44 }
0x1da3   :  { %13194 = vmatprep.mubr.msk.f32.mxu1 %vm733_vm2, %v18216_v40 }
0x1da6   :  { %13195 = vmatmul.mubr.msk.f32.gmra.mrb[158].mxu1 %vm733_vm2, %v18225_v24 }
0x1da7   :  { %13197 = vmatprep.mubr.msk.f32.mxu1 %vm733_vm2, %v18230_v28 }
0x1daa   :  { %13198 = vmatmul.mubr.msk.f32.gmra.mrb[160].mxu1 %vm733_vm2, %v18239_v43 }
0x1dab   :  { %13200 = vmatprep.mubr.msk.f32.mxu1 %vm733_vm2, %v18244_v25 }
0x1dae   :  { %13201 = vmatmul.mubr.msk.f32.gmra.mrb[162].mxu1 %vm733_vm2, %v18253_v15 }
0x1daf   :  { %13203 = vmatprep.mubr.msk.f32.mxu1 %vm733_vm2, %v18258_v4 }
0x1db2   :  { %13204 = vmatmul.mubr.msk.f32.gmra.mrb[164].mxu1 %vm733_vm2, %v18267_v8 }
0x1db3   :  { %13206 = vmatprep.mubr.msk.f32.mxu1 %vm733_vm2, %v18272_v6 }
0x1db6   :  { %13207 = vmatmul.mubr.msk.f32.gmra.mrb[166].mxu1 %vm733_vm2, %v18281_v18 }
0x1db7   :  { %13209 = vmatprep.mubr.msk.f32.mxu1 %vm733_vm2, %v18286_v16 }
0x1dba   :  { %13210 = vmatmul.mubr.msk.f32.gmra.mrb[168].mxu1 %vm733_vm2, %v18295_v31 }
0x1dbb   :  { %13212 = vmatprep.mubr.msk.f32.mxu1 %vm733_vm2, %v18300_v32 }
0x1dbe   :  { %13213 = vmatmul.mubr.msk.f32.gmra.mrb[170].mxu1 %vm733_vm2, %v18309_v1 }
0x1dbf   :  { %13215 = vmatprep.mubr.msk.f32.mxu1 %vm733_vm2, %v18314_v56  ;;  %v7070_v56 = vld [vmem:[%s19740_s2 + $0x60] sm:$0xff] }
0x1dc2   :  { %13216 = vmatmul.mubr.msk.f32.gmra.mrb[172].mxu1 %vm733_vm2, %v18323_v23  ;;  %v7068_v23 = vld [vmem:[%s19740_s2 + $0x50] sm:$0xff] }
0x1dc3   :  { %13218 = vmatprep.mubr.msk.f32.mxu1 %vm733_vm2, %v18328_v19  ;;  %v7066_v19 = vld [vmem:[%s19740_s2 + $0x40] sm:$0xff] }
0x1dc6   :  { %13219 = vmatmul.mubr.msk.f32.gmra.mrb[174].mxu1 %vm733_vm2, %v18337_v41  ;;  %v7063_v41 = vld [vmem:[%s19740_s2 + $0x28] sm:$0xff] }
0x1dc7   :  { %13221 = vmatprep.mubr.msk.f32.mxu1 %vm733_vm2, %v18342_v22  ;;  %v7062_v22 = vld [vmem:[%s19740_s2 + $0x20] sm:$0xff] }
0x1dca   :  { %13222 = vmatmul.mubr.msk.f32.gmra.mrb[176].mxu1 %vm733_vm2, %v18351_v54 }
0x1dcb   :  { %13224 = vmatprep.mubr.msk.f32.mxu1 %vm733_vm2, %v18356_v26  ;;  %v7061_v26 = vld [vmem:[%s19740_s2 + $0x18] sm:$0xff] }
0x1dce   :  { %13225 = vmatmul.mubr.msk.f32.gmra.mrb[178].mxu1 %vm733_vm2, %v18365_v62  ;;  %v7060_v62 = vld [vmem:[%s19740_s2 + $0x10] sm:$0xff] }
0x1dcf   :  { %13227 = vmatprep.mubr.msk.f32.mxu1 %vm733_vm2, %v18370_v49  ;;  %v18400_v49 = vld [vmem:[%s19748_s10 + $0x8] sm:$0xff]  ;;  %v18417_v54 = vpack.c.bf16 %v7061_v26, %v7060_v62  ;;  %v7064_v26 = vld [vmem:[%s19740_s2 + $0x30] sm:$0xff]  ;;  %v7065_v62 = vld [vmem:[%s19740_s2 + $0x38] sm:$0xff] }
0x1dd0   :  { %7047 = vmatprep.mubr.f32.mxu0 %v18400_v49 }
0x1dd2   :  { %13228 = vmatmul.mubr.msk.f32.gmra.mrb[180].mxu1 %vm733_vm2, %v18379_v58  ;;  %v7058_v58 = vld [vmem:[%s19740_s2] sm:$0xff] }
0x1dd3   :  { %13230 = vmatprep.mubr.msk.f32.mxu1 %vm733_vm2, %v18384_v2  ;;  %v7059_v2 = vld [vmem:[%s19740_s2 + $0x8] sm:$0xff] }
0x1dd6   :  { %13231 = vmatmul.mubr.msk.f32.gmra.mrb[182].mxu1 %vm733_vm2, %v18393_v46  ;;  %v18412_v46 = vpack.c.bf16 %v7059_v2, %v7058_v58  ;;  %v18428_v58 = vpack.c.bf16 %v7063_v41, %v7062_v22  ;;  %v18438_v2 = vpack.c.bf16 %v7065_v62, %v7064_v26  ;;  %v7067_v41 = vld [vmem:[%s19740_s2 + $0x48] sm:$0xff]  ;;  %v7069_v26 = vld [vmem:[%s19740_s2 + $0x58] sm:$0xff] }
0x1dd7   :  { %v18448_v22 = vpack.c.bf16 %v7067_v41, %v7066_v19  ;;  %v18458_v62 = vpack.c.bf16 %v7069_v26, %v7068_v23  ;;  %v7071_v19 = vld [vmem:[%s19740_s2 + $0x68] sm:$0xff] }
0x1dd8   :  { %14463 = vmatprep.subr.bf16.mxu1 %v18412_v46  ;;  %v18468_v41 = vpack.c.bf16 %v7071_v19, %v7070_v56 }
0x1dd9   :  { %14465 = vmatpush3.bf16.msra.mxu1 %v18412_v46  ;;  %20519 = vst [vmem:[#allocation37_spill] sm:$0xff] %v18458_v62 }
0x1dda   :  { %14467 = vmatprep.subr.bf16.mxu1 %v18417_v54  ;;  %20520 = vst [vmem:[#allocation31_spill] sm:$0xff] %v18468_v41 }
0x1ddd   :  { %14469 = vmatpush3.bf16.msra.mxu1 %v18417_v54 }
0x1dde   :  { %14471 = vmatprep.subr.bf16.mxu1 %v18428_v58 }
0x1de1   :  { %14473 = vmatpush3.bf16.msra.mxu1 %v18428_v58 }
0x1de2   :  { %14475 = vmatprep.subr.bf16.mxu1 %v18438_v2 }
0x1de5   :  { %14477 = vmatpush3.bf16.msra.mxu1 %v18438_v2 }
0x1de6   :  { %14479 = vmatprep.subr.bf16.mxu1 %v18448_v22 }
0x1de9   :  { %14481 = vmatpush3.bf16.msra.mxu1 %v18448_v22 }
0x1dea   :  { %14483 = vmatprep.subr.bf16.mxu1 %v18458_v62 }
0x1ded   :  { %14485 = vmatpush3.bf16.msra.mxu1 %v18458_v62 }
0x1dee   :  { %14487 = vmatprep.subr.bf16.mxu1 %v18468_v41 }
0x1df1   :  { %14489 = vmatpush3.bf16.msra.mxu1 %v18468_v41 }
0x1e6d   :  { %v13187_v23 = vpop.f32.mrb[152].mxu1 }
0x1e6e   :  { %v6952_v26 = vmul.f32 %v13187_v23, %v20456_v45  ;;  %v6756_v1 = vpop.f32.mrb[153].mxu1 }
0x1e6f   :  { %v6951_v32 = vmul.f32 %v6756_v1, %v20332_v30 }
0x1e71   :  { %v14432_v31 = vpack.c.bf16 %v6952_v26, %v6951_v32  ;;  %v13190_v16 = vpop.f32.mrb[154].mxu1 }
0x1e72   :  { %v6954_v18 = vmul.f32 %v13190_v16, %v20457_v17  ;;  %v6766_v6 = vpop.f32.mrb[155].mxu1 }
0x1e73   :  { %v6953_v56 = vmul.f32 %v6766_v6, %v20334_v0 }
0x1e75   :  { %v14436_v19 = vpack.c.bf16 %v6954_v18, %v6953_v56  ;;  %v13193_v8 = vpop.f32.mrb[156].mxu1 }
0x1e76   :  { %v6956_v4 = vmul.f32 %v13193_v8, %v20458_v7  ;;  %v6776_v15 = vpop.f32.mrb[157].mxu1 }
0x1e77   :  { %v6955_v41 = vmul.f32 %v6776_v15, %v20336_v36 }
0x1e79   :  { %v14440_v62 = vpack.c.bf16 %v6956_v4, %v6955_v41  ;;  %v13196_v25 = vpop.f32.mrb[158].mxu1 }
0x1e7a   :  { %v6958_v23 = vmul.f32 %v13196_v25, %v20459_v14  ;;  %v6786_v45 = vpop.f32.mrb[159].mxu1 }
0x1e7b   :  { %v6957_v32 = vmul.f32 %v6786_v45, %v20216_v27 }
0x1e7d   :  { %v14444_v1 = vpack.c.bf16 %v6958_v23, %v6957_v32  ;;  %v13199_v26 = vpop.f32.mrb[160].mxu1 }
0x1e7e   :  { %v6960_v16 = vmul.f32 %v13199_v26, %v20460_v11  ;;  %v6796_v17 = vpop.f32.mrb[161].mxu1 }
0x1e7f   :  { %v6959_v6 = vmul.f32 %v6796_v17, %v20275_v60 }
0x1e81   :  { %v14448_v18 = vpack.c.bf16 %v6960_v16, %v6959_v6  ;;  %v13202_v56 = vpop.f32.mrb[162].mxu1 }
0x1e82   :  { %v6962_v8 = vmul.f32 %v13202_v56, %v20461_v21  ;;  %v6806_v7 = vpop.f32.mrb[163].mxu1 }
0x1e83   :  { %v6961_v15 = vmul.f32 %v6806_v7, %v20277_v63 }
0x1e85   :  { %v14452_v4 = vpack.c.bf16 %v6962_v8, %v6961_v15  ;;  %v13205_v41 = vpop.f32.mrb[164].mxu1 }
0x1e86   :  { %v6964_v25 = vmul.f32 %v13205_v41, %v20462_v9  ;;  %v6816_v14 = vpop.f32.mrb[165].mxu1 }
0x1e87   :  { %v6963_v45 = vmul.f32 %v6816_v14, %v20222_v13 }
0x1e89   :  { %v14456_v23 = vpack.c.bf16 %v6964_v25, %v6963_v45  ;;  %v13208_v32 = vpop.f32.mrb[166].mxu1 }
0x1e8a   :  { %v6966_v26 = vmul.f32 %v13208_v32, %v20223_v29  ;;  %v6826_v11 = vpop.f32.mrb[167].mxu1 }
0x1e8b   :  { %v6965_v17 = vmul.f32 %v6826_v11, %v20224_v5 }
0x1e8d   :  { %v14460_v16 = vpack.c.bf16 %v6966_v26, %v6965_v17  ;;  %v13211_v6 = vpop.f32.mrb[168].mxu1 }
0x1e8e   :  { %v6968_v56 = vmul.f32 %v13211_v6, %v15984_v3  ;;  %v6836_v21 = vpop.f32.mrb[169].mxu1 }
0x1e8f   :  { %v6967_v7 = vmul.f32 %v6836_v21, %v20225_v38 }
0x1e91   :  { %v14430_v8 = vpack.c.bf16 %v6968_v56, %v6967_v7  ;;  %v13214_v15 = vpop.f32.mrb[170].mxu1 }
0x1e92   :  { %v6970_v41 = vmul.f32 %v13214_v15, %v16000_v12  ;;  %v6846_v9 = vpop.f32.mrb[171].mxu1 }
0x1e93   :  { %v6969_v14 = vmul.f32 %v6846_v9, %v16003_v50  ;;  %14431 = vmatprep.subr.bf16.mxu0 %v14430_v8 }
0x1e94   :  { %14433 = vmatpush3.bf16.msra.mxu0 %v14432_v31 }
0x1e95   :  { %v14434_v25 = vpack.c.bf16 %v6970_v41, %v6969_v14  ;;  %v13217_v45 = vpop.f32.mrb[172].mxu1 }
0x1e96   :  { %v6972_v11 = vmul.f32 %v13217_v45, %v16012_v51  ;;  %v6856_v32 = vpop.f32.mrb[173].mxu1 }
0x1e97   :  { %v6971_v26 = vmul.f32 %v6856_v32, %v16015_v48  ;;  %14435 = vmatprep.subr.bf16.mxu0 %v14434_v25 }
0x1e98   :  { %14437 = vmatpush3.bf16.msra.mxu0 %v14436_v19 }
0x1e99   :  { %v14438_v17 = vpack.c.bf16 %v6972_v11, %v6971_v26  ;;  %v13220_v21 = vpop.f32.mrb[174].mxu1 }
0x1e9a   :  { %v6974_v6 = vmul.f32 %v13220_v21, %v16027_v35  ;;  %v6866_v56 = vpop.f32.mrb[175].mxu1 }
0x1e9b   :  { %v6973_v7 = vmul.f32 %v6866_v56, %v16030_v34  ;;  %14439 = vmatprep.subr.bf16.mxu0 %v14438_v17 }
0x1e9c   :  { %14441 = vmatpush3.bf16.msra.mxu0 %v14440_v62 }
0x1e9d   :  { %v14442_v9 = vpack.c.bf16 %v6974_v6, %v6973_v7  ;;  %v13223_v31 = vpop.f32.mrb[176].mxu1 }
0x1e9e   :  { %v6976_v8 = vmul.f32 %v13223_v31, %v16042_v61  ;;  %v6876_v15 = vpop.f32.mrb[177].mxu1 }
0x1e9f   :  { %v6975_v41 = vmul.f32 %v6876_v15, %v16045_v33  ;;  %14443 = vmatprep.subr.bf16.mxu0 %v14442_v9 }
0x1ea0   :  { %14445 = vmatpush3.bf16.msra.mxu0 %v14444_v1 }
0x1ea1   :  { %v14446_v14 = vpack.c.bf16 %v6976_v8, %v6975_v41  ;;  %v13226_v19 = vpop.f32.mrb[178].mxu1  ;;  %v7073_v8 = vld [vmem:[%s19740_s2 + $0x78] sm:$0xff] }
0x1ea2   :  { %v6978_v25 = vmul.f32 %v13226_v19, %v16057_v37  ;;  %v6886_v45 = vpop.f32.mrb[179].mxu1 }
0x1ea3   :  { %v6977_v11 = vmul.f32 %v6886_v45, %v16060_v59  ;;  %14447 = vmatprep.subr.bf16.mxu0 %v14446_v14 }
0x1ea4   :  { %14449 = vmatpush3.bf16.msra.mxu0 %v14448_v18  ;;  %v18508_v18 = vld [vmem:[%s19748_s10] sm:$0xff] }
0x1ea5   :  { %v14450_v32 = vpack.c.bf16 %v6978_v25, %v6977_v11  ;;  %v13229_v62 = vpop.f32.mrb[180].mxu1  ;;  %20521 = vst [vmem:[#allocation43_spill] sm:$0xff] %v18508_v18 }
0x1ea6   :  { %v6980_v26 = vmul.f32 %v13229_v62, %v16072_v42  ;;  %v6896_v17 = vpop.f32.mrb[181].mxu1  ;;  %v18543_v62 = vld [vmem:[%s19741_s3 + $0x8] sm:$0xff] }
0x1ea7   :  { %v6979_v21 = vmul.f32 %v6896_v17, %v16075_v57  ;;  %14451 = vmatprep.subr.bf16.mxu0 %v14450_v32  ;;  %v18536_v32 = vld [vmem:[%s19749_s11] sm:$0xff]  ;;  %20525 = vst [vmem:[#allocation51_spill] sm:$0xff] %v18543_v62 }
0x1ea8   :  { %14453 = vmatpush3.bf16.msra.mxu0 %v14452_v4  ;;  %v18513_v4 = vld [vmem:[%s19748_s10 + $0x18] sm:$0xff]  ;;  %20524 = vst [vmem:[#allocation46_spill] sm:$0xff] %v18536_v32 }
0x1ea9   :  { %v14454_v6 = vpack.c.bf16 %v6980_v26, %v6979_v21  ;;  %v13232_v1 = vpop.f32.mrb[182].mxu1  ;;  %20522 = vst [vmem:[#allocation44_spill] sm:$0xff] %v18513_v4  ;;  %v18548_v26 = vld [vmem:[%s19741_s3] sm:$0xff] }
0x1eaa   :  { %v6982_v56 = vmul.f32 %v13232_v1, %v16087_v39  ;;  %v6906_v7 = vpop.f32.mrb[183].mxu1  ;;  %20526 = vst [vmem:[#allocation52_spill] sm:$0xff] %v18548_v26 }
0x1eab   :  { %v6981_v9 = vmul.f32 %v6906_v7, %v20463_v55  ;;  %14455 = vmatprep.subr.bf16.mxu0 %v14454_v6  ;;  %v14498_v7 = vpack.c.bf16 %v18186_v52, %v18190_v10 }
0x1eac   :  { %14457 = vmatpush3.bf16.msra.mxu0 %v14456_v23  ;;  %v18520_v23 = vld [vmem:[%s19748_s10 + $0x10] sm:$0xff] }
0x1ead   :  { %v14458_v31 = vpack.c.bf16 %v6982_v56, %v6981_v9  ;;  %20523 = vst [vmem:[#allocation45_spill] sm:$0xff] %v18520_v23  ;;  %v18557_v9 = vld [vmem:[%s19749_s11 + $0x8] sm:$0xff] }
0x1eae   :  { %20527 = vst [vmem:[#allocation59_spill] sm:$0xff] %v18557_v9 }
0x1eaf   :  { %14459 = vmatprep.subr.bf16.mxu0 %v14458_v31  ;;  %v18562_v31 = vld [vmem:[%s19749_s11 + $0x10] sm:$0xff] }
0x1eb0   :  { %14461 = vmatpush3.bf16.msra.mxu0 %v14460_v16  ;;  %v7072_v16 = vld [vmem:[%s19740_s2 + $0x70] sm:$0xff]  ;;  %20528 = vst [vmem:[#allocation53_spill] sm:$0xff] %v18562_v31 }
0x1eb1   :  { %v18529_v15 = vpack.c.bf16 %v7073_v8, %v7072_v16  ;;  %v18571_v16 = vld [vmem:[%s19749_s11 + $0x18] sm:$0xff]  ;;  %v18576_v8 = vld [vmem:[%s19749_s11 + $0x20] sm:$0xff] }
0x1eb2   :  { %20529 = vst [vmem:[#allocation54_spill] sm:$0xff] %v18571_v16  ;;  %20530 = vst [vmem:[#allocation60_spill] sm:$0xff] %v18576_v8 }
0x1eb3   :  { %7048 = vmatmul.mubr.f32.vlgmr.msra.gmra.mrb[178].mxu0 %v18508_v18  ;;  %14491 = vmatprep.subr.bf16.mxu1 %v18529_v15 }
0x1eb4   :  { %7052 = vmatprep.mubr.f32.mxu0 %v18513_v4  ;;  %14493 = vmatpush3.bf16.msra.mxu1 %v18529_v15 }
0x1eb7   :  { %7053 = vmatmul.mubr.f32.gmra.mrb[180].mxu0 %v18520_v23 }
0x1eb8   :  { %13272 = vmatprep.mubr.msk.f32.mxu0 %vm733_vm2, %v18536_v32 }
0x1f86   :  { %v11782_v41 = vpop.f32.mrb[178].mxu0 }
0x1f87   :  { %v11783_v14 = vpop.f32.mrb[179].mxu0 }
0x1f88   :  { %v11784_v19 = vadd.f32 %v11783_v14, %v11782_v41  ;;  %v18585_v41 = vld [vmem:[%s19749_s11 + $0x28] sm:$0xff]  ;;  %v18590_v14 = vld [vmem:[%s19750_s12] sm:$0xff] }
0x1f89   :  { %20531 = vst [vmem:[#allocation55_spill] sm:$0xff] %v18585_v41  ;;  %20532 = vst [vmem:[#allocation61_spill] sm:$0xff] %v18590_v14 }
0x1f8a   :  { %v11785_v25 = vpop.f32.mrb[180].mxu0  ;;  %13265 = vmatprep.mubr.f32.mxu1 %v11784_v19  ;;  %v18599_v19 = vld [vmem:[%s19750_s12 + $0x8] sm:$0xff] }
0x1f8b   :  { %v11786_v45 = vpop.f32.mrb[181].mxu0  ;;  %20533 = vst [vmem:[#allocation62_spill] sm:$0xff] %v18599_v19 }
0x1f8c   :  { %v11787_v11 = vadd.f32 %v11786_v45, %v11785_v25  ;;  %v18604_v25 = vld [vmem:[%s19750_s12 + $0x10] sm:$0xff]  ;;  %v18613_v45 = vld [vmem:[%s19750_s12 + $0x18] sm:$0xff] }
0x1f8d   :  { %20534 = vst [vmem:[#allocation63_spill] sm:$0xff] %v18604_v25  ;;  %20535 = vst [vmem:[#allocation64_spill] sm:$0xff] %v18613_v45 }
0x1f8e   :  { %13266 = vmatmul.mubr.f32.vlgmr.msra.gmra.mrb[184].mxu1 %v11787_v11  ;;  %v18618_v11 = vld [vmem:[%s19750_s12 + $0x20] sm:$0xff] }
0x1f8f   :  { %20536 = vst [vmem:[#allocation65_spill] sm:$0xff] %v18618_v11 }
0x2061   :  { %v13267_v17 = vpop.f32.mrb[184].mxu1 }
0x2062   :  { %v7152_v21 = vmul.f32 %v13267_v17, %v18543_v62  ;;  %v7140_v6 = vpop.f32.mrb[185].mxu1  ;;  %v18627_v17 = vld [vmem:[%s19750_s12 + $0x28] sm:$0xff] }
0x2063   :  { %v7151_v1 = vmul.f32 %v18548_v26, %v7140_v6  ;;  %20537 = vst [vmem:[#allocation66_spill] sm:$0xff] %v18627_v17  ;;  %v7450_v6 = vld [vmem:[%s19739_s1 + $0x8] sm:$0xff] }
0x2065   :  { %v14494_v56 = vpack.c.bf16 %v7152_v21, %v7151_v1  ;;  %v7449_v21 = vld [vmem:[%s19739_s1] sm:$0xff] }
0x2066   :  { %v18637_v1 = vpack.c.bf16 %v7450_v6, %v7449_v21  ;;  %v7453_v21 = vld [vmem:[%s19739_s1 + $0x20] sm:$0xff]  ;;  %v7454_v6 = vld [vmem:[%s19739_s1 + $0x28] sm:$0xff] }
0x2067   :  { %14495 = vmatprep.subr.bf16.mxu0 %v14494_v56 }
0x2068   :  { %14497 = vmatpush3.bf16.msra.mxu0 %v14494_v56  ;;  %14503 = vmatprep.subr.bf16.mxu1 %v18637_v1  ;;  %v7451_v56 = vld [vmem:[%s19739_s1 + $0x10] sm:$0xff] }
0x2069   :  { %14499 = vmatprep.subr.bf16.mxu0 %v14498_v7  ;;  %14505 = vmatpush3.bf16.msra.mxu1 %v18637_v1 }
0x206b   :  { %13273 = vmatmul.mubr.msk.f32.vlgmr.msra.gmra.mrb[182].mxu0 %vm733_vm2, %v18557_v9  ;;  %v18728_v9 = vld [vmem:[%s19751_s13] sm:$0xff] }
0x206c   :  { %14501 = vmatpush3.bf16.msra.mxu0 %v14498_v7  ;;  %13275 = vmatprep.mubr.msk.f32.mxu0 %vm733_vm2, %v18562_v31  ;;  %v7452_v7 = vld [vmem:[%s19739_s1 + $0x18] sm:$0xff]  ;;  %20546 = vst [vmem:[#allocation68_spill] sm:$0xff] %v18728_v9 }
0x206f   :  { %13276 = vmatmul.mubr.msk.f32.gmra.mrb[184].mxu0 %vm733_vm2, %v18571_v16 }
0x2070   :  { %13278 = vmatprep.mubr.msk.f32.mxu0 %vm733_vm2, %v18576_v8 }
0x2073   :  { %13279 = vmatmul.mubr.msk.f32.gmra.mrb[186].mxu0 %vm733_vm2, %v18585_v41  ;;  %v7462_v41 = vld [vmem:[%s19739_s1 + $0x68] sm:$0xff] }
0x2074   :  { %13285 = vmatprep.mubr.msk.f32.mxu0 %vm733_vm2, %v18590_v14  ;;  %v7461_v14 = vld [vmem:[%s19739_s1 + $0x60] sm:$0xff] }
0x2077   :  { %13286 = vmatmul.mubr.msk.f32.vlgmr.msra.gmra.mrb[182].mxu0 %vm733_vm2, %v18599_v19  ;;  %v7459_v19 = vld [vmem:[%s19739_s1 + $0x50] sm:$0xff] }
0x2078   :  { %13288 = vmatprep.mubr.msk.f32.mxu0 %vm733_vm2, %v18604_v25 }
0x207b   :  { %13289 = vmatmul.mubr.msk.f32.gmra.mrb[184].mxu0 %vm733_vm2, %v18613_v45 }
0x207c   :  { %13291 = vmatprep.mubr.msk.f32.mxu0 %vm733_vm2, %v18618_v11  ;;  %v18657_v11 = vpack.c.bf16 %v7454_v6, %v7453_v21  ;;  %v7457_v21 = vld [vmem:[%s19739_s1 + $0x40] sm:$0xff]  ;;  %v7458_v6 = vld [vmem:[%s19739_s1 + $0x48] sm:$0xff] }
0x207d   :  { %v18677_v25 = vpack.c.bf16 %v7458_v6, %v7457_v21  ;;  %v18696_v21 = vpack.c.bf16 %v7462_v41, %v7461_v14  ;;  %v7464_v6 = vld [vmem:[%s19739_s1 + $0x78] sm:$0xff]  ;;  %v7160_v41 = vld [vmem:[%s19751_s13 + $0x8] sm:$0xff] }
0x207e   :  { %20539 = vst [vmem:[#allocation56_spill] sm:$0xff] %v18657_v11  ;;  %v7285_v14 = vld [vmem:[%s19752_s14 + $0x8] sm:$0xff] }
0x207f   :  { %13292 = vmatmul.mubr.msk.f32.gmra.mrb[188].mxu0 %vm733_vm2, %v18627_v17  ;;  %v18647_v17 = vpack.c.bf16 %v7452_v7, %v7451_v56  ;;  %v7455_v56 = vld [vmem:[%s19739_s1 + $0x30] sm:$0xff]  ;;  %v7456_v7 = vld [vmem:[%s19739_s1 + $0x38] sm:$0xff]  ;;  %20541 = vst [vmem:[#allocation48_spill] sm:$0xff] %v18677_v25  ;;  %20543 = vst [vmem:[#allocation50_spill] sm:$0xff] %v18696_v21  ;;  %v18717_v31 = vadd.f32 %v7285_v14, %v7160_v41 }
0x2080   :  { %v18667_v45 = vpack.c.bf16 %v7456_v7, %v7455_v56  ;;  %v7460_v56 = vld [vmem:[%s19739_s1 + $0x58] sm:$0xff]  ;;  %v18734_v41 = vld [vmem:[%s19752_s14] sm:$0xff] }
0x2081   :  { %20538 = vst [vmem:[#allocation70_spill] sm:$0xff] %v18647_v17  ;;  %14507 = vmatprep.subr.bf16.mxu1 %v18647_v17  ;;  %v18685_v7 = vpack.c.bf16 %v7460_v56, %v7459_v19  ;;  %v7463_v19 = vld [vmem:[%s19739_s1 + $0x70] sm:$0xff]  ;;  %20545 = vst [vmem:[#allocation67_spill] sm:$0xff] %v18717_v31 }
0x2082   :  { %14509 = vmatpush3.bf16.msra.mxu1 %v18647_v17  ;;  %20540 = vst [vmem:[#allocation57_spill] sm:$0xff] %v18667_v45  ;;  %v18706_v56 = vpack.c.bf16 %v7464_v6, %v7463_v19  ;;  %v7162_v19 = vld [vmem:[%s19751_s13 + $0x18] sm:$0xff]  ;;  %20547 = vst [vmem:[#allocation71_spill] sm:$0xff] %v18734_v41 }
0x2083   :  { %14511 = vmatprep.subr.bf16.mxu1 %v18657_v11  ;;  %20542 = vst [vmem:[#allocation49_spill] sm:$0xff] %v18685_v7  ;;  %v7287_v6 = vld [vmem:[%s19752_s14 + $0x18] sm:$0xff] }
0x2084   :  { %20544 = vst [vmem:[#allocation58_spill] sm:$0xff] %v18706_v56  ;;  %v18736_v14 = vadd.f32 %v7287_v6, %v7162_v19  ;;  %v18749_v19 = vld [vmem:[%s19752_s14 + $0x10] sm:$0xff] }
0x2085   :  { %20550 = vst [vmem:[#allocation73_spill] sm:$0xff] %v18749_v19 }
0x2086   :  { %14513 = vmatpush3.bf16.msra.mxu1 %v18657_v11  ;;  %20548 = vst [vmem:[#allocation72_spill] sm:$0xff] %v18736_v14 }
0x2087   :  { %14515 = vmatprep.subr.bf16.mxu1 %v18667_v45 }
0x208a   :  { %14517 = vmatpush3.bf16.msra.mxu1 %v18667_v45 }
0x208b   :  { %14519 = vmatprep.subr.bf16.mxu1 %v18677_v25 }
0x208e   :  { %14521 = vmatpush3.bf16.msra.mxu1 %v18677_v25  ;;  %v18742_v25 = vld [vmem:[%s19751_s13 + $0x10] sm:$0xff] }
0x208f   :  { %14523 = vmatprep.subr.bf16.mxu1 %v18685_v7  ;;  %20549 = vst [vmem:[#allocation69_spill] sm:$0xff] %v18742_v25 }
0x2092   :  { %14525 = vmatpush3.bf16.msra.mxu1 %v18685_v7 }
0x2093   :  { %14527 = vmatprep.subr.bf16.mxu1 %v18696_v21 }
0x2096   :  { %14529 = vmatpush3.bf16.msra.mxu1 %v18696_v21 }
0x2097   :  { %14531 = vmatprep.subr.bf16.mxu1 %v18706_v56 }
0x209a   :  { %14533 = vmatpush3.bf16.msra.mxu1 %v18706_v56 }
0x2146   :  { %v13280_v8 = vpop.f32.mrb[186].mxu0 }
0x2147   :  { %v7269_v16 = vpop.f32.mrb[187].mxu0 }
0x214a   :  { %v13287_v26 = vpop.f32.mrb[182].mxu0 }
0x214b   :  { %v14879_v62 = vadd.f32 %v18717_v31, %v13287_v26  ;;  %v7374_v56 = vpop.f32.mrb[183].mxu0 }
0x214c   :  { %v14880_v21 = vadd.f32 %v7374_v56, %v18728_v9 }
0x214d   :  { %v10766_v7 = vmul.f32 -1.442695, %v14879_v62 }
0x214e   :  { %v14881_v45 = vadd.f32 %v14880_v21, %v18734_v41  ;;  %v13290_v11 = vpop.f32.mrb[184].mxu0 }
0x214f   :  { %15071 = vpow2.f32 %v10766_v7  ;;  %v14883_v26 = vadd.f32 %v18736_v14, %v13290_v11  ;;  %v7384_v31 = vpop.f32.mrb[185].mxu0 }
0x2150   :  { %v10765_v6 = vmul.f32 -1.442695, %v14881_v45  ;;  %v14884_v62 = vadd.f32 %v7384_v31, %v18742_v25  ;;  %v18756_v31 = vld [vmem:[%s19752_s14 + $0x28] sm:$0xff] }
0x2151   :  { %v10768_v56 = vmul.f32 -1.442695, %v14883_v26  ;;  %20551 = vst [vmem:[#allocation74_spill] sm:$0xff] %v18756_v31 }
0x2152   :  { %15073 = vpow2.f32 %v10765_v6  ;;  %v14885_v9 = vadd.f32 %v14884_v62, %v18749_v19  ;;  %v13293_v17 = vpop.f32.mrb[188].mxu0 }
0x2153   :  { %v7394_v32 = vpop.f32.mrb[189].mxu0  ;;  %15075 = vpow2.f32 %v10768_v56  ;;  %v7400_v6 = vadd.f32 %v13293_v17, %v18756_v31 }
0x2154   :  { %v10767_v21 = vmul.f32 -1.442695, %v14885_v9  ;;  %v18762_v9 = vld [vmem:[%s19752_s14 + $0x20] sm:$0xff] }
0x2155   :  { %20552 = vst [vmem:[#allocation75_spill] sm:$0xff] %v18762_v9  ;;  %v7395_v56 = vadd.f32 %v7394_v32, %v18762_v9 }
0x2156   :  { %15077 = vpow2.f32 %v10767_v21 }
0x2159   :  { %v15072_v7 = vpop.eup %15071 }
0x215a   :  { %v7412_v11 = vadd.f32 1.0, %v15072_v7 }
0x215c   :  { %v15074_v14 = vpop.eup %15073  ;;  %15079 = vrcp.f32 %v7412_v11 }
0x215d   :  { %v7411_v41 = vadd.f32 1.0, %v15074_v14  ;;  %v15076_v23 = vpop.eup %15075  ;;  %v18767_v14 = vld [vmem:[%s19751_s13 + $0x28] sm:$0xff] }
0x215e   :  { %v7426_v26 = vadd.f32 1.0, %v15076_v23  ;;  %20553 = vst [vmem:[#allocation76_spill] sm:$0xff] %v18767_v14  ;;  %v7275_v21 = vadd.f32 %v13280_v8, %v18767_v14  ;;  %v18774_v23 = vld [vmem:[%s19751_s13 + $0x20] sm:$0xff] }
0x215f   :  { %15081 = vrcp.f32 %v7411_v41  ;;  %v7270_v31 = vadd.f32 %v7269_v16, %v18774_v23 }
0x2160   :  { %v15078_v45 = vpop.eup %15077  ;;  %15083 = vrcp.f32 %v7426_v26 }
0x2161   :  { %v7425_v62 = vadd.f32 1.0, %v15078_v45 }
0x2163   :  { %15085 = vrcp.f32 %v7425_v62  ;;  %v20570_v62 = vld [vmem:[#allocation22_spill] sm:$0xff] }
0x2166   :  { %v15080_v41 = vpop.eup %15079 }
0x2167   :  { %v7432_v17 = vmul.f32 %v15080_v41, %v7400_v6 }
0x2169   :  { %v15082_v7 = vpop.eup %15081  ;;  %v7434_v11 = vadd.f32 %v7432_v17, %v7275_v21  ;;  %v20572_v21 = vld [vmem:[#allocation24_spill] sm:$0xff]  ;;  %v20573_v17 = vld [vmem:[#allocation25_spill] sm:$0xff] }
0x216a   :  { %v7431_v19 = vmul.f32 %v15082_v7, %v7395_v56  ;;  %v15084_v45 = vpop.eup %15083  ;;  %v20571_v56 = vld [vmem:[#allocation23_spill] sm:$0xff]  ;;  %v20574_v7 = vld [vmem:[#allocation26_spill] sm:$0xff] }
0x216b   :  { %15087 = vtanh.f32 %v7434_v11  ;;  %v7438_v9 = vsub.f32 1.0, %v15084_v45  ;;  %v7442_v4 = vmul.f32 %v15084_v45, %v18186_v52  ;;  %v20575_v11 = vld [vmem:[#allocation27_spill] sm:$0xff]  ;;  %v20576_v45 = vld [vmem:[#allocation28_spill] sm:$0xff] }
0x216c   :  { %v7433_v25 = vadd.f32 %v7431_v19, %v7270_v31  ;;  %v20566_v31 = vld [vmem:[#allocation18_spill] sm:$0xff] }
0x216d   :  { %v15086_v32 = vpop.eup %15085 }
0x216e   :  { %15089 = vtanh.f32 %v7433_v25  ;;  %v7437_v18 = vsub.f32 1.0, %v15086_v32  ;;  %v7441_v41 = vmul.f32 %v15086_v32, %v18190_v10  ;;  %v18806_v10 = vld [vmem:[%s19747_s9 + $0x8] sm:$0xff]  ;;  %v20577_v32 = vld [vmem:[#allocation29_spill] sm:$0xff] }
0x2175   :  { %v15088_v8 = vpop.eup %15087 }
0x2176   :  { %v7440_v14 = vmul.f32 %v15088_v8, %v7438_v9  ;;  %v20567_v9 = vld [vmem:[#allocation19_spill] sm:$0xff] }
0x2178   :  { %v15090_v55 = vpop.eup %15089  ;;  %v18778_v26 = vadd.f32 %v7442_v4, %v7440_v14  ;;  %v20565_v4 = vld [vmem:[#allocation17_spill] sm:$0xff]  ;;  %v20568_v14 = vld [vmem:[#allocation20_spill] sm:$0xff] }
0x2179   :  { %v7439_v6 = vmul.f32 %v15090_v55, %v7437_v18  ;;  %v18821_v18 = vld [vmem:[%s19747_s9 + $0x18] sm:$0xff] }
0x217a   :  { %v18783_v16 = vadd.f32 %v18778_v26, %v17976_v53  ;;  %v18799_v53 = vld [vmem:[%s19747_s9] sm:$0xff] }
0x217b   :  { %v18785_v19 = vadd.f32 %v7441_v41, %v7439_v6  ;;  %13333 = vmatprep.mubr.msk.f32.mxu0 %vm733_vm2, %v18799_v53  ;;  %v20578_v6 = vld [vmem:[#allocation30_spill] sm:$0xff] }
0x217c   :  { %7448 = vst [vmem:[#allocation8 + $0x78] sm:$0xff] %v18783_v16 }
0x217d   :  { %v18790_v25 = vadd.f32 %v18785_v19, %v17983_v20 }
0x217f   :  { %7447 = vst [vmem:[#allocation8 + $0x70] sm:$0xff] %v18790_v25  ;;  %13326 = vmatprep.mubr.f32.mxu1 %v18790_v25 }
0x2180   :  { %13327 = vmatmul.mubr.f32.vlgmr.msra.gmra.mrb[186].mxu1 %v18783_v16 }
0x2181   :  { %8025 = vmatprep.mubr.f32.mxu1 %v18400_v49  ;;  %v18811_v49 = vld [vmem:[%s19747_s9 + $0x10] sm:$0xff] }
0x2253   :  { %v13328_v55 = vpop.f32.mrb[186].mxu1 }
0x2254   :  { %v7531_v52 = vpop.f32.mrb[187].mxu1 }
0x2255   :  { %v14534_v20 = vpack.c.bf16 %v13328_v55, %v7531_v52 }
0x2257   :  { %14535 = vmatprep.subr.bf16.mxu0 %v14534_v20 }
0x2258   :  { %14537 = vmatpush3.bf16.msra.mxu0 %v14534_v20 }
0x2259   :  { %14571 = vmatprep.subr.bf16.mxu0 %v18412_v46 }
0x225b   :  { %13334 = vmatmul.mubr.msk.f32.vlgmr.msra.gmra.mrb[190].mxu0 %vm733_vm2, %v18806_v10 }
0x225c   :  { %13336 = vmatprep.mubr.msk.f32.mxu0 %vm733_vm2, %v18811_v49  ;;  %14573 = vmatpush3.bf16.msra.mxu0 %v18412_v46  ;;  %v20561_v46 = vld [vmem:[#allocation13_spill] sm:$0xff] }
0x225d   :  { %14575 = vmatprep.subr.bf16.mxu0 %v18417_v54 }
0x225f   :  { %13337 = vmatmul.mubr.msk.f32.gmra.mrb[192].mxu0 %vm733_vm2, %v18821_v18 }
0x2260   :  { %13339 = vmatprep.mubr.msk.f32.mxu0 %vm733_vm2, %v18202_v47  ;;  %14577 = vmatpush3.bf16.msra.mxu0 %v18417_v54  ;;  %v20554_v47 = vld [vmem:[#allocation39_spill] sm:$0xff]  ;;  %v20559_v54 = vld [vmem:[#allocation12_spill] sm:$0xff] }
0x2261   :  { %14579 = vmatprep.subr.bf16.mxu0 %v18428_v58 }
0x2263   :  { %13340 = vmatmul.mubr.msk.f32.gmra.mrb[194].mxu0 %vm733_vm2, %v18211_v44  ;;  %v20555_v44 = vld [vmem:[#allocation37_spill] sm:$0xff] }
0x2264   :  { %13342 = vmatprep.mubr.msk.f32.mxu0 %vm733_vm2, %v18216_v40  ;;  %14581 = vmatpush3.bf16.msra.mxu0 %v18428_v58  ;;  %v20556_v40 = vld [vmem:[#allocation33_spill] sm:$0xff]  ;;  %v20562_v58 = vld [vmem:[#allocation14_spill] sm:$0xff] }
0x2265   :  { %14583 = vmatprep.subr.bf16.mxu0 %v18438_v2 }
0x2267   :  { %13343 = vmatmul.mubr.msk.f32.gmra.mrb[196].mxu0 %vm733_vm2, %v18225_v24  ;;  %v20557_v24 = vld [vmem:[#allocation41_spill] sm:$0xff] }
0x2268   :  { %13345 = vmatprep.mubr.msk.f32.mxu0 %vm733_vm2, %v18230_v28  ;;  %14585 = vmatpush3.bf16.msra.mxu0 %v18438_v2  ;;  %v20558_v28 = vld [vmem:[#allocation31_spill] sm:$0xff] }
0x2269   :  { %14587 = vmatprep.subr.bf16.mxu0 %v18448_v22  ;;  %v20563_v2 = vld [vmem:[#allocation15_spill] sm:$0xff] }
0x226b   :  { %13346 = vmatmul.mubr.msk.f32.gmra.mrb[198].mxu0 %vm733_vm2, %v18239_v43  ;;  %v20560_v43 = vld [vmem:[#allocation35_spill] sm:$0xff] }
0x226c   :  { %13348 = vmatprep.mubr.msk.f32.mxu0 %vm733_vm2, %v20554_v47  ;;  %14589 = vmatpush3.bf16.msra.mxu0 %v18448_v22  ;;  %v20564_v22 = vld [vmem:[#allocation16_spill] sm:$0xff] }
0x226d   :  { %14591 = vmatprep.subr.bf16.mxu0 %v20555_v44 }
0x226f   :  { %13349 = vmatmul.mubr.msk.f32.gmra.mrb[200].mxu0 %vm733_vm2, %v20556_v40 }
0x2270   :  { %13351 = vmatprep.mubr.msk.f32.mxu0 %vm733_vm2, %v20557_v24  ;;  %14593 = vmatpush3.bf16.msra.mxu0 %v20555_v44  ;;  %v20579_v44 = vld [vmem:[#allocation32_spill] sm:$0xff] }
0x2271   :  { %14595 = vmatprep.subr.bf16.mxu0 %v20558_v28 }
0x2273   :  { %13352 = vmatmul.mubr.msk.f32.gmra.mrb[202].mxu0 %vm733_vm2, %v20559_v54 }
0x2274   :  { %13354 = vmatprep.mubr.msk.f32.mxu0 %vm733_vm2, %v20560_v43  ;;  %14597 = vmatpush3.bf16.msra.mxu0 %v20558_v28 }
0x2275   :  { %14599 = vmatprep.subr.bf16.mxu0 %v18529_v15 }
0x2277   :  { %13355 = vmatmul.mubr.msk.f32.gmra.mrb[204].mxu0 %vm733_vm2, %v20561_v46  ;;  %v20580_v46 = vld [vmem:[#allocation34_spill] sm:$0xff] }
0x2278   :  { %13357 = vmatprep.mubr.msk.f32.mxu0 %vm733_vm2, %v20562_v58  ;;  %14601 = vmatpush3.bf16.msra.mxu0 %v18529_v15  ;;  %v20569_v15 = vld [vmem:[#allocation21_spill] sm:$0xff] }
0x2279   :  { %14611 = vmatprep.subr.bf16.mxu0 %v18637_v1 }
0x227b   :  { %13358 = vmatmul.mubr.msk.f32.gmra.mrb[206].mxu0 %vm733_vm2, %v20563_v2 }
0x227c   :  { %13360 = vmatprep.mubr.msk.f32.mxu0 %vm733_vm2, %v20564_v22 }
0x227f   :  { %13361 = vmatmul.mubr.msk.f32.gmra.mrb[208].mxu0 %vm733_vm2, %v20565_v4 }
0x2280   :  { %13363 = vmatprep.mubr.msk.f32.mxu0 %vm733_vm2, %v20566_v31 }
0x2283   :  { %13364 = vmatmul.mubr.msk.f32.gmra.mrb[210].mxu0 %vm733_vm2, %v20567_v9  ;;  %v20581_v9 = vld [vmem:[#allocation36_spill] sm:$0xff] }
0x2284   :  { %13366 = vmatprep.mubr.msk.f32.mxu0 %vm733_vm2, %v20568_v14 }
0x2287   :  { %13367 = vmatmul.mubr.msk.f32.gmra.mrb[212].mxu0 %vm733_vm2, %v20569_v15 }
0x2288   :  { %13369 = vmatprep.mubr.msk.f32.mxu0 %vm733_vm2, %v20570_v62 }
0x228b   :  { %13370 = vmatmul.mubr.msk.f32.gmra.mrb[214].mxu0 %vm733_vm2, %v20571_v56 }
0x228c   :  { %13372 = vmatprep.mubr.msk.f32.mxu0 %vm733_vm2, %v20572_v21 }
0x228f   :  { %13373 = vmatmul.mubr.msk.f32.gmra.mrb[216].mxu0 %vm733_vm2, %v20573_v17  ;;  %v20582_v17 = vld [vmem:[#allocation38_spill] sm:$0xff] }
0x2290   :  { %13375 = vmatprep.mubr.msk.f32.mxu0 %vm733_vm2, %v20574_v7 }
0x2293   :  { %13376 = vmatmul.mubr.msk.f32.gmra.mrb[218].mxu0 %vm733_vm2, %v20575_v11 }
0x2294   :  { %13378 = vmatprep.mubr.msk.f32.mxu0 %vm733_vm2, %v20576_v45 }
0x2297   :  { %13379 = vmatmul.mubr.msk.f32.gmra.mrb[220].mxu0 %vm733_vm2, %v20577_v32 }
0x232e   :  { %v13335_v8 = vpop.f32.mrb[190].mxu0 }
0x232f   :  { %v7930_v41 = vmul.f32 %v13335_v8, %v20578_v6  ;;  %v7734_v55 = vpop.f32.mrb[191].mxu0 }
0x2330   :  { %v7929_v52 = vmul.f32 %v7734_v55, %v20332_v30 }
0x2332   :  { %v14540_v20 = vpack.c.bf16 %v7930_v41, %v7929_v52  ;;  %v13338_v47 = vpop.f32.mrb[192].mxu0  ;;  %v20583_v41 = vld [vmem:[#allocation40_spill] sm:$0xff] }
0x2333   :  { %v7932_v40 = vmul.f32 %v13338_v47, %v20579_v44  ;;  %v7744_v24 = vpop.f32.mrb[193].mxu0 }
0x2334   :  { %v7931_v28 = vmul.f32 %v7744_v24, %v20334_v0 }
0x2336   :  { %v14544_v54 = vpack.c.bf16 %v7932_v40, %v7931_v28  ;;  %v13341_v43 = vpop.f32.mrb[194].mxu0  ;;  %v20584_v28 = vld [vmem:[#allocation42_spill] sm:$0xff] }
0x2337   :  { %v7934_v58 = vmul.f32 %v13341_v43, %v20580_v46  ;;  %v7754_v2 = vpop.f32.mrb[195].mxu0 }
0x2338   :  { %v7933_v22 = vmul.f32 %v7754_v2, %v20336_v36 }
0x233a   :  { %v14548_v4 = vpack.c.bf16 %v7934_v58, %v7933_v22  ;;  %v13344_v31 = vpop.f32.mrb[196].mxu0 }
0x233b   :  { %v7936_v14 = vmul.f32 %v13344_v31, %v20581_v9  ;;  %v7764_v15 = vpop.f32.mrb[197].mxu0 }
0x233c   :  { %v7935_v62 = vmul.f32 %v7764_v15, %v20216_v27 }
0x233e   :  { %v14552_v56 = vpack.c.bf16 %v7936_v14, %v7935_v62  ;;  %v13347_v21 = vpop.f32.mrb[198].mxu0 }
0x233f   :  { %v7938_v7 = vmul.f32 %v13347_v21, %v20582_v17  ;;  %v7774_v11 = vpop.f32.mrb[199].mxu0 }
0x2340   :  { %v7937_v45 = vmul.f32 %v7774_v11, %v20275_v60 }
0x2342   :  { %v14556_v32 = vpack.c.bf16 %v7938_v7, %v7937_v45  ;;  %v13350_v8 = vpop.f32.mrb[200].mxu0 }
0x2343   :  { %v7940_v55 = vmul.f32 %v13350_v8, %v20583_v41  ;;  %v7784_v52 = vpop.f32.mrb[201].mxu0 }
0x2344   :  { %v7939_v47 = vmul.f32 %v7784_v52, %v20277_v63 }
0x2346   :  { %v14560_v40 = vpack.c.bf16 %v7940_v55, %v7939_v47  ;;  %v13353_v24 = vpop.f32.mrb[202].mxu0 }
0x2347   :  { %v7942_v43 = vmul.f32 %v13353_v24, %v20584_v28  ;;  %v7794_v58 = vpop.f32.mrb[203].mxu0 }
0x2348   :  { %v7941_v2 = vmul.f32 %v7794_v58, %v20222_v13 }
0x234a   :  { %v14564_v22 = vpack.c.bf16 %v7942_v43, %v7941_v2  ;;  %v13356_v31 = vpop.f32.mrb[204].mxu0 }
0x234b   :  { %v7944_v14 = vmul.f32 %v13356_v31, %v20223_v29  ;;  %v7804_v15 = vpop.f32.mrb[205].mxu0 }
0x234c   :  { %v7943_v62 = vmul.f32 %v7804_v15, %v20224_v5 }
0x234e   :  { %v14568_v21 = vpack.c.bf16 %v7944_v14, %v7943_v62  ;;  %v13359_v7 = vpop.f32.mrb[206].mxu0 }
0x234f   :  { %v7946_v11 = vmul.f32 %v13359_v7, %v15984_v3  ;;  %v7814_v45 = vpop.f32.mrb[207].mxu0 }
0x2350   :  { %v7945_v8 = vmul.f32 %v7814_v45, %v20225_v38 }
0x2352   :  { %v14538_v55 = vpack.c.bf16 %v7946_v11, %v7945_v8  ;;  %v13362_v52 = vpop.f32.mrb[208].mxu0 }
0x2353   :  { %v7948_v47 = vmul.f32 %v13362_v52, %v16000_v12  ;;  %v7824_v24 = vpop.f32.mrb[209].mxu0 }
0x2354   :  { %v7947_v43 = vmul.f32 %v7824_v24, %v16003_v50  ;;  %14539 = vmatprep.subr.bf16.mxu1 %v14538_v55 }
0x2355   :  { %14541 = vmatpush3.bf16.msra.mxu1 %v14540_v20 }
0x2356   :  { %v14542_v58 = vpack.c.bf16 %v7948_v47, %v7947_v43  ;;  %v13365_v2 = vpop.f32.mrb[210].mxu0 }
0x2357   :  { %v7950_v31 = vmul.f32 %v13365_v2, %v16012_v51  ;;  %v7834_v14 = vpop.f32.mrb[211].mxu0 }
0x2358   :  { %v7949_v15 = vmul.f32 %v7834_v14, %v16015_v48  ;;  %14543 = vmatprep.subr.bf16.mxu1 %v14542_v58 }
0x2359   :  { %14545 = vmatpush3.bf16.msra.mxu1 %v14544_v54 }
0x235a   :  { %v14546_v62 = vpack.c.bf16 %v7950_v31, %v7949_v15  ;;  %v13368_v7 = vpop.f32.mrb[212].mxu0 }
0x235b   :  { %v7952_v11 = vmul.f32 %v13368_v7, %v16027_v35  ;;  %v7844_v45 = vpop.f32.mrb[213].mxu0 }
0x235c   :  { %v7951_v8 = vmul.f32 %v7844_v45, %v16030_v34  ;;  %14547 = vmatprep.subr.bf16.mxu1 %v14546_v62 }
0x235d   :  { %14549 = vmatpush3.bf16.msra.mxu1 %v14548_v4 }
0x235e   :  { %v14550_v55 = vpack.c.bf16 %v7952_v11, %v7951_v8  ;;  %v13371_v20 = vpop.f32.mrb[214].mxu0 }
0x235f   :  { %v7954_v52 = vmul.f32 %v13371_v20, %v16042_v61  ;;  %v7854_v47 = vpop.f32.mrb[215].mxu0 }
0x2360   :  { %v7953_v24 = vmul.f32 %v7854_v47, %v16045_v33  ;;  %14551 = vmatprep.subr.bf16.mxu1 %v14550_v55  ;;  %v20585_v55 = vld [vmem:[#allocation47_spill] sm:$0xff]  ;;  %v20587_v47 = vld [vmem:[#allocation44_spill] sm:$0xff] }
0x2361   :  { %14553 = vmatpush3.bf16.msra.mxu1 %v14552_v56 }
0x2362   :  { %v14554_v43 = vpack.c.bf16 %v7954_v52, %v7953_v24  ;;  %v13374_v54 = vpop.f32.mrb[216].mxu0  ;;  %v20588_v24 = vld [vmem:[#allocation45_spill] sm:$0xff] }
0x2363   :  { %v7956_v58 = vmul.f32 %v13374_v54, %v16057_v37  ;;  %v7864_v2 = vpop.f32.mrb[217].mxu0 }
0x2364   :  { %v7955_v31 = vmul.f32 %v7864_v2, %v16060_v59  ;;  %14555 = vmatprep.subr.bf16.mxu1 %v14554_v43  ;;  %v20589_v43 = vld [vmem:[#allocation46_spill] sm:$0xff] }
0x2365   :  { %14557 = vmatpush3.bf16.msra.mxu1 %v14556_v32  ;;  %v20586_v32 = vld [vmem:[#allocation43_spill] sm:$0xff] }
0x2366   :  { %v14558_v14 = vpack.c.bf16 %v7956_v58, %v7955_v31  ;;  %v13377_v4 = vpop.f32.mrb[218].mxu0 }
0x2367   :  { %v7958_v15 = vmul.f32 %v13377_v4, %v16072_v42  ;;  %v7874_v62 = vpop.f32.mrb[219].mxu0  ;;  %v20592_v4 = vld [vmem:[#allocation57_spill] sm:$0xff] }
0x2368   :  { %v7957_v7 = vmul.f32 %v7874_v62, %v16075_v57  ;;  %14559 = vmatprep.subr.bf16.mxu1 %v14558_v14  ;;  %v20594_v62 = vld [vmem:[#allocation49_spill] sm:$0xff] }
0x2369   :  { %14561 = vmatpush3.bf16.msra.mxu1 %v14560_v40 }
0x236a   :  { %v14562_v11 = vpack.c.bf16 %v7958_v15, %v7957_v7  ;;  %v13380_v56 = vpop.f32.mrb[220].mxu0  ;;  %v20593_v15 = vld [vmem:[#allocation48_spill] sm:$0xff]  ;;  %v20596_v7 = vld [vmem:[#allocation58_spill] sm:$0xff] }
0x236b   :  { %v7960_v45 = vmul.f32 %v13380_v56, %v16087_v39  ;;  %v7884_v8 = vpop.f32.mrb[221].mxu0  ;;  %v20597_v56 = vld [vmem:[#allocation51_spill] sm:$0xff] }
0x236c   :  { %v7959_v20 = vmul.f32 %v7884_v8, %v20585_v55  ;;  %14563 = vmatprep.subr.bf16.mxu1 %v14562_v11 }
0x236d   :  { %14565 = vmatpush3.bf16.msra.mxu1 %v14564_v22  ;;  %v20590_v22 = vld [vmem:[#allocation70_spill] sm:$0xff] }
0x236e   :  { %v14566_v52 = vpack.c.bf16 %v7960_v45, %v7959_v20  ;;  %v20598_v20 = vld [vmem:[#allocation52_spill] sm:$0xff] }
0x2370   :  { %14567 = vmatprep.subr.bf16.mxu1 %v14566_v52 }
0x2371   :  { %14569 = vmatpush3.bf16.msra.mxu1 %v14568_v21  ;;  %v20591_v21 = vld [vmem:[#allocation56_spill] sm:$0xff] }
0x2374   :  { %8026 = vmatmul.mubr.f32.vlgmr.msra.gmra.mrb[188].mxu1 %v20586_v32 }
0x2375   :  { %8030 = vmatprep.mubr.f32.mxu1 %v20587_v47  ;;  %v14606_v47 = vpack.c.bf16 %v18783_v16, %v18790_v25 }
0x2378   :  { %8031 = vmatmul.mubr.f32.gmra.mrb[190].mxu1 %v20588_v24  ;;  %v20599_v24 = vld [vmem:[#allocation59_spill] sm:$0xff] }
0x2379   :  { %13420 = vmatprep.mubr.msk.f32.mxu1 %vm733_vm2, %v20589_v43  ;;  %v20600_v43 = vld [vmem:[#allocation53_spill] sm:$0xff] }
0x2447   :  { %v11906_v40 = vpop.f32.mrb[188].mxu1 }
0x2448   :  { %v11907_v54 = vpop.f32.mrb[189].mxu1 }
0x2449   :  { %v11908_v58 = vadd.f32 %v11907_v54, %v11906_v40  ;;  %v20601_v40 = vld [vmem:[#allocation54_spill] sm:$0xff]  ;;  %v20602_v54 = vld [vmem:[#allocation60_spill] sm:$0xff] }
0x244b   :  { %v11909_v2 = vpop.f32.mrb[190].mxu1  ;;  %13413 = vmatprep.mubr.f32.mxu0 %v11908_v58  ;;  %v20603_v58 = vld [vmem:[#allocation55_spill] sm:$0xff] }
0x244c   :  { %v11910_v31 = vpop.f32.mrb[191].mxu1 }
0x244d   :  { %v11911_v14 = vadd.f32 %v11910_v31, %v11909_v2  ;;  %v20604_v2 = vld [vmem:[#allocation61_spill] sm:$0xff]  ;;  %v20605_v31 = vld [vmem:[#allocation62_spill] sm:$0xff] }
0x244f   :  { %13414 = vmatmul.mubr.f32.vlgmr.msra.gmra.mrb[222].mxu0 %v11911_v14  ;;  %v20606_v14 = vld [vmem:[#allocation63_spill] sm:$0xff] }
0x2450   :  { %14613 = vmatpush3.bf16.msra.mxu0 %v18637_v1  ;;  %v20595_v1 = vld [vmem:[#allocation50_spill] sm:$0xff] }
0x2451   :  { %14615 = vmatprep.subr.bf16.mxu0 %v20590_v22 }
0x2454   :  { %14617 = vmatpush3.bf16.msra.mxu0 %v20590_v22  ;;  %v20607_v22 = vld [vmem:[#allocation64_spill] sm:$0xff] }
0x2455   :  { %14619 = vmatprep.subr.bf16.mxu0 %v20591_v21 }
0x2458   :  { %14621 = vmatpush3.bf16.msra.mxu0 %v20591_v21  ;;  %v20608_v21 = vld [vmem:[#allocation65_spill] sm:$0xff] }
0x2459   :  { %14623 = vmatprep.subr.bf16.mxu0 %v20592_v4 }
0x245c   :  { %14625 = vmatpush3.bf16.msra.mxu0 %v20592_v4  ;;  %v20609_v4 = vld [vmem:[#allocation66_spill] sm:$0xff] }
0x245d   :  { %14627 = vmatprep.subr.bf16.mxu0 %v20593_v15 }
0x2460   :  { %14629 = vmatpush3.bf16.msra.mxu0 %v20593_v15 }
0x2461   :  { %14631 = vmatprep.subr.bf16.mxu0 %v20594_v62 }
0x2464   :  { %14633 = vmatpush3.bf16.msra.mxu0 %v20594_v62 }
0x2465   :  { %14635 = vmatprep.subr.bf16.mxu0 %v20595_v1 }
0x2468   :  { %14637 = vmatpush3.bf16.msra.mxu0 %v20595_v1 }
0x2469   :  { %14639 = vmatprep.subr.bf16.mxu0 %v20596_v7 }
0x246c   :  { %14641 = vmatpush3.bf16.msra.mxu0 %v20596_v7  ;;  %v20610_v7 = vld [vmem:[#allocation67_spill] sm:$0xff] }
0x2522   :  { %v13415_v11 = vpop.f32.mrb[222].mxu0 }
0x2523   :  { %v8130_v45 = vmul.f32 %v13415_v11, %v20597_v56  ;;  %v8118_v8 = vpop.f32.mrb[223].mxu0 }
0x2524   :  { %v8129_v52 = vmul.f32 %v8118_v8, %v20598_v20 }
0x2526   :  { %v14602_v32 = vpack.c.bf16 %v8130_v45, %v8129_v52  ;;  %v20611_v45 = vld [vmem:[#allocation68_spill] sm:$0xff]  ;;  %v20612_v52 = vld [vmem:[#allocation71_spill] sm:$0xff] }
0x2528   :  { %14603 = vmatprep.subr.bf16.mxu1 %v14602_v32 }
0x2529   :  { %14605 = vmatpush3.bf16.msra.mxu1 %v14602_v32 }
0x252a   :  { %14607 = vmatprep.subr.bf16.mxu1 %v14606_v47 }
0x252c   :  { %13421 = vmatmul.mubr.msk.f32.vlgmr.msra.gmra.mrb[192].mxu1 %vm733_vm2, %v20599_v24  ;;  %v20613_v24 = vld [vmem:[#allocation72_spill] sm:$0xff] }
0x252d   :  { %14609 = vmatpush3.bf16.msra.mxu1 %v14606_v47  ;;  %13423 = vmatprep.mubr.msk.f32.mxu1 %vm733_vm2, %v20600_v43 }
0x2530   :  { %13424 = vmatmul.mubr.msk.f32.gmra.mrb[194].mxu1 %vm733_vm2, %v20601_v40 }
0x2531   :  { %13426 = vmatprep.mubr.msk.f32.mxu1 %vm733_vm2, %v20602_v54 }
0x2534   :  { %13427 = vmatmul.mubr.msk.f32.gmra.mrb[196].mxu1 %vm733_vm2, %v20603_v58  ;;  %v20614_v58 = vld [vmem:[#allocation69_spill] sm:$0xff] }
0x2535   :  { %13433 = vmatprep.mubr.msk.f32.mxu1 %vm733_vm2, %v20604_v2 }
0x2538   :  { %13434 = vmatmul.mubr.msk.f32.vlgmr.msra.gmra.mrb[192].mxu1 %vm733_vm2, %v20605_v31  ;;  %v20615_v31 = vld [vmem:[#allocation73_spill] sm:$0xff] }
0x2539   :  { %13436 = vmatprep.mubr.msk.f32.mxu1 %vm733_vm2, %v20606_v14 }
0x253c   :  { %13437 = vmatmul.mubr.msk.f32.gmra.mrb[194].mxu1 %vm733_vm2, %v20607_v22 }
0x253d   :  { %13439 = vmatprep.mubr.msk.f32.mxu1 %vm733_vm2, %v20608_v21 }
0x2540   :  { %13440 = vmatmul.mubr.msk.f32.gmra.mrb[198].mxu1 %vm733_vm2, %v20609_v4 }
0x2541   :  { %13481 = vmatprep.mubr.msk.f32.mxu1 %vm733_vm2, %v18799_v53 }
0x2607   :  { %v13428_v15 = vpop.f32.mrb[196].mxu1 }
0x2608   :  { %v8247_v62 = vpop.f32.mrb[197].mxu1 }
0x260b   :  { %v13435_v1 = vpop.f32.mrb[192].mxu1 }
0x260c   :  { %v14887_v11 = vadd.f32 %v20610_v7, %v13435_v1  ;;  %v8352_v56 = vpop.f32.mrb[193].mxu1 }
0x260d   :  { %v14888_v8 = vadd.f32 %v8352_v56, %v20611_v45 }
0x260e   :  { %v10814_v20 = vmul.f32 -1.442695, %v14887_v11 }
0x260f   :  { %v14889_v32 = vadd.f32 %v14888_v8, %v20612_v52  ;;  %v13438_v47 = vpop.f32.mrb[194].mxu1  ;;  %v20616_v52 = vld [vmem:[#allocation74_spill] sm:$0xff] }
0x2610   :  { %15091 = vpow2.f32 %v10814_v20  ;;  %v14891_v43 = vadd.f32 %v20613_v24, %v13438_v47  ;;  %v8362_v40 = vpop.f32.mrb[195].mxu1 }
0x2611   :  { %v10813_v54 = vmul.f32 -1.442695, %v14889_v32  ;;  %v14892_v2 = vadd.f32 %v8362_v40, %v20614_v58 }
0x2612   :  { %v10816_v53 = vmul.f32 -1.442695, %v14891_v43  ;;  %v20617_v43 = vld [vmem:[#allocation75_spill] sm:$0xff] }
0x2613   :  { %15093 = vpow2.f32 %v10813_v54  ;;  %v14893_v14 = vadd.f32 %v14892_v2, %v20615_v31  ;;  %v13441_v22 = vpop.f32.mrb[198].mxu1  ;;  %v20618_v54 = vld [vmem:[#allocation76_spill] sm:$0xff] }
0x2614   :  { %v8372_v21 = vpop.f32.mrb[199].mxu1  ;;  %15095 = vpow2.f32 %v10816_v53  ;;  %v8378_v32 = vadd.f32 %v13441_v22, %v20616_v52  ;;  %v8253_v58 = vadd.f32 %v13428_v15, %v20618_v54  ;;  %v19055_v54 = vld [vmem:[%s19747_s9 + $0x58] sm:$0xff] }
0x2615   :  { %v10815_v4 = vmul.f32 -1.442695, %v14893_v14  ;;  %v8373_v40 = vadd.f32 %v8372_v21, %v20617_v43  ;;  %v8248_v14 = vadd.f32 %v8247_v62, %v18774_v23  ;;  %v19041_v43 = vld [vmem:[%s19747_s9 + $0x48] sm:$0xff]  ;;  %20620 = vst [vmem:[#allocation37_spill] sm:$0xff] %v19055_v54 }
0x2617   :  { %15097 = vpow2.f32 %v10815_v4 }
0x261a   :  { %v15092_v1 = vpop.eup %15091 }
0x261b   :  { %v8390_v7 = vadd.f32 1.0, %v15092_v1 }
0x261d   :  { %v15094_v11 = vpop.eup %15093  ;;  %15099 = vrcp.f32 %v8390_v7 }
0x261e   :  { %v8389_v56 = vadd.f32 1.0, %v15094_v11  ;;  %v15096_v45 = vpop.eup %15095 }
0x261f   :  { %v8404_v20 = vadd.f32 1.0, %v15096_v45 }
0x2620   :  { %15101 = vrcp.f32 %v8389_v56 }
0x2621   :  { %v15098_v8 = vpop.eup %15097  ;;  %15103 = vrcp.f32 %v8404_v20 }
0x2622   :  { %v8403_v24 = vadd.f32 1.0, %v15098_v8 }
0x2624   :  { %15105 = vrcp.f32 %v8403_v24  ;;  %v19013_v24 = vld [vmem:[%s19747_s9 + $0x28] sm:$0xff] }
0x2627   :  { %v15100_v47 = vpop.eup %15099 }
0x2628   :  { %v8410_v2 = vmul.f32 %v15100_v47, %v8378_v32 }
0x262a   :  { %v15102_v53 = vpop.eup %15101  ;;  %v8412_v31 = vadd.f32 %v8410_v2, %v8253_v58  ;;  %v19060_v58 = vld [vmem:[%s19747_s9 + $0x60] sm:$0xff]  ;;  %v19069_v2 = vld [vmem:[%s19747_s9 + $0x68] sm:$0xff] }
0x262b   :  { %v8409_v4 = vmul.f32 %v15102_v53, %v8373_v40  ;;  %v15104_v7 = vpop.eup %15103  ;;  %v19046_v40 = vld [vmem:[%s19747_s9 + $0x50] sm:$0xff]  ;;  %20621 = vst [vmem:[#allocation33_spill] sm:$0xff] %v19060_v58  ;;  %20622 = vst [vmem:[#allocation41_spill] sm:$0xff] %v19069_v2 }
0x262c   :  { %15107 = vtanh.f32 %v8412_v31  ;;  %v8416_v22 = vsub.f32 1.0, %v15104_v7  ;;  %v8420_v21 = vmul.f32 %v15104_v7, %v18783_v16  ;;  %20619 = vst [vmem:[#allocation39_spill] sm:$0xff] %v19046_v40  ;;  %v19074_v53 = vld [vmem:[%s19747_s9 + $0x70] sm:$0xff]  ;;  %v19083_v31 = vld [vmem:[%s19747_s9 + $0x78] sm:$0xff] }
0x262d   :  { %v8411_v1 = vadd.f32 %v8409_v4, %v8248_v14  ;;  %20623 = vst [vmem:[#allocation31_spill] sm:$0xff] %v19074_v53  ;;  %20624 = vst [vmem:[#allocation12_spill] sm:$0xff] %v19083_v31  ;;  %v19088_v14 = vld [vmem:[%s19747_s9 + $0x80] sm:$0xff]  ;;  %v19097_v4 = vld [vmem:[%s19747_s9 + $0x88] sm:$0xff] }
0x262e   :  { %v15106_v11 = vpop.eup %15105  ;;  %20625 = vst [vmem:[#allocation35_spill] sm:$0xff] %v19088_v14  ;;  %20626 = vst [vmem:[#allocation13_spill] sm:$0xff] %v19097_v4  ;;  %v19111_v7 = vld [vmem:[%s19747_s9 + $0x98] sm:$0xff] }
0x262f   :  { %15109 = vtanh.f32 %v8411_v1  ;;  %v8415_v8 = vsub.f32 1.0, %v15106_v11  ;;  %v8419_v32 = vmul.f32 %v15106_v11, %v18790_v25  ;;  %v19004_v25 = vld [vmem:[%s19747_s9 + $0x20] sm:$0xff]  ;;  %v19102_v1 = vld [vmem:[%s19747_s9 + $0x90] sm:$0xff]  ;;  %20628 = vst [vmem:[#allocation15_spill] sm:$0xff] %v19111_v7 }
0x2630   :  { %20627 = vst [vmem:[#allocation14_spill] sm:$0xff] %v19102_v1  ;;  %v19116_v11 = vld [vmem:[%s19747_s9 + $0xa0] sm:$0xff] }
0x2631   :  { %20629 = vst [vmem:[#allocation16_spill] sm:$0xff] %v19116_v11 }
0x2636   :  { %v15108_v56 = vpop.eup %15107 }
0x2637   :  { %v8418_v45 = vmul.f32 %v15108_v56, %v8416_v22  ;;  %v19125_v22 = vld [vmem:[%s19747_s9 + $0xa8] sm:$0xff]  ;;  %v19130_v56 = vld [vmem:[%s19747_s9 + $0xb0] sm:$0xff] }
0x2638   :  { %20630 = vst [vmem:[#allocation17_spill] sm:$0xff] %v19125_v22  ;;  %20631 = vst [vmem:[#allocation18_spill] sm:$0xff] %v19130_v56 }
0x2639   :  { %v15110_v15 = vpop.eup %15109  ;;  %v18988_v20 = vadd.f32 %v8420_v21, %v8418_v45  ;;  %v19139_v45 = vld [vmem:[%s19747_s9 + $0xb8] sm:$0xff]  ;;  %v19144_v21 = vld [vmem:[%s19747_s9 + $0xc0] sm:$0xff] }
0x263a   :  { %v8417_v52 = vmul.f32 %v15110_v15, %v8415_v8  ;;  %20632 = vst [vmem:[#allocation19_spill] sm:$0xff] %v19139_v45  ;;  %20633 = vst [vmem:[#allocation20_spill] sm:$0xff] %v19144_v21  ;;  %v19153_v8 = vld [vmem:[%s19747_s9 + $0xc8] sm:$0xff]  ;;  %v19158_v15 = vld [vmem:[%s19747_s9 + $0xd0] sm:$0xff] }
0x263b   :  { %8424 = vst [vmem:[#allocation8 + $0x88] sm:$0xff] %v18988_v20  ;;  %20634 = vst [vmem:[#allocation21_spill] sm:$0xff] %v19153_v8 }
0x263c   :  { %v18992_v23 = vadd.f32 %v8419_v32, %v8417_v52  ;;  %20635 = vst [vmem:[#allocation22_spill] sm:$0xff] %v19158_v15  ;;  %v19167_v52 = vld [vmem:[%s19747_s9 + $0xd8] sm:$0xff]  ;;  %v19172_v32 = vld [vmem:[%s19747_s9 + $0xe0] sm:$0xff] }
0x263d   :  { %20636 = vst [vmem:[#allocation23_spill] sm:$0xff] %v19167_v52  ;;  %20637 = vst [vmem:[#allocation24_spill] sm:$0xff] %v19172_v32 }
0x263e   :  { %8423 = vst [vmem:[#allocation8 + $0x80] sm:$0xff] %v18992_v23  ;;  %13474 = vmatprep.mubr.f32.mxu0 %v18992_v23 }
0x263f   :  { %13475 = vmatmul.mubr.f32.vlgmr.msra.gmra.mrb[224].mxu0 %v18988_v20 }
0x2712   :  { %v13476_v62 = vpop.f32.mrb[224].mxu0 }
0x2713   :  { %v8507_v47 = vpop.f32.mrb[225].mxu0 }
0x2714   :  { %v14642_v16 = vpack.c.bf16 %v13476_v62, %v8507_v47  ;;  %v19181_v62 = vld [vmem:[%s19747_s9 + $0xe8] sm:$0xff]  ;;  %v19186_v47 = vld [vmem:[%s19747_s9 + $0xf0] sm:$0xff] }
0x2715   :  { %20638 = vst [vmem:[#allocation25_spill] sm:$0xff] %v19181_v62  ;;  %20639 = vst [vmem:[#allocation26_spill] sm:$0xff] %v19186_v47 }
0x2716   :  { %14643 = vmatprep.subr.bf16.mxu1 %v14642_v16 }
0x2717   :  { %14645 = vmatpush3.bf16.msra.mxu1 %v14642_v16  ;;  %v19195_v16 = vld [vmem:[%s19747_s9 + $0xf8] sm:$0xff] }
0x2718   :  { %20640 = vst [vmem:[#allocation27_spill] sm:$0xff] %v19195_v16 }
0x271a   :  { %13482 = vmatmul.mubr.msk.f32.vlgmr.msra.gmra.mrb[200].mxu1 %vm733_vm2, %v18806_v10  ;;  %v19018_v10 = vld [vmem:[%s19747_s9 + $0x30] sm:$0xff] }
0x271b   :  { %13484 = vmatprep.mubr.msk.f32.mxu1 %vm733_vm2, %v18811_v49  ;;  %v19027_v49 = vld [vmem:[%s19747_s9 + $0x38] sm:$0xff] }
0x271e   :  { %13485 = vmatmul.mubr.msk.f32.gmra.mrb[202].mxu1 %vm733_vm2, %v18821_v18  ;;  %v19032_v18 = vld [vmem:[%s19747_s9 + $0x40] sm:$0xff] }
0x271f   :  { %13487 = vmatprep.mubr.msk.f32.mxu1 %vm733_vm2, %v19004_v25 }
0x2722   :  { %13488 = vmatmul.mubr.msk.f32.gmra.mrb[204].mxu1 %vm733_vm2, %v19013_v24 }
0x2723   :  { %13490 = vmatprep.mubr.msk.f32.mxu1 %vm733_vm2, %v19018_v10 }
0x2726   :  { %13491 = vmatmul.mubr.msk.f32.gmra.mrb[206].mxu1 %vm733_vm2, %v19027_v49 }
0x2727   :  { %13493 = vmatprep.mubr.msk.f32.mxu1 %vm733_vm2, %v19032_v18 }
0x272a   :  { %13494 = vmatmul.mubr.msk.f32.gmra.mrb[208].mxu1 %vm733_vm2, %v19041_v43 }
0x272b   :  { %13496 = vmatprep.mubr.msk.f32.mxu1 %vm733_vm2, %v19046_v40 }
0x272e   :  { %13497 = vmatmul.mubr.msk.f32.gmra.mrb[210].mxu1 %vm733_vm2, %v19055_v54 }
0x272f   :  { %13499 = vmatprep.mubr.msk.f32.mxu1 %vm733_vm2, %v19060_v58 }
0x2732   :  { %13500 = vmatmul.mubr.msk.f32.gmra.mrb[212].mxu1 %vm733_vm2, %v19069_v2 }
0x2733   :  { %13502 = vmatprep.mubr.msk.f32.mxu1 %vm733_vm2, %v19074_v53 }
0x2736   :  { %13503 = vmatmul.mubr.msk.f32.gmra.mrb[214].mxu1 %vm733_vm2, %v19083_v31 }
0x2737   :  { %13505 = vmatprep.mubr.msk.f32.mxu1 %vm733_vm2, %v19088_v14 }
0x273a   :  { %13506 = vmatmul.mubr.msk.f32.gmra.mrb[216].mxu1 %vm733_vm2, %v19097_v4 }
0x273b   :  { %13508 = vmatprep.mubr.msk.f32.mxu1 %vm733_vm2, %v19102_v1 }
0x273e   :  { %13509 = vmatmul.mubr.msk.f32.gmra.mrb[218].mxu1 %vm733_vm2, %v19111_v7 }
0x273f   :  { %13511 = vmatprep.mubr.msk.f32.mxu1 %vm733_vm2, %v19116_v11  ;;  %v9024_v11 = vld [vmem:[%s19740_s2 + $0x60] sm:$0xff] }
0x2742   :  { %13512 = vmatmul.mubr.msk.f32.gmra.mrb[220].mxu1 %vm733_vm2, %v19125_v22  ;;  %v9022_v22 = vld [vmem:[%s19740_s2 + $0x50] sm:$0xff] }
0x2743   :  { %13514 = vmatprep.mubr.msk.f32.mxu1 %vm733_vm2, %v19130_v56  ;;  %v9020_v56 = vld [vmem:[%s19740_s2 + $0x40] sm:$0xff] }
0x2746   :  { %13515 = vmatmul.mubr.msk.f32.gmra.mrb[222].mxu1 %vm733_vm2, %v19139_v45  ;;  %v9017_v45 = vld [vmem:[%s19740_s2 + $0x28] sm:$0xff] }
0x2747   :  { %13517 = vmatprep.mubr.msk.f32.mxu1 %vm733_vm2, %v19144_v21  ;;  %v9016_v21 = vld [vmem:[%s19740_s2 + $0x20] sm:$0xff] }
0x274a   :  { %13518 = vmatmul.mubr.msk.f32.gmra.mrb[224].mxu1 %vm733_vm2, %v19153_v8 }
0x274b   :  { %13520 = vmatprep.mubr.msk.f32.mxu1 %vm733_vm2, %v19158_v15  ;;  %v9015_v15 = vld [vmem:[%s19740_s2 + $0x18] sm:$0xff] }
0x274e   :  { %13521 = vmatmul.mubr.msk.f32.gmra.mrb[226].mxu1 %vm733_vm2, %v19167_v52  ;;  %v9014_v52 = vld [vmem:[%s19740_s2 + $0x10] sm:$0xff] }
0x274f   :  { %13523 = vmatprep.mubr.msk.f32.mxu1 %vm733_vm2, %v19172_v32  ;;  %v19202_v32 = vld [vmem:[%s19748_s10 + $0x8] sm:$0xff]  ;;  %v19219_v8 = vpack.c.bf16 %v9015_v15, %v9014_v52  ;;  %v9018_v15 = vld [vmem:[%s19740_s2 + $0x30] sm:$0xff]  ;;  %v9019_v52 = vld [vmem:[%s19740_s2 + $0x38] sm:$0xff] }
0x2750   :  { %9001 = vmatprep.mubr.f32.mxu0 %v19202_v32 }
0x2752   :  { %13524 = vmatmul.mubr.msk.f32.gmra.mrb[228].mxu1 %vm733_vm2, %v19181_v62  ;;  %v9012_v62 = vld [vmem:[%s19740_s2] sm:$0xff] }
0x2753   :  { %13526 = vmatprep.mubr.msk.f32.mxu1 %vm733_vm2, %v19186_v47  ;;  %v9013_v47 = vld [vmem:[%s19740_s2 + $0x8] sm:$0xff] }
0x2756   :  { %13527 = vmatmul.mubr.msk.f32.gmra.mrb[230].mxu1 %vm733_vm2, %v19195_v16  ;;  %v19214_v16 = vpack.c.bf16 %v9013_v47, %v9012_v62  ;;  %v19230_v62 = vpack.c.bf16 %v9017_v45, %v9016_v21  ;;  %v19240_v47 = vpack.c.bf16 %v9019_v52, %v9018_v15  ;;  %v9021_v45 = vld [vmem:[%s19740_s2 + $0x48] sm:$0xff]  ;;  %v9023_v15 = vld [vmem:[%s19740_s2 + $0x58] sm:$0xff] }
0x2757   :  { %v19250_v21 = vpack.c.bf16 %v9021_v45, %v9020_v56  ;;  %v19260_v52 = vpack.c.bf16 %v9023_v15, %v9022_v22  ;;  %v9025_v56 = vld [vmem:[%s19740_s2 + $0x68] sm:$0xff] }
0x2758   :  { %14679 = vmatprep.subr.bf16.mxu1 %v19214_v16  ;;  %v19270_v45 = vpack.c.bf16 %v9025_v56, %v9024_v11 }
0x2759   :  { %14681 = vmatpush3.bf16.msra.mxu1 %v19214_v16  ;;  %20641 = vst [vmem:[#allocation28_spill] sm:$0xff] %v19260_v52 }
0x275a   :  { %14683 = vmatprep.subr.bf16.mxu1 %v19219_v8  ;;  %20642 = vst [vmem:[#allocation29_spill] sm:$0xff] %v19270_v45 }
0x275d   :  { %14685 = vmatpush3.bf16.msra.mxu1 %v19219_v8 }
0x275e   :  { %14687 = vmatprep.subr.bf16.mxu1 %v19230_v62 }
0x2761   :  { %14689 = vmatpush3.bf16.msra.mxu1 %v19230_v62 }
0x2762   :  { %14691 = vmatprep.subr.bf16.mxu1 %v19240_v47 }
0x2765   :  { %14693 = vmatpush3.bf16.msra.mxu1 %v19240_v47 }
0x2766   :  { %14695 = vmatprep.subr.bf16.mxu1 %v19250_v21 }
0x2769   :  { %14697 = vmatpush3.bf16.msra.mxu1 %v19250_v21 }
0x276a   :  { %14699 = vmatprep.subr.bf16.mxu1 %v19260_v52 }
0x276d   :  { %14701 = vmatpush3.bf16.msra.mxu1 %v19260_v52 }
0x276e   :  { %14703 = vmatprep.subr.bf16.mxu1 %v19270_v45 }
0x2771   :  { %14705 = vmatpush3.bf16.msra.mxu1 %v19270_v45 }
0x27ed   :  { %v13483_v22 = vpop.f32.mrb[200].mxu1 }
0x27ee   :  { %v8906_v15 = vmul.f32 %v13483_v22, %v20578_v6  ;;  %v8710_v7 = vpop.f32.mrb[201].mxu1 }
0x27ef   :  { %v8905_v1 = vmul.f32 %v8710_v7, %v20332_v30 }
0x27f1   :  { %v14648_v4 = vpack.c.bf16 %v8906_v15, %v8905_v1  ;;  %v13486_v14 = vpop.f32.mrb[202].mxu1 }
0x27f2   :  { %v8908_v31 = vmul.f32 %v13486_v14, %v20579_v44  ;;  %v8720_v53 = vpop.f32.mrb[203].mxu1 }
0x27f3   :  { %v8907_v11 = vmul.f32 %v8720_v53, %v20334_v0 }
0x27f5   :  { %v14652_v56 = vpack.c.bf16 %v8908_v31, %v8907_v11  ;;  %v13489_v2 = vpop.f32.mrb[204].mxu1 }
0x27f6   :  { %v8910_v58 = vmul.f32 %v13489_v2, %v20580_v46  ;;  %v8730_v54 = vpop.f32.mrb[205].mxu1 }
0x27f7   :  { %v8909_v45 = vmul.f32 %v8730_v54, %v20336_v36 }
0x27f9   :  { %v14656_v52 = vpack.c.bf16 %v8910_v58, %v8909_v45  ;;  %v13492_v40 = vpop.f32.mrb[206].mxu1 }
0x27fa   :  { %v8912_v22 = vmul.f32 %v13492_v40, %v20581_v9  ;;  %v8740_v6 = vpop.f32.mrb[207].mxu1 }
0x27fb   :  { %v8911_v1 = vmul.f32 %v8740_v6, %v20216_v27 }
0x27fd   :  { %v14660_v7 = vpack.c.bf16 %v8912_v22, %v8911_v1  ;;  %v13495_v15 = vpop.f32.mrb[208].mxu1 }
0x27fe   :  { %v8914_v14 = vmul.f32 %v13495_v15, %v20582_v17  ;;  %v8750_v44 = vpop.f32.mrb[209].mxu1 }
0x27ff   :  { %v8913_v53 = vmul.f32 %v8750_v44, %v20275_v60 }
0x2801   :  { %v14664_v31 = vpack.c.bf16 %v8914_v14, %v8913_v53  ;;  %v13498_v11 = vpop.f32.mrb[210].mxu1 }
0x2802   :  { %v8916_v2 = vmul.f32 %v13498_v11, %v20583_v41  ;;  %v8760_v46 = vpop.f32.mrb[211].mxu1 }
0x2803   :  { %v8915_v54 = vmul.f32 %v8760_v46, %v20277_v63 }
0x2805   :  { %v14668_v58 = vpack.c.bf16 %v8916_v2, %v8915_v54  ;;  %v13501_v45 = vpop.f32.mrb[212].mxu1 }
0x2806   :  { %v8918_v40 = vmul.f32 %v13501_v45, %v20584_v28  ;;  %v8770_v9 = vpop.f32.mrb[213].mxu1 }
0x2807   :  { %v8917_v6 = vmul.f32 %v8770_v9, %v20222_v13 }
0x2809   :  { %v14672_v22 = vpack.c.bf16 %v8918_v40, %v8917_v6  ;;  %v13504_v1 = vpop.f32.mrb[214].mxu1 }
0x280a   :  { %v8920_v15 = vmul.f32 %v13504_v1, %v20223_v29  ;;  %v8780_v17 = vpop.f32.mrb[215].mxu1 }
0x280b   :  { %v8919_v44 = vmul.f32 %v8780_v17, %v20224_v5 }
0x280d   :  { %v14676_v14 = vpack.c.bf16 %v8920_v15, %v8919_v44  ;;  %v13507_v53 = vpop.f32.mrb[216].mxu1 }
0x280e   :  { %v8922_v11 = vmul.f32 %v13507_v53, %v15984_v3  ;;  %v8790_v41 = vpop.f32.mrb[217].mxu1 }
0x280f   :  { %v8921_v46 = vmul.f32 %v8790_v41, %v20225_v38 }
0x2811   :  { %v14646_v2 = vpack.c.bf16 %v8922_v11, %v8921_v46  ;;  %v13510_v54 = vpop.f32.mrb[218].mxu1 }
0x2812   :  { %v8924_v45 = vmul.f32 %v13510_v54, %v16000_v12  ;;  %v8800_v28 = vpop.f32.mrb[219].mxu1 }
0x2813   :  { %v8923_v9 = vmul.f32 %v8800_v28, %v16003_v50  ;;  %14647 = vmatprep.subr.bf16.mxu0 %v14646_v2 }
0x2814   :  { %14649 = vmatpush3.bf16.msra.mxu0 %v14648_v4 }
0x2815   :  { %v14650_v40 = vpack.c.bf16 %v8924_v45, %v8923_v9  ;;  %v13513_v6 = vpop.f32.mrb[220].mxu1 }
0x2816   :  { %v8926_v17 = vmul.f32 %v13513_v6, %v16012_v51  ;;  %v8810_v1 = vpop.f32.mrb[221].mxu1 }
0x2817   :  { %v8925_v15 = vmul.f32 %v8810_v1, %v16015_v48  ;;  %14651 = vmatprep.subr.bf16.mxu0 %v14650_v40 }
0x2818   :  { %14653 = vmatpush3.bf16.msra.mxu0 %v14652_v56 }
0x2819   :  { %v14654_v44 = vpack.c.bf16 %v8926_v17, %v8925_v15  ;;  %v13516_v41 = vpop.f32.mrb[222].mxu1 }
0x281a   :  { %v8928_v53 = vmul.f32 %v13516_v41, %v16027_v35  ;;  %v8820_v11 = vpop.f32.mrb[223].mxu1 }
0x281b   :  { %v8927_v46 = vmul.f32 %v8820_v11, %v16030_v34  ;;  %14655 = vmatprep.subr.bf16.mxu0 %v14654_v44 }
0x281c   :  { %14657 = vmatpush3.bf16.msra.mxu0 %v14656_v52 }
0x281d   :  { %v14658_v28 = vpack.c.bf16 %v8928_v53, %v8927_v46  ;;  %v13519_v4 = vpop.f32.mrb[224].mxu1 }
0x281e   :  { %v8930_v2 = vmul.f32 %v13519_v4, %v16042_v61  ;;  %v8830_v54 = vpop.f32.mrb[225].mxu1 }
0x281f   :  { %v8929_v45 = vmul.f32 %v8830_v54, %v16045_v33  ;;  %14659 = vmatprep.subr.bf16.mxu0 %v14658_v28 }
0x2820   :  { %14661 = vmatpush3.bf16.msra.mxu0 %v14660_v7 }
0x2821   :  { %v14662_v9 = vpack.c.bf16 %v8930_v2, %v8929_v45  ;;  %v13522_v56 = vpop.f32.mrb[226].mxu1  ;;  %v9027_v2 = vld [vmem:[%s19740_s2 + $0x78] sm:$0xff] }
0x2822   :  { %v8932_v40 = vmul.f32 %v13522_v56, %v16057_v37  ;;  %v8840_v6 = vpop.f32.mrb[227].mxu1 }
0x2823   :  { %v8931_v17 = vmul.f32 %v8840_v6, %v16060_v59  ;;  %14663 = vmatprep.subr.bf16.mxu0 %v14662_v9 }
0x2824   :  { %14665 = vmatpush3.bf16.msra.mxu0 %v14664_v31  ;;  %v19310_v31 = vld [vmem:[%s19748_s10] sm:$0xff] }
0x2825   :  { %v14666_v1 = vpack.c.bf16 %v8932_v40, %v8931_v17  ;;  %v13525_v52 = vpop.f32.mrb[228].mxu1  ;;  %20643 = vst [vmem:[#allocation47_spill] sm:$0xff] %v19310_v31 }
0x2826   :  { %v8934_v15 = vmul.f32 %v13525_v52, %v16072_v42  ;;  %v8850_v44 = vpop.f32.mrb[229].mxu1  ;;  %v19345_v52 = vld [vmem:[%s19741_s3 + $0x8] sm:$0xff] }
0x2827   :  { %v8933_v41 = vmul.f32 %v8850_v44, %v16075_v57  ;;  %14667 = vmatprep.subr.bf16.mxu0 %v14666_v1  ;;  %v19338_v1 = vld [vmem:[%s19749_s11] sm:$0xff]  ;;  %20647 = vst [vmem:[#allocation46_spill] sm:$0xff] %v19345_v52 }
0x2828   :  { %14669 = vmatpush3.bf16.msra.mxu0 %v14668_v58  ;;  %v19315_v58 = vld [vmem:[%s19748_s10 + $0x18] sm:$0xff]  ;;  %20646 = vst [vmem:[#allocation45_spill] sm:$0xff] %v19338_v1 }
0x2829   :  { %v14670_v53 = vpack.c.bf16 %v8934_v15, %v8933_v41  ;;  %v13528_v7 = vpop.f32.mrb[230].mxu1  ;;  %20644 = vst [vmem:[#allocation43_spill] sm:$0xff] %v19315_v58  ;;  %v19350_v15 = vld [vmem:[%s19741_s3] sm:$0xff] }
0x282a   :  { %v8936_v11 = vmul.f32 %v13528_v7, %v16087_v39  ;;  %v8860_v46 = vpop.f32.mrb[231].mxu1  ;;  %20648 = vst [vmem:[#allocation70_spill] sm:$0xff] %v19350_v15 }
0x282b   :  { %v8935_v28 = vmul.f32 %v8860_v46, %v20585_v55  ;;  %14671 = vmatprep.subr.bf16.mxu0 %v14670_v53  ;;  %v14714_v46 = vpack.c.bf16 %v18988_v20, %v18992_v23 }
0x282c   :  { %14673 = vmatpush3.bf16.msra.mxu0 %v14672_v22  ;;  %v19322_v22 = vld [vmem:[%s19748_s10 + $0x10] sm:$0xff] }
0x282d   :  { %v14674_v4 = vpack.c.bf16 %v8936_v11, %v8935_v28  ;;  %20645 = vst [vmem:[#allocation44_spill] sm:$0xff] %v19322_v22  ;;  %v19359_v28 = vld [vmem:[%s19749_s11 + $0x8] sm:$0xff] }
0x282e   :  { %20649 = vst [vmem:[#allocation56_spill] sm:$0xff] %v19359_v28 }
0x282f   :  { %14675 = vmatprep.subr.bf16.mxu0 %v14674_v4  ;;  %v19364_v4 = vld [vmem:[%s19749_s11 + $0x10] sm:$0xff] }
0x2830   :  { %14677 = vmatpush3.bf16.msra.mxu0 %v14676_v14  ;;  %v9026_v14 = vld [vmem:[%s19740_s2 + $0x70] sm:$0xff]  ;;  %20650 = vst [vmem:[#allocation57_spill] sm:$0xff] %v19364_v4 }
0x2831   :  { %v19331_v54 = vpack.c.bf16 %v9027_v2, %v9026_v14  ;;  %v19373_v14 = vld [vmem:[%s19749_s11 + $0x18] sm:$0xff]  ;;  %v19378_v2 = vld [vmem:[%s19749_s11 + $0x20] sm:$0xff] }
0x2832   :  { %20651 = vst [vmem:[#allocation48_spill] sm:$0xff] %v19373_v14  ;;  %20652 = vst [vmem:[#allocation49_spill] sm:$0xff] %v19378_v2 }
0x2833   :  { %9002 = vmatmul.mubr.f32.vlgmr.msra.gmra.mrb[226].mxu0 %v19310_v31  ;;  %14707 = vmatprep.subr.bf16.mxu1 %v19331_v54 }
0x2834   :  { %9006 = vmatprep.mubr.f32.mxu0 %v19315_v58  ;;  %14709 = vmatpush3.bf16.msra.mxu1 %v19331_v54 }
0x2837   :  { %9007 = vmatmul.mubr.f32.gmra.mrb[228].mxu0 %v19322_v22 }
0x2838   :  { %13568 = vmatprep.mubr.msk.f32.mxu0 %vm733_vm2, %v19338_v1 }
0x2906   :  { %v12030_v45 = vpop.f32.mrb[226].mxu0 }
0x2907   :  { %v12031_v9 = vpop.f32.mrb[227].mxu0 }
0x2908   :  { %v12032_v56 = vadd.f32 %v12031_v9, %v12030_v45  ;;  %v19387_v45 = vld [vmem:[%s19749_s11 + $0x28] sm:$0xff]  ;;  %v19392_v9 = vld [vmem:[%s19750_s12] sm:$0xff] }
0x2909   :  { %20653 = vst [vmem:[#allocation50_spill] sm:$0xff] %v19387_v45  ;;  %20654 = vst [vmem:[#allocation58_spill] sm:$0xff] %v19392_v9 }
0x290a   :  { %v12033_v40 = vpop.f32.mrb[228].mxu0  ;;  %13561 = vmatprep.mubr.f32.mxu1 %v12032_v56  ;;  %v19401_v56 = vld [vmem:[%s19750_s12 + $0x8] sm:$0xff] }
0x290b   :  { %v12034_v6 = vpop.f32.mrb[229].mxu0  ;;  %20655 = vst [vmem:[#allocation51_spill] sm:$0xff] %v19401_v56 }
0x290c   :  { %v12035_v17 = vadd.f32 %v12034_v6, %v12033_v40  ;;  %v19406_v40 = vld [vmem:[%s19750_s12 + $0x10] sm:$0xff]  ;;  %v19415_v6 = vld [vmem:[%s19750_s12 + $0x18] sm:$0xff] }
0x290d   :  { %20656 = vst [vmem:[#allocation52_spill] sm:$0xff] %v19406_v40  ;;  %20657 = vst [vmem:[#allocation59_spill] sm:$0xff] %v19415_v6 }
0x290e   :  { %13562 = vmatmul.mubr.f32.vlgmr.msra.gmra.mrb[232].mxu1 %v12035_v17  ;;  %v19420_v17 = vld [vmem:[%s19750_s12 + $0x20] sm:$0xff] }
0x290f   :  { %20658 = vst [vmem:[#allocation53_spill] sm:$0xff] %v19420_v17 }
0x29e1   :  { %v13563_v44 = vpop.f32.mrb[232].mxu1 }
0x29e2   :  { %v9106_v41 = vmul.f32 %v13563_v44, %v19345_v52  ;;  %v9094_v53 = vpop.f32.mrb[233].mxu1  ;;  %v19429_v44 = vld [vmem:[%s19750_s12 + $0x28] sm:$0xff] }
0x29e3   :  { %v9105_v7 = vmul.f32 %v19350_v15, %v9094_v53  ;;  %20659 = vst [vmem:[#allocation54_spill] sm:$0xff] %v19429_v44  ;;  %v9404_v53 = vld [vmem:[%s19739_s1 + $0x8] sm:$0xff] }
0x29e5   :  { %v14710_v11 = vpack.c.bf16 %v9106_v41, %v9105_v7  ;;  %v9403_v41 = vld [vmem:[%s19739_s1] sm:$0xff] }
0x29e6   :  { %v14718_v7 = vpack.c.bf16 %v9404_v53, %v9403_v41  ;;  %v9408_v41 = vld [vmem:[%s19739_s1 + $0x28] sm:$0xff] }
0x29e7   :  { %14711 = vmatprep.subr.bf16.mxu0 %v14710_v11 }
0x29e8   :  { %14713 = vmatpush3.bf16.msra.mxu0 %v14710_v11  ;;  %14719 = vmatprep.subr.bf16.mxu1 %v14718_v7  ;;  %v9405_v11 = vld [vmem:[%s19739_s1 + $0x10] sm:$0xff] }
0x29e9   :  { %14715 = vmatprep.subr.bf16.mxu0 %v14714_v46  ;;  %14721 = vmatpush3.bf16.msra.mxu1 %v14718_v7  ;;  %v9409_v7 = vld [vmem:[%s19739_s1 + $0x30] sm:$0xff] }
0x29eb   :  { %13569 = vmatmul.mubr.msk.f32.vlgmr.msra.gmra.mrb[230].mxu0 %vm733_vm2, %v19359_v28 }
0x29ec   :  { %14717 = vmatpush3.bf16.msra.mxu0 %v14714_v46  ;;  %13571 = vmatprep.mubr.msk.f32.mxu0 %vm733_vm2, %v19364_v4  ;;  %v9406_v46 = vld [vmem:[%s19739_s1 + $0x18] sm:$0xff] }
0x29ef   :  { %13572 = vmatmul.mubr.msk.f32.gmra.mrb[232].mxu0 %vm733_vm2, %v19373_v14  ;;  %v19512_v14 = vld [vmem:[%s19751_s13 + $0x10] sm:$0xff] }
0x29f0   :  { %13574 = vmatprep.mubr.msk.f32.mxu0 %vm733_vm2, %v19378_v2  ;;  %20664 = vst [vmem:[#allocation63_spill] sm:$0xff] %v19512_v14 }
0x29f3   :  { %13575 = vmatmul.mubr.msk.f32.gmra.mrb[234].mxu0 %vm733_vm2, %v19387_v45 }
0x29f4   :  { %13581 = vmatprep.mubr.msk.f32.mxu0 %vm733_vm2, %v19392_v9 }
0x29f7   :  { %13582 = vmatmul.mubr.msk.f32.vlgmr.msra.gmra.mrb[230].mxu0 %vm733_vm2, %v19401_v56 }
0x29f8   :  { %13584 = vmatprep.mubr.msk.f32.mxu0 %vm733_vm2, %v19406_v40 }
0x29fb   :  { %13585 = vmatmul.mubr.msk.f32.gmra.mrb[232].mxu0 %vm733_vm2, %v19415_v6  ;;  %v9414_v6 = vld [vmem:[%s19739_s1 + $0x58] sm:$0xff] }
0x29fc   :  { %13587 = vmatprep.mubr.msk.f32.mxu0 %vm733_vm2, %v19420_v17  ;;  %v9407_v17 = vld [vmem:[%s19739_s1 + $0x20] sm:$0xff] }
0x29fd   :  { %v14726_v53 = vpack.c.bf16 %v9408_v41, %v9407_v17  ;;  %v9412_v17 = vld [vmem:[%s19739_s1 + $0x48] sm:$0xff] }
0x29ff   :  { %13588 = vmatmul.mubr.msk.f32.gmra.mrb[236].mxu0 %vm733_vm2, %v19429_v44  ;;  %v14722_v44 = vpack.c.bf16 %v9406_v46, %v9405_v11  ;;  %v9410_v11 = vld [vmem:[%s19739_s1 + $0x38] sm:$0xff]  ;;  %v9411_v46 = vld [vmem:[%s19739_s1 + $0x40] sm:$0xff] }
0x2a00   :  { %v14734_v41 = vpack.c.bf16 %v9412_v17, %v9411_v46  ;;  %v9417_v17 = vld [vmem:[%s19739_s1 + $0x70] sm:$0xff] }
0x2a01   :  { %14723 = vmatprep.subr.bf16.mxu1 %v14722_v44 }
0x2a02   :  { %14725 = vmatpush3.bf16.msra.mxu1 %v14722_v44  ;;  %v14730_v44 = vpack.c.bf16 %v9410_v11, %v9409_v7  ;;  %v9415_v11 = vld [vmem:[%s19739_s1 + $0x60] sm:$0xff] }
0x2a03   :  { %14727 = vmatprep.subr.bf16.mxu1 %v14726_v53 }
0x2a06   :  { %14729 = vmatpush3.bf16.msra.mxu1 %v14726_v53  ;;  %v9413_v53 = vld [vmem:[%s19739_s1 + $0x50] sm:$0xff] }
0x2a07   :  { %14731 = vmatprep.subr.bf16.mxu1 %v14730_v44  ;;  %v14738_v7 = vpack.c.bf16 %v9414_v6, %v9413_v53  ;;  %v9418_v6 = vld [vmem:[%s19739_s1 + $0x78] sm:$0xff] }
0x2a08   :  { %v14746_v53 = vpack.c.bf16 %v9418_v6, %v9417_v17  ;;  %v19498_v17 = vld [vmem:[%s19751_s13] sm:$0xff] }
0x2a09   :  { %20661 = vst [vmem:[#allocation55_spill] sm:$0xff] %v19498_v17 }
0x2a0a   :  { %14733 = vmatpush3.bf16.msra.mxu1 %v14730_v44  ;;  %v9416_v44 = vld [vmem:[%s19739_s1 + $0x68] sm:$0xff] }
0x2a0b   :  { %14735 = vmatprep.subr.bf16.mxu1 %v14734_v41  ;;  %v14742_v46 = vpack.c.bf16 %v9416_v44, %v9415_v11  ;;  %v9239_v11 = vld [vmem:[%s19752_s14 + $0x8] sm:$0xff] }
0x2a0e   :  { %14737 = vmatpush3.bf16.msra.mxu1 %v14734_v41  ;;  %v9114_v41 = vld [vmem:[%s19751_s13 + $0x8] sm:$0xff] }
0x2a0f   :  { %14739 = vmatprep.subr.bf16.mxu1 %v14738_v7  ;;  %v19487_v56 = vadd.f32 %v9239_v11, %v9114_v41  ;;  %v19504_v41 = vld [vmem:[%s19752_s14] sm:$0xff] }
0x2a10   :  { %20662 = vst [vmem:[#allocation61_spill] sm:$0xff] %v19504_v41 }
0x2a11   :  { %20660 = vst [vmem:[#allocation60_spill] sm:$0xff] %v19487_v56 }
0x2a12   :  { %14741 = vmatpush3.bf16.msra.mxu1 %v14738_v7  ;;  %v9116_v7 = vld [vmem:[%s19751_s13 + $0x18] sm:$0xff] }
0x2a13   :  { %14743 = vmatprep.subr.bf16.mxu1 %v14742_v46 }
0x2a16   :  { %14745 = vmatpush3.bf16.msra.mxu1 %v14742_v46  ;;  %v9241_v46 = vld [vmem:[%s19752_s14 + $0x18] sm:$0xff] }
0x2a17   :  { %14747 = vmatprep.subr.bf16.mxu1 %v14746_v53  ;;  %v19506_v11 = vadd.f32 %v9241_v46, %v9116_v7  ;;  %v19519_v7 = vld [vmem:[%s19752_s14 + $0x10] sm:$0xff] }
0x2a18   :  { %20665 = vst [vmem:[#allocation64_spill] sm:$0xff] %v19519_v7 }
0x2a19   :  { %20663 = vst [vmem:[#allocation62_spill] sm:$0xff] %v19506_v11 }
0x2a1a   :  { %14749 = vmatpush3.bf16.msra.mxu1 %v14746_v53 }
0x2ac6   :  { %v13576_v44 = vpop.f32.mrb[234].mxu0 }
0x2ac7   :  { %v9223_v40 = vpop.f32.mrb[235].mxu0 }
0x2aca   :  { %v13583_v6 = vpop.f32.mrb[230].mxu0 }
0x2acb   :  { %v14895_v53 = vadd.f32 %v19487_v56, %v13583_v6  ;;  %v9328_v9 = vpop.f32.mrb[231].mxu0 }
0x2acc   :  { %v14896_v45 = vadd.f32 %v9328_v9, %v19498_v17 }
0x2acd   :  { %v10862_v2 = vmul.f32 -1.442695, %v14895_v53 }
0x2ace   :  { %v14897_v4 = vadd.f32 %v14896_v45, %v19504_v41  ;;  %v13586_v28 = vpop.f32.mrb[232].mxu0 }
0x2acf   :  { %15111 = vpow2.f32 %v10862_v2  ;;  %v14899_v6 = vadd.f32 %v19506_v11, %v13586_v28  ;;  %v9338_v56 = vpop.f32.mrb[233].mxu0 }
0x2ad0   :  { %v10861_v46 = vmul.f32 -1.442695, %v14897_v4  ;;  %v14900_v9 = vadd.f32 %v9338_v56, %v19512_v14  ;;  %v19526_v4 = vld [vmem:[%s19752_s14 + $0x28] sm:$0xff] }
0x2ad1   :  { %v10864_v53 = vmul.f32 -1.442695, %v14899_v6  ;;  %20666 = vst [vmem:[#allocation65_spill] sm:$0xff] %v19526_v4 }
0x2ad2   :  { %15113 = vpow2.f32 %v10861_v46  ;;  %v14901_v17 = vadd.f32 %v14900_v9, %v19519_v7  ;;  %v13589_v15 = vpop.f32.mrb[236].mxu0 }
0x2ad3   :  { %v9348_v52 = vpop.f32.mrb[237].mxu0  ;;  %15115 = vpow2.f32 %v10864_v53  ;;  %v9354_v46 = vadd.f32 %v13589_v15, %v19526_v4 }
0x2ad4   :  { %v10863_v45 = vmul.f32 -1.442695, %v14901_v17  ;;  %v19532_v17 = vld [vmem:[%s19752_s14 + $0x20] sm:$0xff] }
0x2ad5   :  { %20667 = vst [vmem:[#allocation66_spill] sm:$0xff] %v19532_v17  ;;  %v9349_v53 = vadd.f32 %v9348_v52, %v19532_v17 }
0x2ad6   :  { %15117 = vpow2.f32 %v10863_v45 }
0x2ad9   :  { %v15112_v2 = vpop.eup %15111 }
0x2ada   :  { %v9366_v28 = vadd.f32 1.0, %v15112_v2 }
0x2adc   :  { %v15114_v11 = vpop.eup %15113  ;;  %15119 = vrcp.f32 %v9366_v28 }
0x2add   :  { %v9365_v41 = vadd.f32 1.0, %v15114_v11  ;;  %v15116_v1 = vpop.eup %15115  ;;  %v19537_v11 = vld [vmem:[%s19751_s13 + $0x28] sm:$0xff] }
0x2ade   :  { %v9380_v6 = vadd.f32 1.0, %v15116_v1  ;;  %20668 = vst [vmem:[#allocation67_spill] sm:$0xff] %v19537_v11  ;;  %v9229_v45 = vadd.f32 %v13576_v44, %v19537_v11  ;;  %v19544_v1 = vld [vmem:[%s19751_s13 + $0x20] sm:$0xff] }
0x2adf   :  { %15121 = vrcp.f32 %v9365_v41  ;;  %v9224_v4 = vadd.f32 %v9223_v40, %v19544_v1 }
0x2ae0   :  { %v15118_v56 = vpop.eup %15117  ;;  %15123 = vrcp.f32 %v9380_v6 }
0x2ae1   :  { %v9379_v9 = vadd.f32 1.0, %v15118_v56 }
0x2ae3   :  { %15125 = vrcp.f32 %v9379_v9 }
0x2ae6   :  { %v15120_v41 = vpop.eup %15119 }
0x2ae7   :  { %v9386_v15 = vmul.f32 %v15120_v41, %v9354_v46 }
0x2ae9   :  { %v15122_v2 = vpop.eup %15121  ;;  %v9388_v28 = vadd.f32 %v9386_v15, %v9229_v45  ;;  %v20687_v45 = vld [vmem:[#allocation22_spill] sm:$0xff]  ;;  %v20688_v15 = vld [vmem:[#allocation23_spill] sm:$0xff] }
0x2aea   :  { %v9385_v7 = vmul.f32 %v15122_v2, %v9349_v53  ;;  %v15124_v56 = vpop.eup %15123  ;;  %v20686_v53 = vld [vmem:[#allocation21_spill] sm:$0xff]  ;;  %v20689_v2 = vld [vmem:[#allocation24_spill] sm:$0xff] }
0x2aeb   :  { %15127 = vtanh.f32 %v9388_v28  ;;  %v9392_v17 = vsub.f32 1.0, %v15124_v56  ;;  %v9396_v22 = vmul.f32 %v15124_v56, %v18988_v20  ;;  %v9494_v20 = vld [vmem:[%s19747_s9] sm:$0xff]  ;;  %v20690_v28 = vld [vmem:[#allocation25_spill] sm:$0xff]  ;;  %v20691_v56 = vld [vmem:[#allocation26_spill] sm:$0xff] }
0x2aec   :  { %v9387_v14 = vadd.f32 %v9385_v7, %v9224_v4  ;;  %13629 = vmatprep.mubr.msk.f32.mxu0 %vm733_vm2, %v9494_v20  ;;  %v20681_v7 = vld [vmem:[#allocation16_spill] sm:$0xff]  ;;  %v20682_v4 = vld [vmem:[#allocation17_spill] sm:$0xff] }
0x2aed   :  { %v15126_v52 = vpop.eup %15125 }
0x2aee   :  { %15129 = vtanh.f32 %v9387_v14  ;;  %v9391_v58 = vsub.f32 1.0, %v15126_v52  ;;  %v9395_v41 = vmul.f32 %v15126_v52, %v18992_v23  ;;  %v20692_v52 = vld [vmem:[#allocation27_spill] sm:$0xff] }
0x2af5   :  { %v15128_v44 = vpop.eup %15127 }
0x2af6   :  { %v9394_v11 = vmul.f32 %v15128_v44, %v9392_v17  ;;  %v20683_v17 = vld [vmem:[#allocation18_spill] sm:$0xff] }
0x2af8   :  { %v15130_v31 = vpop.eup %15129  ;;  %v9398_v6 = vadd.f32 %v9396_v22, %v9394_v11  ;;  %v20680_v22 = vld [vmem:[#allocation15_spill] sm:$0xff] }
0x2af9   :  { %v9393_v46 = vmul.f32 %v15130_v31, %v9391_v58  ;;  %v9496_v58 = vld [vmem:[%s19747_s9 + $0x10] sm:$0xff]  ;;  %v20684_v11 = vld [vmem:[#allocation19_spill] sm:$0xff] }
0x2afa   :  { %v19550_v40 = vadd.f32 %v9398_v6, %v18778_v26  ;;  %v20693_v6 = vld [vmem:[#allocation30_spill] sm:$0xff] }
0x2afb   :  { %v9397_v9 = vadd.f32 %v9395_v41, %v9393_v46 }
0x2afc   :  { %9402 = vst [vmem:[#allocation8 + $0x98] sm:$0xff] %v19550_v40 }
0x2afd   :  { %v19554_v14 = vadd.f32 %v9397_v9, %v18785_v19  ;;  %v9495_v19 = vld [vmem:[%s19747_s9 + $0x8] sm:$0xff] }
0x2aff   :  { %9401 = vst [vmem:[#allocation8 + $0x90] sm:$0xff] %v19554_v14  ;;  %13622 = vmatprep.mubr.f32.mxu1 %v19554_v14 }
0x2b00   :  { %13623 = vmatmul.mubr.f32.vlgmr.msra.gmra.mrb[234].mxu1 %v19550_v40 }
0x2b01   :  { %9979 = vmatprep.mubr.f32.mxu1 %v19202_v32  ;;  %v9497_v32 = vld [vmem:[%s19747_s9 + $0x18] sm:$0xff]  ;;  %s15231_s9 = smov [#allocation8]  }
0x2b02   :  { %s10384_s1 = sshll.u32 %s15231_s9, 4  ;;  %s10385_s1 = int_to_ptr.vmem [resolvable:$true] %s10384_s1 }
0x2b03   :  { %s15199_s6 = scalar_lea.vmem %s10385_s1, 2816  ;;  %p15204_p3 = scmp.lt.s32.totalorder %s10385_s1, %s10385_s1 }
0x2b04   :  { %p15200_p2 = scmp.ne.s32.totalorder %s10385_s1, %s15199_s6  ;;  %p15205_p4 = scmp.lt.s32.totalorder %s15199_s6, %s15199_s6 }
0x2b06   :  { %p15206_p5 = por %p15205_p4, %p15204_p3 }
0x2b08   :  { %p15207_p6 = pnand %p15206_p5, %p15200_p2 }
0x2bd3   :  { %v13624_v26 = vpop.f32.mrb[234].mxu1 }
0x2bd4   :  { %v9485_v23 = vpop.f32.mrb[235].mxu1 }
0x2bd5   :  { %v14750_v31 = vpack.c.bf16 %v13624_v26, %v9485_v23  ;;  %v20694_v23 = vld [vmem:[#allocation32_spill] sm:$0xff] }
0x2bd7   :  { %14751 = vmatprep.subr.bf16.mxu0 %v14750_v31 }
0x2bd8   :  { %14753 = vmatpush3.bf16.msra.mxu0 %v14750_v31 }
0x2bd9   :  { %14787 = vmatprep.subr.bf16.mxu0 %v19214_v16 }
0x2bdb   :  { %13630 = vmatmul.mubr.msk.f32.vlgmr.msra.gmra.mrb[238].mxu0 %vm733_vm2, %v9495_v19 }
0x2bdc   :  { %13632 = vmatprep.mubr.msk.f32.mxu0 %vm733_vm2, %v9496_v58  ;;  %14789 = vmatpush3.bf16.msra.mxu0 %v19214_v16  ;;  %v20676_v16 = vld [vmem:[#allocation12_spill] sm:$0xff] }
0x2bdd   :  { %14791 = vmatprep.subr.bf16.mxu0 %v19219_v8 }
0x2bdf   :  { %13633 = vmatmul.mubr.msk.f32.gmra.mrb[240].mxu0 %vm733_vm2, %v9497_v32 }
0x2be0   :  { %13635 = vmatprep.mubr.msk.f32.mxu0 %vm733_vm2, %v19004_v25  ;;  %14793 = vmatpush3.bf16.msra.mxu0 %v19219_v8  ;;  %v20669_v25 = vld [vmem:[#allocation39_spill] sm:$0xff]  ;;  %v20674_v8 = vld [vmem:[#allocation41_spill] sm:$0xff] }
0x2be1   :  { %14795 = vmatprep.subr.bf16.mxu0 %v19230_v62 }
0x2be3   :  { %13636 = vmatmul.mubr.msk.f32.gmra.mrb[242].mxu0 %vm733_vm2, %v19013_v24  ;;  %v20670_v24 = vld [vmem:[#allocation28_spill] sm:$0xff] }
0x2be4   :  { %13638 = vmatprep.mubr.msk.f32.mxu0 %vm733_vm2, %v19018_v10  ;;  %14797 = vmatpush3.bf16.msra.mxu0 %v19230_v62  ;;  %v20671_v10 = vld [vmem:[#allocation37_spill] sm:$0xff]  ;;  %v20677_v62 = vld [vmem:[#allocation35_spill] sm:$0xff] }
0x2be5   :  { %14799 = vmatprep.subr.bf16.mxu0 %v19240_v47 }
0x2be7   :  { %13639 = vmatmul.mubr.msk.f32.gmra.mrb[244].mxu0 %vm733_vm2, %v19027_v49  ;;  %v20672_v49 = vld [vmem:[#allocation33_spill] sm:$0xff] }
0x2be8   :  { %13641 = vmatprep.mubr.msk.f32.mxu0 %vm733_vm2, %v19032_v18  ;;  %14801 = vmatpush3.bf16.msra.mxu0 %v19240_v47  ;;  %v20673_v18 = vld [vmem:[#allocation29_spill] sm:$0xff] }
0x2be9   :  { %14803 = vmatprep.subr.bf16.mxu0 %v19250_v21  ;;  %v20678_v47 = vld [vmem:[#allocation13_spill] sm:$0xff] }
0x2beb   :  { %13642 = vmatmul.mubr.msk.f32.gmra.mrb[246].mxu0 %vm733_vm2, %v19041_v43  ;;  %v20675_v43 = vld [vmem:[#allocation31_spill] sm:$0xff] }
0x2bec   :  { %13644 = vmatprep.mubr.msk.f32.mxu0 %vm733_vm2, %v20669_v25  ;;  %14805 = vmatpush3.bf16.msra.mxu0 %v19250_v21  ;;  %v20679_v21 = vld [vmem:[#allocation14_spill] sm:$0xff] }
0x2bed   :  { %14807 = vmatprep.subr.bf16.mxu0 %v20670_v24 }
0x2bef   :  { %13645 = vmatmul.mubr.msk.f32.gmra.mrb[248].mxu0 %vm733_vm2, %v20671_v10 }
0x2bf0   :  { %13647 = vmatprep.mubr.msk.f32.mxu0 %vm733_vm2, %v20672_v49  ;;  %14809 = vmatpush3.bf16.msra.mxu0 %v20670_v24  ;;  %v20695_v24 = vld [vmem:[#allocation34_spill] sm:$0xff] }
0x2bf1   :  { %14811 = vmatprep.subr.bf16.mxu0 %v20673_v18 }
0x2bf3   :  { %13648 = vmatmul.mubr.msk.f32.gmra.mrb[250].mxu0 %vm733_vm2, %v20674_v8 }
0x2bf4   :  { %13650 = vmatprep.mubr.msk.f32.mxu0 %vm733_vm2, %v20675_v43  ;;  %14813 = vmatpush3.bf16.msra.mxu0 %v20673_v18 }
0x2bf5   :  { %14815 = vmatprep.subr.bf16.mxu0 %v19331_v54 }
0x2bf7   :  { %13651 = vmatmul.mubr.msk.f32.gmra.mrb[252].mxu0 %vm733_vm2, %v20676_v16  ;;  %v20696_v16 = vld [vmem:[#allocation36_spill] sm:$0xff] }
0x2bf8   :  { %13653 = vmatprep.mubr.msk.f32.mxu0 %vm733_vm2, %v20677_v62  ;;  %14817 = vmatpush3.bf16.msra.mxu0 %v19331_v54  ;;  %v20685_v54 = vld [vmem:[#allocation20_spill] sm:$0xff] }
0x2bfb   :  { %13654 = vmatmul.mubr.msk.f32.gmra.mrb[254].mxu0 %vm733_vm2, %v20678_v47 }
0x2bfc   :  { %13656 = vmatprep.mubr.msk.f32.mxu0 %vm733_vm2, %v20679_v21 }
0x2bff   :  { %13657 = vmatmul.mubr.msk.f32.gmra.mrb[0].mxu0 %vm733_vm2, %v20680_v22 }
0x2c00   :  { %13659 = vmatprep.mubr.msk.f32.mxu0 %vm733_vm2, %v20681_v7  ;;  %v20697_v7 = vld [vmem:[#allocation38_spill] sm:$0xff] }
0x2c03   :  { %13660 = vmatmul.mubr.msk.f32.gmra.mrb[2].mxu0 %vm733_vm2, %v20682_v4 }
0x2c04   :  { %13662 = vmatprep.mubr.msk.f32.mxu0 %vm733_vm2, %v20683_v17 }
0x2c07   :  { %13663 = vmatmul.mubr.msk.f32.gmra.mrb[4].mxu0 %vm733_vm2, %v20684_v11 }
0x2c08   :  { %13665 = vmatprep.mubr.msk.f32.mxu0 %vm733_vm2, %v20685_v54 }
0x2c0b   :  { %13666 = vmatmul.mubr.msk.f32.gmra.mrb[6].mxu0 %vm733_vm2, %v20686_v53  ;;  %v20698_v53 = vld [vmem:[#allocation40_spill] sm:$0xff] }
0x2c0c   :  { %13668 = vmatprep.mubr.msk.f32.mxu0 %vm733_vm2, %v20687_v45 }
0x2c0f   :  { %13669 = vmatmul.mubr.msk.f32.gmra.mrb[8].mxu0 %vm733_vm2, %v20688_v15 }
0x2c10   :  { %13671 = vmatprep.mubr.msk.f32.mxu0 %vm733_vm2, %v20689_v2 }
0x2c13   :  { %13672 = vmatmul.mubr.msk.f32.gmra.mrb[10].mxu0 %vm733_vm2, %v20690_v28 }
0x2c14   :  { %13674 = vmatprep.mubr.msk.f32.mxu0 %vm733_vm2, %v20691_v56  ;;  %v20699_v56 = vld [vmem:[#allocation42_spill] sm:$0xff] }
0x2c17   :  { %13675 = vmatmul.mubr.msk.f32.gmra.mrb[12].mxu0 %vm733_vm2, %v20692_v52 }
0x2cae   :  { %v13631_v44 = vpop.f32.mrb[238].mxu0 }
0x2caf   :  { %v9884_v46 = vmul.f32 %v13631_v44, %v20693_v6  ;;  %v9688_v41 = vpop.f32.mrb[239].mxu0 }
0x2cb0   :  { %v9883_v9 = vmul.f32 %v9688_v41, %v20332_v30 }
0x2cb2   :  { %v14756_v20 = vpack.c.bf16 %v9884_v46, %v9883_v9  ;;  %v13634_v26 = vpop.f32.mrb[240].mxu0 }
0x2cb3   :  { %v9886_v31 = vmul.f32 %v13634_v26, %v20694_v23  ;;  %v9698_v19 = vpop.f32.mrb[241].mxu0 }
0x2cb4   :  { %v9885_v58 = vmul.f32 %v9698_v19, %v20334_v0 }
0x2cb6   :  { %v14760_v32 = vpack.c.bf16 %v9886_v31, %v9885_v58  ;;  %v13637_v25 = vpop.f32.mrb[242].mxu0 }
0x2cb7   :  { %v9888_v10 = vmul.f32 %v13637_v25, %v20695_v24  ;;  %v9708_v49 = vpop.f32.mrb[243].mxu0 }
0x2cb8   :  { %v9887_v18 = vmul.f32 %v9708_v49, %v20336_v36 }
0x2cba   :  { %v14764_v8 = vpack.c.bf16 %v9888_v10, %v9887_v18  ;;  %v13640_v43 = vpop.f32.mrb[244].mxu0 }
0x2cbb   :  { %v9890_v62 = vmul.f32 %v13640_v43, %v20696_v16  ;;  %v9718_v47 = vpop.f32.mrb[245].mxu0 }
0x2cbc   :  { %v9889_v30 = vmul.f32 %v9718_v47, %v20216_v27 }
0x2cbe   :  { %v14768_v21 = vpack.c.bf16 %v9890_v62, %v9889_v30  ;;  %v13643_v22 = vpop.f32.mrb[246].mxu0 }
0x2cbf   :  { %v9892_v4 = vmul.f32 %v13643_v22, %v20697_v7  ;;  %v9728_v17 = vpop.f32.mrb[247].mxu0 }
0x2cc0   :  { %v9891_v0 = vmul.f32 %v9728_v17, %v20275_v60 }
0x2cc2   :  { %v14772_v11 = vpack.c.bf16 %v9892_v4, %v9891_v0  ;;  %v13646_v54 = vpop.f32.mrb[248].mxu0 }
0x2cc3   :  { %v9894_v45 = vmul.f32 %v13646_v54, %v20698_v53  ;;  %v9738_v15 = vpop.f32.mrb[249].mxu0  ;;  %v20702_v53 = vld [vmem:[#allocation44_spill] sm:$0xff] }
0x2cc4   :  { %v9893_v36 = vmul.f32 %v9738_v15, %v20277_v63 }
0x2cc6   :  { %v14776_v2 = vpack.c.bf16 %v9894_v45, %v9893_v36  ;;  %v13649_v28 = vpop.f32.mrb[250].mxu0 }
0x2cc7   :  { %v9896_v52 = vmul.f32 %v13649_v28, %v20699_v56  ;;  %v9748_v44 = vpop.f32.mrb[251].mxu0  ;;  %v20704_v56 = vld [vmem:[#allocation46_spill] sm:$0xff] }
0x2cc8   :  { %v9895_v27 = vmul.f32 %v9748_v44, %v20222_v13 }
0x2cca   :  { %v14780_v6 = vpack.c.bf16 %v9896_v52, %v9895_v27  ;;  %v13652_v46 = vpop.f32.mrb[252].mxu0  ;;  %v20705_v27 = vld [vmem:[#allocation70_spill] sm:$0xff] }
0x2ccb   :  { %v9898_v41 = vmul.f32 %v13652_v46, %v20223_v29  ;;  %v9758_v9 = vpop.f32.mrb[253].mxu0 }
0x2ccc   :  { %v9897_v60 = vmul.f32 %v9758_v9, %v20224_v5  ;;  %v20706_v9 = vld [vmem:[#allocation56_spill] sm:$0xff] }
0x2cce   :  { %v14784_v26 = vpack.c.bf16 %v9898_v41, %v9897_v60  ;;  %v13655_v23 = vpop.f32.mrb[254].mxu0  ;;  %v14822_v41 = vpack.c.bf16 %v19550_v40, %v19554_v14  ;;  %v20707_v60 = vld [vmem:[#allocation57_spill] sm:$0xff] }
0x2ccf   :  { %v9900_v31 = vmul.f32 %v13655_v23, %v15984_v3  ;;  %v9768_v19 = vpop.f32.mrb[255].mxu0  ;;  %v20709_v23 = vld [vmem:[#allocation49_spill] sm:$0xff] }
0x2cd0   :  { %v9899_v63 = vmul.f32 %v9768_v19, %v20225_v38  ;;  %v20711_v19 = vld [vmem:[#allocation58_spill] sm:$0xff] }
0x2cd2   :  { %v14754_v58 = vpack.c.bf16 %v9900_v31, %v9899_v63  ;;  %v13658_v25 = vpop.f32.mrb[0].mxu0  ;;  %v20710_v31 = vld [vmem:[#allocation50_spill] sm:$0xff]  ;;  %v20712_v63 = vld [vmem:[#allocation51_spill] sm:$0xff] }
0x2cd3   :  { %v9902_v24 = vmul.f32 %v13658_v25, %v16000_v12  ;;  %v9778_v10 = vpop.f32.mrb[1].mxu0  ;;  %v20714_v25 = vld [vmem:[#allocation59_spill] sm:$0xff] }
0x2cd4   :  { %v9901_v13 = vmul.f32 %v9778_v10, %v16003_v50  ;;  %14755 = vmatprep.subr.bf16.mxu1 %v14754_v58  ;;  %v20713_v58 = vld [vmem:[#allocation52_spill] sm:$0xff]  ;;  %v20716_v10 = vld [vmem:[#allocation54_spill] sm:$0xff] }
0x2cd5   :  { %14757 = vmatpush3.bf16.msra.mxu1 %v14756_v20 }
0x2cd6   :  { %v14758_v29 = vpack.c.bf16 %v9902_v24, %v9901_v13  ;;  %v13661_v49 = vpop.f32.mrb[2].mxu0  ;;  %v20715_v24 = vld [vmem:[#allocation53_spill] sm:$0xff] }
0x2cd7   :  { %v9904_v5 = vmul.f32 %v13661_v49, %v16012_v51  ;;  %v9788_v18 = vpop.f32.mrb[3].mxu0 }
0x2cd8   :  { %v9903_v43 = vmul.f32 %v9788_v18, %v16015_v48  ;;  %14759 = vmatprep.subr.bf16.mxu1 %v14758_v29 }
0x2cd9   :  { %14761 = vmatpush3.bf16.msra.mxu1 %v14760_v32 }
0x2cda   :  { %v14762_v3 = vpack.c.bf16 %v9904_v5, %v9903_v43  ;;  %v13664_v38 = vpop.f32.mrb[4].mxu0  ;;  %v20717_v5 = vld [vmem:[#allocation60_spill] sm:$0xff] }
0x2cdb   :  { %v9906_v16 = vmul.f32 %v13664_v38, %v16027_v35  ;;  %v9798_v62 = vpop.f32.mrb[5].mxu0 }
0x2cdc   :  { %v9905_v12 = vmul.f32 %v9798_v62, %v16030_v34  ;;  %14763 = vmatprep.subr.bf16.mxu1 %v14762_v3  ;;  %v20718_v3 = vld [vmem:[#allocation55_spill] sm:$0xff]  ;;  %v20719_v62 = vld [vmem:[#allocation61_spill] sm:$0xff] }
0x2cdd   :  { %14765 = vmatpush3.bf16.msra.mxu1 %v14764_v8 }
0x2cde   :  { %v14766_v50 = vpack.c.bf16 %v9906_v16, %v9905_v12  ;;  %v13667_v20 = vpop.f32.mrb[6].mxu0 }
0x2cdf   :  { %v9908_v47 = vmul.f32 %v13667_v20, %v16042_v61  ;;  %v9808_v30 = vpop.f32.mrb[7].mxu0  ;;  %v20720_v20 = vld [vmem:[#allocation62_spill] sm:$0xff] }
0x2ce0   :  { %v9907_v51 = vmul.f32 %v9808_v30, %v16045_v33  ;;  %14767 = vmatprep.subr.bf16.mxu1 %v14766_v50 }
0x2ce1   :  { %14769 = vmatpush3.bf16.msra.mxu1 %v14768_v21 }
0x2ce2   :  { %v14770_v48 = vpack.c.bf16 %v9908_v47, %v9907_v51  ;;  %v13670_v32 = vpop.f32.mrb[8].mxu0 }
0x2ce3   :  { %v9910_v22 = vmul.f32 %v13670_v32, %v16057_v37  ;;  %v9818_v7 = vpop.f32.mrb[9].mxu0 }
0x2ce4   :  { %v9909_v35 = vmul.f32 %v9818_v7, %v16060_v59  ;;  %14771 = vmatprep.subr.bf16.mxu1 %v14770_v48  ;;  %v20721_v48 = vld [vmem:[#allocation63_spill] sm:$0xff]  ;;  %v20722_v7 = vld [vmem:[#allocation64_spill] sm:$0xff] }
0x2ce5   :  { %14773 = vmatpush3.bf16.msra.mxu1 %v14772_v11  ;;  %v20700_v11 = vld [vmem:[#allocation47_spill] sm:$0xff] }
0x2ce6   :  { %v14774_v34 = vpack.c.bf16 %v9910_v22, %v9909_v35  ;;  %v13673_v8 = vpop.f32.mrb[10].mxu0 }
0x2ce7   :  { %v9912_v4 = vmul.f32 %v13673_v8, %v16072_v42  ;;  %v9828_v17 = vpop.f32.mrb[11].mxu0  ;;  %v20701_v42 = vld [vmem:[#allocation43_spill] sm:$0xff] }
0x2ce8   :  { %v9911_v61 = vmul.f32 %v9828_v17, %v16075_v57  ;;  %14775 = vmatprep.subr.bf16.mxu1 %v14774_v34  ;;  %v20703_v57 = vld [vmem:[#allocation45_spill] sm:$0xff] }
0x2ce9   :  { %14777 = vmatpush3.bf16.msra.mxu1 %v14776_v2 }
0x2cea   :  { %v14778_v33 = vpack.c.bf16 %v9912_v4, %v9911_v61  ;;  %v13676_v21 = vpop.f32.mrb[12].mxu0 }
0x2ceb   :  { %v9914_v0 = vmul.f32 %v13676_v21, %v16087_v39  ;;  %v9838_v54 = vpop.f32.mrb[13].mxu0 }
0x2cec   :  { %v9913_v37 = vmul.f32 %v9838_v54, %v20585_v55  ;;  %14779 = vmatprep.subr.bf16.mxu1 %v14778_v33 }
0x2ced   :  { %14781 = vmatpush3.bf16.msra.mxu1 %v14780_v6 }
0x2cee   :  { %v14782_v59 = vpack.c.bf16 %v9914_v0, %v9913_v37 }
0x2cf0   :  { %14783 = vmatprep.subr.bf16.mxu1 %v14782_v59  ;;  %v20723_v59 = vld [vmem:[#allocation65_spill] sm:$0xff] }
0x2cf1   :  { %14785 = vmatpush3.bf16.msra.mxu1 %v14784_v26  ;;  %v20708_v26 = vld [vmem:[#allocation48_spill] sm:$0xff] }
0x2cf4   :  { %9980 = vmatmul.mubr.f32.vlgmr.msra.gmra.mrb[236].mxu1 %v20700_v11 }
0x2cf5   :  { %9984 = vmatprep.mubr.f32.mxu1 %v20701_v42 }
0x2cf8   :  { %9985 = vmatmul.mubr.f32.gmra.mrb[238].mxu1 %v20702_v53 }
0x2cf9   :  { %13716 = vmatprep.mubr.msk.f32.mxu1 %vm733_vm2, %v20703_v57  ;;  %v20724_v57 = vld [vmem:[#allocation66_spill] sm:$0xff] }
0x2dc7   :  { %v12154_v45 = vpop.f32.mrb[236].mxu1 }
0x2dc8   :  { %v12155_v15 = vpop.f32.mrb[237].mxu1 }
0x2dc9   :  { %v12156_v39 = vadd.f32 %v12155_v15, %v12154_v45  ;;  %v20725_v15 = vld [vmem:[#allocation67_spill] sm:$0xff] }
0x2dcb   :  { %v12157_v36 = vpop.f32.mrb[238].mxu1  ;;  %13709 = vmatprep.mubr.f32.mxu0 %v12156_v39 }
0x2dcc   :  { %v12158_v55 = vpop.f32.mrb[239].mxu1 }
0x2dcd   :  { %v12159_v2 = vadd.f32 %v12158_v55, %v12157_v36 }
0x2dcf   :  { %13710 = vmatmul.mubr.f32.vlgmr.msra.gmra.mrb[14].mxu0 %v12159_v2 }
0x2ea2   :  { %v13711_v28 = vpop.f32.mrb[14].mxu0 }
0x2ea3   :  { %v10084_v52 = vmul.f32 %v13711_v28, %v20704_v56  ;;  %v10072_v44 = vpop.f32.mrb[15].mxu0 }
0x2ea4   :  { %v10083_v6 = vmul.f32 %v10072_v44, %v20705_v27 }
0x2ea6   :  { %v14818_v46 = vpack.c.bf16 %v10084_v52, %v10083_v6 }
0x2ea8   :  { %14819 = vmatprep.subr.bf16.mxu1 %v14818_v46 }
0x2ea9   :  { %14821 = vmatpush3.bf16.msra.mxu1 %v14818_v46 }
0x2eaa   :  { %14823 = vmatprep.subr.bf16.mxu1 %v14822_v41 }
0x2eac   :  { %13717 = vmatmul.mubr.msk.f32.vlgmr.msra.gmra.mrb[240].mxu1 %vm733_vm2, %v20706_v9 }
0x2ead   :  { %14825 = vmatpush3.bf16.msra.mxu1 %v14822_v41  ;;  %13719 = vmatprep.mubr.msk.f32.mxu1 %vm733_vm2, %v20707_v60 }
0x2eb0   :  { %13720 = vmatmul.mubr.msk.f32.gmra.mrb[242].mxu1 %vm733_vm2, %v20708_v26 }
0x2eb1   :  { %13722 = vmatprep.mubr.msk.f32.mxu1 %vm733_vm2, %v20709_v23 }
0x2eb4   :  { %13723 = vmatmul.mubr.msk.f32.gmra.mrb[244].mxu1 %vm733_vm2, %v20710_v31 }
0x2eb5   :  { %13729 = vmatprep.mubr.msk.f32.mxu1 %vm733_vm2, %v20711_v19 }
0x2eb8   :  { %13730 = vmatmul.mubr.msk.f32.vlgmr.msra.gmra.mrb[240].mxu1 %vm733_vm2, %v20712_v63 }
0x2eb9   :  { %13732 = vmatprep.mubr.msk.f32.mxu1 %vm733_vm2, %v20713_v58 }
0x2ebc   :  { %13733 = vmatmul.mubr.msk.f32.gmra.mrb[242].mxu1 %vm733_vm2, %v20714_v25 }
0x2ebd   :  { %13735 = vmatprep.mubr.msk.f32.mxu1 %vm733_vm2, %v20715_v24 }
0x2ec0   :  { %13736 = vmatmul.mubr.msk.f32.gmra.mrb[246].mxu1 %vm733_vm2, %v20716_v10 }
0x2f87   :  { %v13724_v13 = vpop.f32.mrb[244].mxu1 }
0x2f88   :  { %v10201_v29 = vpop.f32.mrb[245].mxu1  ;;  %v10207_v39 = vadd.f32 %v13724_v13, %v20725_v15 }
0x2f89   :  { %v10202_v28 = vadd.f32 %v10201_v29, %v19544_v1 }
0x2f8b   :  { %v13731_v49 = vpop.f32.mrb[240].mxu1 }
0x2f8c   :  { %v14903_v18 = vadd.f32 %v20717_v5, %v13731_v49  ;;  %v10306_v43 = vpop.f32.mrb[241].mxu1 }
0x2f8d   :  { %v14904_v38 = vadd.f32 %v10306_v43, %v20718_v3 }
0x2f8e   :  { %v10910_v16 = vmul.f32 -1.442695, %v14903_v18 }
0x2f8f   :  { %v14905_v12 = vadd.f32 %v14904_v38, %v20719_v62  ;;  %v13734_v50 = vpop.f32.mrb[242].mxu1 }
0x2f90   :  { %15131 = vpow2.f32 %v10910_v16  ;;  %v14907_v47 = vadd.f32 %v20720_v20, %v13734_v50  ;;  %v10316_v30 = vpop.f32.mrb[243].mxu1 }
0x2f91   :  { %v10909_v51 = vmul.f32 -1.442695, %v14905_v12  ;;  %v14908_v32 = vadd.f32 %v10316_v30, %v20721_v48 }
0x2f92   :  { %v10912_v22 = vmul.f32 -1.442695, %v14907_v47 }
0x2f93   :  { %15133 = vpow2.f32 %v10909_v51  ;;  %v14909_v35 = vadd.f32 %v14908_v32, %v20722_v7  ;;  %v13737_v34 = vpop.f32.mrb[246].mxu1 }
0x2f94   :  { %v10326_v8 = vpop.f32.mrb[247].mxu1  ;;  %15135 = vpow2.f32 %v10912_v22  ;;  %v10332_v11 = vadd.f32 %v13737_v34, %v20723_v59 }
0x2f95   :  { %v10911_v4 = vmul.f32 -1.442695, %v14909_v35  ;;  %v10327_v45 = vadd.f32 %v10326_v8, %v20724_v57 }
0x2f97   :  { %15137 = vpow2.f32 %v10911_v4 }
0x2f9a   :  { %v15132_v17 = vpop.eup %15131 }
0x2f9b   :  { %v10344_v61 = vadd.f32 1.0, %v15132_v17 }
0x2f9d   :  { %v15134_v33 = vpop.eup %15133  ;;  %15139 = vrcp.f32 %v10344_v61 }
0x2f9e   :  { %v10343_v21 = vadd.f32 1.0, %v15134_v33  ;;  %v15136_v0 = vpop.eup %15135 }
0x2f9f   :  { %v10358_v37 = vadd.f32 1.0, %v15136_v0 }
0x2fa0   :  { %15141 = vrcp.f32 %v10343_v21 }
0x2fa1   :  { %v15138_v54 = vpop.eup %15137  ;;  %15143 = vrcp.f32 %v10358_v37 }
0x2fa2   :  { %v10357_v53 = vadd.f32 1.0, %v15138_v54 }
0x2fa4   :  { %15145 = vrcp.f32 %v10357_v53 }
0x2fa7   :  { %v15140_v42 = vpop.eup %15139 }
0x2fa8   :  { %v10364_v36 = vmul.f32 %v15140_v42, %v10332_v11 }
0x2faa   :  { %v15142_v55 = vpop.eup %15141  ;;  %v10366_v2 = vadd.f32 %v10364_v36, %v10207_v39 }
0x2fab   :  { %v10363_v56 = vmul.f32 %v15142_v55, %v10327_v45  ;;  %v15144_v44 = vpop.eup %15143 }
0x2fac   :  { %15147 = vtanh.f32 %v10366_v2  ;;  %v10370_v6 = vsub.f32 1.0, %v15144_v44  ;;  %v10374_v41 = vmul.f32 %v15144_v44, %v19550_v40 }
0x2fad   :  { %v10365_v52 = vadd.f32 %v10363_v56, %v10202_v28 }
0x2fae   :  { %v15146_v27 = vpop.eup %15145 }
0x2faf   :  { %15149 = vtanh.f32 %v10365_v52  ;;  %v10369_v60 = vsub.f32 1.0, %v15146_v27  ;;  %v10373_v31 = vmul.f32 %v15146_v27, %v19554_v14 }
0x2fb6   :  { %v15148_v46 = vpop.eup %15147 }
0x2fb7   :  { %v10372_v9 = vmul.f32 %v15148_v46, %v10370_v6 }
0x2fb9   :  { %v15150_v26 = vpop.eup %15149  ;;  %v10376_v23 = vadd.f32 %v10374_v41, %v10372_v9 }
0x2fba   :  { %v10371_v1 = vmul.f32 %v15150_v26, %v10369_v60 }
0x2fbb   :  { %10378 = vst [vmem:[#allocation8 + $0xa8] sm:$0xff] %v10376_v23 }
0x2fbc   :  { %v10375_v19 = vadd.f32 %v10373_v31, %v10371_v1 }
0x2fbe   :  { %10377 = vst [vmem:[#allocation8 + $0xa0] sm:$0xff] %v10375_v19 }
0x2fbf   :  { %15210 = shalt.err (!%p15207_p6)
}
0x2fc0   :  { %s15211_s8 = scalar_lea.hbm %s19753_s15, 2816 }
0x2fc1   :  { %p15212_p7 = scmp.ne.s32.totalorder %s19753_s15, %s15211_s8  ;;  %p15215_p8 = scmp.lt.u32.totalorder %s15211_s8, %s19753_s15 }
0x2fc3   :  { %p15217_p9 = pnand %p15215_p8, %p15212_p7 }
0x2fc5   :  { %15220 = shalt.err (!%p15217_p9)
}
0x2fc6   :  { %10390 = dma.vmem_to_hbm [thread:$0]  %s10385_s1, 2816, %s19753_s15, [#allocation5], %s15228_s28, %s15228_s28, %s15229_s29  }
0x2fc7   :  { %15225 = dma.done.wait [#allocation5], 2816  }
0x2fc8   :  { %15226 = vsyncadd [#allocation5], 4294964480 }
0x2fc9   :  { %10394 = vsyncpa [#allocation4], 1 }
0x2fca   :  { %10395 = vsyncpa [#allocation7], 1 }
0x2fcb   :  { %10396 = vsyncpa [#allocation5], 1 }

</bundles_post_ra>
